<compile_context>
chip_gen: v7x
topology: tpu7x:2x2x1
jax: 0.10.0
libtpu: 0.0.40
codegen_flags: <defaults>
</compile_context>

<pallas_src>
import math

import jax
import jax.numpy as jnp
from jax import lax
from jax.experimental import pallas as pl
from jax.experimental.pallas import tpu as pltpu

# Small, TPU-friendly problem sizes consistent with the module's forward.
B, CIN, H, W = 2, 3, 16, 16
HW = H * W          # 256  (lane-dense axis)
FEAT = 32           # feature / context channels
HID = 32            # GRU hidden size
DM = 32             # motion-feature dim
ITERS = 4           # RAFT refinement iterations (only the last flow returned)


# ------------------------------ fused kernel -------------------------------

def raft_fused_kernel(x1_ref, x2_ref,
                      wft_ref, bf_ref, wct_ref, bc_ref,
                      wc_ref, wch_ref, wx_ref, whzr_ref, whq_ref,
                      wf_ref, bg_ref, wo_ref, bo_ref, wot_ref, bot_ref,
                      flow_ref):
    """Encoder -> correlation -> iterative GRU refinement, one batch element."""
    x1 = x1_ref[0]          # (CIN, HW)  lane-dense
    x2 = x2_ref[0]          # (CIN, HW)

    def encode_t(x, wt, b):
        # (CIN, HW) -> (FEAT, HW); K = CIN = 3 contraction as VPU broadcast-FMAs
        acc = wt[:, 0:1] * x[0:1, :]
        for k in range(1, CIN):
            acc = acc + wt[:, k:k + 1] * x[k:k + 1, :]
        return jnp.maximum(acc + b, 0.0)

    wft = wft_ref[...]                                  # (FEAT, CIN)
    bf = bf_ref[...]                                    # (FEAT, 1)
    f1t = encode_t(x1, wft, bf)                         # (FEAT, HW)
    f2t = encode_t(x2, wft, bf)                         # (FEAT, HW)
    ctxt = encode_t(x1, wct_ref[...], bc_ref[...])      # (FEAT, HW)

    f1 = jnp.transpose(f1t)                             # (HW, FEAT)
    ctx = jnp.transpose(ctxt)                           # (HW, FEAT)

    # All-pairs correlation: corr[i, j] = <f1_i, f2_j> / sqrt(FEAT)
    # f2 is kept transposed so no .T is materialized before the MXU.
    scale = jnp.float32(1.0 / math.sqrt(FEAT))
    corr = jnp.dot(f1, f2t, preferred_element_type=jnp.float32) * scale    # (HW, HW)

    # Motion features: dense projection of the correlation volume.
    mf = jnp.dot(corr, wc_ref[...], preferred_element_type=jnp.float32)    # (HW, DM)

    # Initial hidden state from the context features.
    h0 = jnp.tanh(jnp.dot(ctx, wch_ref[...],
                          preferred_element_type=jnp.float32))             # (HW, HID)

    # Hoisted loop-invariant input-gate term (mf never changes across iters).
    gxc = jnp.dot(mf, wx_ref[...],
                  preferred_element_type=jnp.float32) + bg_ref[...]        # (HW, 3*HID)
    gxc_z = gxc[:, 0 * HID:1 * HID]
    gxc_r = gxc[:, 1 * HID:2 * HID]
    gxc_q = gxc[:, 2 * HID:3 * HID]

    wf = wf_ref[...]                                    # (2, 3*HID)
    wf_z = wf[:, 0 * HID:1 * HID]
    wf_r = wf[:, 1 * HID:2 * HID]
    wf_q = wf[:, 2 * HID:3 * HID]

    whzr = whzr_ref[...]                                # (HID, 2*HID)
    whq = whq_ref[...]                                  # (HID, HID)
    wo = wo_ref[...]                                    # (HID, 2)
    bo = bo_ref[...]                                    # (1, 2)

    flow0 = jnp.zeros((HW, 2), jnp.float32)
    hsum0 = jnp.zeros((HW, HID), jnp.float32)

    def body(_, carry):
        h, flow, hsum = carry
        fx = flow[:, 0:1]                               # (HW, 1)
        fy = flow[:, 1:2]
        # flow contribution (K=2): VPU broadcast-FMAs, no MXU.
        gz = gxc_z + fx * wf_z[0:1, :] + fy * wf_z[1:2, :]
        gr = gxc_r + fx * wf_r[0:1, :] + fy * wf_r[1:2, :]
        gq = gxc_q + fx * wf_q[0:1, :] + fy * wf_q[1:2, :]

        ghzr = jnp.dot(h, whzr, preferred_element_type=jnp.float32)        # (HW, 2*HID)
        z = jax.nn.sigmoid(gz + ghzr[:, 0:HID])
        r = jax.nn.sigmoid(gr + ghzr[:, HID:2 * HID])
        # Candidate gate uses only the q-block of the recurrent weight.
        q = jnp.tanh(gq + jnp.dot(r * h, whq, preferred_element_type=jnp.float32))

        h_new = (1.0 - z) * h + z * q
        delta = jnp.dot(h_new, wo, preferred_element_type=jnp.float32) + bo
        return h_new, flow + delta, hsum + h_new

    _, _, hsum = lax.fori_loop(0, ITERS, body, (h0, flow0, hsum0), unroll=True)

    # flow_final = sum_i (h_i @ wo + bo) = hsum @ wo + ITERS*bo.  Produce it
    # already transposed (2, HW) straight off the MXU -> lane-dense store.
    flow_t = (jnp.dot(wot_ref[...], jnp.transpose(hsum),
                      preferred_element_type=jnp.float32)
              + jnp.float32(ITERS) * bot_ref[...])                         # (2, HW)
    flow_ref[0] = flow_t


# ------------------------------ pallas_call glue ----------------------------

def _raft_fused(x1, x2, p):
    def batch_spec(shape):
        return pl.BlockSpec((1,) + shape, lambda b: (b, 0, 0))

    def const_spec(shape):
        n = len(shape)
        return pl.BlockSpec(shape, lambda b, _n=n: (0,) * _n)

    in_specs = [
        batch_spec((CIN, HW)),        # x1
        batch_spec((CIN, HW)),        # x2
        const_spec((FEAT, CIN)),      # wft  (feature weight, transposed)
        const_spec((FEAT, 1)),        # bf
        const_spec((FEAT, CIN)),      # wct  (context weight, transposed)
        const_spec((FEAT, 1)),        # bc
        const_spec((HW, DM)),         # wc
        const_spec((FEAT, HID)),      # wch
        const_spec((DM, 3 * HID)),    # wx
        const_spec((HID, 2 * HID)),   # wh_zr
        const_spec((HID, HID)),       # wh_q
        const_spec((2, 3 * HID)),     # wf
        const_spec((1, 3 * HID)),     # bg
        const_spec((HID, 2)),         # wo
        const_spec((1, 2)),           # bo
        const_spec((2, HID)),         # wo_t
        const_spec((2, 1)),           # bo_t
    ]
    return pl.pallas_call(
        raft_fused_kernel,
        out_shape=jax.ShapeDtypeStruct((B, 2, HW), jnp.float32),
        grid_spec=pltpu.PrefetchScalarGridSpec(
            num_scalar_prefetch=0,
            grid=(B,),
            in_specs=in_specs,
            out_specs=pl.BlockSpec((1, 2, HW), lambda b: (b, 0, 0))),
        compiler_params=pltpu.CompilerParams(
            dimension_semantics=("parallel",)),   # batch -> 2 TCs on v7x
    )(x1, x2,
      p["wft"], p["bf"], p["wct"], p["bc"],
      p["wc"], p["wch"], p["wx"], p["wh_zr"], p["wh_q"],
      p["wf"], p["bg"], p["wo"], p["bo"], p["wo_t"], p["bo_t"])


def init_params(key):
    ks = jax.random.split(key, 12)
    s = 0.1
    w_feat = jax.random.normal(ks[0], (CIN, FEAT), jnp.float32) * s
    b_feat = jax.random.normal(ks[1], (FEAT,), jnp.float32) * s
    w_ctx = jax.random.normal(ks[2], (CIN, FEAT), jnp.float32) * s
    b_ctx = jax.random.normal(ks[3], (FEAT,), jnp.float32) * s
    wh = jax.random.normal(ks[7], (HID, 3 * HID), jnp.float32) * s
    wo = jax.random.normal(ks[10], (HID, 2), jnp.float32) * s
    bo = jax.random.normal(ks[11], (2,), jnp.float32) * s
    return {
        "wft": w_feat.T,                      # (FEAT, CIN)
        "bf": b_feat.reshape(FEAT, 1),
        "wct": w_ctx.T,                       # (FEAT, CIN)
        "bc": b_ctx.reshape(FEAT, 1),
        "wc": jax.random.normal(ks[4], (HW, DM), jnp.float32) * s,
        "wch": jax.random.normal(ks[5], (FEAT, HID), jnp.float32) * s,
        "wx": jax.random.normal(ks[6], (DM, 3 * HID), jnp.float32) * s,
        "wh_zr": wh[:, :2 * HID],             # (HID, 2*HID)
        "wh_q": wh[:, 2 * HID:],              # (HID, HID)
        "wf": jax.random.normal(ks[8], (2, 3 * HID), jnp.float32) * s,
        "bg": jax.random.normal(ks[9], (1, 3 * HID), jnp.float32) * s,
        "wo": wo,                             # (HID, 2)
        "bo": bo.reshape(1, 2),
        "wo_t": wo.T,                         # (2, HID)
        "bo_t": bo.reshape(2, 1),
    }


def triton_raft_wrapper_forward(x1_nchw, x2_nchw, params):
    """Equivalent of TritonRAFTWrapper.forward: run base model, return last flow."""
    # NCHW (B, 3, H, W) -> (B, 3, HW): free reshape, lane-dense inside kernel.
    x1 = x1_nchw.astype(jnp.float32).reshape(B, CIN, HW)
    x2 = x2_nchw.astype(jnp.float32).reshape(B, CIN, HW)
    flow_t = _raft_fused(x1, x2, params)      # (B, 2, HW): final iteration only
    return flow_t.reshape(B, 2, H, W)         # NCHW flow — free reshape


if __name__ == "__main__":
    key = jax.random.PRNGKey(0)
    kp, k1, k2 = jax.random.split(key, 3)
    params = init_params(kp)
    x1 = jax.random.normal(k1, (B, CIN, H, W), jnp.float32)
    x2 = jax.random.normal(k2, (B, CIN, H, W), jnp.float32)

    out = jax.jit(lambda a, b: triton_raft_wrapper_forward(a, b, params))(x1, x2)
    jax.block_until_ready(out)
    assert out.shape == (B, 2, H, W) and out.dtype == jnp.float32
    assert bool(jnp.all(jnp.isfinite(out)))
    print("KERNEL_OK")
</pallas_src>

<mosaic_0001>
module attributes {stable_mosaic.version = 11 : i64} {
  func.func @raft_fused_kernel(%arg0: i32, %arg1: memref<1x3x256xf32, #tpu.memory_space<vmem>>, %arg2: memref<1x3x256xf32, #tpu.memory_space<vmem>>, %arg3: memref<32x3xf32, #tpu.memory_space<vmem>>, %arg4: memref<32x1xf32, #tpu.memory_space<vmem>>, %arg5: memref<32x3xf32, #tpu.memory_space<vmem>>, %arg6: memref<32x1xf32, #tpu.memory_space<vmem>>, %arg7: memref<256x32xf32, #tpu.memory_space<vmem>>, %arg8: memref<32x32xf32, #tpu.memory_space<vmem>>, %arg9: memref<32x96xf32, #tpu.memory_space<vmem>>, %arg10: memref<32x64xf32, #tpu.memory_space<vmem>>, %arg11: memref<32x32xf32, #tpu.memory_space<vmem>>, %arg12: memref<2x96xf32, #tpu.memory_space<vmem>>, %arg13: memref<1x96xf32, #tpu.memory_space<vmem>>, %arg14: memref<32x2xf32, #tpu.memory_space<vmem>>, %arg15: memref<1x2xf32, #tpu.memory_space<vmem>>, %arg16: memref<2x32xf32, #tpu.memory_space<vmem>>, %arg17: memref<2x1xf32, #tpu.memory_space<vmem>>, %arg18: memref<1x2x256xf32, #tpu.memory_space<vmem>>) attributes {dimension_semantics = [#tpu.dimension_semantics<parallel>], iteration_bounds = array<i64: 2>, scalar_prefetch = 0 : i64, scratch_operands = 0 : i64, tpu.core_type = #tpu.core_type<tc>, window_params = [{transform_indices = @transform_0, window_bounds = array<i64: 1, 3, 256>}, {transform_indices = @transform_1, window_bounds = array<i64: 1, 3, 256>}, {pipeline_mode = #tpu.pipeline_mode<synchronous>, transform_indices = @transform_2, window_bounds = array<i64: 32, 3>}, {pipeline_mode = #tpu.pipeline_mode<synchronous>, transform_indices = @transform_3, window_bounds = array<i64: 32, 1>}, {pipeline_mode = #tpu.pipeline_mode<synchronous>, transform_indices = @transform_4, window_bounds = array<i64: 32, 3>}, {pipeline_mode = #tpu.pipeline_mode<synchronous>, transform_indices = @transform_5, window_bounds = array<i64: 32, 1>}, {pipeline_mode = #tpu.pipeline_mode<synchronous>, transform_indices = @transform_6, window_bounds = array<i64: 256, 32>}, {pipeline_mode = #tpu.pipeline_mode<synchronous>, transform_indices = @transform_7, window_bounds = array<i64: 32, 32>}, {pipeline_mode = #tpu.pipeline_mode<synchronous>, transform_indices = @transform_8, window_bounds = array<i64: 32, 96>}, {pipeline_mode = #tpu.pipeline_mode<synchronous>, transform_indices = @transform_9, window_bounds = array<i64: 32, 64>}, {pipeline_mode = #tpu.pipeline_mode<synchronous>, transform_indices = @transform_10, window_bounds = array<i64: 32, 32>}, {pipeline_mode = #tpu.pipeline_mode<synchronous>, transform_indices = @transform_11, window_bounds = array<i64: 2, 96>}, {pipeline_mode = #tpu.pipeline_mode<synchronous>, transform_indices = @transform_12, window_bounds = array<i64: 1, 96>}, {pipeline_mode = #tpu.pipeline_mode<synchronous>, transform_indices = @transform_13, window_bounds = array<i64: 32, 2>}, {pipeline_mode = #tpu.pipeline_mode<synchronous>, transform_indices = @transform_14, window_bounds = array<i64: 1, 2>}, {pipeline_mode = #tpu.pipeline_mode<synchronous>, transform_indices = @transform_15, window_bounds = array<i64: 2, 32>}, {pipeline_mode = #tpu.pipeline_mode<synchronous>, transform_indices = @transform_16, window_bounds = array<i64: 2, 1>}, {transform_indices = @transform_17, window_bounds = array<i64: 1, 2, 256>}]} {
    %c0 = arith.constant 0 : index
    %c0_0 = arith.constant 0 : index
    %c0_1 = arith.constant 0 : index
    %0 = vector.load %arg1[%c0, %c0_0, %c0_1] : memref<1x3x256xf32, #tpu.memory_space<vmem>>, vector<1x3x256xf32>
    %1 = vector.shape_cast %0 : vector<1x3x256xf32> to vector<3x256xf32>
    %c0_2 = arith.constant 0 : index
    %c0_3 = arith.constant 0 : index
    %c0_4 = arith.constant 0 : index
    %2 = vector.load %arg2[%c0_2, %c0_3, %c0_4] : memref<1x3x256xf32, #tpu.memory_space<vmem>>, vector<1x3x256xf32>
    %3 = vector.shape_cast %2 : vector<1x3x256xf32> to vector<3x256xf32>
    %c0_5 = arith.constant 0 : index
    %c0_6 = arith.constant 0 : index
    %4 = vector.load %arg3[%c0_5, %c0_6] : memref<32x3xf32, #tpu.memory_space<vmem>>, vector<32x3xf32>
    %c0_7 = arith.constant 0 : index
    %c0_8 = arith.constant 0 : index
    %5 = vector.load %arg4[%c0_7, %c0_8] : memref<32x1xf32, #tpu.memory_space<vmem>>, vector<32x1xf32>
    %6 = vector.extract_strided_slice %4 {offsets = [0, 0], sizes = [32, 1], strides = [1, 1]} : vector<32x3xf32> to vector<32x1xf32>
    %7 = vector.extract_strided_slice %1 {offsets = [0, 0], sizes = [1, 256], strides = [1, 1]} : vector<3x256xf32> to vector<1x256xf32>
    %8 = vector.broadcast %6 : vector<32x1xf32> to vector<32x256xf32>
    %9 = vector.broadcast %7 : vector<1x256xf32> to vector<32x256xf32>
    %10 = arith.mulf %8, %9 : vector<32x256xf32>
    %11 = vector.extract_strided_slice %4 {offsets = [0, 1], sizes = [32, 1], strides = [1, 1]} : vector<32x3xf32> to vector<32x1xf32>
    %12 = vector.extract_strided_slice %1 {offsets = [1, 0], sizes = [1, 256], strides = [1, 1]} : vector<3x256xf32> to vector<1x256xf32>
    %13 = vector.broadcast %11 : vector<32x1xf32> to vector<32x256xf32>
    %14 = vector.broadcast %12 : vector<1x256xf32> to vector<32x256xf32>
    %15 = arith.mulf %13, %14 : vector<32x256xf32>
    %16 = arith.addf %10, %15 : vector<32x256xf32>
    %17 = vector.extract_strided_slice %4 {offsets = [0, 2], sizes = [32, 1], strides = [1, 1]} : vector<32x3xf32> to vector<32x1xf32>
    %18 = vector.extract_strided_slice %1 {offsets = [2, 0], sizes = [1, 256], strides = [1, 1]} : vector<3x256xf32> to vector<1x256xf32>
    %19 = vector.broadcast %17 : vector<32x1xf32> to vector<32x256xf32>
    %20 = vector.broadcast %18 : vector<1x256xf32> to vector<32x256xf32>
    %21 = arith.mulf %19, %20 : vector<32x256xf32>
    %22 = arith.addf %16, %21 : vector<32x256xf32>
    %23 = vector.broadcast %5 : vector<32x1xf32> to vector<32x256xf32>
    %24 = arith.addf %22, %23 : vector<32x256xf32>
    %cst = arith.constant 0.000000e+00 : f32
    %25 = vector.broadcast %cst : f32 to vector<32x256xf32>
    %26 = arith.maximumf %24, %25 : vector<32x256xf32>
    %27 = vector.extract_strided_slice %4 {offsets = [0, 0], sizes = [32, 1], strides = [1, 1]} : vector<32x3xf32> to vector<32x1xf32>
    %28 = vector.extract_strided_slice %3 {offsets = [0, 0], sizes = [1, 256], strides = [1, 1]} : vector<3x256xf32> to vector<1x256xf32>
    %29 = vector.broadcast %27 : vector<32x1xf32> to vector<32x256xf32>
    %30 = vector.broadcast %28 : vector<1x256xf32> to vector<32x256xf32>
    %31 = arith.mulf %29, %30 : vector<32x256xf32>
    %32 = vector.extract_strided_slice %4 {offsets = [0, 1], sizes = [32, 1], strides = [1, 1]} : vector<32x3xf32> to vector<32x1xf32>
    %33 = vector.extract_strided_slice %3 {offsets = [1, 0], sizes = [1, 256], strides = [1, 1]} : vector<3x256xf32> to vector<1x256xf32>
    %34 = vector.broadcast %32 : vector<32x1xf32> to vector<32x256xf32>
    %35 = vector.broadcast %33 : vector<1x256xf32> to vector<32x256xf32>
    %36 = arith.mulf %34, %35 : vector<32x256xf32>
    %37 = arith.addf %31, %36 : vector<32x256xf32>
    %38 = vector.extract_strided_slice %4 {offsets = [0, 2], sizes = [32, 1], strides = [1, 1]} : vector<32x3xf32> to vector<32x1xf32>
    %39 = vector.extract_strided_slice %3 {offsets = [2, 0], sizes = [1, 256], strides = [1, 1]} : vector<3x256xf32> to vector<1x256xf32>
    %40 = vector.broadcast %38 : vector<32x1xf32> to vector<32x256xf32>
    %41 = vector.broadcast %39 : vector<1x256xf32> to vector<32x256xf32>
    %42 = arith.mulf %40, %41 : vector<32x256xf32>
    %43 = arith.addf %37, %42 : vector<32x256xf32>
    %44 = vector.broadcast %5 : vector<32x1xf32> to vector<32x256xf32>
    %45 = arith.addf %43, %44 : vector<32x256xf32>
    %cst_9 = arith.constant 0.000000e+00 : f32
    %46 = vector.broadcast %cst_9 : f32 to vector<32x256xf32>
    %47 = arith.maximumf %45, %46 : vector<32x256xf32>
    %c0_10 = arith.constant 0 : index
    %c0_11 = arith.constant 0 : index
    %48 = vector.load %arg5[%c0_10, %c0_11] : memref<32x3xf32, #tpu.memory_space<vmem>>, vector<32x3xf32>
    %c0_12 = arith.constant 0 : index
    %c0_13 = arith.constant 0 : index
    %49 = vector.load %arg6[%c0_12, %c0_13] : memref<32x1xf32, #tpu.memory_space<vmem>>, vector<32x1xf32>
    %50 = vector.extract_strided_slice %48 {offsets = [0, 0], sizes = [32, 1], strides = [1, 1]} : vector<32x3xf32> to vector<32x1xf32>
    %51 = vector.extract_strided_slice %1 {offsets = [0, 0], sizes = [1, 256], strides = [1, 1]} : vector<3x256xf32> to vector<1x256xf32>
    %52 = vector.broadcast %50 : vector<32x1xf32> to vector<32x256xf32>
    %53 = vector.broadcast %51 : vector<1x256xf32> to vector<32x256xf32>
    %54 = arith.mulf %52, %53 : vector<32x256xf32>
    %55 = vector.extract_strided_slice %48 {offsets = [0, 1], sizes = [32, 1], strides = [1, 1]} : vector<32x3xf32> to vector<32x1xf32>
    %56 = vector.extract_strided_slice %1 {offsets = [1, 0], sizes = [1, 256], strides = [1, 1]} : vector<3x256xf32> to vector<1x256xf32>
    %57 = vector.broadcast %55 : vector<32x1xf32> to vector<32x256xf32>
    %58 = vector.broadcast %56 : vector<1x256xf32> to vector<32x256xf32>
    %59 = arith.mulf %57, %58 : vector<32x256xf32>
    %60 = arith.addf %54, %59 : vector<32x256xf32>
    %61 = vector.extract_strided_slice %48 {offsets = [0, 2], sizes = [32, 1], strides = [1, 1]} : vector<32x3xf32> to vector<32x1xf32>
    %62 = vector.extract_strided_slice %1 {offsets = [2, 0], sizes = [1, 256], strides = [1, 1]} : vector<3x256xf32> to vector<1x256xf32>
    %63 = vector.broadcast %61 : vector<32x1xf32> to vector<32x256xf32>
    %64 = vector.broadcast %62 : vector<1x256xf32> to vector<32x256xf32>
    %65 = arith.mulf %63, %64 : vector<32x256xf32>
    %66 = arith.addf %60, %65 : vector<32x256xf32>
    %67 = vector.broadcast %49 : vector<32x1xf32> to vector<32x256xf32>
    %68 = arith.addf %66, %67 : vector<32x256xf32>
    %cst_14 = arith.constant 0.000000e+00 : f32
    %69 = vector.broadcast %cst_14 : f32 to vector<32x256xf32>
    %70 = arith.maximumf %68, %69 : vector<32x256xf32>
    %71 = tpu.transpose %26, [1, 0] : vector<32x256xf32> -> vector<256x32xf32>
    %72 = tpu.transpose %70, [1, 0] : vector<32x256xf32> -> vector<256x32xf32>
    %cst_15 = arith.constant dense<0.000000e+00> : vector<256x256xf32>
    %73 = tpu.matmul %71, %47, %cst_15 {dimension_numbers = #tpu.dot_dimension_numbers<[1], [0], [0], [1], [0, 0, 1, 1], [], []>} : vector<256x32xf32>, vector<32x256xf32>, vector<256x256xf32> -> vector<256x256xf32>
    %cst_16 = arith.constant 0.176776692 : f32
    %74 = vector.broadcast %cst_16 : f32 to vector<256x256xf32>
    %75 = arith.mulf %73, %74 : vector<256x256xf32>
    %c0_17 = arith.constant 0 : index
    %c0_18 = arith.constant 0 : index
    %76 = vector.load %arg7[%c0_17, %c0_18] : memref<256x32xf32, #tpu.memory_space<vmem>>, vector<256x32xf32>
    %cst_19 = arith.constant dense<0.000000e+00> : vector<256x32xf32>
    %77 = tpu.matmul %75, %76, %cst_19 {dimension_numbers = #tpu.dot_dimension_numbers<[1], [0], [0], [1], [0, 0, 1, 1], [], []>} : vector<256x256xf32>, vector<256x32xf32>, vector<256x32xf32> -> vector<256x32xf32>
    %c0_20 = arith.constant 0 : index
    %c0_21 = arith.constant 0 : index
    %78 = vector.load %arg8[%c0_20, %c0_21] : memref<32x32xf32, #tpu.memory_space<vmem>>, vector<32x32xf32>
    %cst_22 = arith.constant dense<0.000000e+00> : vector<256x32xf32>
    %79 = tpu.matmul %72, %78, %cst_22 {dimension_numbers = #tpu.dot_dimension_numbers<[1], [0], [0], [1], [0, 0, 1, 1], [], []>} : vector<256x32xf32>, vector<32x32xf32>, vector<256x32xf32> -> vector<256x32xf32>
    %80 = math.tanh %79 : vector<256x32xf32>
    %c0_23 = arith.constant 0 : index
    %c0_24 = arith.constant 0 : index
    %81 = vector.load %arg9[%c0_23, %c0_24] : memref<32x96xf32, #tpu.memory_space<vmem>>, vector<32x96xf32>
    %cst_25 = arith.constant dense<0.000000e+00> : vector<256x96xf32>
    %82 = tpu.matmul %77, %81, %cst_25 {dimension_numbers = #tpu.dot_dimension_numbers<[1], [0], [0], [1], [0, 0, 1, 1], [], []>} : vector<256x32xf32>, vector<32x96xf32>, vector<256x96xf32> -> vector<256x96xf32>
    %c0_26 = arith.constant 0 : index
    %c0_27 = arith.constant 0 : index
    %83 = vector.load %arg13[%c0_26, %c0_27] : memref<1x96xf32, #tpu.memory_space<vmem>>, vector<1x96xf32>
    %84 = vector.broadcast %83 : vector<1x96xf32> to vector<256x96xf32>
    %85 = arith.addf %82, %84 : vector<256x96xf32>
    %86 = vector.extract_strided_slice %85 {offsets = [0, 0], sizes = [256, 32], strides = [1, 1]} : vector<256x96xf32> to vector<256x32xf32>
    %87 = vector.extract_strided_slice %85 {offsets = [0, 32], sizes = [256, 32], strides = [1, 1]} : vector<256x96xf32> to vector<256x32xf32>
    %88 = vector.extract_strided_slice %85 {offsets = [0, 64], sizes = [256, 32], strides = [1, 1]} : vector<256x96xf32> to vector<256x32xf32>
    %c0_28 = arith.constant 0 : index
    %c0_29 = arith.constant 0 : index
    %89 = vector.load %arg12[%c0_28, %c0_29] : memref<2x96xf32, #tpu.memory_space<vmem>>, vector<2x96xf32>
    %90 = vector.extract_strided_slice %89 {offsets = [0, 0], sizes = [2, 32], strides = [1, 1]} : vector<2x96xf32> to vector<2x32xf32>
    %91 = vector.extract_strided_slice %89 {offsets = [0, 32], sizes = [2, 32], strides = [1, 1]} : vector<2x96xf32> to vector<2x32xf32>
    %92 = vector.extract_strided_slice %89 {offsets = [0, 64], sizes = [2, 32], strides = [1, 1]} : vector<2x96xf32> to vector<2x32xf32>
    %c0_30 = arith.constant 0 : index
    %c0_31 = arith.constant 0 : index
    %93 = vector.load %arg10[%c0_30, %c0_31] : memref<32x64xf32, #tpu.memory_space<vmem>>, vector<32x64xf32>
    %c0_32 = arith.constant 0 : index
    %c0_33 = arith.constant 0 : index
    %94 = vector.load %arg11[%c0_32, %c0_33] : memref<32x32xf32, #tpu.memory_space<vmem>>, vector<32x32xf32>
    %c0_34 = arith.constant 0 : index
    %c0_35 = arith.constant 0 : index
    %95 = vector.load %arg14[%c0_34, %c0_35] : memref<32x2xf32, #tpu.memory_space<vmem>>, vector<32x2xf32>
    %c0_36 = arith.constant 0 : index
    %c0_37 = arith.constant 0 : index
    %96 = vector.load %arg15[%c0_36, %c0_37] : memref<1x2xf32, #tpu.memory_space<vmem>>, vector<1x2xf32>
    %cst_38 = arith.constant 0.000000e+00 : f32
    %97 = vector.broadcast %cst_38 : f32 to vector<256x2xf32>
    %cst_39 = arith.constant 0.000000e+00 : f32
    %98 = vector.broadcast %cst_39 : f32 to vector<256x32xf32>
    %c0_i32 = arith.constant 0 : i32
    %99 = vector.extract_strided_slice %97 {offsets = [0, 0], sizes = [256, 1], strides = [1, 1]} : vector<256x2xf32> to vector<256x1xf32>
    %100 = vector.extract_strided_slice %97 {offsets = [0, 1], sizes = [256, 1], strides = [1, 1]} : vector<256x2xf32> to vector<256x1xf32>
    %101 = vector.extract_strided_slice %90 {offsets = [0, 0], sizes = [1, 32], strides = [1, 1]} : vector<2x32xf32> to vector<1x32xf32>
    %102 = vector.broadcast %99 : vector<256x1xf32> to vector<256x32xf32>
    %103 = vector.broadcast %101 : vector<1x32xf32> to vector<256x32xf32>
    %104 = arith.mulf %102, %103 : vector<256x32xf32>
    %105 = arith.addf %86, %104 : vector<256x32xf32>
    %106 = vector.extract_strided_slice %90 {offsets = [1, 0], sizes = [1, 32], strides = [1, 1]} : vector<2x32xf32> to vector<1x32xf32>
    %107 = vector.broadcast %100 : vector<256x1xf32> to vector<256x32xf32>
    %108 = vector.broadcast %106 : vector<1x32xf32> to vector<256x32xf32>
    %109 = arith.mulf %107, %108 : vector<256x32xf32>
    %110 = arith.addf %105, %109 : vector<256x32xf32>
    %111 = vector.extract_strided_slice %91 {offsets = [0, 0], sizes = [1, 32], strides = [1, 1]} : vector<2x32xf32> to vector<1x32xf32>
    %112 = vector.broadcast %99 : vector<256x1xf32> to vector<256x32xf32>
    %113 = vector.broadcast %111 : vector<1x32xf32> to vector<256x32xf32>
    %114 = arith.mulf %112, %113 : vector<256x32xf32>
    %115 = arith.addf %87, %114 : vector<256x32xf32>
    %116 = vector.extract_strided_slice %91 {offsets = [1, 0], sizes = [1, 32], strides = [1, 1]} : vector<2x32xf32> to vector<1x32xf32>
    %117 = vector.broadcast %100 : vector<256x1xf32> to vector<256x32xf32>
    %118 = vector.broadcast %116 : vector<1x32xf32> to vector<256x32xf32>
    %119 = arith.mulf %117, %118 : vector<256x32xf32>
    %120 = arith.addf %115, %119 : vector<256x32xf32>
    %121 = vector.extract_strided_slice %92 {offsets = [0, 0], sizes = [1, 32], strides = [1, 1]} : vector<2x32xf32> to vector<1x32xf32>
    %122 = vector.broadcast %99 : vector<256x1xf32> to vector<256x32xf32>
    %123 = vector.broadcast %121 : vector<1x32xf32> to vector<256x32xf32>
    %124 = arith.mulf %122, %123 : vector<256x32xf32>
    %125 = arith.addf %88, %124 : vector<256x32xf32>
    %126 = vector.extract_strided_slice %92 {offsets = [1, 0], sizes = [1, 32], strides = [1, 1]} : vector<2x32xf32> to vector<1x32xf32>
    %127 = vector.broadcast %100 : vector<256x1xf32> to vector<256x32xf32>
    %128 = vector.broadcast %126 : vector<1x32xf32> to vector<256x32xf32>
    %129 = arith.mulf %127, %128 : vector<256x32xf32>
    %130 = arith.addf %125, %129 : vector<256x32xf32>
    %cst_40 = arith.constant dense<0.000000e+00> : vector<256x64xf32>
    %131 = tpu.matmul %80, %93, %cst_40 {dimension_numbers = #tpu.dot_dimension_numbers<[1], [0], [0], [1], [0, 0, 1, 1], [], []>} : vector<256x32xf32>, vector<32x64xf32>, vector<256x64xf32> -> vector<256x64xf32>
    %132 = vector.extract_strided_slice %131 {offsets = [0, 0], sizes = [256, 32], strides = [1, 1]} : vector<256x64xf32> to vector<256x32xf32>
    %133 = arith.addf %110, %132 : vector<256x32xf32>
    %134 = arith.negf %133 : vector<256x32xf32>
    %135 = math.exp %134 : vector<256x32xf32>
    %cst_41 = arith.constant 1.000000e+00 : f32
    %136 = vector.broadcast %cst_41 : f32 to vector<256x32xf32>
    %137 = arith.addf %136, %135 : vector<256x32xf32>
    %138 = arith.divf %136, %137 : vector<256x32xf32>
    %139 = vector.extract_strided_slice %131 {offsets = [0, 32], sizes = [256, 32], strides = [1, 1]} : vector<256x64xf32> to vector<256x32xf32>
    %140 = arith.addf %120, %139 : vector<256x32xf32>
    %141 = arith.negf %140 : vector<256x32xf32>
    %142 = math.exp %141 : vector<256x32xf32>
    %cst_42 = arith.constant 1.000000e+00 : f32
    %143 = vector.broadcast %cst_42 : f32 to vector<256x32xf32>
    %144 = arith.addf %143, %142 : vector<256x32xf32>
    %145 = arith.divf %143, %144 : vector<256x32xf32>
    %146 = arith.mulf %145, %80 : vector<256x32xf32>
    %cst_43 = arith.constant dense<0.000000e+00> : vector<256x32xf32>
    %147 = tpu.matmul %146, %94, %cst_43 {dimension_numbers = #tpu.dot_dimension_numbers<[1], [0], [0], [1], [0, 0, 1, 1], [], []>} : vector<256x32xf32>, vector<32x32xf32>, vector<256x32xf32> -> vector<256x32xf32>
    %148 = arith.addf %130, %147 : vector<256x32xf32>
    %149 = math.tanh %148 : vector<256x32xf32>
    %cst_44 = arith.constant 1.000000e+00 : f32
    %150 = vector.broadcast %cst_44 : f32 to vector<256x32xf32>
    %151 = arith.subf %150, %138 : vector<256x32xf32>
    %152 = arith.mulf %151, %80 : vector<256x32xf32>
    %153 = arith.mulf %138, %149 : vector<256x32xf32>
    %154 = arith.addf %152, %153 : vector<256x32xf32>
    %cst_45 = arith.constant dense<0.000000e+00> : vector<256x2xf32>
    %155 = tpu.matmul %154, %95, %cst_45 {dimension_numbers = #tpu.dot_dimension_numbers<[1], [0], [0], [1], [0, 0, 1, 1], [], []>} : vector<256x32xf32>, vector<32x2xf32>, vector<256x2xf32> -> vector<256x2xf32>
    %156 = vector.broadcast %96 : vector<1x2xf32> to vector<256x2xf32>
    %157 = arith.addf %155, %156 : vector<256x2xf32>
    %158 = arith.addf %97, %157 : vector<256x2xf32>
    %159 = arith.addf %98, %154 : vector<256x32xf32>
    %c1_i32 = arith.constant 1 : i32
    %160 = vector.extract_strided_slice %158 {offsets = [0, 0], sizes = [256, 1], strides = [1, 1]} : vector<256x2xf32> to vector<256x1xf32>
    %161 = vector.extract_strided_slice %158 {offsets = [0, 1], sizes = [256, 1], strides = [1, 1]} : vector<256x2xf32> to vector<256x1xf32>
    %162 = vector.extract_strided_slice %90 {offsets = [0, 0], sizes = [1, 32], strides = [1, 1]} : vector<2x32xf32> to vector<1x32xf32>
    %163 = vector.broadcast %160 : vector<256x1xf32> to vector<256x32xf32>
    %164 = vector.broadcast %162 : vector<1x32xf32> to vector<256x32xf32>
    %165 = arith.mulf %163, %164 : vector<256x32xf32>
    %166 = arith.addf %86, %165 : vector<256x32xf32>
    %167 = vector.extract_strided_slice %90 {offsets = [1, 0], sizes = [1, 32], strides = [1, 1]} : vector<2x32xf32> to vector<1x32xf32>
    %168 = vector.broadcast %161 : vector<256x1xf32> to vector<256x32xf32>
    %169 = vector.broadcast %167 : vector<1x32xf32> to vector<256x32xf32>
    %170 = arith.mulf %168, %169 : vector<256x32xf32>
    %171 = arith.addf %166, %170 : vector<256x32xf32>
    %172 = vector.extract_strided_slice %91 {offsets = [0, 0], sizes = [1, 32], strides = [1, 1]} : vector<2x32xf32> to vector<1x32xf32>
    %173 = vector.broadcast %160 : vector<256x1xf32> to vector<256x32xf32>
    %174 = vector.broadcast %172 : vector<1x32xf32> to vector<256x32xf32>
    %175 = arith.mulf %173, %174 : vector<256x32xf32>
    %176 = arith.addf %87, %175 : vector<256x32xf32>
    %177 = vector.extract_strided_slice %91 {offsets = [1, 0], sizes = [1, 32], strides = [1, 1]} : vector<2x32xf32> to vector<1x32xf32>
    %178 = vector.broadcast %161 : vector<256x1xf32> to vector<256x32xf32>
    %179 = vector.broadcast %177 : vector<1x32xf32> to vector<256x32xf32>
    %180 = arith.mulf %178, %179 : vector<256x32xf32>
    %181 = arith.addf %176, %180 : vector<256x32xf32>
    %182 = vector.extract_strided_slice %92 {offsets = [0, 0], sizes = [1, 32], strides = [1, 1]} : vector<2x32xf32> to vector<1x32xf32>
    %183 = vector.broadcast %160 : vector<256x1xf32> to vector<256x32xf32>
    %184 = vector.broadcast %182 : vector<1x32xf32> to vector<256x32xf32>
    %185 = arith.mulf %183, %184 : vector<256x32xf32>
    %186 = arith.addf %88, %185 : vector<256x32xf32>
    %187 = vector.extract_strided_slice %92 {offsets = [1, 0], sizes = [1, 32], strides = [1, 1]} : vector<2x32xf32> to vector<1x32xf32>
    %188 = vector.broadcast %161 : vector<256x1xf32> to vector<256x32xf32>
    %189 = vector.broadcast %187 : vector<1x32xf32> to vector<256x32xf32>
    %190 = arith.mulf %188, %189 : vector<256x32xf32>
    %191 = arith.addf %186, %190 : vector<256x32xf32>
    %cst_46 = arith.constant dense<0.000000e+00> : vector<256x64xf32>
    %192 = tpu.matmul %154, %93, %cst_46 {dimension_numbers = #tpu.dot_dimension_numbers<[1], [0], [0], [1], [0, 0, 1, 1], [], []>} : vector<256x32xf32>, vector<32x64xf32>, vector<256x64xf32> -> vector<256x64xf32>
    %193 = vector.extract_strided_slice %192 {offsets = [0, 0], sizes = [256, 32], strides = [1, 1]} : vector<256x64xf32> to vector<256x32xf32>
    %194 = arith.addf %171, %193 : vector<256x32xf32>
    %195 = arith.negf %194 : vector<256x32xf32>
    %196 = math.exp %195 : vector<256x32xf32>
    %cst_47 = arith.constant 1.000000e+00 : f32
    %197 = vector.broadcast %cst_47 : f32 to vector<256x32xf32>
    %198 = arith.addf %197, %196 : vector<256x32xf32>
    %199 = arith.divf %197, %198 : vector<256x32xf32>
    %200 = vector.extract_strided_slice %192 {offsets = [0, 32], sizes = [256, 32], strides = [1, 1]} : vector<256x64xf32> to vector<256x32xf32>
    %201 = arith.addf %181, %200 : vector<256x32xf32>
    %202 = arith.negf %201 : vector<256x32xf32>
    %203 = math.exp %202 : vector<256x32xf32>
    %cst_48 = arith.constant 1.000000e+00 : f32
    %204 = vector.broadcast %cst_48 : f32 to vector<256x32xf32>
    %205 = arith.addf %204, %203 : vector<256x32xf32>
    %206 = arith.divf %204, %205 : vector<256x32xf32>
    %207 = arith.mulf %206, %154 : vector<256x32xf32>
    %cst_49 = arith.constant dense<0.000000e+00> : vector<256x32xf32>
    %208 = tpu.matmul %207, %94, %cst_49 {dimension_numbers = #tpu.dot_dimension_numbers<[1], [0], [0], [1], [0, 0, 1, 1], [], []>} : vector<256x32xf32>, vector<32x32xf32>, vector<256x32xf32> -> vector<256x32xf32>
    %209 = arith.addf %191, %208 : vector<256x32xf32>
    %210 = math.tanh %209 : vector<256x32xf32>
    %cst_50 = arith.constant 1.000000e+00 : f32
    %211 = vector.broadcast %cst_50 : f32 to vector<256x32xf32>
    %212 = arith.subf %211, %199 : vector<256x32xf32>
    %213 = arith.mulf %212, %154 : vector<256x32xf32>
    %214 = arith.mulf %199, %210 : vector<256x32xf32>
    %215 = arith.addf %213, %214 : vector<256x32xf32>
    %cst_51 = arith.constant dense<0.000000e+00> : vector<256x2xf32>
    %216 = tpu.matmul %215, %95, %cst_51 {dimension_numbers = #tpu.dot_dimension_numbers<[1], [0], [0], [1], [0, 0, 1, 1], [], []>} : vector<256x32xf32>, vector<32x2xf32>, vector<256x2xf32> -> vector<256x2xf32>
    %217 = vector.broadcast %96 : vector<1x2xf32> to vector<256x2xf32>
    %218 = arith.addf %216, %217 : vector<256x2xf32>
    %219 = arith.addf %158, %218 : vector<256x2xf32>
    %220 = arith.addf %159, %215 : vector<256x32xf32>
    %c2_i32 = arith.constant 2 : i32
    %221 = vector.extract_strided_slice %219 {offsets = [0, 0], sizes = [256, 1], strides = [1, 1]} : vector<256x2xf32> to vector<256x1xf32>
    %222 = vector.extract_strided_slice %219 {offsets = [0, 1], sizes = [256, 1], strides = [1, 1]} : vector<256x2xf32> to vector<256x1xf32>
    %223 = vector.extract_strided_slice %90 {offsets = [0, 0], sizes = [1, 32], strides = [1, 1]} : vector<2x32xf32> to vector<1x32xf32>
    %224 = vector.broadcast %221 : vector<256x1xf32> to vector<256x32xf32>
    %225 = vector.broadcast %223 : vector<1x32xf32> to vector<256x32xf32>
    %226 = arith.mulf %224, %225 : vector<256x32xf32>
    %227 = arith.addf %86, %226 : vector<256x32xf32>
    %228 = vector.extract_strided_slice %90 {offsets = [1, 0], sizes = [1, 32], strides = [1, 1]} : vector<2x32xf32> to vector<1x32xf32>
    %229 = vector.broadcast %222 : vector<256x1xf32> to vector<256x32xf32>
    %230 = vector.broadcast %228 : vector<1x32xf32> to vector<256x32xf32>
    %231 = arith.mulf %229, %230 : vector<256x32xf32>
    %232 = arith.addf %227, %231 : vector<256x32xf32>
    %233 = vector.extract_strided_slice %91 {offsets = [0, 0], sizes = [1, 32], strides = [1, 1]} : vector<2x32xf32> to vector<1x32xf32>
    %234 = vector.broadcast %221 : vector<256x1xf32> to vector<256x32xf32>
    %235 = vector.broadcast %233 : vector<1x32xf32> to vector<256x32xf32>
    %236 = arith.mulf %234, %235 : vector<256x32xf32>
    %237 = arith.addf %87, %236 : vector<256x32xf32>
    %238 = vector.extract_strided_slice %91 {offsets = [1, 0], sizes = [1, 32], strides = [1, 1]} : vector<2x32xf32> to vector<1x32xf32>
    %239 = vector.broadcast %222 : vector<256x1xf32> to vector<256x32xf32>
    %240 = vector.broadcast %238 : vector<1x32xf32> to vector<256x32xf32>
    %241 = arith.mulf %239, %240 : vector<256x32xf32>
    %242 = arith.addf %237, %241 : vector<256x32xf32>
    %243 = vector.extract_strided_slice %92 {offsets = [0, 0], sizes = [1, 32], strides = [1, 1]} : vector<2x32xf32> to vector<1x32xf32>
    %244 = vector.broadcast %221 : vector<256x1xf32> to vector<256x32xf32>
    %245 = vector.broadcast %243 : vector<1x32xf32> to vector<256x32xf32>
    %246 = arith.mulf %244, %245 : vector<256x32xf32>
    %247 = arith.addf %88, %246 : vector<256x32xf32>
    %248 = vector.extract_strided_slice %92 {offsets = [1, 0], sizes = [1, 32], strides = [1, 1]} : vector<2x32xf32> to vector<1x32xf32>
    %249 = vector.broadcast %222 : vector<256x1xf32> to vector<256x32xf32>
    %250 = vector.broadcast %248 : vector<1x32xf32> to vector<256x32xf32>
    %251 = arith.mulf %249, %250 : vector<256x32xf32>
    %252 = arith.addf %247, %251 : vector<256x32xf32>
    %cst_52 = arith.constant dense<0.000000e+00> : vector<256x64xf32>
    %253 = tpu.matmul %215, %93, %cst_52 {dimension_numbers = #tpu.dot_dimension_numbers<[1], [0], [0], [1], [0, 0, 1, 1], [], []>} : vector<256x32xf32>, vector<32x64xf32>, vector<256x64xf32> -> vector<256x64xf32>
    %254 = vector.extract_strided_slice %253 {offsets = [0, 0], sizes = [256, 32], strides = [1, 1]} : vector<256x64xf32> to vector<256x32xf32>
    %255 = arith.addf %232, %254 : vector<256x32xf32>
    %256 = arith.negf %255 : vector<256x32xf32>
    %257 = math.exp %256 : vector<256x32xf32>
    %cst_53 = arith.constant 1.000000e+00 : f32
    %258 = vector.broadcast %cst_53 : f32 to vector<256x32xf32>
    %259 = arith.addf %258, %257 : vector<256x32xf32>
    %260 = arith.divf %258, %259 : vector<256x32xf32>
    %261 = vector.extract_strided_slice %253 {offsets = [0, 32], sizes = [256, 32], strides = [1, 1]} : vector<256x64xf32> to vector<256x32xf32>
    %262 = arith.addf %242, %261 : vector<256x32xf32>
    %263 = arith.negf %262 : vector<256x32xf32>
    %264 = math.exp %263 : vector<256x32xf32>
    %cst_54 = arith.constant 1.000000e+00 : f32
    %265 = vector.broadcast %cst_54 : f32 to vector<256x32xf32>
    %266 = arith.addf %265, %264 : vector<256x32xf32>
    %267 = arith.divf %265, %266 : vector<256x32xf32>
    %268 = arith.mulf %267, %215 : vector<256x32xf32>
    %cst_55 = arith.constant dense<0.000000e+00> : vector<256x32xf32>
    %269 = tpu.matmul %268, %94, %cst_55 {dimension_numbers = #tpu.dot_dimension_numbers<[1], [0], [0], [1], [0, 0, 1, 1], [], []>} : vector<256x32xf32>, vector<32x32xf32>, vector<256x32xf32> -> vector<256x32xf32>
    %270 = arith.addf %252, %269 : vector<256x32xf32>
    %271 = math.tanh %270 : vector<256x32xf32>
    %cst_56 = arith.constant 1.000000e+00 : f32
    %272 = vector.broadcast %cst_56 : f32 to vector<256x32xf32>
    %273 = arith.subf %272, %260 : vector<256x32xf32>
    %274 = arith.mulf %273, %215 : vector<256x32xf32>
    %275 = arith.mulf %260, %271 : vector<256x32xf32>
    %276 = arith.addf %274, %275 : vector<256x32xf32>
    %cst_57 = arith.constant dense<0.000000e+00> : vector<256x2xf32>
    %277 = tpu.matmul %276, %95, %cst_57 {dimension_numbers = #tpu.dot_dimension_numbers<[1], [0], [0], [1], [0, 0, 1, 1], [], []>} : vector<256x32xf32>, vector<32x2xf32>, vector<256x2xf32> -> vector<256x2xf32>
    %278 = vector.broadcast %96 : vector<1x2xf32> to vector<256x2xf32>
    %279 = arith.addf %277, %278 : vector<256x2xf32>
    %280 = arith.addf %219, %279 : vector<256x2xf32>
    %281 = arith.addf %220, %276 : vector<256x32xf32>
    %c3_i32 = arith.constant 3 : i32
    %282 = vector.extract_strided_slice %280 {offsets = [0, 0], sizes = [256, 1], strides = [1, 1]} : vector<256x2xf32> to vector<256x1xf32>
    %283 = vector.extract_strided_slice %280 {offsets = [0, 1], sizes = [256, 1], strides = [1, 1]} : vector<256x2xf32> to vector<256x1xf32>
    %284 = vector.extract_strided_slice %90 {offsets = [0, 0], sizes = [1, 32], strides = [1, 1]} : vector<2x32xf32> to vector<1x32xf32>
    %285 = vector.broadcast %282 : vector<256x1xf32> to vector<256x32xf32>
    %286 = vector.broadcast %284 : vector<1x32xf32> to vector<256x32xf32>
    %287 = arith.mulf %285, %286 : vector<256x32xf32>
    %288 = arith.addf %86, %287 : vector<256x32xf32>
    %289 = vector.extract_strided_slice %90 {offsets = [1, 0], sizes = [1, 32], strides = [1, 1]} : vector<2x32xf32> to vector<1x32xf32>
    %290 = vector.broadcast %283 : vector<256x1xf32> to vector<256x32xf32>
    %291 = vector.broadcast %289 : vector<1x32xf32> to vector<256x32xf32>
    %292 = arith.mulf %290, %291 : vector<256x32xf32>
    %293 = arith.addf %288, %292 : vector<256x32xf32>
    %294 = vector.extract_strided_slice %91 {offsets = [0, 0], sizes = [1, 32], strides = [1, 1]} : vector<2x32xf32> to vector<1x32xf32>
    %295 = vector.broadcast %282 : vector<256x1xf32> to vector<256x32xf32>
    %296 = vector.broadcast %294 : vector<1x32xf32> to vector<256x32xf32>
    %297 = arith.mulf %295, %296 : vector<256x32xf32>
    %298 = arith.addf %87, %297 : vector<256x32xf32>
    %299 = vector.extract_strided_slice %91 {offsets = [1, 0], sizes = [1, 32], strides = [1, 1]} : vector<2x32xf32> to vector<1x32xf32>
    %300 = vector.broadcast %283 : vector<256x1xf32> to vector<256x32xf32>
    %301 = vector.broadcast %299 : vector<1x32xf32> to vector<256x32xf32>
    %302 = arith.mulf %300, %301 : vector<256x32xf32>
    %303 = arith.addf %298, %302 : vector<256x32xf32>
    %304 = vector.extract_strided_slice %92 {offsets = [0, 0], sizes = [1, 32], strides = [1, 1]} : vector<2x32xf32> to vector<1x32xf32>
    %305 = vector.broadcast %282 : vector<256x1xf32> to vector<256x32xf32>
    %306 = vector.broadcast %304 : vector<1x32xf32> to vector<256x32xf32>
    %307 = arith.mulf %305, %306 : vector<256x32xf32>
    %308 = arith.addf %88, %307 : vector<256x32xf32>
    %309 = vector.extract_strided_slice %92 {offsets = [1, 0], sizes = [1, 32], strides = [1, 1]} : vector<2x32xf32> to vector<1x32xf32>
    %310 = vector.broadcast %283 : vector<256x1xf32> to vector<256x32xf32>
    %311 = vector.broadcast %309 : vector<1x32xf32> to vector<256x32xf32>
    %312 = arith.mulf %310, %311 : vector<256x32xf32>
    %313 = arith.addf %308, %312 : vector<256x32xf32>
    %cst_58 = arith.constant dense<0.000000e+00> : vector<256x64xf32>
    %314 = tpu.matmul %276, %93, %cst_58 {dimension_numbers = #tpu.dot_dimension_numbers<[1], [0], [0], [1], [0, 0, 1, 1], [], []>} : vector<256x32xf32>, vector<32x64xf32>, vector<256x64xf32> -> vector<256x64xf32>
    %315 = vector.extract_strided_slice %314 {offsets = [0, 0], sizes = [256, 32], strides = [1, 1]} : vector<256x64xf32> to vector<256x32xf32>
    %316 = arith.addf %293, %315 : vector<256x32xf32>
    %317 = arith.negf %316 : vector<256x32xf32>
    %318 = math.exp %317 : vector<256x32xf32>
    %cst_59 = arith.constant 1.000000e+00 : f32
    %319 = vector.broadcast %cst_59 : f32 to vector<256x32xf32>
    %320 = arith.addf %319, %318 : vector<256x32xf32>
    %321 = arith.divf %319, %320 : vector<256x32xf32>
    %322 = vector.extract_strided_slice %314 {offsets = [0, 32], sizes = [256, 32], strides = [1, 1]} : vector<256x64xf32> to vector<256x32xf32>
    %323 = arith.addf %303, %322 : vector<256x32xf32>
    %324 = arith.negf %323 : vector<256x32xf32>
    %325 = math.exp %324 : vector<256x32xf32>
    %cst_60 = arith.constant 1.000000e+00 : f32
    %326 = vector.broadcast %cst_60 : f32 to vector<256x32xf32>
    %327 = arith.addf %326, %325 : vector<256x32xf32>
    %328 = arith.divf %326, %327 : vector<256x32xf32>
    %329 = arith.mulf %328, %276 : vector<256x32xf32>
    %cst_61 = arith.constant dense<0.000000e+00> : vector<256x32xf32>
    %330 = tpu.matmul %329, %94, %cst_61 {dimension_numbers = #tpu.dot_dimension_numbers<[1], [0], [0], [1], [0, 0, 1, 1], [], []>} : vector<256x32xf32>, vector<32x32xf32>, vector<256x32xf32> -> vector<256x32xf32>
    %331 = arith.addf %313, %330 : vector<256x32xf32>
    %332 = math.tanh %331 : vector<256x32xf32>
    %cst_62 = arith.constant 1.000000e+00 : f32
    %333 = vector.broadcast %cst_62 : f32 to vector<256x32xf32>
    %334 = arith.subf %333, %321 : vector<256x32xf32>
    %335 = arith.mulf %334, %276 : vector<256x32xf32>
    %336 = arith.mulf %321, %332 : vector<256x32xf32>
    %337 = arith.addf %335, %336 : vector<256x32xf32>
    %cst_63 = arith.constant dense<0.000000e+00> : vector<256x2xf32>
    %338 = tpu.matmul %337, %95, %cst_63 {dimension_numbers = #tpu.dot_dimension_numbers<[1], [0], [0], [1], [0, 0, 1, 1], [], []>} : vector<256x32xf32>, vector<32x2xf32>, vector<256x2xf32> -> vector<256x2xf32>
    %339 = vector.broadcast %96 : vector<1x2xf32> to vector<256x2xf32>
    %340 = arith.addf %338, %339 : vector<256x2xf32>
    %341 = arith.addf %280, %340 : vector<256x2xf32>
    %342 = arith.addf %281, %337 : vector<256x32xf32>
    %c0_64 = arith.constant 0 : index
    %c0_65 = arith.constant 0 : index
    %343 = vector.load %arg16[%c0_64, %c0_65] : memref<2x32xf32, #tpu.memory_space<vmem>>, vector<2x32xf32>
    %344 = tpu.transpose %342, [1, 0] : vector<256x32xf32> -> vector<32x256xf32>
    %cst_66 = arith.constant dense<0.000000e+00> : vector<2x256xf32>
    %345 = tpu.matmul %343, %344, %cst_66 {dimension_numbers = #tpu.dot_dimension_numbers<[1], [0], [0], [1], [0, 0, 1, 1], [], []>} : vector<2x32xf32>, vector<32x256xf32>, vector<2x256xf32> -> vector<2x256xf32>
    %c0_67 = arith.constant 0 : index
    %c0_68 = arith.constant 0 : index
    %346 = vector.load %arg17[%c0_67, %c0_68] : memref<2x1xf32, #tpu.memory_space<vmem>>, vector<2x1xf32>
    %cst_69 = arith.constant 4.000000e+00 : f32
    %347 = vector.broadcast %cst_69 : f32 to vector<2x1xf32>
    %348 = arith.mulf %347, %346 : vector<2x1xf32>
    %349 = vector.broadcast %348 : vector<2x1xf32> to vector<2x256xf32>
    %350 = arith.addf %345, %349 : vector<2x256xf32>
    %c0_70 = arith.constant 0 : index
    %c0_71 = arith.constant 0 : index
    %c0_72 = arith.constant 0 : index
    %351 = vector.load %arg18[%c0_70, %c0_71, %c0_72] : memref<1x2x256xf32, #tpu.memory_space<vmem>>, vector<1x2x256xf32>
    %352 = vector.shape_cast %351 : vector<1x2x256xf32> to vector<2x256xf32>
    %353 = vector.shape_cast %350 : vector<2x256xf32> to vector<1x2x256xf32>
    tpu.vector_store %arg18[%c0_70, %c0_71, %c0_72], %353 {strides = array<i32>} : memref<1x2x256xf32, #tpu.memory_space<vmem>>, vector<1x2x256xf32>,
    return
  }
  func.func @transform_0(%arg0: i32) -> (i32, i32, i32) {
    %c0_i32 = arith.constant 0 : i32
    %c0_i32_0 = arith.constant 0 : i32
    %c0_i32_1 = arith.constant 0 : i32
    return %arg0, %c0_i32, %c0_i32_0 : i32, i32, i32
  }
  func.func @transform_1(%arg0: i32) -> (i32, i32, i32) {
    %c0_i32 = arith.constant 0 : i32
    %c0_i32_0 = arith.constant 0 : i32
    %c0_i32_1 = arith.constant 0 : i32
    return %arg0, %c0_i32, %c0_i32_0 : i32, i32, i32
  }
  func.func @transform_2(%arg0: i32) -> (i32, i32) {
    %c0_i32 = arith.constant 0 : i32
    %c0_i32_0 = arith.constant 0 : i32
    %c0_i32_1 = arith.constant 0 : i32
    return %c0_i32, %c0_i32_0 : i32, i32
  }
  func.func @transform_3(%arg0: i32) -> (i32, i32) {
    %c0_i32 = arith.constant 0 : i32
    %c0_i32_0 = arith.constant 0 : i32
    %c0_i32_1 = arith.constant 0 : i32
    return %c0_i32, %c0_i32_0 : i32, i32
  }
  func.func @transform_4(%arg0: i32) -> (i32, i32) {
    %c0_i32 = arith.constant 0 : i32
    %c0_i32_0 = arith.constant 0 : i32
    %c0_i32_1 = arith.constant 0 : i32
    return %c0_i32, %c0_i32_0 : i32, i32
  }
  func.func @transform_5(%arg0: i32) -> (i32, i32) {
    %c0_i32 = arith.constant 0 : i32
    %c0_i32_0 = arith.constant 0 : i32
    %c0_i32_1 = arith.constant 0 : i32
    return %c0_i32, %c0_i32_0 : i32, i32
  }
  func.func @transform_6(%arg0: i32) -> (i32, i32) {
    %c0_i32 = arith.constant 0 : i32
    %c0_i32_0 = arith.constant 0 : i32
    %c0_i32_1 = arith.constant 0 : i32
    return %c0_i32, %c0_i32_0 : i32, i32
  }
  func.func @transform_7(%arg0: i32) -> (i32, i32) {
    %c0_i32 = arith.constant 0 : i32
    %c0_i32_0 = arith.constant 0 : i32
    %c0_i32_1 = arith.constant 0 : i32
    return %c0_i32, %c0_i32_0 : i32, i32
  }
  func.func @transform_8(%arg0: i32) -> (i32, i32) {
    %c0_i32 = arith.constant 0 : i32
    %c0_i32_0 = arith.constant 0 : i32
    %c0_i32_1 = arith.constant 0 : i32
    return %c0_i32, %c0_i32_0 : i32, i32
  }
  func.func @transform_9(%arg0: i32) -> (i32, i32) {
    %c0_i32 = arith.constant 0 : i32
    %c0_i32_0 = arith.constant 0 : i32
    %c0_i32_1 = arith.constant 0 : i32
    return %c0_i32, %c0_i32_0 : i32, i32
  }
  func.func @transform_10(%arg0: i32) -> (i32, i32) {
    %c0_i32 = arith.constant 0 : i32
    %c0_i32_0 = arith.constant 0 : i32
    %c0_i32_1 = arith.constant 0 : i32
    return %c0_i32, %c0_i32_0 : i32, i32
  }
  func.func @transform_11(%arg0: i32) -> (i32, i32) {
    %c0_i32 = arith.constant 0 : i32
    %c0_i32_0 = arith.constant 0 : i32
    %c0_i32_1 = arith.constant 0 : i32
    return %c0_i32, %c0_i32_0 : i32, i32
  }
  func.func @transform_12(%arg0: i32) -> (i32, i32) {
    %c0_i32 = arith.constant 0 : i32
    %c0_i32_0 = arith.constant 0 : i32
    %c0_i32_1 = arith.constant 0 : i32
    return %c0_i32, %c0_i32_0 : i32, i32
  }
  func.func @transform_13(%arg0: i32) -> (i32, i32) {
    %c0_i32 = arith.constant 0 : i32
    %c0_i32_0 = arith.constant 0 : i32
    %c0_i32_1 = arith.constant 0 : i32
    return %c0_i32, %c0_i32_0 : i32, i32
  }
  func.func @transform_14(%arg0: i32) -> (i32, i32) {
    %c0_i32 = arith.constant 0 : i32
    %c0_i32_0 = arith.constant 0 : i32
    %c0_i32_1 = arith.constant 0 : i32
    return %c0_i32, %c0_i32_0 : i32, i32
  }
  func.func @transform_15(%arg0: i32) -> (i32, i32) {
    %c0_i32 = arith.constant 0 : i32
    %c0_i32_0 = arith.constant 0 : i32
    %c0_i32_1 = arith.constant 0 : i32
    return %c0_i32, %c0_i32_0 : i32, i32
  }
  func.func @transform_16(%arg0: i32) -> (i32, i32) {
    %c0_i32 = arith.constant 0 : i32
    %c0_i32_0 = arith.constant 0 : i32
    %c0_i32_1 = arith.constant 0 : i32
    return %c0_i32, %c0_i32_0 : i32, i32
  }
  func.func @transform_17(%arg0: i32) -> (i32, i32, i32) {
    %c0_i32 = arith.constant 0 : i32
    %c0_i32_0 = arith.constant 0 : i32
    %c0_i32_1 = arith.constant 0 : i32
    return %arg0, %c0_i32, %c0_i32_0 : i32, i32, i32
  }
}

</mosaic_0001>

<bundles_post_ra>
// kernel: _lambda_.1
= control target key start
LH: loop header
LB: loop body
LE: loop exit
PB: predicated region body
PF: predicated region fallthrough
CT: control target
= control target key end

     0   :  { %s20014_s0 = inlined_call_operand.vmem [shape: f32[2,3,256], index: 0, kind: input, shape index: {}]   ;;  %s20015_s1 = inlined_call_operand.vmem [shape: f32[2,3,256], index: 1, kind: input, shape index: {}]   ;;  %s20016_s2 = inlined_call_operand.hbm [shape: f32[32,3], index: 2, kind: input, shape index: {}]   ;;  %s20017_s3 = inlined_call_operand.hbm [shape: f32[32,1], index: 3, kind: input, shape index: {}]   ;;  %s20018_s4 = inlined_call_operand.hbm [shape: f32[32,3], index: 4, kind: input, shape index: {}]   ;;  %s20019_s5 = inlined_call_operand.hbm [shape: f32[32,1], index: 5, kind: input, shape index: {}]   ;;  %s20020_s6 = inlined_call_operand.hbm [shape: f32[256,32], index: 6, kind: input, shape index: {}]   ;;  %s20021_s7 = inlined_call_operand.hbm [shape: f32[32,32], index: 7, kind: input, shape index: {}]   ;;  %s20022_s8 = inlined_call_operand.vmem [shape: f32[32,96], index: 8, kind: input, shape index: {}]   ;;  %s20023_s9 = inlined_call_operand.vmem [shape: f32[32,64], index: 9, kind: input, shape index: {}]   ;;  %s20024_s10 = inlined_call_operand.vmem [shape: f32[32,32], index: 10, kind: input, shape index: {}]   ;;  %s20025_s11 = inlined_call_operand.vmem [shape: f32[2,96], index: 11, kind: input, shape index: {}]   ;;  %s20026_s12 = inlined_call_operand.vmem [shape: f32[1,96], index: 12, kind: input, shape index: {}]   ;;  %s20027_s13 = inlined_call_operand.vmem [shape: f32[32,2], index: 13, kind: input, shape index: {}]   ;;  %s20028_s14 = inlined_call_operand.vmem [shape: f32[1,2], index: 14, kind: input, shape index: {}]   ;;  %s20029_s15 = inlined_call_operand.vmem [shape: f32[2,32], index: 15, kind: input, shape index: {}]   ;;  %s20030_s16 = inlined_call_operand.vmem [shape: f32[2,1], index: 16, kind: input, shape index: {}]   ;;  %s20031_s17 = inlined_call_operand.vmem [shape: f32[2,2,256], index: 17, kind: output, shape index: {}]  }
   0x1   :  { %20545 = sst [smem:[#allocation179_spill]] %s20014_s0 }
   0x2   :  { %20546 = sst [smem:[#allocation180_spill]] %s20015_s1 }
   0x3   :  { %20547 = sst [smem:[#allocation181_spill]] %s20028_s14 }
   0x4   :  { %20548 = sst [smem:[#allocation182_spill]] %s20029_s15 }
   0x5   :  { %20549 = sst [smem:[#allocation183_spill]] %s20030_s16 }
   0x6   :  { %20550 = sst [smem:[#allocation184_spill]] %s20031_s17 }
   0x7   :  { %22 = vsyncpa [#allocation3], 0 }
   0x8   :  { %23 = vsyncpa [#allocation5], 0 }
   0x9   :  { %24 = vsyncpa [#allocation8], 0 }
   0xa   :  { %25 = vsyncpa [#allocation11], 0  ;;  %s14606_s24 = smov 0  }
   0xb LB: > { %20551 = sst [smem:[#allocation16_spill]] %s14498_s24  ;;  %s14612_s25 = sadd.s32 4294967295, %s14498_s24   ;;  %s14498_s24 = sphi %s14606_s24, %s31_s24  }
   0xc   : > { %p11173_p0 = scmp.ge.s32.totalorder %s14498_s24, 1  ;;  %p429_p1 = scmp.lt.s32.totalorder %s14498_s24, 3 }
   0xd   : > { %p20034_p2 = scmp.eq.s32.totalorder %s14612_s25, 0  ;;  %s14500_s27 = smov [#allocation4]  }
   0xe   : > { %p14617_p3 = pnand %p11173_p0, %p429_p1  ;;  %s454_s28 = sshll.u32 %s14500_s27, 4  ;;  %s14621_s28 = int_to_ptr.vmem [resolvable:$true] %s454_s28 }
   0xf   : > { %s14501_s29 = smov [#allocation7]   ;;  %s14502_s18 = smov [#allocation2]  }
  0x10   : > { %s20552_s26 = scalar_select %p14617_p3, 1, 0 }
  0x11   : > { %p13273_p4 = pneg %p14617_p3  ;;  %s480_s0 = sshll.u32 %s14501_s29, 4  ;;  %s14625_s0 = int_to_ptr.vmem [resolvable:$true] %s480_s0 }
  0x12   : > { %s441_s19 = sshll.u32 %s14502_s18, 4  ;;  %s14503_s1 = smov [#allocation6]   ;;  %s14633_s19 = int_to_ptr.vmem [resolvable:$true] %s441_s19 }
  0x13   : > { %p14629_p5 = pnand %p20034_p2, %p13273_p4  ;;  %s14635_s20 = sshll.u32 %s14503_s1, 4  ;;  %s468_s20 = int_to_ptr.vmem [resolvable:$true] %s14635_s20 }
  0x14   : > { %s14308_s23 = scalar_lea.hbm %s20017_s3, 512 }
  0x15   : > { %p14309_p6 = scmp.ne.s32.totalorder %s20017_s3, %s14308_s23  ;;  %p14645_p7 = pneg %p14629_p5 }
  0x16   : > { %p14315_p10 = scmp.lt.u32.totalorder %s14308_s23, %s20017_s3 }
  0x17   : > { %p14311_p8 = pnand %p14645_p7, %p14309_p6 }
  0x19   : > { %p14312_p9 = pneg %p14311_p8 }
  0x1b   : > { %p14317_p11 = pnand %p14315_p10, %p14312_p9 }
  0x1d   : > { %14320 = shalt.err (!%p14317_p11)
}
  0x1e   : > { %s14321_s21 = scalar_lea.vmem %s14621_s28, 512  ;;  %p14329_p1 = scmp.lt.s32.totalorder %s14621_s28, %s14621_s28 }
  0x1f   : > { %p14322_p12 = scmp.ne.s32.totalorder %s14621_s28, %s14321_s21  ;;  %p14330_p4 = scmp.lt.s32.totalorder %s14321_s21, %s14321_s21 }
  0x21   : > { %p14324_p13 = pnand %p14322_p12, %p14645_p7  ;;  %p14331_p6 = por %p14330_p4, %p14329_p1 }
  0x23   : > { %p14325_p0 = pneg %p14324_p13 }
  0x25   : > { %p14332_p8 = pnand %p14331_p6, %p14325_p0 }
  0x27   : > { %14335 = shalt.err (!%p14332_p8)
}
  0x28   : > { %s14504_s22 = smov 128   ;;  %s14505_s23 = smov 8  }
  0x29   : > { %13279 = dma.hbm_to_vmem [thread:$0]  (!%p14629_p5), %s20017_s3, 512, %s14621_s28, [#allocation5], %s14504_s22, %s14504_s22, %s14505_s23  }
  0x2a   : > { %s14336_s21 = scalar_lea.hbm %s20019_s5, 512 }
  0x2b   : > { %p14337_p9 = scmp.ne.s32.totalorder %s20019_s5, %s14336_s21  ;;  %p14343_p12 = scmp.lt.u32.totalorder %s14336_s21, %s20019_s5 }
  0x2d   : > { %p14339_p10 = pnand %p14337_p9, %p14645_p7 }
  0x2f   : > { %p14340_p11 = pneg %p14339_p10 }
  0x31   : > { %p14345_p13 = pnand %p14343_p12, %p14340_p11 }
  0x33   : > { %14348 = shalt.err (!%p14345_p13)
}
  0x34   : > { %s14349_s28 = scalar_lea.vmem %s14625_s0, 512  ;;  %p14357_p6 = scmp.lt.s32.totalorder %s14625_s0, %s14625_s0 }
  0x35   : > { %p14350_p0 = scmp.ne.s32.totalorder %s14625_s0, %s14349_s28  ;;  %p14358_p8 = scmp.lt.s32.totalorder %s14349_s28, %s14349_s28 }
  0x37   : > { %p14352_p1 = pnand %p14350_p0, %p14645_p7  ;;  %p14359_p9 = por %p14358_p8, %p14357_p6 }
  0x39   : > { %p14353_p4 = pneg %p14352_p1 }
  0x3b   : > { %p14360_p10 = pnand %p14359_p9, %p14353_p4 }
  0x3d   : > { %14363 = shalt.err (!%p14360_p10)
}
  0x3e   : > { %13285 = dma.hbm_to_vmem [thread:$0]  (!%p14629_p5), %s20019_s5, 512, %s14625_s0, [#allocation8], %s14504_s22, %s14504_s22, %s14505_s23  }
  0x3f   : > { %s14364_s27 = scalar_lea.hbm %s20016_s2, 512 }
  0x40   : > { %p14365_p11 = scmp.ne.s32.totalorder %s20016_s2, %s14364_s27  ;;  %p14371_p0 = scmp.lt.u32.totalorder %s14364_s27, %s20016_s2 }
  0x42   : > { %p14367_p12 = pnand %p14365_p11, %p14645_p7 }
  0x44   : > { %p14368_p13 = pneg %p14367_p12 }
  0x46   : > { %p14373_p1 = pnand %p14371_p0, %p14368_p13 }
  0x48   : > { %14376 = shalt.err (!%p14373_p1)
}
  0x49   : > { %s14377_s0 = scalar_lea.vmem %s14633_s19, 512  ;;  %p14385_p9 = scmp.lt.s32.totalorder %s14633_s19, %s14633_s19 }
  0x4a   : > { %p14378_p4 = scmp.ne.s32.totalorder %s14633_s19, %s14377_s0  ;;  %p14386_p10 = scmp.lt.s32.totalorder %s14377_s0, %s14377_s0 }
  0x4c   : > { %p14380_p6 = pnand %p14378_p4, %p14645_p7  ;;  %p14387_p11 = por %p14386_p10, %p14385_p9 }
  0x4e   : > { %p14381_p8 = pneg %p14380_p6 }
  0x50   : > { %p14388_p12 = pnand %p14387_p11, %p14381_p8 }
  0x52   : > { %14391 = shalt.err (!%p14388_p12)
}
  0x53   : > { %13276 = dma.hbm_to_vmem [thread:$0]  (!%p14629_p5), %s20016_s2, 512, %s14633_s19, [#allocation3], %s14504_s22, %s14504_s22, %s14505_s23  }
  0x54   : > { %s14392_s17 = scalar_lea.hbm %s20018_s4, 512 }
  0x55   : > { %p14393_p13 = scmp.ne.s32.totalorder %s20018_s4, %s14392_s17  ;;  %p14399_p4 = scmp.lt.u32.totalorder %s14392_s17, %s20018_s4 }
  0x57   : > { %p14395_p0 = pnand %p14393_p13, %p14645_p7 }
  0x59   : > { %p14396_p1 = pneg %p14395_p0 }
  0x5b   : > { %p14401_p6 = pnand %p14399_p4, %p14396_p1 }
  0x5d   : > { %14404 = shalt.err (!%p14401_p6)
}
  0x5e   : > { %s14405_s21 = scalar_lea.vmem %s468_s20, 512  ;;  %p14413_p11 = scmp.lt.s32.totalorder %s468_s20, %s468_s20 }
  0x5f   : > { %p14406_p8 = scmp.ne.s32.totalorder %s468_s20, %s14405_s21  ;;  %p14414_p12 = scmp.lt.s32.totalorder %s14405_s21, %s14405_s21 }
  0x61   : > { %p14408_p9 = pnand %p14406_p8, %p14645_p7  ;;  %p14415_p2 = por %p14414_p12, %p14413_p11 }
  0x63   : > { %p14409_p10 = pneg %p14408_p9 }
  0x65   : > { %p14416_p3 = pnand %p14415_p2, %p14409_p10 }
  0x67   : > { %14419 = shalt.err (!%p14416_p3)
}
  0x68   : > { %13282 = dma.hbm_to_vmem [thread:$0]  (!%p14629_p5), %s20018_s4, 512, %s468_s20, [#allocation5], %s14504_s22, %s14504_s22, %s14505_s23  }
  0x69   : > { %s14506_s28 = smov [#allocation9]   ;;  %s14507_s15 = smov [#allocation10]  }
  0x6a   : > { %s493_s14 = sshll.u32 %s14506_s28, 4  ;;  %s506_s16 = sshll.u32 %s14507_s15, 4  ;;  %s494_s14 = int_to_ptr.vmem [resolvable:$true] %s493_s14  ;;  %s507_s16 = int_to_ptr.vmem [resolvable:$true] %s506_s16 }
  0x6b   : > { %s14420_s29 = scalar_lea.hbm %s20020_s6, 4096 }
  0x6c   : > { %p14421_p2 = scmp.ne.s32.totalorder %s20020_s6, %s14420_s29  ;;  %p14427_p0 = scmp.lt.u32.totalorder %s14420_s29, %s20020_s6 }
  0x6e   : > { %p14423_p3 = pnand %p14421_p2, %p14645_p7 }
  0x70   : > { %p14424_p13 = pneg %p14423_p3 }
  0x72   : > { %p14429_p1 = pnand %p14427_p0, %p14424_p13 }
  0x74   : > { %14432 = shalt.err (!%p14429_p1)
}
  0x75   : > { %s14433_s20 = scalar_lea.vmem %s494_s14, 4096  ;;  %p14441_p9 = scmp.lt.s32.totalorder %s494_s14, %s494_s14 }
  0x76   : > { %p14434_p4 = scmp.ne.s32.totalorder %s494_s14, %s14433_s20  ;;  %p14442_p10 = scmp.lt.s32.totalorder %s14433_s20, %s14433_s20 }
  0x78   : > { %p14436_p6 = pnand %p14434_p4, %p14645_p7  ;;  %p14443_p11 = por %p14442_p10, %p14441_p9 }
  0x7a   : > { %p14437_p8 = pneg %p14436_p6 }
  0x7c   : > { %p14444_p12 = pnand %p14443_p11, %p14437_p8 }
  0x7e   : > { %14447 = shalt.err (!%p14444_p12)
}
  0x7f   : > { %13288 = dma.hbm_to_vmem [thread:$0]  (!%p14629_p5), %s20020_s6, 4096, %s494_s14, [#allocation8], %s14504_s22, %s14504_s22, %s14505_s23  }
  0x80   : > { %s14448_s27 = scalar_lea.hbm %s20021_s7, 512 }
  0x81   : > { %p14449_p2 = scmp.ne.s32.totalorder %s20021_s7, %s14448_s27  ;;  %p14455_p0 = scmp.lt.u32.totalorder %s14448_s27, %s20021_s7 }
  0x83   : > { %p14451_p3 = pnand %p14449_p2, %p14645_p7 }
  0x85   : > { %p14452_p13 = pneg %p14451_p3 }
  0x87   : > { %p14457_p1 = pnand %p14455_p0, %p14452_p13 }
  0x89   : > { %14460 = shalt.err (!%p14457_p1)
}
  0x8a   : > { %s14461_s19 = scalar_lea.vmem %s507_s16, 512  ;;  %p14469_p9 = scmp.lt.s32.totalorder %s507_s16, %s507_s16 }
  0x8b   : > { %p14462_p4 = scmp.ne.s32.totalorder %s507_s16, %s14461_s19  ;;  %p14470_p10 = scmp.lt.s32.totalorder %s14461_s19, %s14461_s19 }
  0x8d   : > { %p14464_p6 = pnand %p14462_p4, %p14645_p7  ;;  %p14471_p11 = por %p14470_p10, %p14469_p9 }
  0x8f   : > { %p14465_p8 = pneg %p14464_p6 }
  0x91   : > { %p14472_p12 = pnand %p14471_p11, %p14465_p8 }
  0x93   : > { %14475 = shalt.err (!%p14472_p12)
}
  0x94   : > { %13291 = dma.hbm_to_vmem [thread:$0]  (!%p14629_p5), %s20021_s7, 512, %s507_s16, [#allocation11], %s14504_s22, %s14504_s22, %s14505_s23  }
  0x95   : > { %p20555_p2 = scmp.ne.s32.totalorder %s20552_s26, 0 }
  0x97   : > { %565 = sbr.rel (%p20555_p2) target bundleno = 5196 (0x144c), region = 88 }
  0x9e   : > { %p20556_p7 = scmp.eq.s32.totalorder %s14612_s25, 0 }
  0xa0   : > { %14481 = dma.done.wait (%p20556_p7), [#allocation3], 512   ;;  %p20557_p3 = pmov %p20556_p7 }
  0xa2   : > { %14483 = vsyncadd (%p20557_p3), [#allocation3], 4294966784  ;;  %p20558_p13 = pmov %p20557_p3 }
  0xa3   : > { %p20559_p0 = pmov %p20557_p3 }
  0xa4   : > { %14485 = dma.done.wait (%p20558_p13), [#allocation5], 1024  }
  0xa5   : > { %14487 = vsyncadd (%p20559_p0), [#allocation5], 4294966272  ;;  %p20560_p1 = pmov %p20559_p0 }
  0xa6   : > { %p20561_p5 = pmov %p20559_p0 }
  0xa7   : > { %14489 = dma.done.wait (%p20560_p1), [#allocation8], 4608  }
  0xa8   : > { %14491 = vsyncadd (%p20561_p5), [#allocation8], 4294962688  ;;  %p20562_p4 = pmov %p20559_p0 }
  0xa9   : > { %p20563_p6 = pmov %p20559_p0 }
  0xaa   : > { %14493 = dma.done.wait (%p20562_p4), [#allocation11], 512  }
  0xab   : > { %14495 = vsyncadd (%p20563_p6), [#allocation11], 4294966784  ;;  %v20038_v0 = vmov 1   ;;  %v20036_v1 = vmov 0   ;;  %v660_v2 = vld [vmem:[#allocation2 + $0x8] sm:$0xff]  ;;  %v659_v3 = vld [vmem:[#allocation2] sm:$0xff]  ;;  %v688_v11 = vlaneseq }
  0xac   : > { %13328 = vset.pattern.permute.xlu0 %v20038_v0  ;;  %13329 = vset.pattern.permute.xlu1 %v20036_v1  ;;  %v661_v4 = vld [vmem:[#allocation2 + $0x10] sm:$0xff]  ;;  %v14510_v5 = vmov 2   ;;  %v662_v6 = vld [vmem:[#allocation2 + $0x18] sm:$0xff]  ;;  %v664_v7 = vld [vmem:[#allocation4 + $0x8] sm:$0xff]  ;;  %p642_p8 = scmp.lt.s32.totalorder %s14612_s25, 1  ;;  %s20564_s22 = sld [smem:[#allocation179_spill]] }
  0xad   : > { %674 = vperm.xlu1 %13329, %v660_v2   ;;  %715 = vperm.xlu0 %13328, %v659_v3   ;;  %v663_v8 = vld [vmem:[#allocation4] sm:$0xff]  ;;  %v665_v9 = vld [vmem:[#allocation4 + $0x10] sm:$0xff]  ;;  %v666_v10 = vld [vmem:[#allocation4 + $0x18] sm:$0xff]  ;;  %v689_v14 = vshrl.u32 %v688_v11, 7  ;;  %s20565_s28 = sld [smem:[#allocation180_spill]]  ;;  %vm1225_vm0 = vcmask 261120  }
  0xae   : > { %s21464_s25 = smov (!%p642_p8, %s14612_s25), 1  ;;  %s14514_s30 = smov 96   ;;  %vm19800_vm1 = vmpackc.low %vm1225_vm0, %vm1225_vm0 }
  0xaf   : > { %s11808_s24 = sshll.u32 %s21464_s25, 3  ;;  %v14826_v15 = vsub.s32 0, %v689_v14  ;;  %v694_v16 = vsub.s32 4, %v689_v14  ;;  %v14828_v19 = vsub.s32 1, %v689_v14  ;;  %v736_v21 = vsub.s32 5, %v689_v14  ;;  %s20735_s19 = sld [smem:[#allocation181_spill]] }
  0xb0   : > { %v782_v23 = vsub.s32 2, %v689_v14  ;;  %v786_v24 = vsub.s32 6, %v689_v14  ;;  %s21461_s29 = sld [smem:[#allocation184_spill]] }
  0xb1   : > { %13330 = vset.pattern.permute.xlu1 %v20038_v0  ;;  %13335 = vset.pattern.permute.xlu0 %v14510_v5 }
  0xb2   : > { %719 = vperm.xlu1 %13330, %v660_v2   ;;  %773 = vperm.xlu0 %13335, %v661_v4   ;;  %s646_s23 = scalar_lea.vmem %s20564_s22, %s11808_s24  ;;  %s14515_s22 = smov 64  }
  0xb3   : > { %s651_s15 = scalar_lea.vmem %s20565_s28, %s11808_s24  ;;  %v657_v20 = vld [vmem:[%s646_s23] sm:$0x77]  ;;  %s14513_s28 = smov 32  }
  0xb4   : > { %v658_v22 = vld [vmem:[%s651_s15] sm:$0x77]  ;;  %v691_v25 = vrot.slane %v657_v20, %v14826_v15  ;;  %v695_v26 = vrot.slane %v657_v20, %v694_v16  ;;  %v733_v33 = vrot.slane %v657_v20, %v14828_v19  ;;  %v737_v34 = vrot.slane %v657_v20, %v736_v21  ;;  %s21342_s23 = sld [smem:[#allocation182_spill]]  ;;  %s21343_s15 = sld [smem:[#allocation183_spill]] }
  0xb5   : > { %v854_v27 = vrot.slane %v658_v22, %v14826_v15  ;;  %v858_v28 = vrot.slane %v658_v22, %v694_v16  ;;  %v880_v29 = vrot.slane %v658_v22, %v14828_v19  ;;  %v884_v32 = vrot.slane %v658_v22, %v736_v21 }
  0xb6   : > { %13331 = vset.pattern.permute.xlu1 %v14510_v5  ;;  %13336 = vset.pattern.permute.xlu0 %v20036_v1  ;;  %v783_v35 = vrot.slane %v657_v20, %v782_v23  ;;  %v787_v36 = vrot.slane %v657_v20, %v786_v24  ;;  %v14837_v37 = vrot.slane %v691_v25, %v14826_v15 }
  0xb7   : > { %765 = vperm.xlu1 %13331, %v659_v3   ;;  %669 = vperm.xlu0 %13336, %v659_v3   ;;  %v14840_v38 = vrot.slane %v695_v26, %v14826_v15  ;;  %v914_v39 = vrot.slane %v658_v22, %v782_v23  ;;  %v918_v40 = vrot.slane %v658_v22, %v786_v24 }
  0xb8   : > { %v14843_v41 = vrot.slane %v854_v27, %v14826_v15  ;;  %v14846_v42 = vrot.slane %v858_v28, %v14826_v15  ;;  %v14849_v43 = vrot.slane %v880_v29, %v14828_v19  ;;  %v14852_v44 = vrot.slane %v884_v32, %v14828_v19 }
  0xb9   : > { %v14855_v46 = vrot.slane %v733_v33, %v14828_v19  ;;  %v14858_v47 = vrot.slane %v737_v34, %v14828_v19  ;;  %v14860_v49 = vrot.slane %v783_v35, %v782_v23  ;;  %v14862_v50 = vrot.slane %v787_v36, %v782_v23 }
  0xba   : > { %v14866_v53 = vrot.slane %v914_v39, %v782_v23  ;;  %v14868_v54 = vrot.slane %v918_v40, %v782_v23 }
  0xbb   : > { %13332 = vset.pattern.permute.xlu1 %v20038_v0  ;;  %679 = vperm.xlu0 %13336, %v661_v4  }
  0xbc   : > { %723 = vperm.xlu1 %13332, %v661_v4  }
  0xbf   : > { %684 = vperm.xlu0 %13336, %v662_v6  }
  0xc0   : > { %13333 = vset.pattern.permute.xlu1 %v14510_v5 }
  0xc1   : > { %769 = vperm.xlu1 %13333, %v660_v2  }
  0xc3   : > { %821 = vperm.xlu0 %13336, %v664_v7  }
  0xc5   : > { %13334 = vset.pattern.permute.xlu1 %v20038_v0 }
  0xc6   : > { %727 = vperm.xlu1 %13334, %v662_v6  }
  0xca   : > { %13337 = vset.pattern.permute.xlu1 %v20036_v1 }
  0xcb   : > { %816 = vperm.xlu1 %13337, %v663_v8  }
  0xcf   : > { %13338 = vset.pattern.permute.xlu1 %v14510_v5 }
  0xd0   : > { %777 = vperm.xlu1 %13338, %v662_v6  }
  0xd4   : > { %13339 = vset.pattern.permute.xlu1 %v20036_v1 }
  0xd5   : > { %826 = vperm.xlu1 %13339, %v665_v9  }
  0xd9   : > { %831 = vperm.xlu1 %13339, %v666_v10  }
 0x12c   : > { %v675_v12 = vpop.permute.xlu1 %674  ;;  %v716_v13 = vpop.permute.xlu0 %715 }
 0x12d   : > { %v708_v51 = vmul.f32 %v14837_v37, %v675_v12  ;;  %v709_v52 = vmul.f32 %v14840_v38, %v675_v12  ;;  %v871_v55 = vmul.f32 %v14843_v41, %v675_v12  ;;  %v872_v56 = vmul.f32 %v14846_v42, %v675_v12 }
 0x12e   : > { %v748_v59 = vmul.f32 %v14855_v46, %v716_v13  ;;  %v749_v60 = vmul.f32 %v14858_v47, %v716_v13  ;;  %v895_v2 = vmul.f32 %v14849_v43, %v716_v13  ;;  %v896_v7 = vmul.f32 %v14852_v44, %v716_v13 }
 0x131   : > { %v720_v17 = vpop.permute.xlu1 %719  ;;  %v774_v18 = vpop.permute.xlu0 %773 }
 0x132   : > { %v897_v57 = vmul.f32 %v14849_v43, %v720_v17  ;;  %v898_v58 = vmul.f32 %v14852_v44, %v720_v17  ;;  %v750_v61 = vmul.f32 %v14855_v46, %v720_v17  ;;  %v751_v62 = vmul.f32 %v14858_v47, %v720_v17 }
 0x133   : > { %v14889_v12 = vmul.f32 %v14860_v49, %v774_v18  ;;  %v14892_v14 = vmul.f32 %v14862_v50, %v774_v18  ;;  %v14895_v13 = vmul.f32 %v14866_v53, %v774_v18  ;;  %v14898_v22 = vmul.f32 %v14868_v54, %v774_v18 }
 0x134   : > { %v906_v16 = vadd.f32 %v898_v58, %v872_v56  ;;  %v905_v17 = vadd.f32 %v897_v57, %v871_v55  ;;  %v758_v20 = vadd.f32 %v750_v61, %v708_v51  ;;  %v759_v21 = vadd.f32 %v751_v62, %v709_v52 }
 0x136   : > { %v14833_v30 = vpop.permute.xlu1 %765  ;;  %v670_v31 = vpop.permute.xlu0 %669 }
 0x137   : > { %v706_v3 = vmul.f32 %v14837_v37, %v670_v31  ;;  %v707_v4 = vmul.f32 %v14840_v38, %v670_v31  ;;  %v869_v8 = vmul.f32 %v14843_v41, %v670_v31  ;;  %v870_v9 = vmul.f32 %v14846_v42, %v670_v31 }
 0x138   : > { %v799_v34 = vmul.f32 %v14862_v50, %v14833_v30  ;;  %v798_v35 = vmul.f32 %v14860_v49, %v14833_v30  ;;  %v930_v18 = vmul.f32 %v14868_v54, %v14833_v30  ;;  %v929_v36 = vmul.f32 %v14866_v53, %v14833_v30 }
 0x139   : > { %v757_v29 = vadd.f32 %v749_v60, %v707_v4  ;;  %v756_v31 = vadd.f32 %v748_v59, %v706_v3  ;;  %v904_v32 = vadd.f32 %v896_v7, %v870_v9  ;;  %v903_v33 = vadd.f32 %v895_v2, %v869_v8 }
 0x13a   : > { %v680_v45 = vpop.permute.xlu0 %679 }
 0x13b   : > { %v724_v48 = vpop.permute.xlu1 %723  ;;  %v710_v39 = vmul.f32 %v14837_v37, %v680_v45  ;;  %v711_v40 = vmul.f32 %v14840_v38, %v680_v45  ;;  %v873_v51 = vmul.f32 %v14843_v41, %v680_v45  ;;  %v874_v52 = vmul.f32 %v14846_v42, %v680_v45 }
 0x13c   : > { %v807_v59 = vadd.f32 %v799_v34, %v757_v29  ;;  %v806_v60 = vadd.f32 %v798_v35, %v756_v31  ;;  %v938_v61 = vadd.f32 %v930_v18, %v904_v32  ;;  %v937_v62 = vadd.f32 %v929_v36, %v903_v33 }
 0x13d   : > { %v752_v2 = vmul.f32 %v14855_v46, %v724_v48  ;;  %v753_v30 = vmul.f32 %v14858_v47, %v724_v48  ;;  %v899_v3 = vmul.f32 %v14849_v43, %v724_v48  ;;  %v900_v4 = vmul.f32 %v14852_v44, %v724_v48 }
 0x13e   : > { %v14878_v63 = vpop.permute.xlu0 %684 }
 0x13f   : > { %v908_v29 = vadd.f32 %v900_v4, %v874_v52  ;;  %v907_v31 = vadd.f32 %v899_v3, %v873_v51  ;;  %v712_v48 = vmul.f32 %v14837_v37, %v14878_v63  ;;  %v713_v35 = vmul.f32 %v14840_v38, %v14878_v63 }
 0x140   : > { %v770_v6 = vpop.permute.xlu1 %769  ;;  %v875_v52 = vmul.f32 %v14843_v41, %v14878_v63 }
 0x141   : > { %v932_v10 = vmul.f32 %v14868_v54, %v770_v6  ;;  %v931_v11 = vmul.f32 %v14866_v53, %v770_v6  ;;  %v800_v23 = vmul.f32 %v14860_v49, %v770_v6  ;;  %v801_v24 = vmul.f32 %v14862_v50, %v770_v6 }
 0x142   : > { %v822_v27 = vpop.permute.xlu0 %821 }
 0x143   : > { %v940_v25 = vadd.f32 %v932_v10, %v906_v16  ;;  %v939_v26 = vadd.f32 %v931_v11, %v905_v17  ;;  %v809_v57 = vadd.f32 %v801_v24, %v759_v21  ;;  %v808_v58 = vadd.f32 %v800_v23, %v758_v20 }
 0x145   : > { %v728_v28 = vpop.permute.xlu1 %727  ;;  %v948_v55 = vadd.f32 %v940_v25, %v822_v27  ;;  %v947_v56 = vadd.f32 %v939_v26, %v822_v27  ;;  %v837_v16 = vadd.f32 %v822_v27, %v809_v57  ;;  %v836_v17 = vadd.f32 %v822_v27, %v808_v58 }
 0x146   : > { %v760_v25 = vadd.f32 %v752_v2, %v710_v39  ;;  %v761_v26 = vadd.f32 %v753_v30, %v711_v40  ;;  %v876_v27 = vmul.f32 %v14846_v42, %v14878_v63  ;;  %v754_v18 = vmul.f32 %v14855_v46, %v728_v28 }
 0x147   : > { %v956_v10 = vmax.f32 %v948_v55, 0.0  ;;  %v955_v11 = vmax.f32 %v947_v56, 0.0  ;;  %v755_v36 = vmul.f32 %v14858_v47, %v728_v28  ;;  %v902_v39 = vmul.f32 %v14852_v44, %v728_v28 }
 0x148   : > { %v845_v40 = vmax.f32 %v837_v16, 0.0  ;;  %v844_v51 = vmax.f32 %v836_v17, 0.0  ;;  %v901_v55 = vmul.f32 %v14849_v43, %v728_v28  ;;  %v811_v58 = vadd.f32 %v14892_v14, %v761_v26  ;;  %v961_v26 = vld [vmem:[#allocation6] sm:$0xff] }
 0x149   : > { %v810_v44 = vadd.f32 %v14889_v12, %v760_v25  ;;  %v14511_v63 = vmov 0.0   ;;  %v942_v2 = vadd.f32 %v14898_v22, %v908_v29  ;;  %v941_v14 = vadd.f32 %v14895_v13, %v907_v31  ;;  %v962_v29 = vld [vmem:[#allocation6 + $0x8] sm:$0xff]  ;;  %v963_v31 = vld [vmem:[#allocation6 + $0x10] sm:$0xff] }
 0x14a   : > { %v817_v6 = vpop.permute.xlu1 %816  ;;  %1386 = vmatprep.mubr.f32.mxu0 %v14511_v63  ;;  %v909_v3 = vadd.f32 %v901_v55, %v875_v52 }
 0x14b   : > { %v835_v7 = vadd.f32 %v817_v6, %v807_v59  ;;  %v834_v8 = vadd.f32 %v817_v6, %v806_v60  ;;  %v946_v45 = vadd.f32 %v938_v61, %v817_v6  ;;  %v945_v9 = vadd.f32 %v937_v62, %v817_v6 }
 0x14c   : > { %v762_v59 = vadd.f32 %v754_v18, %v712_v48  ;;  %v763_v60 = vadd.f32 %v755_v36, %v713_v35  ;;  %v910_v62 = vadd.f32 %v902_v39, %v876_v27  ;;  %v964_v48 = vld [vmem:[#allocation6 + $0x18] sm:$0xff]  ;;  %v1900_v39 = vld [vmem:[#allocation10] sm:$0xff] }
 0x14d   : > { %v843_v20 = vmax.f32 %v835_v7, 0.0  ;;  %v842_v21 = vmax.f32 %v834_v8, 0.0  ;;  %v954_v23 = vmax.f32 %v946_v45, 0.0  ;;  %v953_v24 = vmax.f32 %v945_v9, 0.0  ;;  %v968_v35 = vld [vmem:[#allocation7 + $0x18] sm:$0xff] }
 0x14f   : > { %v778_v32 = vpop.permute.xlu1 %777  ;;  %1129 = vxpose.xlu1.b32.start [1/4] (short) %v843_v20, 128  ;;  %1097 = vxpose.xlu0.b32.start [1/4] (short) %v842_v21, 128  ;;  %v13041_v33 = vpack.c.bf16 %v956_v10, %v954_v23  ;;  %v13043_v34 = vpack.c.bf16 %v955_v11, %v953_v24 }
 0x150   : > { %v804_v56 = vmul.f32 %v14860_v49, %v778_v32  ;;  %v805_v57 = vmul.f32 %v14862_v50, %v778_v32  ;;  %v936_v42 = vmul.f32 %v14868_v54, %v778_v32  ;;  %v935_v61 = vmul.f32 %v14866_v53, %v778_v32  ;;  %v965_v32 = vld [vmem:[#allocation7] sm:$0xff] }
 0x151   : > { %13042 = vmatprep.subr.bf16.mxu0 %v13041_v33  ;;  %v966_v33 = vld [vmem:[#allocation7 + $0x8] sm:$0xff] }
 0x152   : > { %13044 = vmatpush1.bf16.msra.mxu0 %v13043_v34  ;;  %v813_v54 = vadd.f32 %v805_v57, %v763_v60  ;;  %v812_v30 = vadd.f32 %v804_v56, %v762_v59  ;;  %v944_v6 = vadd.f32 %v936_v42, %v910_v62  ;;  %v943_v53 = vadd.f32 %v935_v61, %v909_v3  ;;  %v967_v34 = vld [vmem:[#allocation7 + $0x10] sm:$0xff]  ;;  %v1643_v56 = vld [vmem:[#allocation9] sm:$0xff]  ;;  %v1644_v57 = vld [vmem:[#allocation9 + $0x8] sm:$0xff] }
 0x153   : > { %1130 = vxpose.xlu1.b32.cont [2/4] (short) %v845_v40, 128  ;;  %1098 = vxpose.xlu0.b32.cont [2/4] (short) %v844_v51, 128  ;;  %v1901_v40 = vld [vmem:[#allocation10 + $0x8] sm:$0xff]  ;;  %v1645_v42 = vld [vmem:[#allocation9 + $0x10] sm:$0xff]  ;;  %v1646_v59 = vld [vmem:[#allocation9 + $0x18] sm:$0xff] }
 0x154   : > { %v827_v41 = vpop.permute.xlu1 %826  ;;  %v13097_v51 = vpack.c.bf16 %v1901_v40, %v1900_v39  ;;  %v13053_v60 = vpack.c.bf16 %v1646_v59, %v1645_v42  ;;  %v1902_v3 = vld [vmem:[#allocation10 + $0x10] sm:$0xff] }
 0x155   : > { %v839_v43 = vadd.f32 %v827_v41, %v811_v58  ;;  %v838_v28 = vadd.f32 %v827_v41, %v810_v44  ;;  %v950_v7 = vadd.f32 %v942_v2, %v827_v41  ;;  %v949_v45 = vadd.f32 %v941_v14, %v827_v41  ;;  %v1649_v2 = vld [vmem:[#allocation9 + $0x30] sm:$0xff]  ;;  %v1903_v14 = vld [vmem:[#allocation10 + $0x18] sm:$0xff] }
 0x156   : > { %v14512_v58 = vmov 0.0|0.0   ;;  %v13050_v44 = vpack.c.bf16 %v1644_v57, %v1643_v56  ;;  %v1664_v56 = vld [vmem:[#allocation9 + $0xa8] sm:$0xff]  ;;  %v1665_v59 = vld [vmem:[#allocation9 + $0xb0] sm:$0xff] }
 0x157   : > { %v847_v4 = vmax.f32 %v839_v43, 0.0  ;;  %v846_v12 = vmax.f32 %v838_v28, 0.0  ;;  %v958_v20 = vmax.f32 %v950_v7, 0.0  ;;  %v957_v23 = vmax.f32 %v949_v45, 0.0  ;;  %13049 = vmatprep.subr.bf16.mxu1 %v14512_v58  ;;  %v1647_v43 = vld [vmem:[#allocation9 + $0x20] sm:$0xff]  ;;  %v1648_v28 = vld [vmem:[#allocation9 + $0x28] sm:$0xff] }
 0x158   : > { %v832_v8 = vpop.permute.xlu1 %831  ;;  %13051 = vmatpush1.bf16.msra.mxu1 %v13050_v44  ;;  %v13056_v62 = vpack.c.bf16 %v1648_v28, %v1647_v43  ;;  %v1667_v28 = vld [vmem:[#allocation9 + $0xc0] sm:$0xff] }
 0x159   : > { %1131 = vxpose.xlu1.b32.cont [3/4] (short) %v847_v4, 128  ;;  %1099 = vxpose.xlu0.b32.cont [3/4] (short) %v846_v12, 128  ;;  %v841_v9 = vadd.f32 %v832_v8, %v813_v54  ;;  %v840_v10 = vadd.f32 %v832_v8, %v812_v30  ;;  %v952_v11 = vadd.f32 %v944_v6, %v832_v8  ;;  %v1650_v30 = vld [vmem:[#allocation9 + $0x38] sm:$0xff] }
 0x15a   : > { %v951_v16 = vadd.f32 %v943_v53, %v832_v8  ;;  %13052 = vmatprep.subr.bf16.mxu1 %v14512_v58  ;;  %v13101_v12 = vpack.c.bf16 %v1903_v14, %v1902_v3  ;;  %v13059_v6 = vpack.c.bf16 %v1650_v30, %v1649_v2  ;;  %v1651_v8 = vld [vmem:[#allocation9 + $0x40] sm:$0xff]  ;;  %v1652_v53 = vld [vmem:[#allocation9 + $0x48] sm:$0xff]  ;;  %v1669_v3 = vld [vmem:[#allocation9 + $0xd0] sm:$0xff] }
 0x15b   : > { %v849_v17 = vmax.f32 %v841_v9, 0.0  ;;  %v848_v22 = vmax.f32 %v840_v10, 0.0  ;;  %v960_v21 = vmax.f32 %v952_v11, 0.0  ;;  %v13062_v9 = vpack.c.bf16 %v1652_v53, %v1651_v8  ;;  %v1653_v11 = vld [vmem:[#allocation9 + $0x50] sm:$0xff]  ;;  %v1670_v14 = vld [vmem:[#allocation9 + $0xd8] sm:$0xff]  ;;  %v1671_v8 = vld [vmem:[#allocation9 + $0xe0] sm:$0xff] }
 0x15c   : > { %v959_v24 = vmax.f32 %v951_v16, 0.0  ;;  %13054 = vmatpush1.bf16.msra.mxu1 %v13053_v60  ;;  %v1654_v16 = vld [vmem:[#allocation9 + $0x58] sm:$0xff]  ;;  %v1672_v53 = vld [vmem:[#allocation9 + $0xe8] sm:$0xff] }
 0x15d   : > { %1132 = vxpose.xlu1.b32.end [4/4] (short) %v849_v17, 128  ;;  %1100 = vxpose.xlu0.b32.end [4/4] (short) %v848_v22, 128  ;;  %v13045_v13 = vpack.c.bf16 %v960_v21, %v958_v20  ;;  %v13065_v17 = vpack.c.bf16 %v1654_v16, %v1653_v11  ;;  %v1655_v20 = vld [vmem:[#allocation9 + $0x60] sm:$0xff]  ;;  %v1656_v21 = vld [vmem:[#allocation9 + $0x68] sm:$0xff]  ;;  %v1666_v60 = vld [vmem:[#allocation9 + $0xb8] sm:$0xff] }
 0x15e   : > { %v13047_v25 = vpack.c.bf16 %v959_v24, %v957_v23  ;;  %13055 = vmatprep.subr.bf16.mxu1 %v14512_v58  ;;  %v13068_v24 = vpack.c.bf16 %v1656_v21, %v1655_v20 }
 0x15f   : > { %13046 = vmatprep.subr.bf16.mxu0 %v13045_v13 }
 0x160   : > { %13048 = vmatpush1.bf16.msra.mxu0 %v13047_v25  ;;  %13057 = vmatpush1.bf16.msra.mxu1 %v13056_v62  ;;  %v1657_v25 = vld [vmem:[#allocation9 + $0x70] sm:$0xff]  ;;  %v1668_v62 = vld [vmem:[#allocation9 + $0xc8] sm:$0xff] }
 0x161   : > { %13098 = vmatprep.subr.bf16.mxu0 %v13097_v51  ;;  %13058 = vmatprep.subr.bf16.mxu1 %v14512_v58 }
 0x164   : > { %13060 = vmatpush1.bf16.msra.mxu1 %v13059_v6  ;;  %v13089_v6 = vpack.c.bf16 %v1670_v14, %v1669_v3 }
 0x165   : > { %13061 = vmatprep.subr.bf16.mxu1 %v14512_v58 }
 0x168   : > { %13063 = vmatpush1.bf16.msra.mxu1 %v13062_v9  ;;  %v13092_v9 = vpack.c.bf16 %v1672_v53, %v1671_v8 }
 0x169   : > { %13064 = vmatprep.subr.bf16.mxu1 %v14512_v58 }
 0x16c   : > { %13066 = vmatpush1.bf16.msra.mxu1 %v13065_v17 }
 0x16d   : > { %13067 = vmatprep.subr.bf16.mxu1 %v14512_v58 }
 0x170   : > { %13069 = vmatpush1.bf16.msra.mxu1 %v13068_v24 }
 0x171   : > { %13070 = vmatprep.subr.bf16.mxu1 %v14512_v58 }
 0x17b   : > { %13340 = vset.pattern.permute.xlu1 %v20038_v0 }
 0x1ab   : > { %998 = vperm.xlu1 %13340, %v961_v26  }
 0x1af   : > { %1002 = vperm.xlu1 %13340, %v962_v29  }
 0x1b3   : > { %13341 = vset.pattern.permute.xlu1 %v20036_v1 }
 0x1b4   : > { %981 = vperm.xlu1 %13341, %v963_v31  }
 0x1b6   : > { %971 = vperm.xlu0 %13336, %v961_v26  }
 0x1b8   : > { %13342 = vset.pattern.permute.xlu1 %v20038_v0 }
 0x1b9   : > { %1006 = vperm.xlu1 %13342, %v963_v31  }
 0x1ba   : > { %976 = vperm.xlu0 %13336, %v962_v29  }
 0x1bd   : > { %13343 = vset.pattern.permute.xlu1 %v20036_v1 }
 0x1be   : > { %986 = vperm.xlu1 %13343, %v964_v48   ;;  %13344 = vset.pattern.permute.xlu0 %v20038_v0 }
 0x1bf   : > { %1010 = vperm.xlu0 %13344, %v964_v48  }
 0x1c2   : > { %13346 = vset.pattern.permute.xlu1 %v14510_v5 }
 0x1c3   : > { %1038 = vperm.xlu1 %13346, %v963_v31   ;;  %13345 = vset.pattern.permute.xlu0 %v14510_v5 }
 0x1c4   : > { %1030 = vperm.xlu0 %13345, %v961_v26   ;;  %v1658_v26 = vld [vmem:[#allocation9 + $0x78] sm:$0xff] }
 0x1c5   : > { %v13071_v31 = vpack.c.bf16 %v1658_v26, %v1657_v25 }
 0x1c7   : > { %13347 = vset.pattern.permute.xlu1 %v20036_v1  ;;  %13072 = vmatpush1.bf16.msra.mxu1 %v13071_v31 }
 0x1c8   : > { %1063 = vperm.xlu1 %13347, %v965_v32   ;;  %1034 = vperm.xlu0 %13345, %v962_v29   ;;  %v1659_v32 = vld [vmem:[#allocation9 + $0x80] sm:$0xff] }
 0x1c9   : > { %13073 = vmatprep.subr.bf16.mxu1 %v14512_v58 }
 0x1cc   : > { %1068 = vperm.xlu1 %13347, %v966_v33   ;;  %1042 = vperm.xlu0 %13345, %v964_v48   ;;  %v1660_v33 = vld [vmem:[#allocation9 + $0x88] sm:$0xff] }
 0x1d0   : > { %1073 = vperm.xlu1 %13347, %v967_v34   ;;  %13348 = vset.pattern.permute.xlu0 %v20036_v1  ;;  %v13074_v34 = vpack.c.bf16 %v1660_v33, %v1659_v32 }
 0x1d1   : > { %1078 = vperm.xlu0 %13348, %v968_v35   ;;  %v1113_v27 = vpop.trf.xlu0  ;;  %v14948_v18 = vpop.trf.xlu1 }
 0x1d2   : > { %11194 = vmatmul.mubr.msk.f32.vlgmr.msra.gmra.mrb[0].mxu0 %vm1225_vm0, %v1113_v27  ;;  %v1661_v27 = vld [vmem:[#allocation9 + $0x90] sm:$0xff]  ;;  %13075 = vmatpush1.bf16.msra.mxu1 %v13074_v34 }
 0x1d3   : > { %1392 = vmatprep.mubr.f32.mxu0 %v14511_v63  ;;  %13100 = vmatpush3.bf16.msra.mxu0 %v13097_v51 }
 0x1d4   : > { %13102 = vmatprep.subr.bf16.mxu0 %v13101_v12  ;;  %13076 = vmatprep.subr.bf16.mxu1 %v14512_v58 }
 0x1d5   : > { %v1114_v5 = vpop.trf.xlu0  ;;  %v14952_v36 = vpop.trf.xlu1 }
 0x1d6   : > { %11195 = vmatmul.mubr.msk.f32.gmra.mrb[2].mxu0 %vm1225_vm0, %v1114_v5  ;;  %v1662_v5 = vld [vmem:[#allocation9 + $0x98] sm:$0xff] }
 0x1d7   : > { %1398 = vmatprep.mubr.f32.mxu0 %v14511_v63  ;;  %13104 = vmatpush3.bf16.msra.mxu0 %v13101_v12  ;;  %v13077_v40 = vpack.c.bf16 %v1662_v5, %v1661_v27 }
 0x1d9   : > { %v1115_v52 = vpop.trf.xlu0  ;;  %v14956_v55 = vpop.trf.xlu1  ;;  %13078 = vmatpush1.bf16.msra.mxu1 %v13077_v40 }
 0x1da   : > { %11196 = vmatmul.mubr.msk.f32.gmra.mrb[4].mxu0 %vm1225_vm0, %v1115_v52  ;;  %v1663_v52 = vld [vmem:[#allocation9 + $0xa0] sm:$0xff]  ;;  %13079 = vmatprep.subr.bf16.mxu1 %v14512_v58 }
 0x1db   : > { %1404 = vmatprep.mubr.f32.mxu0 %v14511_v63  ;;  %v13080_v42 = vpack.c.bf16 %v1664_v56, %v1663_v52 }
 0x1dd   : > { %v1116_v61 = vpop.trf.xlu0  ;;  %v14961_v41 = vpop.trf.xlu1  ;;  %13081 = vmatpush1.bf16.msra.mxu1 %v13080_v42 }
 0x1de   : > { %11197 = vmatmul.mubr.msk.f32.gmra.mrb[6].mxu0 %vm1225_vm0, %v1116_v61  ;;  %v13083_v61 = vpack.c.bf16 %v1666_v60, %v1665_v59  ;;  %13082 = vmatprep.subr.bf16.mxu1 %v14512_v58 }
 0x1df   : > { %1410 = vmatprep.mubr.f32.mxu0 %v14511_v63 }
 0x1e1   : > { %v1117_v54 = vpop.trf.xlu0  ;;  %v14968_v4 = vpop.trf.xlu1  ;;  %13084 = vmatpush1.bf16.msra.mxu1 %v13083_v61 }
 0x1e2   : > { %11198 = vmatmul.mubr.msk.f32.gmra.mrb[8].mxu0 %vm1225_vm0, %v1117_v54  ;;  %v13086_v54 = vpack.c.bf16 %v1668_v62, %v1667_v28  ;;  %13085 = vmatprep.subr.bf16.mxu1 %v14512_v58 }
 0x1e3   : > { %1416 = vmatprep.mubr.f32.mxu0 %v14511_v63 }
 0x1e5   : > { %v1118_v7 = vpop.trf.xlu0  ;;  %v14974_v45 = vpop.trf.xlu1  ;;  %13087 = vmatpush1.bf16.msra.mxu1 %v13086_v54 }
 0x1e6   : > { %11199 = vmatmul.mubr.msk.f32.gmra.mrb[10].mxu0 %vm1225_vm0, %v1118_v7  ;;  %13088 = vmatprep.subr.bf16.mxu1 %v14512_v58 }
 0x1e7   : > { %1422 = vmatprep.mubr.f32.mxu0 %v14511_v63 }
 0x1e9   : > { %v1119_v10 = vpop.trf.xlu0  ;;  %v14981_v23 = vpop.trf.xlu1  ;;  %13090 = vmatpush1.bf16.msra.mxu1 %v13089_v6 }
 0x1ea   : > { %11200 = vmatmul.mubr.msk.f32.gmra.mrb[12].mxu0 %vm1225_vm0, %v1119_v10  ;;  %13091 = vmatprep.subr.bf16.mxu1 %v14512_v58 }
 0x1eb   : > { %1428 = vmatprep.mubr.f32.mxu0 %v14511_v63 }
 0x1ed   : > { %v1120_v22 = vpop.trf.xlu0  ;;  %v14987_v29 = vpop.trf.xlu1  ;;  %13093 = vmatpush1.bf16.msra.mxu1 %v13092_v9 }
 0x1ee   : > { %11201 = vmatmul.mubr.msk.f32.gmra.mrb[14].mxu0 %vm1225_vm0, %v1120_v22  ;;  %13094 = vmatprep.subr.bf16.mxu1 %v14512_v58  ;;  %v1674_v58 = vld [vmem:[#allocation9 + $0xf8] sm:$0xff] }
 0x1ef   : > { %1434 = vmatprep.mubr.f32.mxu0 %v14511_v63 }
 0x1f1   : > { %v1121_v13 = vpop.trf.xlu0  ;;  %v14994_v39 = vpop.trf.xlu1 }
 0x1f2   : > { %11202 = vmatmul.mubr.msk.f32.gmra.mrb[16].mxu0 %vm1225_vm0, %v1121_v13 }
 0x1f3   : > { %1440 = vmatprep.mubr.f32.mxu0 %v14511_v63 }
 0x1f5   : > { %v1122_v48 = vpop.trf.xlu0  ;;  %v15000_v57 = vpop.trf.xlu1 }
 0x1f6   : > { %11203 = vmatmul.mubr.msk.f32.gmra.mrb[18].mxu0 %vm1225_vm0, %v1122_v48 }
 0x1f7   : > { %1446 = vmatprep.mubr.f32.mxu0 %v14511_v63 }
 0x1f9   : > { %v1123_v35 = vpop.trf.xlu0  ;;  %v1155_v2 = vpop.trf.xlu1 }
 0x1fa   : > { %11204 = vmatmul.mubr.msk.f32.gmra.mrb[20].mxu0 %vm1225_vm0, %v1123_v35 }
 0x1fb   : > { %1452 = vmatprep.mubr.f32.mxu0 %v14511_v63 }
 0x1fd   : > { %v1124_v51 = vpop.trf.xlu0  ;;  %v1156_v12 = vpop.trf.xlu1 }
 0x1fe   : > { %11205 = vmatmul.mubr.msk.f32.gmra.mrb[22].mxu0 %vm1225_vm0, %v1124_v51 }
 0x1ff   : > { %1458 = vmatprep.mubr.f32.mxu0 %v14511_v63 }
 0x201   : > { %v1125_v44 = vpop.trf.xlu0  ;;  %v1157_v10 = vpop.trf.xlu1 }
 0x202   : > { %11206 = vmatmul.mubr.msk.f32.gmra.mrb[24].mxu0 %vm1225_vm0, %v1125_v44 }
 0x203   : > { %1464 = vmatprep.mubr.f32.mxu0 %v14511_v63 }
 0x205   : > { %v1126_v43 = vpop.trf.xlu0  ;;  %v1158_v11 = vpop.trf.xlu1 }
 0x206   : > { %11207 = vmatmul.mubr.msk.f32.gmra.mrb[26].mxu0 %vm1225_vm0, %v1126_v43 }
 0x207   : > { %1470 = vmatprep.mubr.f32.mxu0 %v14511_v63 }
 0x209   : > { %v1127_v30 = vpop.trf.xlu0 }
 0x20a   : > { %11208 = vmatmul.mubr.msk.f32.gmra.mrb[28].mxu0 %vm1225_vm0, %v1127_v30 }
 0x20b   : > { %1476 = vmatprep.mubr.f32.mxu0 %v14511_v63 }
 0x20d   : > { %v1128_v7 = vpop.trf.xlu0 }
 0x20e   : > { %11209 = vmatmul.mubr.msk.f32.gmra.mrb[30].mxu0 %vm1225_vm0, %v1128_v7 }
 0x20f   : > { %1482 = vmatprep.mubr.f32.mxu0 %v14511_v63 }
 0x212   : > { %11210 = vmatmul.mubr.msk.f32.gmra.mrb[32].mxu0 %vm1225_vm0, %v14948_v18  ;;  %v15027_v18 = vpop.trf.xlu1 }
 0x213   : > { %1488 = vmatprep.mubr.f32.mxu0 %v14511_v63 }
 0x216   : > { %11211 = vmatmul.mubr.msk.f32.gmra.mrb[34].mxu0 %vm1225_vm0, %v14952_v36  ;;  %v15033_v36 = vpop.trf.xlu1 }
 0x217   : > { %1494 = vmatprep.mubr.f32.mxu0 %v14511_v63 }
 0x21a   : > { %11212 = vmatmul.mubr.msk.f32.gmra.mrb[36].mxu0 %vm1225_vm0, %v14956_v55  ;;  %v1673_v55 = vld [vmem:[#allocation9 + $0xf0] sm:$0xff] }
 0x21b   : > { %1500 = vmatprep.mubr.f32.mxu0 %v14511_v63  ;;  %v13095_v16 = vpack.c.bf16 %v1674_v58, %v1673_v55 }
 0x21d   : > { %13096 = vmatpush1.bf16.msra.mxu1 %v13095_v16 }
 0x21e   : > { %11213 = vmatmul.mubr.msk.f32.gmra.mrb[38].mxu0 %vm1225_vm0, %v14961_v41 }
 0x21f   : > { %1506 = vmatprep.mubr.f32.mxu0 %v14511_v63 }
 0x222   : > { %11214 = vmatmul.mubr.msk.f32.gmra.mrb[40].mxu0 %vm1225_vm0, %v14968_v4 }
 0x223   : > { %1512 = vmatprep.mubr.f32.mxu0 %v14511_v63 }
 0x226   : > { %11215 = vmatmul.mubr.msk.f32.gmra.mrb[42].mxu0 %vm1225_vm0, %v14974_v45 }
 0x227   : > { %1518 = vmatprep.mubr.f32.mxu0 %v14511_v63 }
 0x22a   : > { %v999_v41 = vpop.permute.xlu1 %998  ;;  %11216 = vmatmul.mubr.msk.f32.gmra.mrb[44].mxu0 %vm1225_vm0, %v14981_v23 }
 0x22b   : > { %1524 = vmatprep.mubr.f32.mxu0 %v14511_v63  ;;  %v1013_v25 = vmul.f32 %v999_v41, %v14855_v46  ;;  %v1014_v26 = vmul.f32 %v999_v41, %v14858_v47 }
 0x22e   : > { %v1003_v4 = vpop.permute.xlu1 %1002  ;;  %11217 = vmatmul.mubr.msk.f32.gmra.mrb[46].mxu0 %vm1225_vm0, %v14987_v29 }
 0x22f   : > { %1530 = vmatprep.mubr.f32.mxu0 %v14511_v63  ;;  %v1015_v5 = vmul.f32 %v1003_v4, %v14855_v46 }
 0x232   : > { %11218 = vmatmul.mubr.msk.f32.gmra.mrb[48].mxu0 %vm1225_vm0, %v14994_v39  ;;  %v1016_v39 = vmul.f32 %v1003_v4, %v14858_v47 }
 0x233   : > { %v982_v45 = vpop.permute.xlu1 %981  ;;  %1536 = vmatprep.mubr.f32.mxu0 %v14511_v63 }
 0x234   : > { %v993_v40 = vmul.f32 %v982_v45, %v14837_v37  ;;  %v994_v51 = vmul.f32 %v982_v45, %v14840_v38 }
 0x235   : > { %v972_v17 = vpop.permute.xlu0 %971 }
 0x236   : > { %11219 = vmatmul.mubr.msk.f32.gmra.mrb[50].mxu0 %vm1225_vm0, %v15000_v57  ;;  %v989_v24 = vmul.f32 %v972_v17, %v14837_v37  ;;  %v990_v13 = vmul.f32 %v972_v17, %v14840_v38 }
 0x237   : > { %1542 = vmatprep.mubr.f32.mxu0 %v14511_v63 }
 0x238   : > { %v1007_v22 = vpop.permute.xlu1 %1006  ;;  %v1021_v33 = vadd.f32 %v1013_v25, %v989_v24  ;;  %v1022_v34 = vadd.f32 %v1014_v26, %v990_v13 }
 0x239   : > { %v977_v20 = vpop.permute.xlu0 %976  ;;  %v1017_v52 = vmul.f32 %v1007_v22, %v14855_v46  ;;  %v1018_v56 = vmul.f32 %v1007_v22, %v14858_v47 }
 0x23a   : > { %11220 = vmatmul.mubr.msk.f32.gmra.mrb[52].mxu0 %vm1225_vm0, %v1155_v2  ;;  %v991_v31 = vmul.f32 %v977_v20, %v14837_v37  ;;  %v992_v48 = vmul.f32 %v977_v20, %v14840_v38 }
 0x23b   : > { %1548 = vmatprep.mubr.f32.mxu0 %v14511_v63  ;;  %v1025_v53 = vadd.f32 %v1017_v52, %v993_v40  ;;  %v1026_v9 = vadd.f32 %v1018_v56, %v994_v51  ;;  %v2260_v52 = vld [vmem:[%s20022_s8 + $0x18] sm:$0xff]  ;;  %v2590_v56 = vld [vmem:[%s20023_s9] sm:$0xff] }
 0x23c   : > { %v1023_v44 = vadd.f32 %v1015_v5, %v991_v31  ;;  %v1024_v59 = vadd.f32 %v1016_v39, %v992_v48  ;;  %v2258_v5 = vld [vmem:[%s20022_s8 + $0x8] sm:$0xff]  ;;  %v2259_v39 = vld [vmem:[%s20022_s8 + $0x10] sm:$0xff] }
 0x23d   : > { %v987_v21 = vpop.permute.xlu1 %986 }
 0x23e   : > { %11221 = vmatmul.mubr.msk.f32.gmra.mrb[54].mxu0 %vm1225_vm0, %v1156_v12  ;;  %v1011_v23 = vpop.permute.xlu0 %1010  ;;  %v996_v60 = vmul.f32 %v987_v21, %v14840_v38  ;;  %v995_v3 = vmul.f32 %v987_v21, %v14837_v37 }
 0x23f   : > { %1554 = vmatprep.mubr.f32.mxu0 %v14511_v63  ;;  %v1020_v61 = vmul.f32 %v1011_v23, %v14858_v47  ;;  %v1019_v14 = vmul.f32 %v1011_v23, %v14855_v46 }
 0x241   : > { %v1027_v41 = vadd.f32 %v1019_v14, %v995_v3 }
 0x242   : > { %v1039_v29 = vpop.permute.xlu1 %1038  ;;  %11222 = vmatmul.mubr.msk.f32.gmra.mrb[56].mxu0 %vm1225_vm0, %v1157_v10  ;;  %v1028_v10 = vadd.f32 %v1020_v61, %v996_v60 }
 0x243   : > { %v1031_v32 = vpop.permute.xlu0 %1030  ;;  %1560 = vmatprep.mubr.f32.mxu0 %v14511_v63  ;;  %v1049_v12 = vmul.f32 %v1039_v29, %v14860_v49  ;;  %v1050_v38 = vmul.f32 %v1039_v29, %v14862_v50 }
 0x244   : > { %v1045_v35 = vmul.f32 %v1031_v32, %v14860_v49  ;;  %v1046_v27 = vmul.f32 %v1031_v32, %v14862_v50 }
 0x245   : > { %v1058_v4 = vadd.f32 %v1050_v38, %v1026_v9  ;;  %v1057_v17 = vadd.f32 %v1049_v12, %v1025_v53 }
 0x246   : > { %11223 = vmatmul.mubr.msk.f32.gmra.mrb[58].mxu0 %vm1225_vm0, %v1158_v11  ;;  %v1053_v57 = vadd.f32 %v1045_v35, %v1021_v33  ;;  %v1054_v42 = vadd.f32 %v1046_v27, %v1022_v34  ;;  %v2257_v27 = vld [vmem:[%s20022_s8] sm:$0xff] }
 0x247   : > { %v1064_v43 = vpop.permute.xlu1 %1063  ;;  %v1035_v28 = vpop.permute.xlu0 %1034  ;;  %1566 = vmatprep.mubr.f32.mxu0 %v14511_v63  ;;  %v13105_v51 = vpack.c.bf16 %v2258_v5, %v2257_v27 }
 0x248   : > { %v1081_v62 = vadd.f32 %v1064_v43, %v1053_v57  ;;  %v1082_v2 = vadd.f32 %v1064_v43, %v1054_v42  ;;  %v1047_v54 = vmul.f32 %v1035_v28, %v14860_v49  ;;  %v1048_v30 = vmul.f32 %v1035_v28, %v14862_v50  ;;  %v2591_v57 = vld [vmem:[%s20023_s9 + $0x8] sm:$0xff] }
 0x249   : > { %v13109_v42 = vpack.c.bf16 %v2260_v52, %v2259_v39  ;;  %13106 = vmatprep.subr.bf16.mxu1 %v13105_v51 }
 0x24a   : > { %v1089_v6 = vmax.f32 %v1081_v62, 0.0  ;;  %v1090_v47 = vmax.f32 %v1082_v2, 0.0  ;;  %11224 = vmatmul.mubr.msk.f32.gmra.mrb[60].mxu0 %vm1225_vm0, %v15027_v18  ;;  %v1055_v7 = vadd.f32 %v1047_v54, %v1023_v44  ;;  %v1056_v8 = vadd.f32 %v1048_v30, %v1024_v59 }
 0x24b   : > { %v1069_v11 = vpop.permute.xlu1 %1068  ;;  %v1043_v55 = vpop.permute.xlu0 %1042  ;;  %1572 = vmatprep.mubr.f32.mxu0 %v14511_v63  ;;  %v15105_v44 = vpack.c.bf16 %v2591_v57, %v2590_v56 }
 0x24c   : > { %v1083_v37 = vadd.f32 %v1069_v11, %v1055_v7  ;;  %v1084_v46 = vadd.f32 %v1069_v11, %v1056_v8  ;;  %v1051_v58 = vmul.f32 %v1043_v55, %v14860_v49  ;;  %v1052_v16 = vmul.f32 %v1043_v55, %v14862_v50  ;;  %1193 = vxpose.xlu0.b32.start [1/4] (short) %v1090_v47, 128 }
 0x24d   : > { %1161 = vxpose.xlu1.b32.start [1/4] (short) %v1089_v6, 128  ;;  %20566 = vst [vmem:[#allocation17_spill] sm:$0xff] %v15105_v44  ;;  %13114 = vmatprep.subr.bf16.mxu0 %v15105_v44 }
 0x24e   : > { %v1091_v18 = vmax.f32 %v1083_v37, 0.0  ;;  %v1092_v45 = vmax.f32 %v1084_v46, 0.0  ;;  %11225 = vmatmul.mubr.msk.f32.gmra.mrb[62].mxu0 %vm1225_vm0, %v15033_v36  ;;  %v1060_v22 = vadd.f32 %v1052_v16, %v1028_v10  ;;  %v1059_v21 = vadd.f32 %v1051_v58, %v1027_v41 }
 0x24f   : > { %v1074_v20 = vpop.permute.xlu1 %1073 }
 0x250   : > { %v1085_v63 = vadd.f32 %v1074_v20, %v1057_v17  ;;  %v1086_v23 = vadd.f32 %v1074_v20, %v1058_v4  ;;  %1194 = vxpose.xlu0.b32.cont [2/4] (short) %v1092_v45, 128  ;;  %v1079_v24 = vpop.permute.xlu0 %1078 }
 0x251   : > { %1162 = vxpose.xlu1.b32.cont [2/4] (short) %v1091_v18, 128  ;;  %v1088_v13 = vadd.f32 %v1079_v24, %v1060_v22  ;;  %v1087_v25 = vadd.f32 %v1079_v24, %v1059_v21  ;;  %v2593_v24 = vld [vmem:[%s20023_s9 + $0x18] sm:$0xff] }
 0x252   : > { %v1093_v49 = vmax.f32 %v1085_v63, 0.0  ;;  %v1094_v50 = vmax.f32 %v1086_v23, 0.0  ;;  %v2592_v23 = vld [vmem:[%s20023_s9 + $0x10] sm:$0xff] }
 0x253   : > { %v1096_v26 = vmax.f32 %v1088_v13, 0.0  ;;  %v1095_v29 = vmax.f32 %v1087_v25, 0.0  ;;  %v15117_v25 = vpack.c.bf16 %v2593_v24, %v2592_v23 }
 0x254   : > { %1195 = vxpose.xlu0.b32.cont [3/4] (short) %v1094_v50, 128 }
 0x255   : > { %1163 = vxpose.xlu1.b32.cont [3/4] (short) %v1093_v49, 128  ;;  %20567 = vst [vmem:[#allocation18_spill] sm:$0xff] %v15117_v25 }
 0x258   : > { %1196 = vxpose.xlu0.b32.end [4/4] (short) %v1096_v26, 128 }
 0x259   : > { %1164 = vxpose.xlu1.b32.end [4/4] (short) %v1095_v29, 128 }
 0x2a5   : > { %v1388_v36 = vpop.f32.mrb[0].mxu0 }
 0x2a6   : > { %v1579_v31 = vmul.f32 0.17677669, %v1388_v36  ;;  %v1390_v48 = vpop.f32.mrb[1].mxu0 }
 0x2a7   : > { %v1580_v32 = vmul.f32 0.17677669, %v1390_v48 }
 0x2a9   : > { %v1394_v33 = vpop.f32.mrb[2].mxu0  ;;  %1739 = vmatprep.mubr.f32.mxu1 %v1580_v32 }
 0x2aa   : > { %v1581_v34 = vmul.f32 0.17677669, %v1394_v33  ;;  %v1396_v35 = vpop.f32.mrb[3].mxu0  ;;  %1740 = vmatmul.mubr.f32.vlgmr.msra.gmra.mrb[0].mxu1 %v1579_v31 }
 0x2ab   : > { %v1582_v40 = vmul.f32 0.17677669, %v1396_v35  ;;  %13108 = vmatpush3.bf16.msra.mxu1 %v13105_v51 }
 0x2ac   : > { %13110 = vmatprep.subr.bf16.mxu1 %v13109_v42 }
 0x2ad   : > { %v1400_v59 = vpop.f32.mrb[4].mxu0  ;;  %1744 = vmatprep.mubr.f32.mxu1 %v1582_v40 }
 0x2ae   : > { %v1583_v60 = vmul.f32 0.17677669, %v1400_v59  ;;  %v1402_v61 = vpop.f32.mrb[5].mxu0  ;;  %1745 = vmatmul.mubr.f32.gmra.mrb[2].mxu1 %v1581_v34 }
 0x2af   : > { %v1584_v43 = vmul.f32 0.17677669, %v1402_v61  ;;  %13112 = vmatpush3.bf16.msra.mxu1 %v13109_v42 }
 0x2b1   : > { %v1406_v28 = vpop.f32.mrb[6].mxu0  ;;  %1749 = vmatprep.mubr.f32.mxu1 %v1584_v43 }
 0x2b2   : > { %v1585_v62 = vmul.f32 0.17677669, %v1406_v28  ;;  %v1408_v2 = vpop.f32.mrb[7].mxu0  ;;  %1750 = vmatmul.mubr.f32.gmra.mrb[4].mxu1 %v1583_v60 }
 0x2b3   : > { %v1586_v54 = vmul.f32 0.17677669, %v1408_v2 }
 0x2b5   : > { %v1412_v30 = vpop.f32.mrb[8].mxu0  ;;  %1754 = vmatprep.mubr.f32.mxu1 %v1586_v54 }
 0x2b6   : > { %v1587_v3 = vmul.f32 0.17677669, %v1412_v30  ;;  %v1414_v14 = vpop.f32.mrb[9].mxu0  ;;  %1755 = vmatmul.mubr.f32.gmra.mrb[6].mxu1 %v1585_v62 }
 0x2b7   : > { %v1588_v12 = vmul.f32 0.17677669, %v1414_v14 }
 0x2b9   : > { %v1418_v38 = vpop.f32.mrb[10].mxu0  ;;  %1759 = vmatprep.mubr.f32.mxu1 %v1588_v12 }
 0x2ba   : > { %v1589_v6 = vmul.f32 0.17677669, %v1418_v38  ;;  %v1420_v47 = vpop.f32.mrb[11].mxu0  ;;  %1760 = vmatmul.mubr.f32.gmra.mrb[8].mxu1 %v1587_v3 }
 0x2bb   : > { %v1590_v7 = vmul.f32 0.17677669, %v1420_v47 }
 0x2bd   : > { %v1424_v8 = vpop.f32.mrb[12].mxu0  ;;  %1764 = vmatprep.mubr.f32.mxu1 %v1590_v7 }
 0x2be   : > { %v1591_v53 = vmul.f32 0.17677669, %v1424_v8  ;;  %v1426_v9 = vpop.f32.mrb[13].mxu0  ;;  %1765 = vmatmul.mubr.f32.gmra.mrb[10].mxu1 %v1589_v6 }
 0x2bf   : > { %v1592_v10 = vmul.f32 0.17677669, %v1426_v9 }
 0x2c1   : > { %v1430_v11 = vpop.f32.mrb[14].mxu0  ;;  %1769 = vmatprep.mubr.f32.mxu1 %v1592_v10 }
 0x2c2   : > { %v1593_v55 = vmul.f32 0.17677669, %v1430_v11  ;;  %v1432_v37 = vpop.f32.mrb[15].mxu0  ;;  %1770 = vmatmul.mubr.f32.gmra.mrb[12].mxu1 %v1591_v53 }
 0x2c3   : > { %v1594_v46 = vmul.f32 0.17677669, %v1432_v37 }
 0x2c5   : > { %v1436_v58 = vpop.f32.mrb[16].mxu0  ;;  %1774 = vmatprep.mubr.f32.mxu1 %v1594_v46 }
 0x2c6   : > { %v1595_v16 = vmul.f32 0.17677669, %v1436_v58  ;;  %v1438_v41 = vpop.f32.mrb[17].mxu0  ;;  %1775 = vmatmul.mubr.f32.gmra.mrb[14].mxu1 %v1593_v55 }
 0x2c7   : > { %v1596_v4 = vmul.f32 0.17677669, %v1438_v41 }
 0x2c9   : > { %v1442_v18 = vpop.f32.mrb[18].mxu0  ;;  %1779 = vmatprep.mubr.f32.mxu1 %v1596_v4 }
 0x2ca   : > { %v1597_v45 = vmul.f32 0.17677669, %v1442_v18  ;;  %v1444_v17 = vpop.f32.mrb[19].mxu0  ;;  %1780 = vmatmul.mubr.f32.gmra.mrb[16].mxu1 %v1595_v16 }
 0x2cb   : > { %v1598_v22 = vmul.f32 0.17677669, %v1444_v17 }
 0x2cc   : > { %v15108_v20 = vpop.trf.xlu0 }
 0x2cd   : > { %v1177_v21 = vpop.trf.xlu1  ;;  %v1448_v63 = vpop.f32.mrb[20].mxu0  ;;  %1784 = vmatprep.mubr.f32.mxu1 %v1598_v22 }
 0x2ce   : > { %v1599_v49 = vmul.f32 0.17677669, %v1448_v63  ;;  %12321 = vmatprep.mubr.msk.f32.mxu0 %vm1225_vm0, %v1177_v21  ;;  %v1450_v50 = vpop.f32.mrb[21].mxu0  ;;  %1785 = vmatmul.mubr.f32.gmra.mrb[18].mxu1 %v1597_v45 }
 0x2cf   : > { %v1600_v13 = vmul.f32 0.17677669, %v1450_v50 }
 0x2d0   : > { %v15120_v48 = vpop.trf.xlu0 }
 0x2d1   : > { %v1178_v26 = vpop.trf.xlu1  ;;  %v1454_v29 = vpop.f32.mrb[22].mxu0  ;;  %1789 = vmatprep.mubr.f32.mxu1 %v1600_v13 }
 0x2d2   : > { %v1601_v36 = vmul.f32 0.17677669, %v1454_v29  ;;  %12322 = vmatmul.mubr.msk.f32.vlgmr.msra.gmra.mrb[64].mxu0 %vm1225_vm0, %v1178_v26  ;;  %v1456_v31 = vpop.f32.mrb[23].mxu0  ;;  %1790 = vmatmul.mubr.f32.gmra.mrb[20].mxu1 %v1599_v49 }
 0x2d3   : > { %v1602_v32 = vmul.f32 0.17677669, %v1456_v31  ;;  %13116 = vmatpush3.bf16.msra.mxu0 %v15105_v44 }
 0x2d4   : > { %13118 = vmatprep.subr.bf16.mxu0 %v15117_v25  ;;  %v15126_v39 = vpop.trf.xlu0 }
 0x2d5   : > { %v1179_v33 = vpop.trf.xlu1  ;;  %v1460_v34 = vpop.f32.mrb[24].mxu0  ;;  %1794 = vmatprep.mubr.f32.mxu1 %v1602_v32 }
 0x2d6   : > { %v1603_v35 = vmul.f32 0.17677669, %v1460_v34  ;;  %12324 = vmatprep.mubr.msk.f32.mxu0 %vm1225_vm0, %v1179_v33  ;;  %v1462_v27 = vpop.f32.mrb[25].mxu0  ;;  %1795 = vmatmul.mubr.f32.gmra.mrb[22].mxu1 %v1601_v36 }
 0x2d7   : > { %v1604_v5 = vmul.f32 0.17677669, %v1462_v27  ;;  %13120 = vmatpush3.bf16.msra.mxu0 %v15117_v25 }
 0x2d8   : > { %v15130_v43 = vpop.trf.xlu0 }
 0x2d9   : > { %v1180_v40 = vpop.trf.xlu1  ;;  %v1466_v51 = vpop.f32.mrb[26].mxu0  ;;  %1799 = vmatprep.mubr.f32.mxu1 %v1604_v5 }
 0x2da   : > { %v1605_v52 = vmul.f32 0.17677669, %v1466_v51  ;;  %12325 = vmatmul.mubr.msk.f32.gmra.mrb[66].mxu0 %vm1225_vm0, %v1180_v40  ;;  %v1468_v56 = vpop.f32.mrb[27].mxu0  ;;  %1800 = vmatmul.mubr.f32.gmra.mrb[24].mxu1 %v1603_v35 }
 0x2db   : > { %v1606_v57 = vmul.f32 0.17677669, %v1468_v56 }
 0x2dc   : > { %v15133_v14 = vpop.trf.xlu0 }
 0x2dd   : > { %v1181_v42 = vpop.trf.xlu1  ;;  %v1472_v59 = vpop.f32.mrb[28].mxu0  ;;  %1804 = vmatprep.mubr.f32.mxu1 %v1606_v57 }
 0x2de   : > { %v1607_v60 = vmul.f32 0.17677669, %v1472_v59  ;;  %12327 = vmatprep.mubr.msk.f32.mxu0 %vm1225_vm0, %v1181_v42  ;;  %v1474_v61 = vpop.f32.mrb[29].mxu0  ;;  %1805 = vmatmul.mubr.f32.gmra.mrb[26].mxu1 %v1605_v52 }
 0x2df   : > { %v1608_v28 = vmul.f32 0.17677669, %v1474_v61 }
 0x2e0   : > { %v15137_v10 = vpop.trf.xlu0 }
 0x2e1   : > { %v1182_v62 = vpop.trf.xlu1  ;;  %v1478_v2 = vpop.f32.mrb[30].mxu0  ;;  %1809 = vmatprep.mubr.f32.mxu1 %v1608_v28 }
 0x2e2   : > { %v1609_v54 = vmul.f32 0.17677669, %v1478_v2  ;;  %12328 = vmatmul.mubr.msk.f32.gmra.mrb[68].mxu0 %vm1225_vm0, %v1182_v62  ;;  %v1480_v30 = vpop.f32.mrb[31].mxu0  ;;  %1810 = vmatmul.mubr.f32.gmra.mrb[28].mxu1 %v1607_v60 }
 0x2e3   : > { %v1610_v3 = vmul.f32 0.17677669, %v1480_v30 }
 0x2e4   : > { %v15140_v4 = vpop.trf.xlu0 }
 0x2e5   : > { %v1183_v12 = vpop.trf.xlu1  ;;  %v1484_v38 = vpop.f32.mrb[32].mxu0  ;;  %1814 = vmatprep.mubr.f32.mxu1 %v1610_v3 }
 0x2e6   : > { %12330 = vmatprep.mubr.msk.f32.mxu0 %vm1225_vm0, %v1183_v12  ;;  %v1486_v6 = vpop.f32.mrb[33].mxu0  ;;  %1815 = vmatmul.mubr.f32.gmra.mrb[30].mxu1 %v1609_v54  ;;  %v1611_v7 = vmul.f32 0.17677669, %v1484_v38 }
 0x2e7   : > { %v1612_v47 = vmul.f32 0.17677669, %v1486_v6 }
 0x2e8   : > { %v15144_v49 = vpop.trf.xlu0 }
 0x2e9   : > { %v1184_v8 = vpop.trf.xlu1  ;;  %v1490_v53 = vpop.f32.mrb[34].mxu0  ;;  %1819 = vmatprep.mubr.f32.mxu1 %v1612_v47 }
 0x2ea   : > { %12331 = vmatmul.mubr.msk.f32.gmra.mrb[70].mxu0 %vm1225_vm0, %v1184_v8  ;;  %v1492_v9 = vpop.f32.mrb[35].mxu0  ;;  %1820 = vmatmul.mubr.f32.gmra.mrb[32].mxu1 %v1611_v7  ;;  %v1613_v55 = vmul.f32 0.17677669, %v1490_v53 }
 0x2eb   : > { %v1614_v11 = vmul.f32 0.17677669, %v1492_v9 }
 0x2ec   : > { %v15147_v33 = vpop.trf.xlu0 }
 0x2ed   : > { %v1185_v37 = vpop.trf.xlu1  ;;  %v1496_v46 = vpop.f32.mrb[36].mxu0  ;;  %1824 = vmatprep.mubr.f32.mxu1 %v1614_v11 }
 0x2ee   : > { %12333 = vmatprep.mubr.msk.f32.mxu0 %vm1225_vm0, %v1185_v37  ;;  %v1498_v58 = vpop.f32.mrb[37].mxu0  ;;  %1825 = vmatmul.mubr.f32.gmra.mrb[34].mxu1 %v1613_v55  ;;  %v1615_v41 = vmul.f32 0.17677669, %v1496_v46 }
 0x2ef   : > { %v1616_v16 = vmul.f32 0.17677669, %v1498_v58 }
 0x2f0   : > { %v1218_v57 = vpop.trf.xlu0 }
 0x2f1   : > { %v1186_v18 = vpop.trf.xlu1  ;;  %v1502_v45 = vpop.f32.mrb[38].mxu0  ;;  %1829 = vmatprep.mubr.f32.mxu1 %v1616_v16 }
 0x2f2   : > { %12334 = vmatmul.mubr.msk.f32.gmra.mrb[72].mxu0 %vm1225_vm0, %v1186_v18  ;;  %v1504_v17 = vpop.f32.mrb[39].mxu0  ;;  %1830 = vmatmul.mubr.f32.gmra.mrb[36].mxu1 %v1615_v41  ;;  %v1617_v21 = vmul.f32 0.17677669, %v1502_v45 }
 0x2f3   : > { %v1618_v22 = vmul.f32 0.17677669, %v1504_v17 }
 0x2f4   : > { %v1219_v54 = vpop.trf.xlu0 }
 0x2f5   : > { %v1187_v63 = vpop.trf.xlu1  ;;  %v1508_v23 = vpop.f32.mrb[40].mxu0  ;;  %1834 = vmatprep.mubr.f32.mxu1 %v1618_v22 }
 0x2f6   : > { %12336 = vmatprep.mubr.msk.f32.mxu0 %vm1225_vm0, %v1187_v63  ;;  %v1510_v24 = vpop.f32.mrb[41].mxu0  ;;  %1835 = vmatmul.mubr.f32.gmra.mrb[38].mxu1 %v1617_v21  ;;  %v1619_v13 = vmul.f32 0.17677669, %v1508_v23 }
 0x2f7   : > { %v1620_v50 = vmul.f32 0.17677669, %v1510_v24 }
 0x2f8   : > { %v1220_v53 = vpop.trf.xlu0 }
 0x2f9   : > { %v1188_v26 = vpop.trf.xlu1  ;;  %v1514_v29 = vpop.f32.mrb[42].mxu0  ;;  %1839 = vmatprep.mubr.f32.mxu1 %v1620_v50 }
 0x2fa   : > { %12337 = vmatmul.mubr.msk.f32.gmra.mrb[74].mxu0 %vm1225_vm0, %v1188_v26  ;;  %v1516_v36 = vpop.f32.mrb[43].mxu0  ;;  %1840 = vmatmul.mubr.f32.gmra.mrb[40].mxu1 %v1619_v13  ;;  %v1621_v32 = vmul.f32 0.17677669, %v1514_v29 }
 0x2fb   : > { %v1622_v31 = vmul.f32 0.17677669, %v1516_v36 }
 0x2fc   : > { %v1221_v46 = vpop.trf.xlu0 }
 0x2fd   : > { %v1189_v34 = vpop.trf.xlu1  ;;  %v1520_v35 = vpop.f32.mrb[44].mxu0  ;;  %1844 = vmatprep.mubr.f32.mxu1 %v1622_v31 }
 0x2fe   : > { %12339 = vmatprep.mubr.msk.f32.mxu0 %vm1225_vm0, %v1189_v34  ;;  %v1522_v27 = vpop.f32.mrb[45].mxu0  ;;  %1845 = vmatmul.mubr.f32.gmra.mrb[42].mxu1 %v1621_v32  ;;  %v1623_v40 = vmul.f32 0.17677669, %v1520_v35 }
 0x2ff   : > { %v1624_v5 = vmul.f32 0.17677669, %v1522_v27 }
 0x300   : > { %v1222_v18 = vpop.trf.xlu0 }
 0x301   : > { %v1190_v51 = vpop.trf.xlu1  ;;  %v1526_v52 = vpop.f32.mrb[46].mxu0  ;;  %1849 = vmatprep.mubr.f32.mxu1 %v1624_v5 }
 0x302   : > { %12340 = vmatmul.mubr.msk.f32.gmra.mrb[76].mxu0 %vm1225_vm0, %v1190_v51  ;;  %v1528_v56 = vpop.f32.mrb[47].mxu0  ;;  %1850 = vmatmul.mubr.f32.gmra.mrb[44].mxu1 %v1623_v40  ;;  %v1625_v59 = vmul.f32 0.17677669, %v1526_v52 }
 0x303   : > { %v1626_v42 = vmul.f32 0.17677669, %v1528_v56 }
 0x304   : > { %v1223_v63 = vpop.trf.xlu0 }
 0x305   : > { %v1191_v60 = vpop.trf.xlu1  ;;  %v1532_v61 = vpop.f32.mrb[48].mxu0  ;;  %1854 = vmatprep.mubr.f32.mxu1 %v1626_v42 }
 0x306   : > { %v1534_v28 = vpop.f32.mrb[49].mxu0  ;;  %1855 = vmatmul.mubr.f32.gmra.mrb[46].mxu1 %v1625_v59  ;;  %12342 = vmatprep.mubr.msk.f32.mxu0 %vm1225_vm0, %v1191_v60  ;;  %v1627_v2 = vmul.f32 0.17677669, %v1532_v61 }
 0x307   : > { %v1628_v62 = vmul.f32 0.17677669, %v1534_v28 }
 0x308   : > { %v1224_v50 = vpop.trf.xlu0 }
 0x309   : > { %v1192_v30 = vpop.trf.xlu1  ;;  %v1538_v3 = vpop.f32.mrb[50].mxu0  ;;  %1859 = vmatprep.mubr.f32.mxu1 %v1628_v62 }
 0x30a   : > { %12343 = vmatmul.mubr.msk.f32.gmra.mrb[78].mxu0 %vm1225_vm0, %v1192_v30  ;;  %v1540_v12 = vpop.f32.mrb[51].mxu0  ;;  %1860 = vmatmul.mubr.f32.gmra.mrb[48].mxu1 %v1627_v2  ;;  %v1629_v6 = vmul.f32 0.17677669, %v1538_v3 }
 0x30b   : > { %v1630_v38 = vmul.f32 0.17677669, %v1540_v12  ;;  %12345 = vmatprep.mubr.msk.f32.mxu0 %vm1225_vm0, %v15108_v20 }
 0x30d   : > { %v1544_v47 = vpop.f32.mrb[52].mxu0  ;;  %1864 = vmatprep.mubr.f32.mxu1 %v1630_v38 }
 0x30e   : > { %12346 = vmatmul.mubr.msk.f32.gmra.mrb[80].mxu0 %vm1225_vm0, %v15120_v48  ;;  %v1546_v7 = vpop.f32.mrb[53].mxu0  ;;  %1865 = vmatmul.mubr.f32.gmra.mrb[50].mxu1 %v1629_v6  ;;  %v1631_v9 = vmul.f32 0.17677669, %v1544_v47 }
 0x30f   : > { %v1632_v8 = vmul.f32 0.17677669, %v1546_v7  ;;  %12348 = vmatprep.mubr.msk.f32.mxu0 %vm1225_vm0, %v15126_v39 }
 0x311   : > { %v1550_v11 = vpop.f32.mrb[54].mxu0  ;;  %1869 = vmatprep.mubr.f32.mxu1 %v1632_v8 }
 0x312   : > { %12349 = vmatmul.mubr.msk.f32.gmra.mrb[82].mxu0 %vm1225_vm0, %v15130_v43  ;;  %v1552_v20 = vpop.f32.mrb[55].mxu0  ;;  %1870 = vmatmul.mubr.f32.gmra.mrb[52].mxu1 %v1631_v9  ;;  %v1633_v48 = vmul.f32 0.17677669, %v1550_v11 }
 0x313   : > { %v1634_v55 = vmul.f32 0.17677669, %v1552_v20  ;;  %12351 = vmatprep.mubr.msk.f32.mxu0 %vm1225_vm0, %v15133_v14 }
 0x315   : > { %v1556_v37 = vpop.f32.mrb[56].mxu0  ;;  %1874 = vmatprep.mubr.f32.mxu1 %v1634_v55 }
 0x316   : > { %12352 = vmatmul.mubr.msk.f32.gmra.mrb[84].mxu0 %vm1225_vm0, %v15137_v10  ;;  %v1558_v39 = vpop.f32.mrb[57].mxu0  ;;  %1875 = vmatmul.mubr.f32.gmra.mrb[54].mxu1 %v1633_v48  ;;  %v1635_v43 = vmul.f32 0.17677669, %v1556_v37 }
 0x317   : > { %v1636_v58 = vmul.f32 0.17677669, %v1558_v39  ;;  %12354 = vmatprep.mubr.msk.f32.mxu0 %vm1225_vm0, %v15140_v4 }
 0x319   : > { %v1562_v16 = vpop.f32.mrb[58].mxu0  ;;  %1879 = vmatprep.mubr.f32.mxu1 %v1636_v58 }
 0x31a   : > { %12355 = vmatmul.mubr.msk.f32.gmra.mrb[86].mxu0 %vm1225_vm0, %v15144_v49  ;;  %v1564_v14 = vpop.f32.mrb[59].mxu0  ;;  %1880 = vmatmul.mubr.f32.gmra.mrb[56].mxu1 %v1635_v43  ;;  %v1637_v10 = vmul.f32 0.17677669, %v1562_v16 }
 0x31b   : > { %v1638_v41 = vmul.f32 0.17677669, %v1564_v14  ;;  %12357 = vmatprep.mubr.msk.f32.mxu0 %vm1225_vm0, %v15147_v33 }
 0x31d   : > { %v1568_v45 = vpop.f32.mrb[60].mxu0  ;;  %1884 = vmatprep.mubr.f32.mxu1 %v1638_v41 }
 0x31e   : > { %12358 = vmatmul.mubr.msk.f32.gmra.mrb[88].mxu0 %vm1225_vm0, %v1218_v57  ;;  %v1570_v17 = vpop.f32.mrb[61].mxu0  ;;  %1885 = vmatmul.mubr.f32.gmra.mrb[58].mxu1 %v1637_v10  ;;  %v1639_v22 = vmul.f32 0.17677669, %v1568_v45 }
 0x31f   : > { %v1640_v4 = vmul.f32 0.17677669, %v1570_v17  ;;  %12360 = vmatprep.mubr.msk.f32.mxu0 %vm1225_vm0, %v1219_v54 }
 0x321   : > { %v1574_v21 = vpop.f32.mrb[62].mxu0  ;;  %1889 = vmatprep.mubr.f32.mxu1 %v1640_v4 }
 0x322   : > { %12361 = vmatmul.mubr.msk.f32.gmra.mrb[90].mxu0 %vm1225_vm0, %v1220_v53  ;;  %v1576_v23 = vpop.f32.mrb[63].mxu0  ;;  %1890 = vmatmul.mubr.f32.gmra.mrb[60].mxu1 %v1639_v22  ;;  %v1641_v49 = vmul.f32 0.17677669, %v1574_v21 }
 0x323   : > { %v1642_v24 = vmul.f32 0.17677669, %v1576_v23  ;;  %12363 = vmatprep.mubr.msk.f32.mxu0 %vm1225_vm0, %v1221_v46 }
 0x325   : > { %1894 = vmatprep.mubr.f32.mxu1 %v1642_v24 }
 0x326   : > { %12364 = vmatmul.mubr.msk.f32.gmra.mrb[92].mxu0 %vm1225_vm0, %v1222_v18  ;;  %1895 = vmatmul.mubr.f32.gmra.mrb[62].mxu1 %v1641_v49 }
 0x327   : > { %12366 = vmatprep.mubr.msk.f32.mxu0 %vm1225_vm0, %v1223_v63 }
 0x32a   : > { %12367 = vmatmul.mubr.msk.f32.gmra.mrb[94].mxu0 %vm1225_vm0, %v1224_v50 }
 0x37d   : > { %v1741_v13 = vpop.f32.mrb[0].mxu1 }
 0x37e   : > { %v1743_v26 = vpop.f32.mrb[1].mxu1  ;;  %12377 = vmatprep.mubr.msk.f32.mxu1 %vm1225_vm0, %v1741_v13 }
 0x381   : > { %v1746_v29 = vpop.f32.mrb[2].mxu1 }
 0x382   : > { %v1748_v36 = vpop.f32.mrb[3].mxu1  ;;  %12378 = vmatmul.mubr.msk.f32.vlgmr.msra.gmra.mrb[64].mxu1 %vm1225_vm0, %v1746_v29 }
 0x385   : > { %v1751_v31 = vpop.f32.mrb[4].mxu1 }
 0x386   : > { %v1753_v32 = vpop.f32.mrb[5].mxu1  ;;  %12380 = vmatprep.mubr.msk.f32.mxu1 %vm1225_vm0, %v1751_v31 }
 0x389   : > { %v1756_v33 = vpop.f32.mrb[6].mxu1 }
 0x38a   : > { %v1758_v34 = vpop.f32.mrb[7].mxu1  ;;  %12381 = vmatmul.mubr.msk.f32.gmra.mrb[66].mxu1 %vm1225_vm0, %v1756_v33 }
 0x38d   : > { %v1761_v35 = vpop.f32.mrb[8].mxu1 }
 0x38e   : > { %v1763_v27 = vpop.f32.mrb[9].mxu1  ;;  %12383 = vmatprep.mubr.msk.f32.mxu1 %vm1225_vm0, %v1761_v35 }
 0x391   : > { %v1766_v5 = vpop.f32.mrb[10].mxu1 }
 0x392   : > { %v1768_v40 = vpop.f32.mrb[11].mxu1  ;;  %12384 = vmatmul.mubr.msk.f32.gmra.mrb[68].mxu1 %vm1225_vm0, %v1766_v5 }
 0x395   : > { %v1771_v51 = vpop.f32.mrb[12].mxu1 }
 0x396   : > { %v1773_v52 = vpop.f32.mrb[13].mxu1  ;;  %12386 = vmatprep.mubr.msk.f32.mxu1 %vm1225_vm0, %v1771_v51 }
 0x399   : > { %v1776_v56 = vpop.f32.mrb[14].mxu1 }
 0x39a   : > { %v1778_v57 = vpop.f32.mrb[15].mxu1  ;;  %12387 = vmatmul.mubr.msk.f32.gmra.mrb[70].mxu1 %vm1225_vm0, %v1776_v56 }
 0x39d   : > { %v1781_v42 = vpop.f32.mrb[16].mxu1 }
 0x39e   : > { %v1783_v59 = vpop.f32.mrb[17].mxu1  ;;  %12389 = vmatprep.mubr.msk.f32.mxu1 %vm1225_vm0, %v1781_v42 }
 0x3a1   : > { %v1786_v60 = vpop.f32.mrb[18].mxu1 }
 0x3a2   : > { %v1788_v61 = vpop.f32.mrb[19].mxu1  ;;  %12390 = vmatmul.mubr.msk.f32.gmra.mrb[72].mxu1 %vm1225_vm0, %v1786_v60 }
 0x3a5   : > { %v12323_v28 = vpop.f32.mrb[64].mxu0  ;;  %v1791_v62 = vpop.f32.mrb[20].mxu1 }
 0x3a6   : > { %13474 = vtanh.f32 %v12323_v28  ;;  %v2066_v2 = vpop.f32.mrb[65].mxu0  ;;  %v1793_v54 = vpop.f32.mrb[21].mxu1  ;;  %12392 = vmatprep.mubr.msk.f32.mxu1 %vm1225_vm0, %v1791_v62 }
 0x3a7   : > { %13476 = vtanh.f32 %v2066_v2 }
 0x3a9   : > { %v1796_v30 = vpop.f32.mrb[22].mxu1 }
 0x3aa   : > { %v1798_v3 = vpop.f32.mrb[23].mxu1  ;;  %12393 = vmatmul.mubr.msk.f32.gmra.mrb[74].mxu1 %vm1225_vm0, %v1796_v30 }
 0x3ad   : > { %v12326_v12 = vpop.f32.mrb[66].mxu0  ;;  %v1801_v38 = vpop.f32.mrb[24].mxu1 }
 0x3ae   : > { %13478 = vtanh.f32 %v12326_v12  ;;  %v2076_v6 = vpop.f32.mrb[67].mxu0  ;;  %v1803_v47 = vpop.f32.mrb[25].mxu1  ;;  %12395 = vmatprep.mubr.msk.f32.mxu1 %vm1225_vm0, %v1801_v38 }
 0x3af   : > { %13480 = vtanh.f32 %v2076_v6 }
 0x3b0   : > { %v15191_v7 = vpop.eup %13474 }
 0x3b1   : > { %20568 = vst [vmem:[#allocation19_spill] sm:$0xff] %v15191_v7  ;;  %v15193_v8 = vpop.eup %13476  ;;  %3224 = vrot.lane.b32.xlu1 %v15191_v7, %s14513_s28  ;;  %v1806_v53 = vpop.f32.mrb[26].mxu1 }
 0x3b2   : > { %20569 = vst [vmem:[#allocation20_spill] sm:$0xff] %v15193_v8  ;;  %3222 = vrot.lane.b32.xlu0 %v15193_v8, %s14513_s28  ;;  %12433 = vmatprep.mubr.msk.f32.mxu0 %vm1225_vm0, %v15193_v8  ;;  %v1808_v9 = vpop.f32.mrb[27].mxu1 }
 0x3b3   : > { %12434 = vmatmul.mubr.msk.f32.vlgmr.msra.gmra.mrb[96].mxu0 %vm1225_vm0, %v15191_v7  ;;  %12396 = vmatmul.mubr.msk.f32.gmra.mrb[76].mxu1 %vm1225_vm0, %v1806_v53 }
 0x3b5   : > { %v12329_v11 = vpop.f32.mrb[68].mxu0  ;;  %v1811_v20 = vpop.f32.mrb[28].mxu1 }
 0x3b6   : > { %13482 = vtanh.f32 %v12329_v11  ;;  %v2086_v55 = vpop.f32.mrb[69].mxu0  ;;  %v1813_v48 = vpop.f32.mrb[29].mxu1  ;;  %12398 = vmatprep.mubr.msk.f32.mxu1 %vm1225_vm0, %v1811_v20 }
 0x3b7   : > { %13484 = vtanh.f32 %v2086_v55 }
 0x3b8   : > { %v15205_v37 = vpop.eup %13478 }
 0x3b9   : > { %20570 = vst [vmem:[#allocation21_spill] sm:$0xff] %v15205_v37  ;;  %v15207_v46 = vpop.eup %13480  ;;  %3228 = vrot.lane.b32.xlu1 %v15205_v37, %s14513_s28  ;;  %v1816_v39 = vpop.f32.mrb[30].mxu1 }
 0x3ba   : > { %20571 = vst [vmem:[#allocation22_spill] sm:$0xff] %v15207_v46  ;;  %12436 = vmatprep.mubr.msk.f32.mxu0 %vm1225_vm0, %v15207_v46  ;;  %v1818_v58 = vpop.f32.mrb[31].mxu1  ;;  %12399 = vmatmul.mubr.msk.f32.gmra.mrb[78].mxu1 %vm1225_vm0, %v1816_v39 }
 0x3bb   : > { %12437 = vmatmul.mubr.msk.f32.gmra.mrb[98].mxu0 %vm1225_vm0, %v15205_v37 }
 0x3bd   : > { %3226 = vrot.lane.b32.xlu1 %v15207_v46, %s14513_s28  ;;  %v12332_v43 = vpop.f32.mrb[70].mxu0  ;;  %v1821_v16 = vpop.f32.mrb[32].mxu1 }
 0x3be   : > { %13486 = vtanh.f32 %v12332_v43  ;;  %v2096_v14 = vpop.f32.mrb[71].mxu0  ;;  %v1823_v41 = vpop.f32.mrb[33].mxu1  ;;  %12401 = vmatprep.mubr.msk.f32.mxu1 %vm1225_vm0, %v1821_v16 }
 0x3bf   : > { %13488 = vtanh.f32 %v2096_v14 }
 0x3c0   : > { %v15219_v18 = vpop.eup %13482 }
 0x3c1   : > { %20572 = vst [vmem:[#allocation23_spill] sm:$0xff] %v15219_v18  ;;  %v15221_v10 = vpop.eup %13484  ;;  %3232 = vrot.lane.b32.xlu1 %v15219_v18, %s14513_s28  ;;  %v1826_v45 = vpop.f32.mrb[34].mxu1 }
 0x3c2   : > { %20573 = vst [vmem:[#allocation24_spill] sm:$0xff] %v15221_v10  ;;  %3230 = vrot.lane.b32.xlu0 %v15221_v10, %s14513_s28  ;;  %12439 = vmatprep.mubr.msk.f32.mxu0 %vm1225_vm0, %v15221_v10  ;;  %v1828_v17 = vpop.f32.mrb[35].mxu1 }
 0x3c3   : > { %12402 = vmatmul.mubr.msk.f32.gmra.mrb[80].mxu1 %vm1225_vm0, %v1826_v45  ;;  %12440 = vmatmul.mubr.msk.f32.gmra.mrb[100].mxu0 %vm1225_vm0, %v15219_v18 }
 0x3c5   : > { %v12335_v4 = vpop.f32.mrb[72].mxu0  ;;  %v1831_v22 = vpop.f32.mrb[36].mxu1 }
 0x3c6   : > { %13490 = vtanh.f32 %v12335_v4  ;;  %v2106_v21 = vpop.f32.mrb[73].mxu0  ;;  %v1833_v63 = vpop.f32.mrb[37].mxu1  ;;  %12404 = vmatprep.mubr.msk.f32.mxu1 %vm1225_vm0, %v1831_v22 }
 0x3c7   : > { %13492 = vtanh.f32 %v2106_v21 }
 0x3c8   : > { %v15233_v23 = vpop.eup %13486 }
 0x3c9   : > { %20574 = vst [vmem:[#allocation25_spill] sm:$0xff] %v15233_v23  ;;  %v15235_v24 = vpop.eup %13488  ;;  %3236 = vrot.lane.b32.xlu1 %v15233_v23, %s14513_s28  ;;  %v1836_v49 = vpop.f32.mrb[38].mxu1 }
 0x3ca   : > { %20575 = vst [vmem:[#allocation26_spill] sm:$0xff] %v15235_v24  ;;  %3234 = vrot.lane.b32.xlu0 %v15235_v24, %s14513_s28  ;;  %12442 = vmatprep.mubr.msk.f32.mxu0 %vm1225_vm0, %v15235_v24  ;;  %v1838_v50 = vpop.f32.mrb[39].mxu1 }
 0x3cb   : > { %12405 = vmatmul.mubr.msk.f32.gmra.mrb[82].mxu1 %vm1225_vm0, %v1836_v49  ;;  %12443 = vmatmul.mubr.msk.f32.gmra.mrb[102].mxu0 %vm1225_vm0, %v15233_v23 }
 0x3cd   : > { %v12338_v13 = vpop.f32.mrb[74].mxu0  ;;  %v1841_v26 = vpop.f32.mrb[40].mxu1 }
 0x3ce   : > { %13494 = vtanh.f32 %v12338_v13  ;;  %v2116_v29 = vpop.f32.mrb[75].mxu0  ;;  %v1843_v36 = vpop.f32.mrb[41].mxu1  ;;  %12407 = vmatprep.mubr.msk.f32.mxu1 %vm1225_vm0, %v1841_v26 }
 0x3cf   : > { %13496 = vtanh.f32 %v2116_v29 }
 0x3d0   : > { %v15247_v31 = vpop.eup %13490 }
 0x3d1   : > { %20576 = vst [vmem:[#allocation27_spill] sm:$0xff] %v15247_v31  ;;  %v15249_v32 = vpop.eup %13492  ;;  %3240 = vrot.lane.b32.xlu1 %v15247_v31, %s14513_s28  ;;  %v1846_v33 = vpop.f32.mrb[42].mxu1 }
 0x3d2   : > { %20577 = vst [vmem:[#allocation28_spill] sm:$0xff] %v15249_v32  ;;  %3238 = vrot.lane.b32.xlu0 %v15249_v32, %s14513_s28  ;;  %12445 = vmatprep.mubr.msk.f32.mxu0 %vm1225_vm0, %v15249_v32  ;;  %v1848_v34 = vpop.f32.mrb[43].mxu1 }
 0x3d3   : > { %12408 = vmatmul.mubr.msk.f32.gmra.mrb[84].mxu1 %vm1225_vm0, %v1846_v33  ;;  %12446 = vmatmul.mubr.msk.f32.gmra.mrb[104].mxu0 %vm1225_vm0, %v15247_v31 }
 0x3d5   : > { %v12341_v35 = vpop.f32.mrb[76].mxu0  ;;  %v1851_v27 = vpop.f32.mrb[44].mxu1 }
 0x3d6   : > { %13498 = vtanh.f32 %v12341_v35  ;;  %v2126_v5 = vpop.f32.mrb[77].mxu0  ;;  %v1853_v40 = vpop.f32.mrb[45].mxu1  ;;  %12410 = vmatprep.mubr.msk.f32.mxu1 %vm1225_vm0, %v1851_v27 }
 0x3d7   : > { %13500 = vtanh.f32 %v2126_v5 }
 0x3d8   : > { %v15261_v51 = vpop.eup %13494 }
 0x3d9   : > { %20578 = vst [vmem:[#allocation29_spill] sm:$0xff] %v15261_v51  ;;  %v15263_v52 = vpop.eup %13496  ;;  %3244 = vrot.lane.b32.xlu1 %v15261_v51, %s14513_s28  ;;  %v1856_v56 = vpop.f32.mrb[46].mxu1 }
 0x3da   : > { %20579 = vst [vmem:[#allocation30_spill] sm:$0xff] %v15263_v52  ;;  %3242 = vrot.lane.b32.xlu0 %v15263_v52, %s14513_s28  ;;  %12448 = vmatprep.mubr.msk.f32.mxu0 %vm1225_vm0, %v15263_v52  ;;  %v1858_v57 = vpop.f32.mrb[47].mxu1 }
 0x3db   : > { %12411 = vmatmul.mubr.msk.f32.gmra.mrb[86].mxu1 %vm1225_vm0, %v1856_v56  ;;  %12449 = vmatmul.mubr.msk.f32.gmra.mrb[106].mxu0 %vm1225_vm0, %v15261_v51 }
 0x3dd   : > { %v12344_v42 = vpop.f32.mrb[78].mxu0  ;;  %v1861_v59 = vpop.f32.mrb[48].mxu1 }
 0x3de   : > { %13502 = vtanh.f32 %v12344_v42  ;;  %v2136_v60 = vpop.f32.mrb[79].mxu0  ;;  %v1863_v61 = vpop.f32.mrb[49].mxu1  ;;  %12413 = vmatprep.mubr.msk.f32.mxu1 %vm1225_vm0, %v1861_v59 }
 0x3df   : > { %13504 = vtanh.f32 %v2136_v60 }
 0x3e0   : > { %v15275_v28 = vpop.eup %13498 }
 0x3e1   : > { %20580 = vst [vmem:[#allocation31_spill] sm:$0xff] %v15275_v28  ;;  %v15277_v62 = vpop.eup %13500  ;;  %3248 = vrot.lane.b32.xlu1 %v15275_v28, %s14513_s28  ;;  %v12347_v2 = vpop.f32.mrb[80].mxu0 }
 0x3e2   : > { %20581 = vst [vmem:[#allocation32_spill] sm:$0xff] %v15277_v62  ;;  %v1866_v54 = vpop.f32.mrb[50].mxu1  ;;  %13506 = vtanh.f32 %v12347_v2  ;;  %3246 = vrot.lane.b32.xlu0 %v15277_v62, %s14513_s28  ;;  %v2146_v30 = vpop.f32.mrb[81].mxu0  ;;  %12451 = vmatprep.mubr.msk.f32.mxu0 %vm1225_vm0, %v15277_v62 }
 0x3e3   : > { %v1868_v3 = vpop.f32.mrb[51].mxu1  ;;  %13508 = vtanh.f32 %v2146_v30  ;;  %12414 = vmatmul.mubr.msk.f32.gmra.mrb[88].mxu1 %vm1225_vm0, %v1866_v54  ;;  %12452 = vmatmul.mubr.msk.f32.gmra.mrb[108].mxu0 %vm1225_vm0, %v15275_v28 }
 0x3e5   : > { %v12350_v12 = vpop.f32.mrb[82].mxu0  ;;  %v1871_v38 = vpop.f32.mrb[52].mxu1 }
 0x3e6   : > { %13510 = vtanh.f32 %v12350_v12  ;;  %v2156_v6 = vpop.f32.mrb[83].mxu0  ;;  %v1873_v47 = vpop.f32.mrb[53].mxu1  ;;  %12416 = vmatprep.mubr.msk.f32.mxu1 %vm1225_vm0, %v1871_v38 }
 0x3e7   : > { %13512 = vtanh.f32 %v2156_v6 }
 0x3e8   : > { %v15289_v53 = vpop.eup %13502 }
 0x3e9   : > { %20582 = vst [vmem:[#allocation33_spill] sm:$0xff] %v15289_v53  ;;  %v15291_v9 = vpop.eup %13504  ;;  %v12353_v11 = vpop.f32.mrb[84].mxu0  ;;  %3252 = vrot.lane.b32.xlu1 %v15289_v53, %s14513_s28 }
 0x3ea   : > { %20583 = vst [vmem:[#allocation34_spill] sm:$0xff] %v15291_v9  ;;  %v1876_v20 = vpop.f32.mrb[54].mxu1  ;;  %13514 = vtanh.f32 %v12353_v11  ;;  %v2166_v55 = vpop.f32.mrb[85].mxu0  ;;  %12454 = vmatprep.mubr.msk.f32.mxu0 %vm1225_vm0, %v15291_v9  ;;  %3250 = vrot.lane.b32.xlu0 %v15291_v9, %s14513_s28 }
 0x3eb   : > { %v1878_v48 = vpop.f32.mrb[55].mxu1  ;;  %12417 = vmatmul.mubr.msk.f32.gmra.mrb[90].mxu1 %vm1225_vm0, %v1876_v20  ;;  %13516 = vtanh.f32 %v2166_v55  ;;  %12455 = vmatmul.mubr.msk.f32.gmra.mrb[110].mxu0 %vm1225_vm0, %v15289_v53 }
 0x3ec   : > { %v15302_v39 = vpop.eup %13506 }
 0x3ed   : > { %20584 = vst [vmem:[#allocation35_spill] sm:$0xff] %v15302_v39  ;;  %v15304_v58 = vpop.eup %13508  ;;  %v12356_v43 = vpop.f32.mrb[86].mxu0  ;;  %3256 = vrot.lane.b32.xlu1 %v15302_v39, %s14513_s28 }
 0x3ee   : > { %20585 = vst [vmem:[#allocation36_spill] sm:$0xff] %v15304_v58  ;;  %v1881_v16 = vpop.f32.mrb[56].mxu1  ;;  %13518 = vtanh.f32 %v12356_v43  ;;  %v2176_v14 = vpop.f32.mrb[87].mxu0  ;;  %12457 = vmatprep.mubr.msk.f32.mxu0 %vm1225_vm0, %v15304_v58  ;;  %3254 = vrot.lane.b32.xlu0 %v15304_v58, %s14513_s28  ;;  %v2594_v43 = vld [vmem:[%s20024_s10] sm:$0xff] }
 0x3ef   : > { %v1883_v41 = vpop.f32.mrb[57].mxu1  ;;  %12419 = vmatprep.mubr.msk.f32.mxu1 %vm1225_vm0, %v1881_v16  ;;  %13520 = vtanh.f32 %v2176_v14  ;;  %12458 = vmatmul.mubr.msk.f32.gmra.mrb[112].mxu0 %vm1225_vm0, %v15302_v39  ;;  %v2595_v16 = vld [vmem:[%s20024_s10 + $0x8] sm:$0xff] }
 0x3f0   : > { %v15315_v45 = vpop.eup %13510  ;;  %v15402_v14 = vpack.c.bf16 %v2595_v16, %v2594_v43 }
 0x3f1   : > { %20586 = vst [vmem:[#allocation37_spill] sm:$0xff] %v15315_v45  ;;  %v15317_v17 = vpop.eup %13512  ;;  %v12359_v4 = vpop.f32.mrb[88].mxu0  ;;  %3260 = vrot.lane.b32.xlu1 %v15315_v45, %s14513_s28 }
 0x3f2   : > { %20587 = vst [vmem:[#allocation38_spill] sm:$0xff] %v15317_v17  ;;  %v1886_v22 = vpop.f32.mrb[58].mxu1  ;;  %13522 = vtanh.f32 %v12359_v4  ;;  %v2186_v21 = vpop.f32.mrb[89].mxu0  ;;  %12460 = vmatprep.mubr.msk.f32.mxu0 %vm1225_vm0, %v15317_v17  ;;  %3258 = vrot.lane.b32.xlu0 %v15317_v17, %s14513_s28  ;;  %20600 = vst [vmem:[#allocation51_spill] sm:$0xff] %v15402_v14  ;;  %v2589_v4 = vld [vmem:[%s20025_s11] sm:$0x3] }
 0x3f3   : > { %v1888_v63 = vpop.f32.mrb[59].mxu1  ;;  %12420 = vmatmul.mubr.msk.f32.gmra.mrb[92].mxu1 %vm1225_vm0, %v1886_v22  ;;  %13524 = vtanh.f32 %v2186_v21  ;;  %12461 = vmatmul.mubr.msk.f32.gmra.mrb[114].mxu0 %vm1225_vm0, %v15315_v45  ;;  %v15414_v21 = vrot.slane %v2589_v4, %v14826_v15 }
 0x3f4   : > { %v15328_v49 = vpop.eup %13514  ;;  %13122 = vmatprep.subr.bf16.mxu1 %v15402_v14  ;;  %v15419_v63 = vld [vmem:[%s20026_s12] ss:$0 sm:$0xff] }
 0x3f5   : > { %20588 = vst [vmem:[#allocation39_spill] sm:$0xff] %v15328_v49  ;;  %v15330_v50 = vpop.eup %13516  ;;  %v12362_v13 = vpop.f32.mrb[90].mxu0  ;;  %3264 = vrot.lane.b32.xlu1 %v15328_v49, %s14513_s28  ;;  %13124 = vmatpush3.bf16.msra.mxu1 %v15402_v14  ;;  %20601 = vst [vmem:[#allocation52_spill] sm:$0xff] %v15414_v21 }
 0x3f6   : > { %20589 = vst [vmem:[#allocation40_spill] sm:$0xff] %v15330_v50  ;;  %v1891_v26 = vpop.f32.mrb[60].mxu1  ;;  %13526 = vtanh.f32 %v12362_v13  ;;  %v2196_v29 = vpop.f32.mrb[91].mxu0  ;;  %12463 = vmatprep.mubr.msk.f32.mxu0 %vm1225_vm0, %v15330_v50  ;;  %3262 = vrot.lane.b32.xlu0 %v15330_v50, %s14513_s28  ;;  %v2596_v13 = vld [vmem:[%s20024_s10 + $0x10] sm:$0xff] }
 0x3f7   : > { %v1893_v36 = vpop.f32.mrb[61].mxu1  ;;  %12422 = vmatprep.mubr.msk.f32.mxu1 %vm1225_vm0, %v1891_v26  ;;  %13528 = vtanh.f32 %v2196_v29  ;;  %12464 = vmatmul.mubr.msk.f32.gmra.mrb[116].mxu0 %vm1225_vm0, %v15328_v49  ;;  %v2597_v26 = vld [vmem:[%s20024_s10 + $0x18] sm:$0xff] }
 0x3f8   : > { %v15341_v33 = vpop.eup %13518  ;;  %v15427_v29 = vpack.c.bf16 %v2597_v26, %v2596_v13  ;;  %v15430_v36 = vrot.slane %v2589_v4, %v14828_v19 }
 0x3f9   : > { %20590 = vst [vmem:[#allocation41_spill] sm:$0xff] %v15341_v33  ;;  %v15343_v34 = vpop.eup %13520  ;;  %v12365_v35 = vpop.f32.mrb[92].mxu0  ;;  %3268 = vrot.lane.b32.xlu1 %v15341_v33, %s14513_s28 }
 0x3fa   : > { %20591 = vst [vmem:[#allocation42_spill] sm:$0xff] %v15343_v34  ;;  %v1896_v27 = vpop.f32.mrb[62].mxu1  ;;  %13530 = vtanh.f32 %v12365_v35  ;;  %v2206_v5 = vpop.f32.mrb[93].mxu0  ;;  %12466 = vmatprep.mubr.msk.f32.mxu0 %vm1225_vm0, %v15343_v34  ;;  %3266 = vrot.lane.b32.xlu0 %v15343_v34, %s14513_s28  ;;  %20602 = vst [vmem:[#allocation53_spill] sm:$0xff] %v15427_v29  ;;  %v15436_v35 = vmul.f32 0.0, %v15414_v21 }
 0x3fb   : > { %v1898_v40 = vpop.f32.mrb[63].mxu1  ;;  %12423 = vmatmul.mubr.msk.f32.gmra.mrb[94].mxu1 %vm1225_vm0, %v1896_v27  ;;  %13532 = vtanh.f32 %v2206_v5  ;;  %12467 = vmatmul.mubr.msk.f32.gmra.mrb[118].mxu0 %vm1225_vm0, %v15341_v33  ;;  %20603 = vst [vmem:[#allocation54_spill] sm:$0xff] %v15430_v36 }
 0x3fc   : > { %v15354_v56 = vpop.eup %13522  ;;  %13126 = vmatprep.subr.bf16.mxu1 %v15427_v29 }
 0x3fd   : > { %20592 = vst [vmem:[#allocation43_spill] sm:$0xff] %v15354_v56  ;;  %v15356_v57 = vpop.eup %13524  ;;  %v12368_v42 = vpop.f32.mrb[94].mxu0  ;;  %13128 = vmatpush3.bf16.msra.mxu1 %v15427_v29 }
 0x3fe   : > { %20593 = vst [vmem:[#allocation44_spill] sm:$0xff] %v15356_v57  ;;  %13534 = vtanh.f32 %v12368_v42  ;;  %v2216_v59 = vpop.f32.mrb[95].mxu0  ;;  %12469 = vmatprep.mubr.msk.f32.mxu0 %vm1225_vm0, %v15356_v57  ;;  %3272 = vrot.lane.b32.xlu0 %v15354_v56, %s14513_s28  ;;  %v15451_v42 = vmul.f32 0.0, %v15430_v36 }
 0x3ff   : > { %13536 = vtanh.f32 %v2216_v59  ;;  %12470 = vmatmul.mubr.msk.f32.gmra.mrb[120].mxu0 %vm1225_vm0, %v15354_v56  ;;  %13138 = vmatprep.subr.bf16.mxu1 %v15105_v44 }
 0x400   : > { %v15364_v60 = vpop.eup %13526 }
 0x401   : > { %20594 = vst [vmem:[#allocation45_spill] sm:$0xff] %v15364_v60  ;;  %v15366_v61 = vpop.eup %13528 }
 0x402   : > { %20595 = vst [vmem:[#allocation46_spill] sm:$0xff] %v15366_v61  ;;  %12472 = vmatprep.mubr.msk.f32.mxu0 %vm1225_vm0, %v15366_v61  ;;  %3270 = vrot.lane.b32.xlu0 %v15356_v57, %s14513_s28 }
 0x403   : > { %12473 = vmatmul.mubr.msk.f32.gmra.mrb[122].mxu0 %vm1225_vm0, %v15364_v60 }
 0x404   : > { %v15374_v2 = vpop.eup %13530 }
 0x405   : > { %20596 = vst [vmem:[#allocation47_spill] sm:$0xff] %v15374_v2  ;;  %v15376_v54 = vpop.eup %13532 }
 0x406   : > { %20597 = vst [vmem:[#allocation48_spill] sm:$0xff] %v15376_v54  ;;  %12475 = vmatprep.mubr.msk.f32.mxu0 %vm1225_vm0, %v15376_v54  ;;  %3276 = vrot.lane.b32.xlu0 %v15364_v60, %s14513_s28 }
 0x407   : > { %12476 = vmatmul.mubr.msk.f32.gmra.mrb[124].mxu0 %vm1225_vm0, %v15374_v2 }
 0x408   : > { %v15384_v30 = vpop.eup %13534 }
 0x409   : > { %20598 = vst [vmem:[#allocation49_spill] sm:$0xff] %v15384_v30  ;;  %v15386_v3 = vpop.eup %13536 }
 0x40a   : > { %20599 = vst [vmem:[#allocation50_spill] sm:$0xff] %v15386_v3  ;;  %12478 = vmatprep.mubr.msk.f32.mxu0 %vm1225_vm0, %v15386_v3  ;;  %3274 = vrot.lane.b32.xlu0 %v15366_v61, %s14513_s28 }
 0x40b   : > { %12479 = vmatmul.mubr.msk.f32.gmra.mrb[126].mxu0 %vm1225_vm0, %v15384_v30 }
 0x455   : > { %v12379_v12 = vpop.f32.mrb[64].mxu1 }
 0x456   : > { %v2430_v38 = vpop.f32.mrb[65].mxu1  ;;  %v15433_v15 = vadd.f32 %v12379_v12, %v15419_v63 }
 0x457   : > { %v15442_v5 = vadd.f32 %v15419_v63, %v2430_v38 }
 0x458   : > { %20604 = vst [vmem:[#allocation55_spill] sm:$0xff] %v15433_v15  ;;  %v2609_v19 = vadd.f32 %v15436_v35, %v15433_v15 }
 0x459   : > { %20605 = vst [vmem:[#allocation56_spill] sm:$0xff] %v15442_v5  ;;  %v2608_v59 = vadd.f32 %v15436_v35, %v15442_v5 }
 0x45a   : > { %v15459_v38 = vadd.f32 %v15451_v42, %v2609_v19 }
 0x45b   : > { %v15465_v4 = vadd.f32 %v15451_v42, %v2608_v59 }
 0x45d   : > { %v12382_v6 = vpop.f32.mrb[66].mxu1 }
 0x45e   : > { %v2440_v47 = vpop.f32.mrb[67].mxu1  ;;  %v15456_v12 = vadd.f32 %v12382_v6, %v15419_v63 }
 0x45f   : > { %v15462_v43 = vadd.f32 %v15419_v63, %v2440_v47 }
 0x460   : > { %20606 = vst [vmem:[#allocation57_spill] sm:$0xff] %v15456_v12  ;;  %v2611_v19 = vadd.f32 %v15436_v35, %v15456_v12 }
 0x461   : > { %20607 = vst [vmem:[#allocation58_spill] sm:$0xff] %v15462_v43  ;;  %v2610_v47 = vadd.f32 %v15436_v35, %v15462_v43 }
 0x463   : > { %v15489_v12 = vadd.f32 %v15451_v42, %v2610_v47 }
 0x465   : > { %v12385_v11 = vpop.f32.mrb[68].mxu1 }
 0x466   : > { %v2450_v20 = vpop.f32.mrb[69].mxu1  ;;  %v15478_v59 = vadd.f32 %v12385_v11, %v15419_v63 }
 0x468   : > { %20608 = vst [vmem:[#allocation59_spill] sm:$0xff] %v15478_v59 }
 0x46d   : > { %v12388_v55 = vpop.f32.mrb[70].mxu1 }
 0x46e   : > { %v15394_v48 = vpop.f32.mrb[71].mxu1  ;;  %v15500_v47 = vadd.f32 %v12388_v55, %v15419_v63 }
 0x470   : > { %20610 = vst [vmem:[#allocation61_spill] sm:$0xff] %v15500_v47 }
 0x475   : > { %v15404_v41 = vpop.f32.mrb[72].mxu1 }
 0x476   : > { %v15410_v22 = vpop.f32.mrb[73].mxu1 }
 0x47d   : > { %v15438_v27 = vpop.f32.mrb[74].mxu1 }
 0x47e   : > { %v15444_v40 = vpop.f32.mrb[75].mxu1 }
 0x486   : > { %v12435_v16 = vpop.f32.mrb[96].mxu0  ;;  %v15467_v13 = vpop.f32.mrb[76].mxu1 }
 0x487   : > { %v2999_v26 = vadd.f32 %v12435_v16, %v15459_v38  ;;  %v2839_v1 = vpop.f32.mrb[97].mxu0  ;;  %v15470_v0 = vpop.f32.mrb[77].mxu1  ;;  %v15481_v16 = vadd.f32 %v15451_v42, %v2611_v19  ;;  %v2613_v19 = vadd.f32 %v15436_v35, %v15478_v59 }
 0x488   : > { %v2998_v6 = vadd.f32 %v2839_v1, %v15465_v4  ;;  %v15486_v1 = vadd.f32 %v15419_v63, %v2450_v20 }
 0x489   : > { %v11324_v15 = vmul.f32 -1.442695, %v2999_v26  ;;  %v15503_v61 = vadd.f32 %v15451_v42, %v2613_v19 }
 0x48a   : > { %v11323_v5 = vmul.f32 -1.442695, %v2998_v6  ;;  %20609 = vst [vmem:[#allocation60_spill] sm:$0xff] %v15486_v1  ;;  %v2612_v20 = vadd.f32 %v15436_v35, %v15486_v1 }
 0x48b   : > { %13538 = vpow2.f32 %v11324_v15 }
 0x48c   : > { %13540 = vpow2.f32 %v11323_v5  ;;  %v15512_v59 = vadd.f32 %v15451_v42, %v2612_v20 }
 0x48d   : > { %v15483_v36 = vpop.f32.mrb[78].mxu1 }
 0x48e   : > { %v12438_v26 = vpop.f32.mrb[98].mxu0  ;;  %v15491_v6 = vpop.f32.mrb[79].mxu1 }
 0x48f   : > { %v3001_v15 = vadd.f32 %v12438_v26, %v15481_v16  ;;  %v2849_v5 = vpop.f32.mrb[99].mxu0 }
 0x490   : > { %v3000_v11 = vadd.f32 %v2849_v5, %v15489_v12 }
 0x491   : > { %v11326_v43 = vmul.f32 -1.442695, %v3001_v15  ;;  %v15507_v15 = vadd.f32 %v15419_v63, %v15394_v48  ;;  %v2615_v48 = vadd.f32 %v15436_v35, %v15500_v47 }
 0x492   : > { %v11325_v21 = vmul.f32 -1.442695, %v3000_v11 }
 0x493   : > { %13542 = vpow2.f32 %v11326_v43  ;;  %20611 = vst [vmem:[#allocation62_spill] sm:$0xff] %v15507_v15  ;;  %v2614_v33 = vadd.f32 %v15436_v35, %v15507_v15 }
 0x494   : > { %13544 = vpow2.f32 %v11325_v21 }
 0x495   : > { %v13539_v60 = vpop.eup %13538 }
 0x496   : > { %v13541_v26 = vpop.eup %13540  ;;  %v3127_v56 = vadd.f32 1.0, %v13539_v60  ;;  %v15509_v5 = vpop.f32.mrb[80].mxu1 }
 0x497   : > { %v12441_v11 = vpop.f32.mrb[100].mxu0  ;;  %v3126_v21 = vadd.f32 1.0, %v13541_v26  ;;  %v15515_v55 = vpop.f32.mrb[81].mxu1  ;;  %v15524_v26 = vadd.f32 %v15404_v41, %v15419_v63 }
 0x498   : > { %v3003_v43 = vadd.f32 %v12441_v11, %v15503_v61  ;;  %v2859_v1 = vpop.f32.mrb[101].mxu0  ;;  %13546 = vrcp.f32 %v3127_v56  ;;  %v15527_v56 = vadd.f32 %v15451_v42, %v2615_v48 }
 0x499   : > { %v3002_v19 = vadd.f32 %v2859_v1, %v15512_v59  ;;  %13548 = vrcp.f32 %v3126_v21  ;;  %20612 = vst [vmem:[#allocation63_spill] sm:$0xff] %v15524_v26  ;;  %v15531_v21 = vadd.f32 %v15419_v63, %v15410_v22  ;;  %v2617_v22 = vadd.f32 %v15436_v35, %v15524_v26 }
 0x49a   : > { %v11328_v60 = vmul.f32 -1.442695, %v3003_v43  ;;  %v15554_v26 = vadd.f32 %v15438_v27, %v15419_v63 }
 0x49b   : > { %v11327_v57 = vmul.f32 -1.442695, %v3002_v19  ;;  %20613 = vst [vmem:[#allocation64_spill] sm:$0xff] %v15531_v21 }
 0x49c   : > { %13550 = vpow2.f32 %v11328_v60  ;;  %v15536_v60 = vadd.f32 %v15451_v42, %v2614_v33  ;;  %v2616_v33 = vadd.f32 %v15436_v35, %v15531_v21  ;;  %20614 = vst [vmem:[#allocation65_spill] sm:$0xff] %v15554_v26 }
 0x49d   : > { %13552 = vpow2.f32 %v11327_v57  ;;  %v13543_v20 = vpop.eup %13542 }
 0x49e   : > { %v13545_v1 = vpop.eup %13544  ;;  %v3129_v11 = vadd.f32 1.0, %v13543_v20  ;;  %v15533_v43 = vpop.f32.mrb[82].mxu1  ;;  %v15568_v27 = vadd.f32 %v15451_v42, %v2616_v33 }
 0x49f   : > { %v12444_v19 = vpop.f32.mrb[102].mxu0  ;;  %v3128_v57 = vadd.f32 1.0, %v13545_v1  ;;  %v15539_v41 = vpop.f32.mrb[83].mxu1 }
 0x4a0   : > { %v3005_v15 = vadd.f32 %v12444_v19, %v15527_v56  ;;  %v2869_v47 = vpop.f32.mrb[103].mxu0  ;;  %13554 = vrcp.f32 %v3129_v11  ;;  %v3225_v20 = vpop.permute.xlu1 %3224 }
 0x4a1   : > { %v3004_v48 = vadd.f32 %v2869_v47, %v15536_v60  ;;  %13556 = vrcp.f32 %v3128_v57  ;;  %v3223_v19 = vpop.permute.xlu0 %3222  ;;  %v15558_v57 = vadd.f32 %v15451_v42, %v2617_v22 }
 0x4a2   : > { %v11330_v34 = vmul.f32 -1.442695, %v3005_v15  ;;  %v15544_v49 = vpop.eup %13546 }
 0x4a3   : > { %v11329_v50 = vmul.f32 -1.442695, %v3004_v48  ;;  %v15548_v1 = vpop.eup %13548  ;;  %v3319_v11 = vmul.f32 %v15544_v49, %v3225_v20 }
 0x4a4   : > { %13558 = vpow2.f32 %v11330_v34  ;;  %v3318_v47 = vmul.f32 %v15548_v1, %v3223_v19  ;;  %v3229_v45 = vpop.permute.xlu1 %3228  ;;  %v15562_v34 = vadd.f32 %v15419_v63, %v15444_v40 }
 0x4a5   : > { %13560 = vpow2.f32 %v11329_v50  ;;  %3384 = vrot.lane.b32.xlu1 %v3319_v11, %s14514_s30 }
 0x4a6   : > { %v13551_v15 = vpop.eup %13550  ;;  %20615 = vst [vmem:[#allocation66_spill] sm:$0xff] %v15562_v34  ;;  %v15564_v20 = vpop.f32.mrb[84].mxu1  ;;  %3382 = vrot.lane.b32.xlu0 %v3318_v47, %s14514_s30  ;;  %v2618_v33 = vadd.f32 %v15436_v35, %v15562_v34 }
 0x4a7   : > { %v13553_v48 = vpop.eup %13552  ;;  %v3131_v50 = vadd.f32 1.0, %v13551_v15  ;;  %v12447_v19 = vpop.f32.mrb[104].mxu0  ;;  %v2619_v15 = vadd.f32 %v15436_v35, %v15554_v26 }
 0x4a8   : > { %v3130_v21 = vadd.f32 1.0, %v13553_v48  ;;  %v3007_v11 = vadd.f32 %v12447_v19, %v15558_v57  ;;  %v15571_v17 = vpop.f32.mrb[85].mxu1  ;;  %v2879_v22 = vpop.f32.mrb[105].mxu0 }
 0x4a9   : > { %13562 = vrcp.f32 %v3131_v50  ;;  %v3006_v39 = vadd.f32 %v2879_v22, %v15568_v27  ;;  %v3227_v19 = vpop.permute.xlu1 %3226 }
 0x4aa   : > { %13564 = vrcp.f32 %v3130_v21  ;;  %v11332_v40 = vmul.f32 -1.442695, %v3007_v11  ;;  %v15576_v58 = vpop.eup %13554  ;;  %3278 = vrot.lane.b32.xlu0 %v15376_v54, %s14513_s28  ;;  %v15587_v11 = vadd.f32 %v15467_v13, %v15419_v63 }
 0x4ab   : > { %20616 = vst [vmem:[#allocation67_spill] sm:$0xff] %v15576_v58  ;;  %v11331_v47 = vmul.f32 -1.442695, %v3006_v39  ;;  %v3321_v48 = vmul.f32 %v15576_v58, %v3229_v45  ;;  %v15583_v50 = vpop.eup %13556  ;;  %v15591_v39 = vadd.f32 %v15451_v42, %v2619_v15 }
 0x4ac   : > { %13566 = vpow2.f32 %v11332_v40  ;;  %20617 = vst [vmem:[#allocation68_spill] sm:$0xff] %v15583_v50  ;;  %20618 = vst [vmem:[#allocation69_spill] sm:$0xff] %v15587_v11  ;;  %v15595_v40 = vadd.f32 %v15419_v63, %v15470_v0  ;;  %v3320_v15 = vmul.f32 %v15583_v50, %v3227_v19  ;;  %v3231_v19 = vpop.permute.xlu0 %3230 }
 0x4ad   : > { %13568 = vpow2.f32 %v11331_v47  ;;  %3388 = vrot.lane.b32.xlu1 %v3321_v48, %s14514_s30  ;;  %v15600_v47 = vadd.f32 %v15451_v42, %v2618_v33  ;;  %v3233_v33 = vpop.permute.xlu1 %3232 }
 0x4ae   : > { %v13559_v21 = vpop.eup %13558  ;;  %20619 = vst [vmem:[#allocation70_spill] sm:$0xff] %v15595_v40  ;;  %v15597_v34 = vpop.f32.mrb[86].mxu1 }
 0x4af   : > { %v13561_v22 = vpop.eup %13560  ;;  %v3133_v45 = vadd.f32 1.0, %v13559_v21  ;;  %v12450_v26 = vpop.f32.mrb[106].mxu0  ;;  %v2621_v21 = vadd.f32 %v15436_v35, %v15587_v11  ;;  %v15628_v11 = vadd.f32 %v15419_v63, %v15491_v6  ;;  %v15642_v6 = vadd.f32 %v15509_v5, %v15419_v63 }
 0x4b0   : > { %v3132_v54 = vadd.f32 1.0, %v13561_v22  ;;  %v3009_v13 = vadd.f32 %v12450_v26, %v15591_v39  ;;  %v15603_v53 = vpop.f32.mrb[87].mxu1  ;;  %v2889_v48 = vpop.f32.mrb[107].mxu0  ;;  %v2620_v26 = vadd.f32 %v15436_v35, %v15595_v40  ;;  %v15718_v18 = vadd.f32 %v15597_v34, %v15419_v63 }
 0x4b1   : > { %13570 = vrcp.f32 %v3133_v45  ;;  %v3008_v9 = vadd.f32 %v2889_v48, %v15600_v47  ;;  %3386 = vrot.lane.b32.xlu1 %v3320_v15, %s14514_s30  ;;  %v15620_v15 = vadd.f32 %v15483_v36, %v15419_v63  ;;  %20623 = vst [vmem:[#allocation74_spill] sm:$0xff] %v15628_v11  ;;  %20624 = vst [vmem:[#allocation75_spill] sm:$0xff] %v15642_v6 }
 0x4b2   : > { %v11334_v0 = vmul.f32 -1.442695, %v3009_v13  ;;  %13572 = vrcp.f32 %v3132_v54  ;;  %v2622_v5 = vadd.f32 %v15436_v35, %v15628_v11  ;;  %20634 = vst [vmem:[#allocation85_spill] sm:$0xff] %v15718_v18 }
 0x4b3   : > { %v15610_v28 = vpop.eup %13562  ;;  %v11333_v22 = vmul.f32 -1.442695, %v3008_v9  ;;  %20622 = vst [vmem:[#allocation73_spill] sm:$0xff] %v15620_v15  ;;  %v15624_v9 = vadd.f32 %v15451_v42, %v2621_v21 }
 0x4b4   : > { %20620 = vst [vmem:[#allocation71_spill] sm:$0xff] %v15610_v28  ;;  %v15614_v62 = vpop.eup %13564  ;;  %13574 = vpow2.f32 %v11334_v0  ;;  %v3323_v45 = vmul.f32 %v15610_v28, %v3233_v33 }
 0x4b5   : > { %20621 = vst [vmem:[#allocation72_spill] sm:$0xff] %v15614_v62  ;;  %13576 = vpow2.f32 %v11333_v22  ;;  %v3322_v13 = vmul.f32 %v15614_v62, %v3231_v19  ;;  %v15634_v19 = vadd.f32 %v15451_v42, %v2620_v26 }
 0x4b6   : > { %v13567_v48 = vpop.eup %13566  ;;  %3392 = vrot.lane.b32.xlu1 %v3323_v45, %s14514_s30  ;;  %v15630_v33 = vpop.f32.mrb[88].mxu1 }
 0x4b7   : > { %v13569_v54 = vpop.eup %13568  ;;  %v3135_v0 = vadd.f32 1.0, %v13567_v48  ;;  %3390 = vrot.lane.b32.xlu0 %v3322_v13, %s14514_s30  ;;  %v12453_v22 = vpop.f32.mrb[108].mxu0  ;;  %v2623_v13 = vadd.f32 %v15436_v35, %v15620_v15  ;;  %v15661_v15 = vadd.f32 %v15533_v43, %v15419_v63  ;;  %v15678_v43 = vadd.f32 %v15451_v42, %v2622_v5 }
 0x4b8   : > { %v3134_v36 = vadd.f32 1.0, %v13569_v54  ;;  %v3011_v45 = vadd.f32 %v12453_v22, %v15624_v9  ;;  %v15637_v40 = vpop.f32.mrb[89].mxu1  ;;  %v2899_v21 = vpop.f32.mrb[109].mxu0  ;;  %v15650_v22 = vadd.f32 %v15419_v63, %v15515_v55 }
 0x4b9   : > { %13578 = vrcp.f32 %v3135_v0  ;;  %v3010_v51 = vadd.f32 %v2899_v21, %v15634_v19  ;;  %v3237_v54 = vpop.permute.xlu1 %3236  ;;  %v3235_v0 = vpop.permute.xlu0 %3234  ;;  %20628 = vst [vmem:[#allocation79_spill] sm:$0xff] %v15661_v15 }
 0x4ba   : > { %13580 = vrcp.f32 %v3134_v36  ;;  %v11336_v48 = vmul.f32 -1.442695, %v3011_v45  ;;  %20626 = vst [vmem:[#allocation77_spill] sm:$0xff] %v15650_v22 }
 0x4bb   : > { %v15646_v26 = vpop.eup %13570  ;;  %v11335_v52 = vmul.f32 -1.442695, %v3010_v51  ;;  %3280 = vrot.lane.b32.xlu0 %v15374_v2, %s14513_s28  ;;  %v15665_v51 = vadd.f32 %v15419_v63, %v15539_v41  ;;  %v2624_v41 = vadd.f32 %v15436_v35, %v15650_v22 }
 0x4bc   : > { %20625 = vst [vmem:[#allocation76_spill] sm:$0xff] %v15646_v26  ;;  %13582 = vpow2.f32 %v11336_v48  ;;  %v3325_v36 = vmul.f32 %v15646_v26, %v3237_v54  ;;  %v15657_v45 = vpop.eup %13572  ;;  %v15671_v48 = vadd.f32 %v15451_v42, %v2623_v13  ;;  %v2625_v54 = vadd.f32 %v15436_v35, %v15642_v6 }
 0x4bd   : > { %20627 = vst [vmem:[#allocation78_spill] sm:$0xff] %v15657_v45  ;;  %13584 = vpow2.f32 %v11335_v52  ;;  %20629 = vst [vmem:[#allocation80_spill] sm:$0xff] %v15665_v51  ;;  %v3324_v26 = vmul.f32 %v15657_v45, %v3235_v0  ;;  %v15686_v6 = vadd.f32 %v15564_v20, %v15419_v63  ;;  %v3241_v22 = vpop.permute.xlu1 %3240  ;;  %v15701_v20 = vadd.f32 %v15419_v63, %v15571_v17 }
 0x4be   : > { %v13575_v21 = vpop.eup %13574  ;;  %3396 = vrot.lane.b32.xlu1 %v3325_v36, %s14514_s30  ;;  %v15668_v55 = vpop.f32.mrb[90].mxu1  ;;  %v15691_v5 = vadd.f32 %v15451_v42, %v2625_v54 }
 0x4bf   : > { %v13577_v52 = vpop.eup %13576  ;;  %v3137_v11 = vadd.f32 1.0, %v13575_v21  ;;  %v12456_v2 = vpop.f32.mrb[110].mxu0  ;;  %20630 = vst [vmem:[#allocation81_spill] sm:$0xff] %v15686_v6  ;;  %20632 = vst [vmem:[#allocation83_spill] sm:$0xff] %v15701_v20 }
 0x4c0   : > { %v15675_v31 = vpop.f32.mrb[91].mxu1  ;;  %v3239_v36 = vpop.permute.xlu0 %3238  ;;  %v3136_v32 = vadd.f32 1.0, %v13577_v52  ;;  %v3013_v23 = vadd.f32 %v12456_v2, %v15671_v48  ;;  %v2627_v52 = vadd.f32 %v15436_v35, %v15661_v15  ;;  %v2626_v2 = vadd.f32 %v15436_v35, %v15665_v51 }
 0x4c1   : > { %v2909_v13 = vpop.f32.mrb[111].mxu0  ;;  %13586 = vrcp.f32 %v3137_v11 }
 0x4c2   : > { %v3012_v21 = vadd.f32 %v2909_v13, %v15678_v43  ;;  %v11338_v24 = vmul.f32 -1.442695, %v3013_v23  ;;  %3394 = vrot.lane.b32.xlu1 %v3324_v26, %s14514_s30  ;;  %13588 = vrcp.f32 %v3136_v32  ;;  %v12459_v11 = vpop.f32.mrb[112].mxu0  ;;  %v15704_v26 = vadd.f32 %v15451_v42, %v2624_v41 }
 0x4c3   : > { %v15697_v0 = vpop.eup %13578  ;;  %v3015_v51 = vadd.f32 %v12459_v11, %v15691_v5  ;;  %v2919_v15 = vpop.f32.mrb[113].mxu0 }
 0x4c4   : > { %20631 = vst [vmem:[#allocation82_spill] sm:$0xff] %v15697_v0  ;;  %v11337_v23 = vmul.f32 -1.442695, %v3012_v21  ;;  %v15706_v54 = vpop.eup %13580  ;;  %v15708_v13 = vpop.permute.xlu0 %3242  ;;  %13590 = vpow2.f32 %v11338_v24  ;;  %v3327_v45 = vmul.f32 %v15697_v0, %v3241_v22  ;;  %v3014_v17 = vadd.f32 %v2919_v15, %v15704_v26 }
 0x4c5   : > { %20633 = vst [vmem:[#allocation84_spill] sm:$0xff] %v15706_v54  ;;  %v3326_v32 = vmul.f32 %v15706_v54, %v3239_v36  ;;  %v2629_v21 = vadd.f32 %v15436_v35, %v15686_v6  ;;  %v11340_v10 = vmul.f32 -1.442695, %v3015_v51  ;;  %v15724_v22 = vadd.f32 %v15451_v42, %v2627_v52 }
 0x4c6   : > { %13592 = vpow2.f32 %v11337_v23  ;;  %v13583_v41 = vpop.eup %13582  ;;  %3400 = vrot.lane.b32.xlu1 %v3327_v45, %s14514_s30  ;;  %v15721_v24 = vpop.f32.mrb[92].mxu1  ;;  %v15727_v15 = vadd.f32 %v15451_v42, %v2626_v2  ;;  %v15731_v23 = vadd.f32 %v15419_v63, %v15603_v53  ;;  %v11339_v6 = vmul.f32 -1.442695, %v3014_v17 }
 0x4c7   : > { %v13585_v36 = vpop.eup %13584  ;;  %v3139_v11 = vadd.f32 1.0, %v13583_v41  ;;  %3398 = vrot.lane.b32.xlu0 %v3326_v32, %s14514_s30  ;;  %v12462_v34 = vpop.f32.mrb[114].mxu0  ;;  %v2628_v45 = vadd.f32 %v15436_v35, %v15701_v20  ;;  %13594 = vpow2.f32 %v11340_v10  ;;  %v15743_v53 = vadd.f32 %v15630_v33, %v15419_v63 }
 0x4c8   : > { %20635 = vst [vmem:[#allocation86_spill] sm:$0xff] %v15731_v23  ;;  %v15734_v51 = vpop.f32.mrb[93].mxu1  ;;  %v15738_v52 = vpop.permute.xlu0 %3246  ;;  %v3138_v0 = vadd.f32 1.0, %v13585_v36  ;;  %v3017_v2 = vadd.f32 %v12462_v34, %v15724_v22  ;;  %v15747_v32 = vadd.f32 %v15451_v42, %v2629_v21  ;;  %v15751_v41 = vadd.f32 %v15419_v63, %v15637_v40 }
 0x4c9   : > { %v2929_v54 = vpop.f32.mrb[115].mxu0  ;;  %20636 = vst [vmem:[#allocation87_spill] sm:$0xff] %v15743_v53  ;;  %13596 = vrcp.f32 %v3139_v11  ;;  %v2631_v10 = vadd.f32 %v15436_v35, %v15718_v18  ;;  %v3245_v20 = vpop.permute.xlu1 %3244  ;;  %v2630_v40 = vadd.f32 %v15436_v35, %v15731_v23  ;;  %v15775_v23 = vadd.f32 %v15668_v55, %v15419_v63 }
 0x4ca   : > { %v3016_v17 = vadd.f32 %v2929_v54, %v15727_v15  ;;  %20637 = vst [vmem:[#allocation88_spill] sm:$0xff] %v15751_v41  ;;  %13598 = vrcp.f32 %v3138_v0  ;;  %v11342_v36 = vmul.f32 -1.442695, %v3017_v2  ;;  %v12465_v11 = vpop.f32.mrb[116].mxu0  ;;  %v15760_v54 = vadd.f32 %v15451_v42, %v2628_v45 }
 0x4cb   : > { %v15755_v34 = vpop.eup %13586  ;;  %13600 = vpow2.f32 %v11339_v6  ;;  %3282 = vrot.lane.b32.xlu0 %v15386_v3, %s14513_s28  ;;  %v3019_v21 = vadd.f32 %v12465_v11, %v15747_v32  ;;  %v2939_v2 = vpop.f32.mrb[117].mxu0  ;;  %v2633_v45 = vadd.f32 %v15436_v35, %v15743_v53  ;;  %20640 = vst [vmem:[#allocation91_spill] sm:$0xff] %v15775_v23  ;;  %v15787_v53 = vadd.f32 %v15419_v63, %v15675_v31 }
 0x4cc   : > { %20638 = vst [vmem:[#allocation89_spill] sm:$0xff] %v15755_v34  ;;  %v11341_v33 = vmul.f32 -1.442695, %v3016_v17  ;;  %v15764_v0 = vpop.permute.xlu0 %3250  ;;  %13602 = vpow2.f32 %v11342_v36  ;;  %v3329_v18 = vmul.f32 %v15755_v34, %v3245_v20  ;;  %v15768_v6 = vpop.eup %13588  ;;  %v3018_v17 = vadd.f32 %v2939_v2, %v15760_v54 }
 0x4cd   : > { %20639 = vst [vmem:[#allocation90_spill] sm:$0xff] %v15768_v6  ;;  %v11344_v28 = vmul.f32 -1.442695, %v3019_v21  ;;  %v15781_v20 = vadd.f32 %v15451_v42, %v2631_v10  ;;  %20641 = vst [vmem:[#allocation92_spill] sm:$0xff] %v15787_v53  ;;  %v15799_v31 = vadd.f32 %v15451_v42, %v2633_v45 }
 0x4ce   : > { %13604 = vpow2.f32 %v11341_v33  ;;  %v13591_v3 = vpop.eup %13590  ;;  %3404 = vrot.lane.b32.xlu1 %v3329_v18, %s14514_s30  ;;  %v15778_v36 = vpop.f32.mrb[94].mxu1  ;;  %v2632_v33 = vadd.f32 %v15436_v35, %v15751_v41  ;;  %v11343_v34 = vmul.f32 -1.442695, %v3018_v17  ;;  %v15792_v18 = vadd.f32 %v15451_v42, %v2630_v40 }
 0x4cf   : > { %v3141_v2 = vadd.f32 1.0, %v13591_v3  ;;  %v12468_v55 = vpop.f32.mrb[118].mxu0  ;;  %v15789_v62 = vpop.f32.mrb[95].mxu1  ;;  %13606 = vpow2.f32 %v11344_v28  ;;  %v3328_v41 = vmul.f32 %v15768_v6, %v15708_v13  ;;  %v2634_v6 = vadd.f32 %v15436_v35, %v15787_v53 }
 0x4d0   : > { %v13593_v11 = vpop.eup %13592  ;;  %v3021_v10 = vadd.f32 %v12468_v55, %v15781_v20  ;;  %v2949_v37 = vpop.f32.mrb[119].mxu0  ;;  %v15805_v28 = vadd.f32 %v15451_v42, %v2632_v33 }
 0x4d1   : > { %v3140_v21 = vadd.f32 1.0, %v13593_v11  ;;  %13608 = vrcp.f32 %v3141_v2  ;;  %v3020_v3 = vadd.f32 %v2949_v37, %v15792_v18  ;;  %v13595_v17 = vpop.eup %13594  ;;  %v15801_v58 = vpop.permute.xlu0 %3254  ;;  %v2635_v11 = vadd.f32 %v15436_v35, %v15775_v23 }
 0x4d2   : > { %v11346_v40 = vmul.f32 -1.442695, %v3021_v10  ;;  %3402 = vrot.lane.b32.xlu1 %v3328_v41, %s14514_s30  ;;  %v3249_v2 = vpop.permute.xlu1 %3248  ;;  %v3143_v37 = vadd.f32 1.0, %v13595_v17  ;;  %v12471_v55 = vpop.f32.mrb[120].mxu0 }
 0x4d3   : > { %13610 = vrcp.f32 %v3140_v21  ;;  %v15809_v13 = vpop.eup %13596  ;;  %v11345_v45 = vmul.f32 -1.442695, %v3020_v3  ;;  %v3023_v41 = vadd.f32 %v12471_v55, %v15799_v31  ;;  %v2959_v33 = vpop.f32.mrb[121].mxu0  ;;  %v15822_v53 = vadd.f32 %v15451_v42, %v2635_v11 }
 0x4d4   : > { %20642 = vst [vmem:[#allocation93_spill] sm:$0xff] %v15809_v13  ;;  %13612 = vpow2.f32 %v11343_v34  ;;  %v15813_v21 = vpop.eup %13598  ;;  %v3331_v10 = vmul.f32 %v15809_v13, %v3249_v2  ;;  %v3022_v23 = vadd.f32 %v2959_v33, %v15805_v28  ;;  %v15826_v33 = vadd.f32 %v15451_v42, %v2634_v6 }
 0x4d5   : > { %20643 = vst [vmem:[#allocation94_spill] sm:$0xff] %v15813_v21  ;;  %13614 = vpow2.f32 %v11346_v40  ;;  %v13601_v46 = vpop.eup %13600  ;;  %v3330_v17 = vmul.f32 %v15813_v21, %v15738_v52  ;;  %v3259_v3 = vpop.permute.xlu0 %3258  ;;  %v11348_v50 = vmul.f32 -1.442695, %v3023_v41 }
 0x4d6   : > { %v13603_v34 = vpop.eup %13602  ;;  %v3142_v29 = vadd.f32 1.0, %v13601_v46  ;;  %13616 = vpow2.f32 %v11345_v45  ;;  %3408 = vrot.lane.b32.xlu1 %v3331_v10, %s14514_s30  ;;  %v12474_v2 = vpop.f32.mrb[122].mxu0  ;;  %v11347_v13 = vmul.f32 -1.442695, %v3022_v23 }
 0x4d7   : > { %13618 = vrcp.f32 %v3143_v37  ;;  %v3145_v55 = vadd.f32 1.0, %v13603_v34  ;;  %3406 = vrot.lane.b32.xlu0 %v3330_v17, %s14514_s30  ;;  %v3025_v46 = vadd.f32 %v12474_v2, %v15822_v53  ;;  %v2969_v45 = vpop.f32.mrb[123].mxu0 }
 0x4d8   : > { %v13605_v40 = vpop.eup %13604  ;;  %13620 = vrcp.f32 %v3142_v29  ;;  %v3024_v11 = vadd.f32 %v2969_v45, %v15826_v33 }
 0x4d9   : > { %v3144_v52 = vadd.f32 1.0, %v13605_v40  ;;  %13622 = vrcp.f32 %v3145_v55  ;;  %v13607_v10 = vpop.eup %13606  ;;  %v3263_v21 = vpop.permute.xlu0 %3262  ;;  %v11350_v37 = vmul.f32 -1.442695, %v3025_v46 }
 0x4da   : > { %v3147_v34 = vadd.f32 1.0, %v13607_v10  ;;  %v11349_v17 = vmul.f32 -1.442695, %v3024_v11  ;;  %v15832_v6 = vpop.f32.mrb[124].mxu0 }
 0x4db   : > { %13624 = vrcp.f32 %v3144_v52  ;;  %v15830_v41 = vpop.eup %13608  ;;  %3284 = vrot.lane.b32.xlu0 %v15384_v30, %s14513_s28  ;;  %v15838_v23 = vpop.f32.mrb[125].mxu0 }
 0x4dc   : > { %20644 = vst [vmem:[#allocation95_spill] sm:$0xff] %v15830_v41  ;;  %13626 = vpow2.f32 %v11348_v50  ;;  %v3253_v52 = vpop.permute.xlu1 %3252 }
 0x4dd   : > { %v15836_v29 = vpop.eup %13610  ;;  %13628 = vpow2.f32 %v11347_v13  ;;  %v3267_v46 = vpop.permute.xlu0 %3266 }
 0x4de   : > { %20645 = vst [vmem:[#allocation96_spill] sm:$0xff] %v15836_v29  ;;  %v13613_v40 = vpop.eup %13612  ;;  %13630 = vrcp.f32 %v3147_v34  ;;  %v3332_v55 = vmul.f32 %v15836_v29, %v15764_v0  ;;  %v15842_v45 = vpop.f32.mrb[126].mxu0  ;;  %v3333_v0 = vmul.f32 %v15830_v41, %v3253_v52 }
 0x4df   : > { %v13615_v2 = vpop.eup %13614  ;;  %v3146_v50 = vadd.f32 1.0, %v13613_v40  ;;  %13632 = vpow2.f32 %v11350_v37  ;;  %v15845_v10 = vpop.f32.mrb[127].mxu0 }
 0x4e0   : > { %13634 = vpow2.f32 %v11349_v17  ;;  %3410 = vrot.lane.b32.xlu1 %v3332_v55, %s14514_s30  ;;  %v13617_v11 = vpop.eup %13616  ;;  %v3149_v13 = vadd.f32 1.0, %v13615_v2  ;;  %v3257_v40 = vpop.permute.xlu1 %3256 }
 0x4e1   : > { %13636 = vrcp.f32 %v3146_v50  ;;  %v15847_v30 = vpop.eup %13618  ;;  %v3148_v34 = vadd.f32 1.0, %v13617_v11  ;;  %v3273_v55 = vpop.permute.xlu0 %3272 }
 0x4e2   : > { %v15850_v29 = vpop.eup %13620  ;;  %v3335_v50 = vmul.f32 %v15847_v30, %v3257_v40 }
 0x4e3   : > { %20646 = vst [vmem:[#allocation97_spill] sm:$0xff] %v15850_v29  ;;  %v15852_v7 = vpop.eup %13622  ;;  %13638 = vrcp.f32 %v3148_v34  ;;  %v3334_v37 = vmul.f32 %v15850_v29, %v15801_v58 }
 0x4e4   : > { %3412 = vrot.lane.b32.xlu1 %v3333_v0, %s14514_s30  ;;  %13640 = vrcp.f32 %v3149_v13  ;;  %v3261_v0 = vpop.permute.xlu1 %3260 }
 0x4e5   : > { %v15857_v17 = vpop.eup %13624  ;;  %3414 = vrot.lane.b32.xlu0 %v3334_v37, %s14514_s30  ;;  %v3337_v37 = vmul.f32 %v15852_v7, %v3261_v0  ;;  %v3271_v40 = vpop.permute.xlu0 %3270 }
 0x4e6   : > { %20647 = vst [vmem:[#allocation98_spill] sm:$0xff] %v15857_v17  ;;  %v13627_v2 = vpop.eup %13626  ;;  %v3336_v52 = vmul.f32 %v15857_v17, %v3259_v3 }
 0x4e7   : > { %v13629_v11 = vpop.eup %13628  ;;  %v3151_v41 = vadd.f32 1.0, %v13627_v2 }
 0x4e8   : > { %v15862_v34 = vpop.eup %13630  ;;  %v3150_v8 = vadd.f32 1.0, %v13629_v11  ;;  %3416 = vrot.lane.b32.xlu1 %v3335_v50, %s14514_s30  ;;  %v3265_v50 = vpop.permute.xlu1 %3264 }
 0x4e9   : > { %v13633_v58 = vpop.eup %13632  ;;  %13642 = vrcp.f32 %v3151_v41  ;;  %3418 = vrot.lane.b32.xlu0 %v3336_v52, %s14514_s30 }
 0x4ea   : > { %v13635_v29 = vpop.eup %13634  ;;  %13644 = vrcp.f32 %v3150_v8  ;;  %v3153_v13 = vadd.f32 1.0, %v13633_v58  ;;  %v3339_v8 = vmul.f32 %v15862_v34, %v3265_v50  ;;  %v3277_v58 = vpop.permute.xlu0 %3276 }
 0x4eb   : > { %v15867_v3 = vpop.eup %13636  ;;  %v3152_v17 = vadd.f32 1.0, %v13635_v29 }
 0x4ec   : > { %13646 = vrcp.f32 %v3153_v13  ;;  %v3338_v2 = vmul.f32 %v15867_v3, %v3263_v21  ;;  %3420 = vrot.lane.b32.xlu1 %v3337_v37, %s14514_s30  ;;  %v3269_v29 = vpop.permute.xlu1 %3268  ;;  %v15881_v21 = vadd.f32 %v15419_v63, %v15734_v51 }
 0x4ed   : > { %13648 = vrcp.f32 %v3152_v17  ;;  %v15871_v11 = vpop.eup %13638 }
 0x4ee   : > { %3422 = vrot.lane.b32.xlu0 %v3338_v2, %s14514_s30  ;;  %v15875_v41 = vpop.eup %13640  ;;  %v3340_v52 = vmul.f32 %v15871_v11, %v3267_v46  ;;  %20648 = vst [vmem:[#allocation99_spill] sm:$0xff] %v15881_v21  ;;  %v2636_v46 = vadd.f32 %v15436_v35, %v15881_v21 }
 0x4ef   : > { %v3341_v17 = vmul.f32 %v15875_v41, %v3269_v29 }
 0x4f0   : > { %3424 = vrot.lane.b32.xlu1 %v3339_v8, %s14514_s30  ;;  %v3275_v8 = vpop.permute.xlu0 %3274  ;;  %v15902_v29 = vadd.f32 %v15451_v42, %v2636_v46 }
 0x4f2   : > { %3426 = vrot.lane.b32.xlu0 %v3340_v52, %s14514_s30 }
 0x4f3   : > { %v15885_v0 = vpop.eup %13642 }
 0x4f4   : > { %v15887_v13 = vpop.eup %13644  ;;  %3428 = vrot.lane.b32.xlu1 %v3341_v17, %s14514_s30  ;;  %v3343_v51 = vmul.f32 %v15885_v0, %v3273_v55 }
 0x4f5   : > { %v3342_v37 = vmul.f32 %v15887_v13, %v3271_v40  ;;  %v3026_v40 = vadd.f32 %v15838_v23, %v15902_v29 }
 0x4f6   : > { %v15893_v2 = vpop.eup %13646 }
 0x4f7   : > { %v15896_v50 = vpop.eup %13648  ;;  %3430 = vrot.lane.b32.xlu0 %v3342_v37, %s14514_s30  ;;  %v3345_v17 = vmul.f32 %v15893_v2, %v3277_v58  ;;  %v11351_v55 = vmul.f32 -1.442695, %v3026_v40  ;;  %v15911_v37 = vadd.f32 %v15721_v24, %v15419_v63 }
 0x4f8   : > { %v3344_v52 = vmul.f32 %v15896_v50, %v3275_v8  ;;  %3432 = vrot.lane.b32.xlu1 %v3343_v51, %s14514_s30 }
 0x4f9   : > { %20649 = vst [vmem:[#allocation100_spill] sm:$0xff] %v15911_v37  ;;  %13650 = vpow2.f32 %v11351_v55  ;;  %v2637_v51 = vadd.f32 %v15436_v35, %v15911_v37 }
 0x4fb   : > { %3434 = vrot.lane.b32.xlu0 %v3344_v52, %s14514_s30  ;;  %v15916_v46 = vadd.f32 %v15451_v42, %v2637_v51 }
 0x4fc   : > { %3436 = vrot.lane.b32.xlu1 %v3345_v17, %s14514_s30  ;;  %v15922_v17 = vadd.f32 %v15419_v63, %v15789_v62 }
 0x4fd   : > { %v3027_v58 = vadd.f32 %v15832_v6, %v15916_v46 }
 0x4fe   : > { %20650 = vst [vmem:[#allocation101_spill] sm:$0xff] %v15922_v17  ;;  %v2638_v24 = vadd.f32 %v15436_v35, %v15922_v17 }
 0x4ff   : > { %v11352_v8 = vmul.f32 -1.442695, %v3027_v58 }
 0x500   : > { %v15927_v40 = vadd.f32 %v15451_v42, %v2638_v24 }
 0x501   : > { %13652 = vpow2.f32 %v11352_v8 }
 0x502   : > { %v3028_v51 = vadd.f32 %v15845_v10, %v15927_v40  ;;  %v15940_v10 = vadd.f32 %v15778_v36, %v15419_v63 }
 0x503   : > { %v13651_v23 = vpop.eup %13650 }
 0x504   : > { %v3154_v52 = vadd.f32 1.0, %v13651_v23  ;;  %v11353_v8 = vmul.f32 -1.442695, %v3028_v51  ;;  %20651 = vst [vmem:[#allocation102_spill] sm:$0xff] %v15940_v10 }
 0x506   : > { %13654 = vrcp.f32 %v3154_v52 }
 0x507   : > { %13656 = vpow2.f32 %v11353_v8 }
 0x50b   : > { %v13653_v58 = vpop.eup %13652 }
 0x50c   : > { %v3155_v24 = vadd.f32 1.0, %v13653_v58 }
 0x50e   : > { %13658 = vrcp.f32 %v3155_v24 }
 0x510   : > { %v15934_v62 = vpop.eup %13654 }
 0x517   : > { %v3385_v6 = vpop.permute.xlu1 %3384 }
 0x518   : > { %v3383_v55 = vpop.permute.xlu0 %3382 }
 0x519   : > { %12489 = vmatprep.mubr.msk.f32.mxu1 %vm1225_vm0, %v3383_v55 }
 0x51a   : > { %12490 = vmatmul.mubr.msk.f32.vlgmr.msra.gmra.mrb[96].mxu1 %vm1225_vm0, %v3385_v6  ;;  %v2639_v6 = vadd.f32 %v15436_v35, %v15940_v10 }
 0x51b   : > { %13140 = vmatpush3.bf16.msra.mxu1 %v15105_v44 }
 0x51c   : > { %v3279_v23 = vpop.permute.xlu0 %3278  ;;  %13142 = vmatprep.subr.bf16.mxu1 %v15117_v25  ;;  %v15949_v51 = vadd.f32 %v15451_v42, %v2639_v6 }
 0x51d   : > { %v3346_v52 = vmul.f32 %v15934_v62, %v3279_v23  ;;  %v13657_v23 = vpop.eup %13656 }
 0x51e   : > { %v3029_v36 = vadd.f32 %v15842_v45, %v15949_v51  ;;  %v15955_v8 = vpop.eup %13658  ;;  %v3156_v24 = vadd.f32 1.0, %v13657_v23 }
 0x51f   : > { %3438 = vrot.lane.b32.xlu0 %v3346_v52, %s14514_s30  ;;  %v3389_v55 = vpop.permute.xlu1 %3388  ;;  %13144 = vmatpush3.bf16.msra.mxu1 %v15117_v25 }
 0x520   : > { %v11354_v52 = vmul.f32 -1.442695, %v3029_v36 }
 0x522   : > { %13660 = vpow2.f32 %v11354_v52 }
 0x523   : > { %v3387_v17 = vpop.permute.xlu1 %3386  ;;  %13662 = vrcp.f32 %v3156_v24 }
 0x524   : > { %12492 = vmatprep.mubr.msk.f32.mxu1 %vm1225_vm0, %v3387_v17 }
 0x525   : > { %12493 = vmatmul.mubr.msk.f32.gmra.mrb[98].mxu1 %vm1225_vm0, %v3389_v55 }
 0x528   : > { %v3393_v58 = vpop.permute.xlu1 %3392 }
 0x529   : > { %v3391_v63 = vpop.permute.xlu0 %3390 }
 0x52a   : > { %12495 = vmatprep.mubr.msk.f32.mxu1 %vm1225_vm0, %v3391_v63 }
 0x52b   : > { %12496 = vmatmul.mubr.msk.f32.gmra.mrb[100].mxu1 %vm1225_vm0, %v3393_v58 }
 0x52c   : > { %v13661_v63 = vpop.eup %13660 }
 0x52d   : > { %v3281_v35 = vpop.permute.xlu0 %3280  ;;  %v15963_v36 = vpop.eup %13662 }
 0x52e   : > { %v3347_v17 = vmul.f32 %v15955_v8, %v3281_v35  ;;  %v3157_v35 = vadd.f32 1.0, %v13661_v63 }
 0x530   : > { %3440 = vrot.lane.b32.xlu1 %v3347_v17, %s14514_s30  ;;  %v3397_v42 = vpop.permute.xlu1 %3396  ;;  %13664 = vrcp.f32 %v3157_v35 }
 0x534   : > { %v3395_v55 = vpop.permute.xlu1 %3394 }
 0x535   : > { %12498 = vmatprep.mubr.msk.f32.mxu1 %vm1225_vm0, %v3395_v55 }
 0x536   : > { %12499 = vmatmul.mubr.msk.f32.gmra.mrb[102].mxu1 %vm1225_vm0, %v3397_v42 }
 0x538   : > { %v3401_v6 = vpop.permute.xlu1 %3400 }
 0x539   : > { %v3399_v45 = vpop.permute.xlu0 %3398 }
 0x53a   : > { %12501 = vmatprep.mubr.msk.f32.mxu1 %vm1225_vm0, %v3399_v45  ;;  %v15971_v55 = vpop.eup %13664 }
 0x53b   : > { %12502 = vmatmul.mubr.msk.f32.gmra.mrb[104].mxu1 %vm1225_vm0, %v3401_v6 }
 0x53d   : > { %v3283_v58 = vpop.permute.xlu0 %3282 }
 0x53e   : > { %v3348_v23 = vmul.f32 %v15963_v36, %v3283_v58 }
 0x540   : > { %3442 = vrot.lane.b32.xlu0 %v3348_v23, %s14514_s30  ;;  %v3405_v52 = vpop.permute.xlu1 %3404 }
 0x544   : > { %v3403_v17 = vpop.permute.xlu1 %3402 }
 0x545   : > { %12504 = vmatprep.mubr.msk.f32.mxu1 %vm1225_vm0, %v3403_v17 }
 0x546   : > { %12505 = vmatmul.mubr.msk.f32.gmra.mrb[106].mxu1 %vm1225_vm0, %v3405_v52 }
 0x548   : > { %v3409_v42 = vpop.permute.xlu1 %3408 }
 0x549   : > { %v3407_v24 = vpop.permute.xlu0 %3406 }
 0x54a   : > { %12507 = vmatprep.mubr.msk.f32.mxu1 %vm1225_vm0, %v3407_v24 }
 0x54b   : > { %12508 = vmatmul.mubr.msk.f32.gmra.mrb[108].mxu1 %vm1225_vm0, %v3409_v42 }
 0x54d   : > { %v3285_v45 = vpop.permute.xlu0 %3284 }
 0x54e   : > { %v3349_v6 = vmul.f32 %v15971_v55, %v3285_v45 }
 0x550   : > { %3444 = vrot.lane.b32.xlu1 %v3349_v6, %s14514_s30 }
 0x552   : > { %v3411_v63 = vpop.permute.xlu1 %3410 }
 0x553   : > { %12510 = vmatprep.mubr.msk.f32.mxu1 %vm1225_vm0, %v3411_v63 }
 0x556   : > { %v3413_v58 = vpop.permute.xlu1 %3412 }
 0x557   : > { %12511 = vmatmul.mubr.msk.f32.gmra.mrb[110].mxu1 %vm1225_vm0, %v3413_v58  ;;  %v3415_v23 = vpop.permute.xlu0 %3414 }
 0x558   : > { %12513 = vmatprep.mubr.msk.f32.mxu1 %vm1225_vm0, %v3415_v23 }
 0x55a   : > { %v3417_v35 = vpop.permute.xlu1 %3416 }
 0x55b   : > { %12514 = vmatmul.mubr.msk.f32.gmra.mrb[112].mxu1 %vm1225_vm0, %v3417_v35  ;;  %v3419_v52 = vpop.permute.xlu0 %3418 }
 0x55c   : > { %12516 = vmatprep.mubr.msk.f32.mxu1 %vm1225_vm0, %v3419_v52 }
 0x55e   : > { %v3421_v17 = vpop.permute.xlu1 %3420 }
 0x55f   : > { %12517 = vmatmul.mubr.msk.f32.gmra.mrb[114].mxu1 %vm1225_vm0, %v3421_v17 }
 0x560   : > { %v3423_v24 = vpop.permute.xlu0 %3422 }
 0x561   : > { %12519 = vmatprep.mubr.msk.f32.mxu1 %vm1225_vm0, %v3423_v24 }
 0x562   : > { %v3425_v42 = vpop.permute.xlu1 %3424 }
 0x563   : > { %12520 = vmatmul.mubr.msk.f32.gmra.mrb[116].mxu1 %vm1225_vm0, %v3425_v42 }
 0x564   : > { %v3427_v45 = vpop.permute.xlu0 %3426 }
 0x565   : > { %12522 = vmatprep.mubr.msk.f32.mxu1 %vm1225_vm0, %v3427_v45 }
 0x566   : > { %v3429_v6 = vpop.permute.xlu1 %3428 }
 0x567   : > { %12523 = vmatmul.mubr.msk.f32.gmra.mrb[118].mxu1 %vm1225_vm0, %v3429_v6 }
 0x569   : > { %v3431_v63 = vpop.permute.xlu0 %3430 }
 0x56a   : > { %12525 = vmatprep.mubr.msk.f32.mxu1 %vm1225_vm0, %v3431_v63  ;;  %v3433_v58 = vpop.permute.xlu1 %3432 }
 0x56b   : > { %12526 = vmatmul.mubr.msk.f32.gmra.mrb[120].mxu1 %vm1225_vm0, %v3433_v58 }
 0x56d   : > { %v3435_v23 = vpop.permute.xlu0 %3434 }
 0x56e   : > { %12528 = vmatprep.mubr.msk.f32.mxu1 %vm1225_vm0, %v3435_v23  ;;  %v3437_v35 = vpop.permute.xlu1 %3436 }
 0x56f   : > { %12529 = vmatmul.mubr.msk.f32.gmra.mrb[122].mxu1 %vm1225_vm0, %v3437_v35 }
 0x591   : > { %v3439_v52 = vpop.permute.xlu0 %3438 }
 0x592   : > { %12531 = vmatprep.mubr.msk.f32.mxu1 %vm1225_vm0, %v3439_v52 }
 0x5a2   : > { %v3441_v17 = vpop.permute.xlu1 %3440 }
 0x5a3   : > { %12532 = vmatmul.mubr.msk.f32.gmra.mrb[124].mxu1 %vm1225_vm0, %v3441_v17 }
 0x5b2   : > { %v3443_v24 = vpop.permute.xlu0 %3442 }
 0x5b3   : > { %12534 = vmatprep.mubr.msk.f32.mxu1 %vm1225_vm0, %v3443_v24 }
 0x5c2   : > { %v3445_v42 = vpop.permute.xlu1 %3444 }
 0x5c3   : > { %12535 = vmatmul.mubr.msk.f32.gmra.mrb[126].mxu1 %vm1225_vm0, %v3445_v42 }
 0x5ed   : > { %v12491_v45 = vpop.f32.mrb[96].mxu1 }
 0x5ee   : > { %3769 = vrot.lane.b32.xlu1 %v12491_v45, %s14515_s22  ;;  %v3576_v6 = vpop.f32.mrb[97].mxu1 }
 0x5ef   : > { %3767 = vrot.lane.b32.xlu0 %v3576_v6, %s14515_s22 }
 0x5f8   : > { %v12494_v63 = vpop.f32.mrb[98].mxu1 }
 0x5f9   : > { %3773 = vrot.lane.b32.xlu1 %v12494_v63, %s14515_s22  ;;  %v3586_v58 = vpop.f32.mrb[99].mxu1 }
 0x5fa   : > { %3771 = vrot.lane.b32.xlu0 %v3586_v58, %s14515_s22 }
 0x5fe   : > { %v12497_v23 = vpop.f32.mrb[100].mxu1 }
 0x5ff   : > { %3777 = vrot.lane.b32.xlu1 %v12497_v23, %s14515_s22  ;;  %v3596_v35 = vpop.f32.mrb[101].mxu1 }
 0x600   : > { %3775 = vrot.lane.b32.xlu0 %v3596_v35, %s14515_s22 }
 0x609   : > { %v12500_v52 = vpop.f32.mrb[102].mxu1 }
 0x60a   : > { %3781 = vrot.lane.b32.xlu1 %v12500_v52, %s14515_s22  ;;  %v3606_v17 = vpop.f32.mrb[103].mxu1 }
 0x60b   : > { %3779 = vrot.lane.b32.xlu0 %v3606_v17, %s14515_s22 }
 0x60e   : > { %v12503_v24 = vpop.f32.mrb[104].mxu1 }
 0x60f   : > { %3785 = vrot.lane.b32.xlu1 %v12503_v24, %s14515_s22  ;;  %v3616_v42 = vpop.f32.mrb[105].mxu1 }
 0x610   : > { %3783 = vrot.lane.b32.xlu0 %v3616_v42, %s14515_s22 }
 0x619   : > { %v12506_v45 = vpop.f32.mrb[106].mxu1 }
 0x61a   : > { %3789 = vrot.lane.b32.xlu1 %v12506_v45, %s14515_s22  ;;  %v3626_v6 = vpop.f32.mrb[107].mxu1  ;;  %v2598_v45 = vld [vmem:[%s20027_s13] sm:$0xff] }
 0x61b   : > { %3787 = vrot.lane.b32.xlu0 %v3626_v6, %s14515_s22  ;;  %v2599_v6 = vld [vmem:[%s20027_s13 + $0x8] sm:$0xff] }
 0x61e   : > { %v12509_v63 = vpop.f32.mrb[108].mxu1 }
 0x61f   : > { %3793 = vrot.lane.b32.xlu1 %v12509_v63, %s14515_s22  ;;  %v3636_v58 = vpop.f32.mrb[109].mxu1 }
 0x620   : > { %3791 = vrot.lane.b32.xlu0 %v3636_v58, %s14515_s22  ;;  %v16019_v58 = vpack.c.bf16 %v2599_v6, %v2598_v45  ;;  %v2600_v6 = vld [vmem:[%s20027_s13 + $0x10] sm:$0xff] }
 0x622   : > { %20652 = vst [vmem:[#allocation103_spill] sm:$0xff] %v16019_v58  ;;  %13130 = vmatprep.subr.bf16.mxu0 %v16019_v58  ;;  %13154 = vmatprep.subr.bf16.mxu1 %v16019_v58 }
 0x623   : > { %13132 = vmatpush3.bf16.msra.mxu0 %v16019_v58 }
 0x62a   : > { %v12512_v23 = vpop.f32.mrb[110].mxu1 }
 0x62b   : > { %3797 = vrot.lane.b32.xlu1 %v12512_v23, %s14515_s22  ;;  %v3646_v35 = vpop.f32.mrb[111].mxu1 }
 0x62c   : > { %3795 = vrot.lane.b32.xlu0 %v3646_v35, %s14515_s22 }
 0x62e   : > { %v12515_v52 = vpop.f32.mrb[112].mxu1 }
 0x62f   : > { %3801 = vrot.lane.b32.xlu1 %v12515_v52, %s14515_s22  ;;  %v3656_v17 = vpop.f32.mrb[113].mxu1 }
 0x630   : > { %3799 = vrot.lane.b32.xlu0 %v3656_v17, %s14515_s22 }
 0x632   : > { %v12518_v24 = vpop.f32.mrb[114].mxu1 }
 0x633   : > { %3805 = vrot.lane.b32.xlu1 %v12518_v24, %s14515_s22  ;;  %v3666_v42 = vpop.f32.mrb[115].mxu1 }
 0x634   : > { %3803 = vrot.lane.b32.xlu0 %v3666_v42, %s14515_s22 }
 0x636   : > { %v12521_v63 = vpop.f32.mrb[116].mxu1 }
 0x637   : > { %3809 = vrot.lane.b32.xlu1 %v12521_v63, %s14515_s22  ;;  %v3676_v23 = vpop.f32.mrb[117].mxu1  ;;  %v2601_v63 = vld [vmem:[%s20027_s13 + $0x18] sm:$0xff] }
 0x638   : > { %3807 = vrot.lane.b32.xlu0 %v3676_v23, %s14515_s22  ;;  %v16038_v23 = vpack.c.bf16 %v2601_v63, %v2600_v6 }
 0x63a   : > { %v12524_v35 = vpop.f32.mrb[118].mxu1  ;;  %20653 = vst [vmem:[#allocation104_spill] sm:$0xff] %v16038_v23  ;;  %13134 = vmatprep.subr.bf16.mxu0 %v16038_v23 }
 0x63b   : > { %3813 = vrot.lane.b32.xlu1 %v12524_v35, %s14515_s22  ;;  %v3686_v52 = vpop.f32.mrb[119].mxu1  ;;  %13136 = vmatpush3.bf16.msra.mxu0 %v16038_v23 }
 0x63c   : > { %3811 = vrot.lane.b32.xlu0 %v3686_v52, %s14515_s22  ;;  %13146 = vmatprep.subr.bf16.mxu0 %v15402_v14 }
 0x63e   : > { %v12527_v17 = vpop.f32.mrb[120].mxu1 }
 0x63f   : > { %3817 = vrot.lane.b32.xlu1 %v12527_v17, %s14515_s22  ;;  %v3696_v24 = vpop.f32.mrb[121].mxu1 }
 0x640   : > { %3815 = vrot.lane.b32.xlu0 %v3696_v24, %s14515_s22 }
 0x642   : > { %v12530_v42 = vpop.f32.mrb[122].mxu1 }
 0x643   : > { %3821 = vrot.lane.b32.xlu1 %v12530_v42, %s14515_s22  ;;  %v3706_v45 = vpop.f32.mrb[123].mxu1 }
 0x647   : > { %3819 = vrot.lane.b32.xlu1 %v3706_v45, %s14515_s22 }
 0x660   : > { %v3770_v35 = vpop.permute.xlu1 %3769 }
 0x661   : > { %v3864_v52 = vadd.f32 %v3770_v35, %v15459_v38  ;;  %v3768_v17 = vpop.permute.xlu0 %3767 }
 0x662   : > { %v3863_v24 = vadd.f32 %v3768_v17, %v15465_v4 }
 0x663   : > { %13666 = vtanh.f32 %v3864_v52 }
 0x664   : > { %13668 = vtanh.f32 %v3863_v24 }
 0x66b   : > { %v3774_v42 = vpop.permute.xlu1 %3773 }
 0x66c   : > { %v3772_v45 = vpop.permute.xlu0 %3771  ;;  %v3866_v63 = vadd.f32 %v3774_v42, %v15481_v16 }
 0x66d   : > { %v13667_v25 = vpop.eup %13666  ;;  %v3865_v6 = vadd.f32 %v3772_v45, %v15489_v12 }
 0x66e   : > { %4025 = vrot.lane.b32.xlu0 %v13667_v25, %s14515_s22  ;;  %v13669_v21 = vpop.eup %13668 }
 0x66f   : > { %13670 = vtanh.f32 %v3865_v6 }
 0x670   : > { %13672 = vtanh.f32 %v3866_v63 }
 0x671   : > { %v3778_v10 = vpop.permute.xlu1 %3777 }
 0x672   : > { %v3868_v37 = vadd.f32 %v3778_v10, %v15503_v61  ;;  %v3776_v38 = vpop.permute.xlu0 %3775  ;;  %4023 = vrot.lane.b32.xlu0 %v13669_v21, %s14515_s22 }
 0x673   : > { %v3867_v4 = vadd.f32 %v3776_v38, %v15512_v59 }
 0x674   : > { %13674 = vtanh.f32 %v3868_v37 }
 0x675   : > { %13676 = vtanh.f32 %v3867_v4 }
 0x676   : > { %v12533_v35 = vpop.f32.mrb[124].mxu1 }
 0x677   : > { %3825 = vrot.lane.b32.xlu1 %v12533_v35, %s14515_s22  ;;  %v3716_v12 = vpop.f32.mrb[125].mxu1 }
 0x679   : > { %v13671_v16 = vpop.eup %13670 }
 0x67a   : > { %4027 = vrot.lane.b32.xlu0 %v13671_v16, %s14515_s22  ;;  %v13673_v52 = vpop.eup %13672 }
 0x67b   : > { %3823 = vrot.lane.b32.xlu1 %v3716_v12, %s14515_s22 }
 0x67c   : > { %v3782_v25 = vpop.permute.xlu1 %3781 }
 0x67d   : > { %v3780_v61 = vpop.permute.xlu0 %3779 }
 0x67e   : > { %v13675_v10 = vpop.eup %13674  ;;  %v3869_v17 = vadd.f32 %v3780_v61, %v15536_v60  ;;  %v3870_v60 = vadd.f32 %v3782_v25, %v15527_v56 }
 0x67f   : > { %4029 = vrot.lane.b32.xlu1 %v13673_v52, %s14515_s22  ;;  %4033 = vrot.lane.b32.xlu0 %v13675_v10, %s14515_s22  ;;  %v13677_v21 = vpop.eup %13676 }
 0x680   : > { %13678 = vtanh.f32 %v3869_v17 }
 0x681   : > { %v3786_v59 = vpop.permute.xlu1 %3785 }
 0x682   : > { %v3872_v37 = vadd.f32 %v3786_v59, %v15558_v57  ;;  %v3784_v24 = vpop.permute.xlu0 %3783 }
 0x683   : > { %4031 = vrot.lane.b32.xlu0 %v13677_v21, %s14515_s22  ;;  %v3871_v42 = vadd.f32 %v3784_v24, %v15568_v27 }
 0x684   : > { %13680 = vtanh.f32 %v3872_v37 }
 0x685   : > { %13682 = vtanh.f32 %v3871_v42 }
 0x68a   : > { %v13679_v45 = vpop.eup %13678 }
 0x68b   : > { %4035 = vrot.lane.b32.xlu0 %v13679_v45, %s14515_s22 }
 0x68c   : > { %v3790_v4 = vpop.permute.xlu1 %3789 }
 0x68d   : > { %v3788_v6 = vpop.permute.xlu0 %3787  ;;  %v3874_v27 = vadd.f32 %v3790_v4, %v15591_v39 }
 0x68e   : > { %v13681_v63 = vpop.eup %13680  ;;  %v3873_v38 = vadd.f32 %v3788_v6, %v15600_v47 }
 0x68f   : > { %4041 = vrot.lane.b32.xlu0 %v13681_v63, %s14515_s22  ;;  %v13683_v57 = vpop.eup %13682 }
 0x690   : > { %13684 = vtanh.f32 %v3873_v38 }
 0x691   : > { %13686 = vtanh.f32 %v3870_v60  ;;  %v3794_v16 = vpop.permute.xlu1 %3793 }
 0x692   : > { %v3792_v35 = vpop.permute.xlu0 %3791  ;;  %v3876_v47 = vadd.f32 %v3794_v16, %v15624_v9 }
 0x693   : > { %v3875_v12 = vadd.f32 %v3792_v35, %v15634_v19  ;;  %4039 = vrot.lane.b32.xlu0 %v13683_v57, %s14515_s22 }
 0x695   : > { %13688 = vtanh.f32 %v3875_v12 }
 0x696   : > { %v12536_v56 = vpop.f32.mrb[126].mxu1  ;;  %13690 = vtanh.f32 %v3874_v27 }
 0x697   : > { %v3726_v25 = vpop.f32.mrb[127].mxu1  ;;  %13692 = vtanh.f32 %v3876_v47 }
 0x698   : > { %3827 = vrot.lane.b32.xlu1 %v3726_v25, %s14515_s22 }
 0x69a   : > { %v13685_v52 = vpop.eup %13684 }
 0x69b   : > { %v13687_v61 = vpop.eup %13686  ;;  %4043 = vrot.lane.b32.xlu0 %v13685_v52, %s14515_s22 }
 0x69c   : > { %4037 = vrot.lane.b32.xlu1 %v13687_v61, %s14515_s22 }
 0x69d   : > { %v3798_v19 = vpop.permute.xlu1 %3797 }
 0x69e   : > { %v3878_v10 = vadd.f32 %v3798_v19, %v15671_v48  ;;  %v3796_v39 = vpop.permute.xlu0 %3795 }
 0x69f   : > { %v3877_v17 = vadd.f32 %v3796_v39, %v15678_v43  ;;  %v13689_v59 = vpop.eup %13688 }
 0x6a0   : > { %3829 = vrot.lane.b32.xlu1 %v12536_v56, %s14515_s22  ;;  %4047 = vrot.lane.b32.xlu0 %v13689_v59, %s14515_s22  ;;  %v13691_v42 = vpop.eup %13690 }
 0x6a1   : > { %13694 = vtanh.f32 %v3877_v17  ;;  %v3802_v9 = vpop.permute.xlu1 %3801  ;;  %v13693_v6 = vpop.eup %13692 }
 0x6a2   : > { %13696 = vtanh.f32 %v3878_v10  ;;  %v3880_v21 = vadd.f32 %v3802_v9, %v15691_v5  ;;  %v3800_v37 = vpop.permute.xlu0 %3799 }
 0x6a3   : > { %v3879_v24 = vadd.f32 %v3800_v37, %v15704_v26  ;;  %v3928_v37 = vsub.f32 1.0, %v15544_v49 }
 0x6a4   : > { %4045 = vrot.lane.b32.xlu1 %v13691_v42, %s14515_s22 }
 0x6a5   : > { %13698 = vtanh.f32 %v3879_v24  ;;  %v3806_v48 = vpop.permute.xlu1 %3805 }
 0x6a6   : > { %13700 = vtanh.f32 %v3880_v21  ;;  %v3882_v43 = vadd.f32 %v3806_v48, %v15724_v22  ;;  %v3804_v45 = vpop.permute.xlu0 %3803  ;;  %v3927_v21 = vsub.f32 1.0, %v15548_v1  ;;  %v20654_v48 = vld [vmem:[#allocation20_spill] sm:$0xff] }
 0x6a7   : > { %v3881_v60 = vadd.f32 %v3804_v45, %v15727_v15 }
 0x6a8   : > { %4049 = vrot.lane.b32.xlu1 %v13693_v6, %s14515_s22 }
 0x6a9   : > { %13702 = vtanh.f32 %v3881_v60  ;;  %v3810_v63 = vpop.permute.xlu1 %3809  ;;  %v20655_v60 = vld [vmem:[#allocation19_spill] sm:$0xff] }
 0x6aa   : > { %13704 = vtanh.f32 %v3882_v43  ;;  %v3884_v5 = vadd.f32 %v3810_v63, %v15747_v32  ;;  %v3808_v26 = vpop.permute.xlu0 %3807  ;;  %v3959_v43 = vmul.f32 %v20654_v48, %v3927_v21  ;;  %v3960_v6 = vmul.f32 %v20655_v60, %v3928_v37 }
 0x6ab   : > { %v13695_v38 = vpop.eup %13694  ;;  %v3883_v4 = vadd.f32 %v3808_v26, %v15760_v54 }
 0x6ac   : > { %v13697_v57 = vpop.eup %13696  ;;  %4051 = vrot.lane.b32.xlu0 %v13695_v38, %s14515_s22 }
 0x6ad   : > { %13706 = vtanh.f32 %v3883_v4  ;;  %4053 = vrot.lane.b32.xlu1 %v13697_v57, %s14515_s22  ;;  %v3814_v22 = vpop.permute.xlu1 %3813  ;;  %v20659_v57 = vld [vmem:[#allocation53_spill] sm:$0xff] }
 0x6ae   : > { %13708 = vtanh.f32 %v3884_v5  ;;  %v3886_v15 = vadd.f32 %v3814_v22, %v15781_v20  ;;  %v3812_v35 = vpop.permute.xlu0 %3811  ;;  %v20660_v22 = vld [vmem:[#allocation22_spill] sm:$0xff] }
 0x6af   : > { %v13699_v12 = vpop.eup %13698  ;;  %v3885_v27 = vadd.f32 %v3812_v35, %v15792_v18 }
 0x6b0   : > { %v13701_v16 = vpop.eup %13700  ;;  %4055 = vrot.lane.b32.xlu0 %v13699_v12, %s14515_s22 }
 0x6b1   : > { %13710 = vtanh.f32 %v3885_v27  ;;  %4057 = vrot.lane.b32.xlu1 %v13701_v16, %s14515_s22  ;;  %v3818_v32 = vpop.permute.xlu1 %3817  ;;  %v20661_v27 = vld [vmem:[#allocation67_spill] sm:$0xff] }
 0x6b2   : > { %13712 = vtanh.f32 %v3886_v15  ;;  %v3888_v54 = vadd.f32 %v3818_v32, %v15799_v31  ;;  %v3816_v56 = vpop.permute.xlu0 %3815  ;;  %v3930_v16 = vsub.f32 1.0, %v20661_v27 }
 0x6b3   : > { %v13703_v25 = vpop.eup %13702  ;;  %v3887_v47 = vadd.f32 %v3816_v56, %v15805_v28 }
 0x6b4   : > { %v13705_v52 = vpop.eup %13704  ;;  %4059 = vrot.lane.b32.xlu0 %v13703_v25, %s14515_s22  ;;  %v20663_v25 = vld [vmem:[#allocation21_spill] sm:$0xff] }
 0x6b5   : > { %13714 = vtanh.f32 %v3887_v47  ;;  %4061 = vrot.lane.b32.xlu1 %v13705_v52, %s14515_s22  ;;  %v3822_v20 = vpop.permute.xlu1 %3821  ;;  %v3962_v47 = vmul.f32 %v20663_v25, %v3930_v16  ;;  %v20676_v16 = vld [vmem:[#allocation82_spill] sm:$0xff] }
 0x6b6   : > { %13716 = vtanh.f32 %v3888_v54  ;;  %v3890_v18 = vadd.f32 %v3822_v20, %v15822_v53 }
 0x6b7   : > { %v13707_v61 = vpop.eup %13706 }
 0x6b8   : > { %v13709_v19 = vpop.eup %13708  ;;  %4063 = vrot.lane.b32.xlu0 %v13707_v61, %s14515_s22  ;;  %13718 = vtanh.f32 %v3890_v18  ;;  %v20665_v18 = vld [vmem:[#allocation71_spill] sm:$0xff] }
 0x6b9   : > { %4065 = vrot.lane.b32.xlu1 %v13709_v19, %s14515_s22  ;;  %v3820_v31 = vpop.permute.xlu1 %3819  ;;  %v3932_v61 = vsub.f32 1.0, %v20665_v18 }
 0x6ba   : > { %v3889_v28 = vadd.f32 %v3820_v31, %v15826_v33 }
 0x6bb   : > { %v13711_v10 = vpop.eup %13710 }
 0x6bc   : > { %v13713_v39 = vpop.eup %13712  ;;  %13720 = vtanh.f32 %v3889_v28  ;;  %4067 = vrot.lane.b32.xlu0 %v13711_v10, %s14515_s22 }
 0x6bd   : > { %4069 = vrot.lane.b32.xlu1 %v13713_v39, %s14515_s22  ;;  %v20667_v39 = vld [vmem:[#allocation24_spill] sm:$0xff] }
 0x6bf   : > { %v13715_v17 = vpop.eup %13714 }
 0x6c0   : > { %v13717_v59 = vpop.eup %13716  ;;  %4071 = vrot.lane.b32.xlu0 %v13715_v17, %s14515_s22 }
 0x6c1   : > { %4073 = vrot.lane.b32.xlu1 %v13717_v59, %s14515_s22 }
 0x6c2   : > { %v13719_v53 = vpop.eup %13718 }
 0x6c5   : > { %4077 = vrot.lane.b32.xlu1 %v13719_v53, %s14515_s22  ;;  %v20668_v53 = vld [vmem:[#allocation23_spill] sm:$0xff] }
 0x6c6   : > { %v13721_v9 = vpop.eup %13720 }
 0x6c7   : > { %4075 = vrot.lane.b32.xlu0 %v13721_v9, %s14515_s22  ;;  %v3964_v9 = vmul.f32 %v20668_v53, %v3932_v61 }
 0x6e0   : > { %v4026_v33 = vpop.permute.xlu0 %4025 }
 0x6e1   : > { %v4120_v24 = vmul.f32 %v15544_v49, %v4026_v33  ;;  %v20658_v49 = vld [vmem:[#allocation68_spill] sm:$0xff] }
 0x6e2   : > { %v3929_v4 = vsub.f32 1.0, %v20658_v49 }
 0x6e3   : > { %v16111_v5 = vadd.f32 %v4120_v24, %v3960_v6  ;;  %v20671_v24 = vld [vmem:[#allocation78_spill] sm:$0xff] }
 0x6e4   : > { %v4024_v42 = vpop.permute.xlu0 %4023  ;;  %v3961_v15 = vmul.f32 %v20660_v22, %v3929_v4  ;;  %v20675_v22 = vld [vmem:[#allocation84_spill] sm:$0xff] }
 0x6e5   : > { %v4119_v45 = vmul.f32 %v15548_v1, %v4024_v42  ;;  %20657 = vst [vmem:[#allocation19_spill] sm:$0xff] %v16111_v5  ;;  %v3933_v42 = vsub.f32 1.0, %v20671_v24 }
 0x6e7   : > { %v16109_v63 = vadd.f32 %v4119_v45, %v3959_v43  ;;  %v20672_v43 = vld [vmem:[#allocation26_spill] sm:$0xff] }
 0x6e8   : > { %v3965_v45 = vmul.f32 %v20672_v43, %v3933_v42 }
 0x6e9   : > { %20656 = vst [vmem:[#allocation20_spill] sm:$0xff] %v16109_v63  ;;  %v3826_v26 = vpop.permute.xlu1 %3825  ;;  %12545 = vmatprep.mubr.msk.f32.mxu0 %vm1225_vm0, %v16109_v63  ;;  %12601 = vmatprep.mubr.msk.f32.mxu1 %vm1225_vm0, %v16109_v63 }
 0x6ea   : > { %v3892_v38 = vadd.f32 %v3826_v26, %v15916_v46  ;;  %12546 = vmatmul.mubr.msk.f32.vlgmr.msra.gmra.mrb[128].mxu0 %vm1225_vm0, %v16111_v5  ;;  %12602 = vmatmul.mubr.msk.f32.vlgmr.msra.gmra.mrb[128].mxu1 %vm1225_vm0, %v16111_v5 }
 0x6eb   : > { %13148 = vmatpush3.bf16.msra.mxu0 %v15402_v14  ;;  %13156 = vmatpush3.bf16.msra.mxu1 %v16019_v58 }
 0x6ec   : > { %13722 = vtanh.f32 %v3892_v38  ;;  %v4028_v1 = vpop.permute.xlu0 %4027  ;;  %13150 = vmatprep.subr.bf16.mxu0 %v20659_v57  ;;  %13158 = vmatprep.subr.bf16.mxu1 %v16038_v23 }
 0x6ed   : > { %v3824_v46 = vpop.permute.xlu1 %3823  ;;  %v4121_v35 = vmul.f32 %v20658_v49, %v4028_v1  ;;  %v20674_v1 = vld [vmem:[#allocation76_spill] sm:$0xff] }
 0x6ee   : > { %v3891_v12 = vadd.f32 %v3824_v46, %v15902_v29  ;;  %v20664_v29 = vld [vmem:[#allocation72_spill] sm:$0xff]  ;;  %v3934_v46 = vsub.f32 1.0, %v20674_v1 }
 0x6ef   : > { %v16131_v32 = vadd.f32 %v4121_v35, %v3961_v15  ;;  %13152 = vmatpush3.bf16.msra.mxu0 %v20659_v57  ;;  %13160 = vmatpush3.bf16.msra.mxu1 %v16038_v23  ;;  %v3931_v20 = vsub.f32 1.0, %v20664_v29  ;;  %v3935_v15 = vsub.f32 1.0, %v20675_v22 }
 0x6f0   : > { %13724 = vtanh.f32 %v3891_v12  ;;  %13162 = vmatprep.subr.bf16.mxu0 %v15105_v44  ;;  %13170 = vmatprep.subr.bf16.mxu1 %v15402_v14 }
 0x6f1   : > { %20662 = vst [vmem:[#allocation68_spill] sm:$0xff] %v16131_v32  ;;  %v4034_v54 = vpop.permute.xlu0 %4033  ;;  %v4030_v56 = vpop.permute.xlu1 %4029  ;;  %12548 = vmatprep.mubr.msk.f32.mxu0 %vm1225_vm0, %v16131_v32  ;;  %12604 = vmatprep.mubr.msk.f32.mxu1 %vm1225_vm0, %v16131_v32  ;;  %v3963_v17 = vmul.f32 %v20667_v39, %v3931_v20  ;;  %v20679_v20 = vld [vmem:[#allocation90_spill] sm:$0xff]  ;;  %v20682_v39 = vld [vmem:[#allocation27_spill] sm:$0xff] }
 0x6f2   : > { %v4122_v52 = vmul.f32 %v20661_v27, %v4030_v56  ;;  %v4124_v31 = vmul.f32 %v20665_v18, %v4034_v54  ;;  %v3936_v54 = vsub.f32 1.0, %v20676_v16  ;;  %v20677_v56 = vld [vmem:[#allocation25_spill] sm:$0xff]  ;;  %v3937_v18 = vsub.f32 1.0, %v20679_v20 }
 0x6f3   : > { %v3966_v25 = vmul.f32 %v20677_v56, %v3934_v46  ;;  %v20689_v46 = vld [vmem:[#allocation93_spill] sm:$0xff] }
 0x6f4   : > { %v16145_v19 = vadd.f32 %v4122_v52, %v3962_v47  ;;  %v16158_v21 = vadd.f32 %v4124_v31, %v3964_v9  ;;  %v20678_v52 = vld [vmem:[#allocation28_spill] sm:$0xff]  ;;  %v20683_v9 = vld [vmem:[#allocation89_spill] sm:$0xff] }
 0x6f5   : > { %v4032_v28 = vpop.permute.xlu0 %4031 }
 0x6f6   : > { %20666 = vst [vmem:[#allocation22_spill] sm:$0xff] %v16145_v19  ;;  %v13723_v10 = vpop.eup %13722  ;;  %v4123_v59 = vmul.f32 %v20664_v29, %v4032_v28  ;;  %12549 = vmatmul.mubr.msk.f32.gmra.mrb[130].mxu0 %vm1225_vm0, %v16145_v19  ;;  %12605 = vmatmul.mubr.msk.f32.gmra.mrb[130].mxu1 %vm1225_vm0, %v16145_v19  ;;  %20670 = vst [vmem:[#allocation21_spill] sm:$0xff] %v16158_v21  ;;  %v3967_v29 = vmul.f32 %v20678_v52, %v3935_v15  ;;  %v20690_v15 = vld [vmem:[#allocation32_spill] sm:$0xff] }
 0x6f7   : > { %4081 = vrot.lane.b32.xlu1 %v13723_v10, %s14515_s22 }
 0x6f8   : > { %v16156_v33 = vadd.f32 %v4123_v59, %v3963_v17  ;;  %v3968_v17 = vmul.f32 %v20682_v39, %v3936_v54  ;;  %v20693_v54 = vld [vmem:[#allocation96_spill] sm:$0xff] }
 0x6f9   : > { %v3941_v56 = vsub.f32 1.0, %v20693_v54 }
 0x6fa   : > { %20669 = vst [vmem:[#allocation67_spill] sm:$0xff] %v16156_v33  ;;  %v13725_v37 = vpop.eup %13724  ;;  %12551 = vmatprep.mubr.msk.f32.mxu0 %vm1225_vm0, %v16156_v33  ;;  %12607 = vmatprep.mubr.msk.f32.mxu1 %vm1225_vm0, %v16156_v33 }
 0x6fb   : > { %4079 = vrot.lane.b32.xlu0 %v13725_v37, %s14515_s22  ;;  %12552 = vmatmul.mubr.msk.f32.gmra.mrb[132].mxu0 %vm1225_vm0, %v16158_v21  ;;  %v3938_v37 = vsub.f32 1.0, %v20683_v9 }
 0x6fc   : > { %12608 = vmatmul.mubr.msk.f32.gmra.mrb[132].mxu1 %vm1225_vm0, %v16158_v21 }
 0x6fd   : > { %v4036_v48 = vpop.permute.xlu0 %4035 }
 0x6fe   : > { %v4125_v60 = vmul.f32 %v20671_v24, %v4036_v48  ;;  %v20684_v24 = vld [vmem:[#allocation30_spill] sm:$0xff] }
 0x6ff   : > { %v3969_v42 = vmul.f32 %v20684_v24, %v3937_v18  ;;  %v20685_v48 = vld [vmem:[#allocation94_spill] sm:$0xff] }
 0x700   : > { %v16172_v6 = vadd.f32 %v4125_v60, %v3965_v45  ;;  %v3939_v43 = vsub.f32 1.0, %v20685_v48 }
 0x701   : > { %v4042_v26 = vpop.permute.xlu0 %4041 }
 0x702   : > { %20673 = vst [vmem:[#allocation72_spill] sm:$0xff] %v16172_v6  ;;  %12554 = vmatprep.mubr.msk.f32.mxu0 %vm1225_vm0, %v16172_v6  ;;  %12610 = vmatprep.mubr.msk.f32.mxu1 %vm1225_vm0, %v16172_v6 }
 0x705   : > { %v4040_v38 = vpop.permute.xlu0 %4039 }
 0x706   : > { %v4127_v12 = vmul.f32 %v20675_v22, %v4040_v38  ;;  %v3940_v22 = vsub.f32 1.0, %v20689_v46 }
 0x708   : > { %v16190_v31 = vadd.f32 %v4127_v12, %v3967_v29  ;;  %v20695_v29 = vld [vmem:[#allocation95_spill] sm:$0xff] }
 0x70a   : > { %v3828_v49 = vpop.permute.xlu1 %3827  ;;  %20681 = vst [vmem:[#allocation24_spill] sm:$0xff] %v16190_v31 }
 0x70b   : > { %v3893_v4 = vadd.f32 %v3828_v49, %v15927_v40  ;;  %v4128_v40 = vmul.f32 %v20676_v16, %v4042_v26  ;;  %v20688_v49 = vld [vmem:[#allocation29_spill] sm:$0xff] }
 0x70d   : > { %13726 = vtanh.f32 %v3893_v4  ;;  %v4044_v35 = vpop.permute.xlu0 %4043  ;;  %v16206_v45 = vadd.f32 %v4128_v40, %v3968_v17  ;;  %v3970_v4 = vmul.f32 %v20688_v49, %v3938_v37  ;;  %v20699_v37 = vld [vmem:[#allocation33_spill] sm:$0xff] }
 0x70e   : > { %v4038_v27 = vpop.permute.xlu1 %4037  ;;  %v4129_v28 = vmul.f32 %v20679_v20, %v4044_v35  ;;  %v3971_v35 = vmul.f32 %v20690_v15, %v3939_v43  ;;  %v3942_v20 = vsub.f32 1.0, %v20695_v29  ;;  %v20704_v15 = vld [vmem:[#allocation35_spill] sm:$0xff] }
 0x70f   : > { %v4126_v47 = vmul.f32 %v20674_v1, %v4038_v27  ;;  %20686 = vst [vmem:[#allocation23_spill] sm:$0xff] %v16206_v45 }
 0x710   : > { %v3974_v24 = vmul.f32 %v20699_v37, %v3942_v20 }
 0x711   : > { %v16188_v61 = vadd.f32 %v4126_v47, %v3966_v25  ;;  %v20694_v25 = vld [vmem:[#allocation31_spill] sm:$0xff] }
 0x712   : > { %v3830_v10 = vpop.permute.xlu1 %3829  ;;  %v4048_v59 = vpop.permute.xlu0 %4047  ;;  %v3972_v47 = vmul.f32 %v20694_v25, %v3940_v22 }
 0x713   : > { %20680 = vst [vmem:[#allocation71_spill] sm:$0xff] %v16188_v61  ;;  %v3894_v53 = vadd.f32 %v3830_v10, %v15949_v51  ;;  %12555 = vmatmul.mubr.msk.f32.gmra.mrb[134].mxu0 %vm1225_vm0, %v16188_v61  ;;  %12611 = vmatmul.mubr.msk.f32.gmra.mrb[134].mxu1 %vm1225_vm0, %v16188_v61  ;;  %v16208_v51 = vadd.f32 %v4129_v28, %v3969_v42  ;;  %v20697_v28 = vld [vmem:[#allocation34_spill] sm:$0xff] }
 0x714   : > { %12557 = vmatprep.mubr.msk.f32.mxu0 %vm1225_vm0, %v16190_v31  ;;  %12613 = vmatprep.mubr.msk.f32.mxu1 %vm1225_vm0, %v16190_v31  ;;  %v4131_v60 = vmul.f32 %v20685_v48, %v4048_v59  ;;  %v3973_v10 = vmul.f32 %v20697_v28, %v3941_v56  ;;  %v20698_v59 = vld [vmem:[#allocation97_spill] sm:$0xff]  ;;  %v3944_v48 = vsub.f32 1.0, %v15847_v30 }
 0x715   : > { %13728 = vtanh.f32 %v3894_v53  ;;  %20687 = vst [vmem:[#allocation78_spill] sm:$0xff] %v16208_v51  ;;  %v3943_v53 = vsub.f32 1.0, %v20698_v59  ;;  %v20708_v28 = vld [vmem:[#allocation37_spill] sm:$0xff] }
 0x716   : > { %v4046_v26 = vpop.permute.xlu1 %4045  ;;  %v16226_v27 = vadd.f32 %v4131_v60, %v3971_v35  ;;  %v3976_v35 = vmul.f32 %v20704_v15, %v3944_v48  ;;  %v3949_v48 = vsub.f32 1.0, %v15871_v11 }
 0x717   : > { %v13727_v38 = vpop.eup %13726  ;;  %v4130_v1 = vmul.f32 %v20683_v9, %v4046_v26  ;;  %12558 = vmatmul.mubr.msk.f32.gmra.mrb[136].mxu0 %vm1225_vm0, %v16206_v45  ;;  %12614 = vmatmul.mubr.msk.f32.gmra.mrb[136].mxu1 %vm1225_vm0, %v16206_v45 }
 0x718   : > { %4083 = vrot.lane.b32.xlu0 %v13727_v38, %s14515_s22  ;;  %12560 = vmatprep.mubr.msk.f32.mxu0 %vm1225_vm0, %v16208_v51  ;;  %20692 = vst [vmem:[#allocation76_spill] sm:$0xff] %v16226_v27  ;;  %v20702_v38 = vld [vmem:[#allocation36_spill] sm:$0xff] }
 0x719   : > { %v16222_v12 = vadd.f32 %v4130_v1, %v3970_v4  ;;  %12616 = vmatprep.mubr.msk.f32.mxu1 %vm1225_vm0, %v16208_v51  ;;  %v3975_v49 = vmul.f32 %v20702_v38, %v3943_v53 }
 0x71a   : > { %v4050_v16 = vpop.permute.xlu1 %4049 }
 0x71b   : > { %20691 = vst [vmem:[#allocation26_spill] sm:$0xff] %v16222_v12  ;;  %v4132_v52 = vmul.f32 %v20689_v46, %v4050_v16  ;;  %12561 = vmatmul.mubr.msk.f32.gmra.mrb[138].mxu0 %vm1225_vm0, %v16222_v12  ;;  %12617 = vmatmul.mubr.msk.f32.gmra.mrb[138].mxu1 %vm1225_vm0, %v16222_v12  ;;  %v20703_v46 = vld [vmem:[#allocation98_spill] sm:$0xff] }
 0x71c   : > { %5441 = vrot.lane.b32.xlu0 %v16111_v5, %s14513_s28  ;;  %12563 = vmatprep.mubr.msk.f32.mxu0 %vm1225_vm0, %v16226_v27  ;;  %v3945_v22 = vsub.f32 1.0, %v20703_v46 }
 0x71d   : > { %v16240_v18 = vadd.f32 %v4132_v52, %v3972_v47  ;;  %12619 = vmatprep.mubr.msk.f32.mxu1 %vm1225_vm0, %v16226_v27 }
 0x71e   : > { %v4052_v40 = vpop.permute.xlu0 %4051 }
 0x71f   : > { %20696 = vst [vmem:[#allocation84_spill] sm:$0xff] %v16240_v18  ;;  %v4133_v39 = vmul.f32 %v20693_v54, %v4052_v40  ;;  %v4054_v17 = vpop.permute.xlu1 %4053  ;;  %v13729_v9 = vpop.eup %13728  ;;  %12564 = vmatmul.mubr.msk.f32.gmra.mrb[140].mxu0 %vm1225_vm0, %v16240_v18  ;;  %12620 = vmatmul.mubr.msk.f32.gmra.mrb[140].mxu1 %vm1225_vm0, %v16240_v18  ;;  %v3946_v54 = vsub.f32 1.0, %v15852_v7  ;;  %v3947_v40 = vsub.f32 1.0, %v15867_v3 }
 0x720   : > { %v4134_v42 = vmul.f32 %v20695_v29, %v4054_v17  ;;  %5443 = vrot.lane.b32.xlu0 %v16131_v32, %s14513_s28  ;;  %4085 = vrot.lane.b32.xlu1 %v13729_v9, %s14515_s22  ;;  %v3948_v17 = vsub.f32 1.0, %v15862_v34 }
 0x721   : > { %v16254_v43 = vadd.f32 %v4133_v39, %v3973_v10  ;;  %v3978_v10 = vmul.f32 %v20708_v28, %v3946_v54  ;;  %v20716_v54 = vld [vmem:[#allocation41_spill] sm:$0xff] }
 0x722   : > { %v16259_v60 = vadd.f32 %v4134_v42, %v3974_v24  ;;  %v4056_v26 = vpop.permute.xlu0 %4055 }
 0x723   : > { %20700 = vst [vmem:[#allocation82_spill] sm:$0xff] %v16254_v43  ;;  %v4135_v4 = vmul.f32 %v20698_v59, %v4056_v26  ;;  %12566 = vmatprep.mubr.msk.f32.mxu0 %vm1225_vm0, %v16254_v43  ;;  %12622 = vmatprep.mubr.msk.f32.mxu1 %vm1225_vm0, %v16254_v43  ;;  %v4058_v1 = vpop.permute.xlu1 %4057  ;;  %v20712_v26 = vld [vmem:[#allocation39_spill] sm:$0xff] }
 0x724   : > { %20701 = vst [vmem:[#allocation25_spill] sm:$0xff] %v16259_v60  ;;  %v4136_v16 = vmul.f32 %v15847_v30, %v4058_v1  ;;  %12567 = vmatmul.mubr.msk.f32.gmra.mrb[142].mxu0 %vm1225_vm0, %v16259_v60  ;;  %12623 = vmatmul.mubr.msk.f32.gmra.mrb[142].mxu1 %vm1225_vm0, %v16259_v60  ;;  %v20707_v30 = vld [vmem:[#allocation38_spill] sm:$0xff]  ;;  %v3980_v38 = vmul.f32 %v20712_v26, %v3948_v17 }
 0x725   : > { %v16275_v56 = vadd.f32 %v4135_v4, %v3975_v49  ;;  %5449 = vrot.lane.b32.xlu0 %v16158_v21, %s14513_s28  ;;  %5439 = vrot.lane.b32.xlu1 %v16109_v63, %s14513_s28  ;;  %v3977_v52 = vmul.f32 %v20707_v30, %v3945_v22  ;;  %v20723_v26 = vld [vmem:[#allocation46_spill] sm:$0xff] }
 0x726   : > { %v16281_v25 = vadd.f32 %v4136_v16, %v3976_v35  ;;  %v4060_v47 = vpop.permute.xlu0 %4059  ;;  %v3951_v16 = vsub.f32 1.0, %v15887_v13 }
 0x727   : > { %20705 = vst [vmem:[#allocation28_spill] sm:$0xff] %v16275_v56  ;;  %v4137_v29 = vmul.f32 %v20703_v46, %v4060_v47  ;;  %12569 = vmatprep.mubr.msk.f32.mxu0 %vm1225_vm0, %v16275_v56  ;;  %12625 = vmatprep.mubr.msk.f32.mxu1 %vm1225_vm0, %v16275_v56  ;;  %v4062_v20 = vpop.permute.xlu1 %4061 }
 0x728   : > { %20706 = vst [vmem:[#allocation90_spill] sm:$0xff] %v16281_v25  ;;  %v4138_v39 = vmul.f32 %v15852_v7, %v4062_v20  ;;  %12570 = vmatmul.mubr.msk.f32.gmra.mrb[144].mxu0 %vm1225_vm0, %v16281_v25  ;;  %12626 = vmatmul.mubr.msk.f32.gmra.mrb[144].mxu1 %vm1225_vm0, %v16281_v25  ;;  %v20711_v7 = vld [vmem:[#allocation40_spill] sm:$0xff] }
 0x729   : > { %v16297_v59 = vadd.f32 %v4137_v29, %v3977_v52  ;;  %5447 = vrot.lane.b32.xlu0 %v16156_v33, %s14513_s28  ;;  %5445 = vrot.lane.b32.xlu1 %v16145_v19, %s14513_s28  ;;  %v3979_v37 = vmul.f32 %v20711_v7, %v3947_v40 }
 0x72a   : > { %v16303_v53 = vadd.f32 %v4138_v39, %v3978_v10  ;;  %v4064_v9 = vpop.permute.xlu0 %4063  ;;  %v20720_v39 = vld [vmem:[#allocation43_spill] sm:$0xff] }
 0x72b   : > { %20709 = vst [vmem:[#allocation27_spill] sm:$0xff] %v16297_v59  ;;  %v4139_v24 = vmul.f32 %v15867_v3, %v4064_v9  ;;  %12572 = vmatprep.mubr.msk.f32.mxu0 %vm1225_vm0, %v16297_v59  ;;  %12628 = vmatprep.mubr.msk.f32.mxu1 %vm1225_vm0, %v16297_v59  ;;  %v4066_v42 = vpop.permute.xlu1 %4065  ;;  %v3950_v3 = vsub.f32 1.0, %v15875_v41 }
 0x72c   : > { %20710 = vst [vmem:[#allocation89_spill] sm:$0xff] %v16303_v53  ;;  %v4140_v49 = vmul.f32 %v15862_v34, %v4066_v42  ;;  %12573 = vmatmul.mubr.msk.f32.gmra.mrb[146].mxu0 %vm1225_vm0, %v16303_v53  ;;  %12629 = vmatmul.mubr.msk.f32.gmra.mrb[146].mxu1 %vm1225_vm0, %v16303_v53  ;;  %v20715_v34 = vld [vmem:[#allocation42_spill] sm:$0xff] }
 0x72d   : > { %v16319_v4 = vadd.f32 %v4139_v24, %v3979_v37  ;;  %5451 = vrot.lane.b32.xlu0 %v16172_v6, %s14513_s28  ;;  %5453 = vrot.lane.b32.xlu1 %v16188_v61, %s14513_s28  ;;  %v3981_v22 = vmul.f32 %v20715_v34, %v3949_v48  ;;  %v3982_v47 = vmul.f32 %v20716_v54, %v3950_v3  ;;  %v3953_v37 = vsub.f32 1.0, %v15896_v50  ;;  %v20724_v3 = vld [vmem:[#allocation45_spill] sm:$0xff]  ;;  %v20727_v54 = vld [vmem:[#allocation48_spill] sm:$0xff] }
 0x72e   : > { %v16325_v1 = vadd.f32 %v4140_v49, %v3980_v38  ;;  %v4068_v46 = vpop.permute.xlu0 %4067 }
 0x72f   : > { %20713 = vst [vmem:[#allocation30_spill] sm:$0xff] %v16319_v4  ;;  %v4141_v15 = vmul.f32 %v15871_v11, %v4068_v46  ;;  %12575 = vmatprep.mubr.msk.f32.mxu0 %vm1225_vm0, %v16319_v4  ;;  %12631 = vmatprep.mubr.msk.f32.mxu1 %vm1225_vm0, %v16319_v4  ;;  %v4070_v35 = vpop.permute.xlu1 %4069  ;;  %v3952_v11 = vsub.f32 1.0, %v15885_v0  ;;  %v3985_v38 = vmul.f32 %v20723_v26, %v3953_v37 }
 0x730   : > { %20714 = vst [vmem:[#allocation94_spill] sm:$0xff] %v16325_v1  ;;  %v4142_v30 = vmul.f32 %v15875_v41, %v4070_v35  ;;  %12576 = vmatmul.mubr.msk.f32.gmra.mrb[148].mxu0 %vm1225_vm0, %v16325_v1  ;;  %12632 = vmatmul.mubr.msk.f32.gmra.mrb[148].mxu1 %vm1225_vm0, %v16325_v1  ;;  %v20719_v41 = vld [vmem:[#allocation44_spill] sm:$0xff] }
 0x731   : > { %v16341_v52 = vadd.f32 %v4141_v15, %v3981_v22  ;;  %5457 = vrot.lane.b32.xlu0 %v16206_v45, %s14513_s28  ;;  %5461 = vrot.lane.b32.xlu1 %v16222_v12, %s14513_s28  ;;  %v3983_v40 = vmul.f32 %v20719_v41, %v3951_v16  ;;  %v3984_v17 = vmul.f32 %v20720_v39, %v3952_v11  ;;  %v3956_v15 = vsub.f32 1.0, %v15955_v8  ;;  %v20728_v11 = vld [vmem:[#allocation47_spill] sm:$0xff] }
 0x732   : > { %v16347_v29 = vadd.f32 %v4142_v30, %v3982_v47  ;;  %v4072_v20 = vpop.permute.xlu0 %4071 }
 0x733   : > { %20717 = vst [vmem:[#allocation29_spill] sm:$0xff] %v16341_v52  ;;  %v4143_v28 = vmul.f32 %v15887_v13, %v4072_v20  ;;  %12578 = vmatprep.mubr.msk.f32.mxu0 %vm1225_vm0, %v16341_v52  ;;  %12634 = vmatprep.mubr.msk.f32.mxu1 %vm1225_vm0, %v16341_v52  ;;  %v4074_v10 = vpop.permute.xlu1 %4073  ;;  %v3988_v20 = vmul.f32 %v20728_v11, %v3956_v15 }
 0x734   : > { %20718 = vst [vmem:[#allocation93_spill] sm:$0xff] %v16347_v29  ;;  %v4144_v9 = vmul.f32 %v15885_v0, %v4074_v10  ;;  %12579 = vmatmul.mubr.msk.f32.gmra.mrb[150].mxu0 %vm1225_vm0, %v16347_v29  ;;  %12635 = vmatmul.mubr.msk.f32.gmra.mrb[150].mxu1 %vm1225_vm0, %v16347_v29  ;;  %v3954_v0 = vsub.f32 1.0, %v15893_v2 }
 0x735   : > { %v16361_v7 = vadd.f32 %v4143_v28, %v3983_v40  ;;  %5455 = vrot.lane.b32.xlu0 %v16190_v31, %s14513_s28  ;;  %5469 = vrot.lane.b32.xlu1 %v16259_v60, %s14513_s28  ;;  %v20731_v28 = vld [vmem:[#allocation50_spill] sm:$0xff] }
 0x736   : > { %v16367_v13 = vadd.f32 %v4144_v9, %v3984_v17  ;;  %v3986_v46 = vmul.f32 %v20724_v3, %v3954_v0  ;;  %v3958_v9 = vsub.f32 1.0, %v15971_v55  ;;  %v20733_v0 = vld [vmem:[#allocation49_spill] sm:$0xff] }
 0x737   : > { %20721 = vst [vmem:[#allocation32_spill] sm:$0xff] %v16361_v7  ;;  %12581 = vmatprep.mubr.msk.f32.mxu0 %vm1225_vm0, %v16361_v7  ;;  %12637 = vmatprep.mubr.msk.f32.mxu1 %vm1225_vm0, %v16361_v7  ;;  %v4078_v24 = vpop.permute.xlu1 %4077 }
 0x738   : > { %20722 = vst [vmem:[#allocation96_spill] sm:$0xff] %v16367_v13  ;;  %12582 = vmatmul.mubr.msk.f32.gmra.mrb[152].mxu0 %vm1225_vm0, %v16367_v13  ;;  %12638 = vmatmul.mubr.msk.f32.gmra.mrb[152].mxu1 %vm1225_vm0, %v16367_v13  ;;  %v4146_v42 = vmul.f32 %v15893_v2, %v4078_v24  ;;  %v3990_v24 = vmul.f32 %v20733_v0, %v3958_v9 }
 0x739   : > { %v4076_v48 = vpop.permute.xlu0 %4075  ;;  %5459 = vrot.lane.b32.xlu0 %v16208_v51, %s14513_s28 }
 0x73a   : > { %v4145_v49 = vmul.f32 %v15896_v50, %v4076_v48  ;;  %v16387_v22 = vadd.f32 %v4146_v42, %v3986_v46  ;;  %v3955_v50 = vsub.f32 1.0, %v15934_v62 }
 0x73c   : > { %v16385_v34 = vadd.f32 %v4145_v49, %v3985_v38  ;;  %20726 = vst [vmem:[#allocation95_spill] sm:$0xff] %v16387_v22  ;;  %v3987_v47 = vmul.f32 %v20727_v54, %v3955_v50 }
 0x73d   : > { %5465 = vrot.lane.b32.xlu0 %v16240_v18, %s14513_s28 }
 0x73e   : > { %20725 = vst [vmem:[#allocation31_spill] sm:$0xff] %v16385_v34  ;;  %12584 = vmatprep.mubr.msk.f32.mxu0 %vm1225_vm0, %v16385_v34  ;;  %12640 = vmatprep.mubr.msk.f32.mxu1 %vm1225_vm0, %v16385_v34 }
 0x73f   : > { %12585 = vmatmul.mubr.msk.f32.gmra.mrb[154].mxu0 %vm1225_vm0, %v16387_v22  ;;  %12641 = vmatmul.mubr.msk.f32.gmra.mrb[154].mxu1 %vm1225_vm0, %v16387_v22 }
 0x741   : > { %5463 = vrot.lane.b32.xlu0 %v16226_v27, %s14513_s28 }
 0x745   : > { %5467 = vrot.lane.b32.xlu0 %v16254_v43, %s14513_s28 }
 0x749   : > { %5473 = vrot.lane.b32.xlu0 %v16281_v25, %s14513_s28 }
 0x74d   : > { %5471 = vrot.lane.b32.xlu0 %v16275_v56, %s14513_s28 }
 0x751   : > { %5475 = vrot.lane.b32.xlu0 %v16297_v59, %s14513_s28 }
 0x769   : > { %v4082_v2 = vpop.permute.xlu1 %4081 }
 0x76a   : > { %v4148_v35 = vmul.f32 %v15955_v8, %v4082_v2  ;;  %v20738_v2 = vmov 1  }
 0x76c   : > { %v16417_v40 = vadd.f32 %v4148_v35, %v3988_v20 }
 0x76d   : > { %v4080_v16 = vpop.permute.xlu0 %4079 }
 0x76e   : > { %v4147_v30 = vmul.f32 %v15934_v62, %v4080_v16  ;;  %20730 = vst [vmem:[#allocation97_spill] sm:$0xff] %v16417_v40  ;;  %v3957_v62 = vsub.f32 1.0, %v15963_v36 }
 0x770   : > { %v16415_v41 = vadd.f32 %v4147_v30, %v3987_v47  ;;  %v3989_v10 = vmul.f32 %v20731_v28, %v3957_v62  ;;  %v20740_v47 = vmov 0  }
 0x772   : > { %20729 = vst [vmem:[#allocation34_spill] sm:$0xff] %v16415_v41  ;;  %12587 = vmatprep.mubr.msk.f32.mxu0 %vm1225_vm0, %v16415_v41  ;;  %12643 = vmatprep.mubr.msk.f32.mxu1 %vm1225_vm0, %v16415_v41 }
 0x773   : > { %12588 = vmatmul.mubr.msk.f32.gmra.mrb[156].mxu0 %vm1225_vm0, %v16417_v40  ;;  %12644 = vmatmul.mubr.msk.f32.gmra.mrb[156].mxu1 %vm1225_vm0, %v16417_v40 }
 0x78a   : > { %v4084_v8 = vpop.permute.xlu0 %4083 }
 0x78b   : > { %v4149_v39 = vmul.f32 %v15963_v36, %v4084_v8  ;;  %v16448_v36 = vld [vmem:[%s20735_s19] ss:$0 sm:$0xff] }
 0x78d   : > { %v16430_v17 = vadd.f32 %v4149_v39, %v3989_v10 }
 0x78e   : > { %v16501_v39 = vpop.permute.xlu0 %5441 }
 0x78f   : > { %20732 = vst [vmem:[#allocation33_spill] sm:$0xff] %v16430_v17  ;;  %12590 = vmatprep.mubr.msk.f32.mxu0 %vm1225_vm0, %v16430_v17  ;;  %12646 = vmatprep.mubr.msk.f32.mxu1 %vm1225_vm0, %v16430_v17 }
 0x792   : > { %v4086_v37 = vpop.permute.xlu1 %4085 }
 0x793   : > { %v4150_v42 = vmul.f32 %v15971_v55, %v4086_v37 }
 0x795   : > { %v16439_v48 = vadd.f32 %v4150_v42, %v3990_v24 }
 0x797   : > { %20734 = vst [vmem:[#allocation36_spill] sm:$0xff] %v16439_v48  ;;  %12591 = vmatmul.mubr.msk.f32.gmra.mrb[158].mxu0 %vm1225_vm0, %v16439_v48  ;;  %12647 = vmatmul.mubr.msk.f32.gmra.mrb[158].mxu1 %vm1225_vm0, %v16439_v48 }
 0x7bd   : > { %v12547_v26 = vpop.f32.mrb[128].mxu0  ;;  %v16450_v38 = vpop.f32.mrb[128].mxu1 }
 0x7be   : > { %v16453_v49 = vadd.f32 %v12547_v26, %v16448_v36  ;;  %v4351_v55 = vpop.f32.mrb[129].mxu0  ;;  %v16458_v46 = vpop.f32.mrb[129].mxu1 }
 0x7bf   : > { %v16456_v3 = vadd.f32 %v16448_v36, %v4351_v55 }
 0x7c0   : > { %20736 = vst [vmem:[#allocation98_spill] sm:$0xff] %v16453_v49  ;;  %4581 = vperm.xlu1 %13347, %v16453_v49  }
 0x7c1   : > { %20737 = vst [vmem:[#allocation35_spill] sm:$0xff] %v16456_v3  ;;  %4576 = vperm.xlu0 %13348, %v16456_v3  }
 0x7c4   : > { %13349 = vset.pattern.permute.xlu1 %v20738_v2 }
 0x7c5   : > { %4803 = vperm.xlu1 %13349, %v16453_v49   ;;  %13350 = vset.pattern.permute.xlu0 %v20738_v2 }
 0x7c6   : > { %4799 = vperm.xlu0 %13350, %v16456_v3  }
 0x7c9   : > { %v12550_v50 = vpop.f32.mrb[130].mxu0  ;;  %v16466_v15 = vpop.f32.mrb[130].mxu1 }
 0x7ca   : > { %v16469_v35 = vadd.f32 %v12550_v50, %v16448_v36  ;;  %v4361_v16 = vpop.f32.mrb[131].mxu0  ;;  %v16471_v54 = vpop.f32.mrb[131].mxu1  ;;  %13351 = vset.pattern.permute.xlu0 %v20740_v47 }
 0x7cb   : > { %v16477_v11 = vadd.f32 %v16448_v36, %v4361_v16 }
 0x7cc   : > { %20739 = vst [vmem:[#allocation38_spill] sm:$0xff] %v16469_v35  ;;  %4811 = vperm.xlu1 %13349, %v16469_v35   ;;  %4591 = vperm.xlu0 %13351, %v16469_v35  }
 0x7cd   : > { %20741 = vst [vmem:[#allocation37_spill] sm:$0xff] %v16477_v11 }
 0x7ce   : > { %v12553_v30 = vpop.f32.mrb[132].mxu0 }
 0x7cf   : > { %v16479_v20 = vpop.f32.mrb[132].mxu1  ;;  %v4371_v62 = vpop.f32.mrb[133].mxu0  ;;  %v16494_v10 = vadd.f32 %v12553_v30, %v16448_v36 }
 0x7d0   : > { %v16482_v8 = vadd.f32 %v16448_v36, %v4371_v62  ;;  %v16484_v28 = vpop.f32.mrb[133].mxu1  ;;  %13352 = vset.pattern.permute.xlu1 %v20740_v47 }
 0x7d1   : > { %4586 = vperm.xlu1 %13352, %v16477_v11   ;;  %20743 = vst [vmem:[#allocation39_spill] sm:$0xff] %v16494_v10 }
 0x7d2   : > { %20742 = vst [vmem:[#allocation40_spill] sm:$0xff] %v16482_v8  ;;  %4596 = vperm.xlu0 %13351, %v16482_v8  }
 0x7d5   : > { %13353 = vset.pattern.permute.xlu1 %v20738_v2 }
 0x7d6   : > { %4807 = vperm.xlu1 %13353, %v16477_v11   ;;  %13356 = vset.pattern.permute.xlu0 %v20738_v2 }
 0x7d7   : > { %4815 = vperm.xlu0 %13356, %v16482_v8  }
 0x7da   : > { %13354 = vset.pattern.permute.xlu1 %v20740_v47 }
 0x7db   : > { %4601 = vperm.xlu1 %13354, %v16494_v10   ;;  %13357 = vset.pattern.permute.xlu0 %v20740_v47 }
 0x7df   : > { %13355 = vset.pattern.permute.xlu1 %v20738_v2 }
 0x7e0   : > { %4819 = vperm.xlu1 %13355, %v16494_v10  }
 0x7e6   : > { %v12556_v9 = vpop.f32.mrb[134].mxu0  ;;  %v16503_v37 = vpop.f32.mrb[134].mxu1 }
 0x7e7   : > { %v16506_v0 = vadd.f32 %v12556_v9, %v16448_v36  ;;  %v4381_v24 = vpop.f32.mrb[135].mxu0  ;;  %v16508_v42 = vpop.f32.mrb[135].mxu1 }
 0x7e8   : > { %v16517_v30 = vadd.f32 %v16448_v36, %v4381_v24  ;;  %v16522_v9 = vpop.permute.xlu0 %5443 }
 0x7e9   : > { %20744 = vst [vmem:[#allocation42_spill] sm:$0xff] %v16506_v0  ;;  %4827 = vperm.xlu1 %13355, %v16506_v0   ;;  %4611 = vperm.xlu0 %13357, %v16506_v0  }
 0x7ea   : > { %v12559_v26 = vpop.f32.mrb[136].mxu0  ;;  %v16512_v55 = vpop.f32.mrb[136].mxu1  ;;  %20745 = vst [vmem:[#allocation41_spill] sm:$0xff] %v16517_v30 }
 0x7eb   : > { %v4391_v50 = vpop.f32.mrb[137].mxu0  ;;  %v16514_v16 = vpop.f32.mrb[137].mxu1  ;;  %v16542_v59 = vadd.f32 %v12559_v26, %v16448_v36 }
 0x7ec   : > { %v16520_v62 = vadd.f32 %v16448_v36, %v4391_v50  ;;  %v16539_v49 = vpop.permute.xlu0 %5449 }
 0x7ed   : > { %13358 = vset.pattern.permute.xlu1 %v20740_v47  ;;  %20747 = vst [vmem:[#allocation43_spill] sm:$0xff] %v16542_v59 }
 0x7ee   : > { %20746 = vst [vmem:[#allocation44_spill] sm:$0xff] %v16520_v62  ;;  %v12562_v10 = vpop.f32.mrb[138].mxu0  ;;  %v16525_v8 = vpop.f32.mrb[138].mxu1  ;;  %4606 = vperm.xlu1 %13358, %v16517_v30   ;;  %4616 = vperm.xlu0 %13357, %v16520_v62  }
 0x7ef   : > { %v4401_v0 = vpop.f32.mrb[139].mxu0  ;;  %v16529_v11 = vpop.f32.mrb[139].mxu1  ;;  %v16545_v25 = vadd.f32 %v12562_v10, %v16448_v36 }
 0x7f0   : > { %v16568_v12 = vpop.permute.xlu0 %5447 }
 0x7f1   : > { %20748 = vst [vmem:[#allocation46_spill] sm:$0xff] %v16545_v25 }
 0x7f2   : > { %v12565_v35 = vpop.f32.mrb[140].mxu0  ;;  %v16531_v24 = vpop.f32.mrb[140].mxu1  ;;  %13359 = vset.pattern.permute.xlu1 %v20738_v2  ;;  %13362 = vset.pattern.permute.xlu0 %v20738_v2 }
 0x7f3   : > { %v4411_v50 = vpop.f32.mrb[141].mxu0  ;;  %v16535_v3 = vpop.f32.mrb[141].mxu1  ;;  %4823 = vperm.xlu1 %13359, %v16517_v30   ;;  %4831 = vperm.xlu0 %13362, %v16520_v62   ;;  %v16619_v44 = vadd.f32 %v12565_v35, %v16448_v36 }
 0x7f4   : > { %v16558_v26 = vadd.f32 %v16448_v36, %v4411_v50  ;;  %v16592_v23 = vpop.permute.xlu0 %5451 }
 0x7f5   : > { %20757 = vst [vmem:[#allocation108_spill] sm:$0xff] %v16592_v23  ;;  %20764 = vst [vmem:[#allocation115_spill] sm:$0xff] %v16619_v44 }
 0x7f6   : > { %20749 = vst [vmem:[#allocation45_spill] sm:$0xff] %v16558_v26 }
 0x7f7   : > { %v12568_v56 = vpop.f32.mrb[142].mxu0  ;;  %v16547_v60 = vpop.f32.mrb[142].mxu1  ;;  %13360 = vset.pattern.permute.xlu1 %v20740_v47  ;;  %13363 = vset.pattern.permute.xlu0 %v20740_v47 }
 0x7f8   : > { %v16550_v43 = vpop.f32.mrb[143].mxu0  ;;  %v16552_v18 = vpop.f32.mrb[143].mxu1  ;;  %4621 = vperm.xlu1 %13360, %v16542_v59   ;;  %4631 = vperm.xlu0 %13363, %v16545_v25   ;;  %v16590_v19 = vadd.f32 %v12568_v56, %v16448_v36 }
 0x7f9   : > { %v16616_v58 = vpop.permute.xlu0 %5457 }
 0x7fa   : > { %20756 = vst [vmem:[#allocation107_spill] sm:$0xff] %v16590_v19  ;;  %20763 = vst [vmem:[#allocation114_spill] sm:$0xff] %v16616_v58 }
 0x7fb   : > { %v16560_v10 = vpop.f32.mrb[144].mxu0  ;;  %v16562_v30 = vpop.f32.mrb[144].mxu1 }
 0x7fc   : > { %20750 = vst [vmem:[#allocation48_spill] sm:$0xff] %v16562_v30  ;;  %v4431_v62 = vpop.f32.mrb[145].mxu0  ;;  %v16564_v27 = vpop.f32.mrb[145].mxu1  ;;  %13361 = vset.pattern.permute.xlu1 %v20738_v2  ;;  %4636 = vperm.xlu0 %13363, %v16558_v26  }
 0x7fd   : > { %4835 = vperm.xlu1 %13361, %v16542_v59   ;;  %v16587_v59 = vadd.f32 %v16448_v36, %v4401_v0  ;;  %v16605_v56 = vadd.f32 %v16448_v36, %v4431_v62  ;;  %v16634_v35 = vpop.permute.xlu0 %5455 }
 0x7ff   : > { %v12574_v51 = vpop.f32.mrb[146].mxu0  ;;  %v16571_v45 = vpop.f32.mrb[146].mxu1  ;;  %20755 = vst [vmem:[#allocation106_spill] sm:$0xff] %v16587_v59  ;;  %20760 = vst [vmem:[#allocation111_spill] sm:$0xff] %v16605_v56 }
 0x800   : > { %20751 = vst [vmem:[#allocation47_spill] sm:$0xff] %v16571_v45  ;;  %v16573_v50 = vpop.f32.mrb[147].mxu0  ;;  %v16575_v31 = vpop.f32.mrb[147].mxu1  ;;  %13368 = vset.pattern.permute.xlu0 %v20738_v2 }
 0x801   : > { %20752 = vst [vmem:[#allocation50_spill] sm:$0xff] %v16575_v31  ;;  %4843 = vperm.xlu1 %13361, %v16545_v25   ;;  %4847 = vperm.xlu0 %13368, %v16558_v26  }
 0x803   : > { %v16580_v61 = vpop.f32.mrb[148].mxu0  ;;  %v16582_v6 = vpop.f32.mrb[148].mxu1 }
 0x804   : > { %20753 = vst [vmem:[#allocation49_spill] sm:$0xff] %v16582_v6  ;;  %v4451_v21 = vpop.f32.mrb[149].mxu0  ;;  %v16584_v33 = vpop.f32.mrb[149].mxu1 }
 0x805   : > { %20754 = vst [vmem:[#allocation105_spill] sm:$0xff] %v16584_v33  ;;  %13364 = vset.pattern.permute.xlu1 %v20740_v47  ;;  %13369 = vset.pattern.permute.xlu0 %v20740_v47 }
 0x806   : > { %4626 = vperm.xlu1 %13364, %v16587_v59   ;;  %4651 = vperm.xlu0 %13369, %v16590_v19  }
 0x807   : > { %v16598_v26 = vpop.f32.mrb[150].mxu0  ;;  %v16600_v25 = vpop.f32.mrb[150].mxu1 }
 0x808   : > { %20758 = vst [vmem:[#allocation109_spill] sm:$0xff] %v16600_v25  ;;  %v4461_v57 = vpop.f32.mrb[151].mxu0  ;;  %v16602_v0 = vpop.f32.mrb[151].mxu1  ;;  %v16698_v25 = vadd.f32 %v16448_v36, %v16573_v50  ;;  %v16716_v50 = vadd.f32 %v16580_v61, %v16448_v36  ;;  %v16735_v31 = vadd.f32 %v16598_v26, %v16448_v36 }
 0x809   : > { %20759 = vst [vmem:[#allocation110_spill] sm:$0xff] %v16602_v0 }
 0x80a   : > { %13365 = vset.pattern.permute.xlu1 %v20738_v2  ;;  %4656 = vperm.xlu0 %13369, %v16605_v56   ;;  %20778 = vst [vmem:[#allocation129_spill] sm:$0xff] %v16698_v25  ;;  %20783 = vst [vmem:[#allocation134_spill] sm:$0xff] %v16716_v50 }
 0x80b   : > { %v16609_v14 = vpop.f32.mrb[152].mxu0  ;;  %v16611_v32 = vpop.f32.mrb[152].mxu1  ;;  %4839 = vperm.xlu1 %13365, %v16587_v59   ;;  %v16630_v59 = vadd.f32 %v12574_v51, %v16448_v36  ;;  %20787 = vst [vmem:[#allocation138_spill] sm:$0xff] %v16735_v31 }
 0x80c   : > { %20761 = vst [vmem:[#allocation112_spill] sm:$0xff] %v16611_v32  ;;  %v4471_v5 = vpop.f32.mrb[153].mxu0  ;;  %v16614_v63 = vpop.f32.mrb[153].mxu1 }
 0x80d   : > { %20762 = vst [vmem:[#allocation113_spill] sm:$0xff] %v16614_v63  ;;  %20766 = vst [vmem:[#allocation117_spill] sm:$0xff] %v16630_v59  ;;  %v16644_v51 = vpop.permute.xlu0 %5459 }
 0x80e   : > { %13374 = vset.pattern.permute.xlu0 %v20738_v2  ;;  %20769 = vst [vmem:[#allocation120_spill] sm:$0xff] %v16644_v51 }
 0x80f   : > { %13366 = vset.pattern.permute.xlu1 %v20740_v47  ;;  %4863 = vperm.xlu0 %13374, %v16605_v56   ;;  %v16641_v56 = vadd.f32 %v16448_v36, %v4451_v21 }
 0x810   : > { %4641 = vperm.xlu1 %13366, %v16619_v44  }
 0x811   : > { %20768 = vst [vmem:[#allocation119_spill] sm:$0xff] %v16641_v56  ;;  %v16658_v21 = vpop.permute.xlu0 %5465 }
 0x812   : > { %v16625_v62 = vpop.f32.mrb[154].mxu0  ;;  %v16627_v32 = vpop.f32.mrb[154].mxu1  ;;  %20772 = vst [vmem:[#allocation123_spill] sm:$0xff] %v16658_v21 }
 0x813   : > { %20765 = vst [vmem:[#allocation116_spill] sm:$0xff] %v16627_v32  ;;  %v4481_v63 = vpop.f32.mrb[155].mxu0  ;;  %v16632_v0 = vpop.f32.mrb[155].mxu1  ;;  %13375 = vset.pattern.permute.xlu0 %v20740_v47 }
 0x814   : > { %20767 = vst [vmem:[#allocation118_spill] sm:$0xff] %v16632_v0  ;;  %13367 = vset.pattern.permute.xlu1 %v20738_v2  ;;  %4671 = vperm.xlu0 %13375, %v16630_v59   ;;  %v16649_v0 = vadd.f32 %v16448_v36, %v16550_v43 }
 0x815   : > { %4851 = vperm.xlu1 %13367, %v16619_v44   ;;  %v16655_v44 = vadd.f32 %v16448_v36, %v4461_v57  ;;  %v16665_v43 = vpop.permute.xlu0 %5463  ;;  %v16671_v57 = vadd.f32 %v16560_v10, %v16448_v36 }
 0x816   : > { %20770 = vst [vmem:[#allocation121_spill] sm:$0xff] %v16649_v0 }
 0x817   : > { %20771 = vst [vmem:[#allocation122_spill] sm:$0xff] %v16655_v44  ;;  %20773 = vst [vmem:[#allocation124_spill] sm:$0xff] %v16671_v57 }
 0x818   : > { %4676 = vperm.xlu0 %13375, %v16641_v56  }
 0x819   : > { %4859 = vperm.xlu1 %13367, %v16590_v19   ;;  %v16667_v19 = vpop.permute.xlu1 %5439 }
 0x81c   : > { %5477 = vrot.lane.b32.xlu0 %v16303_v53, %s14513_s28  ;;  %v16674_v53 = vadd.f32 %v16448_v36, %v4471_v5  ;;  %v16688_v5 = vadd.f32 %v16448_v36, %v4481_v63 }
 0x81d   : > { %13370 = vset.pattern.permute.xlu1 %v20740_v47 }
 0x81e   : > { %4646 = vperm.xlu1 %13370, %v16649_v0   ;;  %20774 = vst [vmem:[#allocation125_spill] sm:$0xff] %v16674_v53  ;;  %20776 = vst [vmem:[#allocation127_spill] sm:$0xff] %v16688_v5 }
 0x820   : > { %4686 = vperm.xlu0 %13375, %v16655_v44  }
 0x822   : > { %13371 = vset.pattern.permute.xlu1 %v20738_v2 }
 0x823   : > { %4855 = vperm.xlu1 %13371, %v16649_v0   ;;  %v16679_v0 = vpop.permute.xlu0 %5467 }
 0x824   : > { %5479 = vrot.lane.b32.xlu0 %v16319_v4, %s14513_s28  ;;  %20775 = vst [vmem:[#allocation126_spill] sm:$0xff] %v16679_v0  ;;  %v16681_v4 = vpop.permute.xlu1 %5445 }
 0x827   : > { %13372 = vset.pattern.permute.xlu1 %v20740_v47  ;;  %v16691_v10 = vpop.permute.xlu0 %5473 }
 0x828   : > { %4661 = vperm.xlu1 %13372, %v16671_v57   ;;  %4696 = vperm.xlu0 %13375, %v16674_v53   ;;  %20777 = vst [vmem:[#allocation128_spill] sm:$0xff] %v16691_v10  ;;  %v16694_v32 = vpop.permute.xlu1 %5453 }
 0x82b   : > { %v16704_v63 = vpop.permute.xlu0 %5471 }
 0x82c   : > { %13373 = vset.pattern.permute.xlu1 %v20738_v2  ;;  %5481 = vrot.lane.b32.xlu0 %v16325_v1, %s14513_s28  ;;  %20779 = vst [vmem:[#allocation130_spill] sm:$0xff] %v16704_v63 }
 0x82d   : > { %4867 = vperm.xlu1 %13373, %v16671_v57   ;;  %v16706_v57 = vpop.permute.xlu1 %5461 }
 0x82e   : > { %20780 = vst [vmem:[#allocation131_spill] sm:$0xff] %v16706_v57 }
 0x830   : > { %4706 = vperm.xlu0 %13375, %v16688_v5  }
 0x831   : > { %4875 = vperm.xlu1 %13373, %v16630_v59   ;;  %v16710_v59 = vpop.permute.xlu0 %5475  ;;  %v16712_v1 = vpop.permute.xlu1 %5469 }
 0x832   : > { %20781 = vst [vmem:[#allocation132_spill] sm:$0xff] %v16710_v59  ;;  %20782 = vst [vmem:[#allocation133_spill] sm:$0xff] %v16712_v1 }
 0x834   : > { %5483 = vrot.lane.b32.xlu0 %v16341_v52, %s14513_s28 }
 0x835   : > { %13376 = vset.pattern.permute.xlu1 %v20740_v47 }
 0x836   : > { %4666 = vperm.xlu1 %13376, %v16698_v25  }
 0x83a   : > { %13377 = vset.pattern.permute.xlu1 %v20738_v2 }
 0x83b   : > { %4871 = vperm.xlu1 %13377, %v16698_v25  }
 0x83f   : > { %13378 = vset.pattern.permute.xlu1 %v20740_v47  ;;  %v4582_v10 = vpop.permute.xlu1 %4581 }
 0x840   : > { %4681 = vperm.xlu1 %13378, %v16716_v50   ;;  %v4577_v52 = vpop.permute.xlu0 %4576 }
 0x844   : > { %13379 = vset.pattern.permute.xlu1 %v20738_v2  ;;  %v4804_v1 = vpop.permute.xlu1 %4803 }
 0x845   : > { %4883 = vperm.xlu1 %13379, %v16716_v50   ;;  %v4800_v33 = vpop.permute.xlu0 %4799  ;;  %v20788_v50 = vld [vmem:[#allocation52_spill] sm:$0xff] }
 0x846   : > { %v16722_v25 = vpop.f32.mrb[156].mxu0  ;;  %v16724_v59 = vpop.f32.mrb[156].mxu1  ;;  %v4734_v21 = vmul.f32 %v4577_v52, %v20788_v50 }
 0x847   : > { %20784 = vst [vmem:[#allocation135_spill] sm:$0xff] %v16724_v59  ;;  %v4491_v6 = vpop.f32.mrb[157].mxu0  ;;  %v16729_v0 = vpop.f32.mrb[157].mxu1  ;;  %v20789_v59 = vld [vmem:[#allocation54_spill] sm:$0xff] }
 0x848   : > { %v16727_v61 = vadd.f32 %v16448_v36, %v4491_v6  ;;  %20786 = vst [vmem:[#allocation137_spill] sm:$0xff] %v16729_v0  ;;  %v4926_v57 = vmul.f32 %v4800_v33, %v20789_v59  ;;  %v20790_v6 = vld [vmem:[#allocation56_spill] sm:$0xff] }
 0x849   : > { %4879 = vperm.xlu1 %13379, %v16641_v56   ;;  %v4766_v56 = vadd.f32 %v4734_v21, %v20790_v6 }
 0x84a   : > { %20785 = vst [vmem:[#allocation136_spill] sm:$0xff] %v16727_v61  ;;  %4716 = vperm.xlu0 %13375, %v16727_v61  }
 0x84b   : > { %v4812_v51 = vpop.permute.xlu1 %4811  ;;  %v4592_v45 = vpop.permute.xlu0 %4591  ;;  %v16744_v63 = vadd.f32 %v4926_v57, %v4766_v56  ;;  %v16756_v56 = vadd.f32 %v16609_v14, %v16448_v36  ;;  %v4735_v14 = vmul.f32 %v4582_v10, %v20788_v50  ;;  %v20798_v10 = vld [vmem:[#allocation57_spill] sm:$0xff] }
 0x84d   : > { %13380 = vset.pattern.permute.xlu1 %v20740_v47  ;;  %20791 = vst [vmem:[#allocation139_spill] sm:$0xff] %v16744_v63  ;;  %v5215_v33 = vadd.f32 %v16458_v46, %v16744_v63  ;;  %20793 = vst [vmem:[#allocation140_spill] sm:$0xff] %v16756_v56 }
 0x84e   : > { %4691 = vperm.xlu1 %13380, %v16735_v31   ;;  %5487 = vrot.lane.b32.xlu0 %v16361_v7, %s14513_s28  ;;  %v20792_v7 = vld [vmem:[#allocation60_spill] sm:$0xff] }
 0x84f   : > { %v11452_v57 = vmul.f32 -1.442695, %v5215_v33  ;;  %v4737_v33 = vmul.f32 %v4592_v45, %v20788_v50 }
 0x850   : > { %v4587_v26 = vpop.permute.xlu1 %4586 }
 0x851   : > { %v4597_v0 = vpop.permute.xlu0 %4596  ;;  %13730 = vpow2.f32 %v11452_v57 }
 0x852   : > { %13381 = vset.pattern.permute.xlu1 %v20738_v2  ;;  %v4738_v52 = vmul.f32 %v4597_v0, %v20788_v50 }
 0x853   : > { %4891 = vperm.xlu1 %13381, %v16735_v31  }
 0x854   : > { %v4770_v21 = vadd.f32 %v4738_v52, %v20792_v7 }
 0x855   : > { %v4808_v6 = vpop.permute.xlu1 %4807 }
 0x856   : > { %v4816_v30 = vpop.permute.xlu0 %4815  ;;  %v4928_v63 = vmul.f32 %v4808_v6, %v20789_v59 }
 0x857   : > { %v4930_v58 = vmul.f32 %v4816_v30, %v20789_v59  ;;  %4887 = vperm.xlu1 %13381, %v16655_v44   ;;  %v4736_v44 = vmul.f32 %v4587_v26, %v20788_v50  ;;  %v20802_v26 = vld [vmem:[#allocation58_spill] sm:$0xff] }
 0x859   : > { %v16758_v23 = vadd.f32 %v4930_v58, %v4770_v21  ;;  %v4927_v58 = vmul.f32 %v4804_v1, %v20789_v59  ;;  %v20795_v21 = vld [vmem:[#allocation55_spill] sm:$0xff]  ;;  %v4769_v1 = vadd.f32 %v4737_v33, %v20798_v10 }
 0x85a   : > { %v4602_v30 = vpop.permute.xlu1 %4601  ;;  %v4767_v57 = vadd.f32 %v4735_v14, %v20795_v21 }
 0x85b   : > { %20794 = vst [vmem:[#allocation141_spill] sm:$0xff] %v16758_v23  ;;  %13382 = vset.pattern.permute.xlu1 %v20740_v47  ;;  %v5219_v46 = vadd.f32 %v16484_v28, %v16758_v23  ;;  %v13731_v7 = vpop.eup %13730  ;;  %v16773_v28 = vadd.f32 %v16625_v62, %v16448_v36  ;;  %v4929_v62 = vmul.f32 %v4812_v51, %v20789_v59 }
 0x85c   : > { %4701 = vperm.xlu1 %13382, %v16756_v56  }
 0x85d   : > { %v11456_v0 = vmul.f32 -1.442695, %v5219_v46  ;;  %20796 = vst [vmem:[#allocation142_spill] sm:$0xff] %v16773_v28  ;;  %v16775_v46 = vadd.f32 %v4927_v58, %v4767_v57  ;;  %v16793_v23 = vadd.f32 %v4929_v62, %v4769_v1 }
 0x85f   : > { %v4820_v52 = vpop.permute.xlu1 %4819  ;;  %13732 = vpow2.f32 %v11456_v0  ;;  %20797 = vst [vmem:[#allocation143_spill] sm:$0xff] %v16775_v46  ;;  %v5343_v0 = vadd.f32 1.0, %v13731_v7  ;;  %v5216_v33 = vadd.f32 %v16450_v38, %v16775_v46  ;;  %v4739_v38 = vmul.f32 %v4602_v30, %v20788_v50 }
 0x860   : > { %13383 = vset.pattern.permute.xlu1 %v20738_v2  ;;  %v5218_v1 = vadd.f32 %v16466_v15, %v16793_v23  ;;  %v4931_v6 = vmul.f32 %v4820_v52, %v20789_v59  ;;  %v20804_v15 = vld [vmem:[#allocation59_spill] sm:$0xff] }
 0x861   : > { %4899 = vperm.xlu1 %13383, %v16756_v56   ;;  %13734 = vrcp.f32 %v5343_v0  ;;  %v11453_v46 = vmul.f32 -1.442695, %v5216_v33 }
 0x862   : > { %v11455_v52 = vmul.f32 -1.442695, %v5218_v1 }
 0x863   : > { %13736 = vpow2.f32 %v11453_v46 }
 0x865   : > { %4895 = vperm.xlu1 %13383, %v16674_v53  }
 0x868   : > { %v4612_v31 = vpop.permute.xlu0 %4611  ;;  %v4828_v56 = vpop.permute.xlu1 %4827 }
 0x869   : > { %13384 = vset.pattern.permute.xlu1 %v20740_v47  ;;  %v13733_v51 = vpop.eup %13732 }
 0x86a   : > { %4711 = vperm.xlu1 %13384, %v16773_v28   ;;  %v16780_v53 = vpop.f32.mrb[158].mxu0  ;;  %v16782_v45 = vpop.f32.mrb[158].mxu1 }
 0x86b   : > { %20799 = vst [vmem:[#allocation144_spill] sm:$0xff] %v16782_v45  ;;  %v4501_v14 = vpop.f32.mrb[159].mxu0  ;;  %v16784_v21 = vpop.f32.mrb[159].mxu1  ;;  %v20803_v45 = vld [vmem:[#allocation64_spill] sm:$0xff] }
 0x86c   : > { %20800 = vst [vmem:[#allocation145_spill] sm:$0xff] %v16784_v21  ;;  %v16789_v58 = vadd.f32 %v16448_v36, %v4501_v14  ;;  %v4768_v14 = vadd.f32 %v4736_v44, %v20802_v26  ;;  %v16828_v1 = vpop.eup %13734 }
 0x86d   : > { %v4617_v57 = vpop.permute.xlu0 %4616  ;;  %v4607_v10 = vpop.permute.xlu1 %4606 }
 0x86e   : > { %20801 = vst [vmem:[#allocation146_spill] sm:$0xff] %v16789_v58  ;;  %13385 = vset.pattern.permute.xlu1 %v20738_v2  ;;  %4726 = vperm.xlu0 %13375, %v16789_v58   ;;  %v4742_v7 = vmul.f32 %v4617_v57, %v20788_v50  ;;  %v16804_v62 = vadd.f32 %v4928_v63, %v4768_v14  ;;  %v5347_v57 = vadd.f32 1.0, %v13733_v51 }
 0x86f   : > { %4907 = vperm.xlu1 %13385, %v16773_v28   ;;  %v4741_v28 = vmul.f32 %v4612_v31, %v20788_v50  ;;  %v4771_v63 = vadd.f32 %v4739_v38, %v20804_v15  ;;  %v20805_v31 = vld [vmem:[#allocation61_spill] sm:$0xff] }
 0x870   : > { %v4774_v44 = vadd.f32 %v4742_v7, %v20803_v45  ;;  %v5217_v14 = vadd.f32 %v16471_v54, %v16804_v62  ;;  %13738 = vrcp.f32 %v5347_v57  ;;  %v4740_v7 = vmul.f32 %v4607_v10, %v20788_v50 }
 0x871   : > { %v16819_v26 = vadd.f32 %v4931_v6, %v4771_v63  ;;  %v4933_v54 = vmul.f32 %v4828_v56, %v20789_v59  ;;  %v16834_v57 = vadd.f32 %v16722_v25, %v16448_v36  ;;  %13740 = vpow2.f32 %v11455_v52 }
 0x872   : > { %v4832_v21 = vpop.permute.xlu0 %4831  ;;  %5489 = vrot.lane.b32.xlu0 %v16367_v13, %s14513_s28  ;;  %v4824_v0 = vpop.permute.xlu1 %4823  ;;  %v5535_v52 = vmul.f32 %v16828_v1, %v16667_v19 }
 0x873   : > { %v4934_v30 = vmul.f32 %v4832_v21, %v20789_v59  ;;  %5485 = vrot.lane.b32.xlu1 %v16347_v29, %s14513_s28  ;;  %v4773_v21 = vadd.f32 %v4741_v28, %v20805_v31  ;;  %20806 = vst [vmem:[#allocation147_spill] sm:$0xff] %v16834_v57  ;;  %v11454_v28 = vmul.f32 -1.442695, %v5217_v14 }
 0x875   : > { %v16815_v33 = vadd.f32 %v4934_v30, %v4774_v44  ;;  %v4932_v44 = vmul.f32 %v4824_v0, %v20789_v59  ;;  %v16840_v10 = vadd.f32 %v4933_v54, %v4773_v21  ;;  %v20807_v30 = vld [vmem:[#allocation62_spill] sm:$0xff]  ;;  %v20808_v54 = vld [vmem:[#allocation63_spill] sm:$0xff] }
 0x876   : > { %5491 = vrot.lane.b32.xlu0 %v16385_v34, %s14513_s28  ;;  %v4772_v63 = vadd.f32 %v4740_v7, %v20807_v30  ;;  %v13737_v7 = vpop.eup %13736 }
 0x877   : > { %v5223_v51 = vadd.f32 %v16514_v16, %v16815_v33  ;;  %v4632_v46 = vpop.permute.xlu0 %4631  ;;  %4903 = vperm.xlu1 %13385, %v16688_v5   ;;  %v4622_v38 = vpop.permute.xlu1 %4621  ;;  %v5220_v16 = vadd.f32 %v16479_v20, %v16819_v26  ;;  %v20834_v5 = vld [vmem:[#allocation83_spill] sm:$0xff] }
 0x878   : > { %v4743_v0 = vmul.f32 %v4622_v38, %v20788_v50  ;;  %v16848_v14 = vadd.f32 %v4932_v44, %v4772_v63  ;;  %v5222_v38 = vadd.f32 %v16503_v37, %v16840_v10  ;;  %v5344_v37 = vadd.f32 1.0, %v13737_v7 }
 0x879   : > { %v11460_v6 = vmul.f32 -1.442695, %v5223_v51  ;;  %v11457_v51 = vmul.f32 -1.442695, %v5220_v16 }
 0x87a   : > { %5493 = vrot.lane.b32.xlu0 %v16387_v22, %s14513_s28  ;;  %v16857_v44 = vpop.eup %13738  ;;  %v5221_v63 = vadd.f32 %v16508_v42, %v16848_v14 }
 0x87b   : > { %13742 = vpow2.f32 %v11460_v6  ;;  %v4637_v56 = vpop.permute.xlu0 %4636  ;;  %13386 = vset.pattern.permute.xlu1 %v20740_v47  ;;  %v4775_v6 = vadd.f32 %v4743_v0, %v20808_v54  ;;  %v11459_v0 = vmul.f32 -1.442695, %v5222_v38  ;;  %v13741_v31 = vpop.eup %13740 }
 0x87c   : > { %4721 = vperm.xlu1 %13386, %v16834_v57   ;;  %v4836_v25 = vpop.permute.xlu1 %4835  ;;  %v4746_v20 = vmul.f32 %v4637_v56, %v20788_v50  ;;  %13744 = vpow2.f32 %v11454_v28  ;;  %v4745_v56 = vmul.f32 %v4632_v46, %v20788_v50  ;;  %v5539_v46 = vmul.f32 %v16857_v44, %v16568_v12 }
 0x87d   : > { %v4935_v21 = vmul.f32 %v4836_v25, %v20789_v59  ;;  %v20809_v25 = vld [vmem:[#allocation70_spill] sm:$0xff]  ;;  %13746 = vpow2.f32 %v11457_v51 }
 0x87e   : > { %5599 = vrot.lane.b32.xlu0 %v5535_v52, %s14514_s30  ;;  %v4778_v52 = vadd.f32 %v4746_v20, %v20809_v25  ;;  %v20810_v25 = vld [vmem:[#allocation65_spill] sm:$0xff]  ;;  %13748 = vrcp.f32 %v5344_v37  ;;  %v20812_v37 = vld [vmem:[#allocation66_spill] sm:$0xff] }
 0x87f   : > { %v16865_v16 = vadd.f32 %v4935_v21, %v4775_v6  ;;  %13750 = vpow2.f32 %v11459_v0 }
 0x880   : > { %v4848_v30 = vpop.permute.xlu0 %4847  ;;  %13387 = vset.pattern.permute.xlu1 %v20738_v2  ;;  %v4844_v19 = vpop.permute.xlu1 %4843 }
 0x881   : > { %v4938_v28 = vmul.f32 %v4848_v30, %v20789_v59  ;;  %4915 = vperm.xlu1 %13387, %v16834_v57   ;;  %v4937_v42 = vmul.f32 %v4844_v19, %v20789_v59  ;;  %v11458_v30 = vmul.f32 -1.442695, %v5221_v63  ;;  %v4777_v57 = vadd.f32 %v4745_v56, %v20810_v25  ;;  %v20828_v25 = vld [vmem:[#allocation80_spill] sm:$0xff] }
 0x882   : > { %5495 = vrot.lane.b32.xlu0 %v16415_v41, %s14513_s28  ;;  %v5224_v6 = vadd.f32 %v16512_v55, %v16865_v16  ;;  %v5346_v56 = vadd.f32 1.0, %v13741_v31 }
 0x883   : > { %v16869_v54 = vadd.f32 %v4938_v28, %v4778_v52  ;;  %v16883_v19 = vadd.f32 %v4937_v42, %v4777_v57 }
 0x884   : > { %v11461_v55 = vmul.f32 -1.442695, %v5224_v6 }
 0x885   : > { %v13743_v20 = vpop.eup %13742  ;;  %v5227_v21 = vadd.f32 %v16535_v3, %v16869_v54  ;;  %v16877_v7 = vpop.permute.xlu0 %4651  ;;  %4911 = vperm.xlu1 %13387, %v16727_v61   ;;  %v16888_v3 = vadd.f32 %v16780_v53, %v16448_v36  ;;  %v5226_v31 = vadd.f32 %v16525_v8, %v16883_v19 }
 0x886   : > { %v4627_v51 = vpop.permute.xlu1 %4626  ;;  %v5351_v38 = vadd.f32 1.0, %v13743_v20  ;;  %5607 = vrot.lane.b32.xlu0 %v5539_v46, %s14514_s30  ;;  %v13745_v52 = vpop.eup %13744 }
 0x887   : > { %v11464_v12 = vmul.f32 -1.442695, %v5227_v21  ;;  %v4744_v63 = vmul.f32 %v4627_v51, %v20788_v50  ;;  %20811 = vst [vmem:[#allocation148_spill] sm:$0xff] %v16888_v3  ;;  %v5345_v42 = vadd.f32 1.0, %v13745_v52  ;;  %v13747_v46 = vpop.eup %13746  ;;  %v11463_v21 = vmul.f32 -1.442695, %v5226_v31 }
 0x888   : > { %13752 = vrcp.f32 %v5351_v38  ;;  %v20813_v51 = vld [vmem:[#allocation77_spill] sm:$0xff] }
 0x889   : > { %13754 = vpow2.f32 %v11458_v30  ;;  %v4657_v28 = vpop.permute.xlu0 %4656  ;;  %13388 = vset.pattern.permute.xlu1 %v20740_v47  ;;  %v4776_v53 = vadd.f32 %v4744_v63, %v20812_v37  ;;  %v16907_v63 = vpop.eup %13748  ;;  %v20826_v37 = vld [vmem:[#allocation120_spill] sm:$0xff] }
 0x88a   : > { %13756 = vpow2.f32 %v11464_v12  ;;  %4731 = vperm.xlu1 %13388, %v16888_v3   ;;  %5497 = vrot.lane.b32.xlu0 %v16417_v40, %s14513_s28  ;;  %v4840_v57 = vpop.permute.xlu1 %4839  ;;  %v4750_v36 = vmul.f32 %v4657_v28, %v20788_v50  ;;  %v13751_v52 = vpop.eup %13750 }
 0x88b   : > { %v4936_v0 = vmul.f32 %v4840_v57, %v20789_v59  ;;  %13758 = vrcp.f32 %v5346_v56  ;;  %v5348_v56 = vadd.f32 1.0, %v13747_v46 }
 0x88c   : > { %13760 = vpow2.f32 %v11461_v55  ;;  %v4782_v38 = vadd.f32 %v4750_v36, %v20813_v51 }
 0x88d   : > { %v16899_v20 = vadd.f32 %v4936_v0, %v4776_v53  ;;  %13762 = vrcp.f32 %v5345_v42  ;;  %v5350_v42 = vadd.f32 1.0, %v13751_v52 }
 0x88e   : > { %v4864_v30 = vpop.permute.xlu0 %4863  ;;  %13389 = vset.pattern.permute.xlu1 %v20738_v2  ;;  %13764 = vpow2.f32 %v11463_v21 }
 0x88f   : > { %v5225_v8 = vadd.f32 %v16529_v11, %v16899_v20  ;;  %v4942_v6 = vmul.f32 %v4864_v30, %v20789_v59  ;;  %4923 = vperm.xlu1 %13389, %v16888_v3   ;;  %v4642_v12 = vpop.permute.xlu1 %4641  ;;  %13766 = vrcp.f32 %v5348_v56  ;;  %v5536_v30 = vmul.f32 %v16907_v63, %v16501_v39 }
 0x890   : > { %v4747_v55 = vmul.f32 %v4642_v12, %v20788_v50 }
 0x891   : > { %v16909_v28 = vadd.f32 %v4942_v6, %v4782_v38  ;;  %v11462_v31 = vmul.f32 -1.442695, %v5225_v8  ;;  %v20814_v8 = vld [vmem:[#allocation69_spill] sm:$0xff] }
 0x892   : > { %v16912_v57 = vpop.eup %13752  ;;  %v4779_v12 = vadd.f32 %v4747_v55, %v20814_v8 }
 0x893   : > { %v13755_v53 = vpop.eup %13754  ;;  %v5231_v11 = vadd.f32 %v16564_v27, %v16909_v28  ;;  %4919 = vperm.xlu1 %13389, %v16789_v58   ;;  %v5543_v36 = vmul.f32 %v16912_v57, %v16634_v35  ;;  %13768 = vpow2.f32 %v11462_v31  ;;  %v4749_v35 = vmul.f32 %v16877_v7, %v20788_v50  ;;  %v20832_v58 = vld [vmem:[#allocation81_spill] sm:$0xff] }
 0x894   : > { %v13757_v0 = vpop.eup %13756  ;;  %v4852_v46 = vpop.permute.xlu1 %4851  ;;  %v5349_v52 = vadd.f32 1.0, %v13755_v53 }
 0x895   : > { %v5355_v38 = vadd.f32 1.0, %v13757_v0  ;;  %v11468_v6 = vmul.f32 -1.442695, %v5231_v11  ;;  %v4939_v21 = vmul.f32 %v4852_v46, %v20789_v59  ;;  %5615 = vrot.lane.b32.xlu0 %v5543_v36, %s14514_s30  ;;  %v16924_v27 = vpop.eup %13758  ;;  %v20815_v0 = vld [vmem:[#allocation73_spill] sm:$0xff] }
 0x896   : > { %v13761_v39 = vpop.eup %13760  ;;  %v5538_v7 = vmul.f32 %v16924_v27, %v16681_v4 }
 0x897   : > { %13770 = vrcp.f32 %v5355_v38  ;;  %v16928_v56 = vadd.f32 %v4939_v21, %v4779_v12  ;;  %5601 = vrot.lane.b32.xlu1 %v5536_v30, %s14514_s30  ;;  %v16939_v36 = vpop.eup %13762  ;;  %v5352_v46 = vadd.f32 1.0, %v13761_v39 }
 0x898   : > { %13772 = vrcp.f32 %v5350_v42  ;;  %v4860_v11 = vpop.permute.xlu1 %4859  ;;  %13390 = vset.pattern.permute.xlu1 %v20740_v47  ;;  %v4781_v42 = vadd.f32 %v4749_v35, %v20815_v0  ;;  %v13765_v30 = vpop.eup %13764  ;;  %v20835_v47 = vld [vmem:[#allocation49_spill] sm:$0xff] }
 0x899   : > { %13774 = vpow2.f32 %v11468_v6  ;;  %v5228_v55 = vadd.f32 %v16531_v24, %v16928_v56  ;;  %v4941_v31 = vmul.f32 %v4860_v11, %v20789_v59  ;;  %5499 = vrot.lane.b32.xlu0 %v16430_v17, %s14513_s28  ;;  %v5537_v6 = vmul.f32 %v16939_v36, %v16522_v9  ;;  %v16947_v12 = vpop.eup %13766 }
 0x89a   : > { %13776 = vrcp.f32 %v5349_v52  ;;  %v5354_v35 = vadd.f32 1.0, %v13765_v30  ;;  %v5540_v52 = vmul.f32 %v16947_v12, %v16539_v49 }
 0x89b   : > { %v11465_v53 = vmul.f32 -1.442695, %v5228_v55  ;;  %5605 = vrot.lane.b32.xlu1 %v5538_v7, %s14514_s30  ;;  %v16943_v24 = vadd.f32 %v4941_v31, %v4781_v42  ;;  %v20816_v42 = vld [vmem:[#allocation74_spill] sm:$0xff] }
 0x89d   : > { %13778 = vpow2.f32 %v11465_v53  ;;  %v4647_v38 = vpop.permute.xlu1 %4646  ;;  %v13769_v21 = vpop.eup %13768  ;;  %v5230_v39 = vadd.f32 %v16547_v60, %v16943_v24 }
 0x89e   : > { %v4748_v4 = vmul.f32 %v4647_v38, %v20788_v50  ;;  %13780 = vrcp.f32 %v5352_v46  ;;  %v5353_v30 = vadd.f32 1.0, %v13769_v21 }
 0x89f   : > { %5603 = vrot.lane.b32.xlu1 %v5537_v6, %s14514_s30  ;;  %13782 = vrcp.f32 %v5354_v35  ;;  %v11467_v60 = vmul.f32 -1.442695, %v5230_v39  ;;  %v4672_v39 = vpop.permute.xlu0 %4671 }
 0x8a0   : > { %v4780_v53 = vadd.f32 %v4748_v4, %v20816_v42 }
 0x8a1   : > { %v16951_v11 = vpop.eup %13770 }
 0x8a2   : > { %v16957_v55 = vpop.eup %13772  ;;  %v4856_v9 = vpop.permute.xlu1 %4855  ;;  %v5547_v31 = vmul.f32 %v16951_v11, %v16665_v43 }
 0x8a3   : > { %v13775_v7 = vpop.eup %13774  ;;  %v4940_v46 = vmul.f32 %v4856_v9, %v20789_v59  ;;  %5609 = vrot.lane.b32.xlu1 %v5540_v52, %s14514_s30  ;;  %v5542_v6 = vmul.f32 %v16957_v55, %v16694_v32  ;;  %v20817_v9 = vld [vmem:[#allocation108_spill] sm:$0xff] }
 0x8a4   : > { %v5359_v38 = vadd.f32 1.0, %v13775_v7  ;;  %5623 = vrot.lane.b32.xlu0 %v5547_v31, %s14514_s30  ;;  %v16969_v0 = vpop.eup %13776 }
 0x8a5   : > { %v16965_v49 = vadd.f32 %v4940_v46, %v4780_v53  ;;  %v5541_v31 = vmul.f32 %v16969_v0, %v20817_v9  ;;  %v20818_v46 = vld [vmem:[#allocation75_spill] sm:$0xff] }
 0x8a6   : > { %13784 = vrcp.f32 %v5359_v38 }
 0x8a7   : > { %v13779_v43 = vpop.eup %13778  ;;  %v5229_v4 = vadd.f32 %v16552_v18, %v16965_v49  ;;  %5613 = vrot.lane.b32.xlu1 %v5542_v6, %s14514_s30  ;;  %v4662_v35 = vpop.permute.xlu1 %4661  ;;  %13786 = vrcp.f32 %v5353_v30  ;;  %v4753_v18 = vmul.f32 %v4672_v39, %v20788_v50 }
 0x8a8   : > { %v5356_v21 = vadd.f32 1.0, %v13779_v43  ;;  %5501 = vrot.lane.b32.xlu0 %v16439_v48, %s14513_s28  ;;  %13788 = vpow2.f32 %v11467_v60  ;;  %v4751_v32 = vmul.f32 %v4662_v35, %v20788_v50  ;;  %v16979_v7 = vpop.eup %13780  ;;  %v20819_v60 = vld [vmem:[#allocation114_spill] sm:$0xff] }
 0x8a9   : > { %v11466_v52 = vmul.f32 -1.442695, %v5229_v4  ;;  %v5544_v6 = vmul.f32 %v16979_v7, %v20819_v60  ;;  %v16987_v43 = vpop.eup %13782  ;;  %v20824_v60 = vld [vmem:[#allocation131_spill] sm:$0xff] }
 0x8aa   : > { %v4783_v30 = vadd.f32 %v4751_v32, %v20818_v46  ;;  %v5546_v42 = vmul.f32 %v16987_v43, %v20824_v60 }
 0x8ab   : > { %13790 = vpow2.f32 %v11466_v52  ;;  %5611 = vrot.lane.b32.xlu1 %v5541_v31, %s14514_s30  ;;  %v20821_v52 = vld [vmem:[#allocation79_spill] sm:$0xff] }
 0x8ac   : > { %13792 = vrcp.f32 %v5356_v21  ;;  %v4868_v53 = vpop.permute.xlu1 %4867  ;;  %v4785_v9 = vadd.f32 %v4753_v18, %v20821_v52  ;;  %v20822_v21 = vld [vmem:[#allocation48_spill] sm:$0xff] }
 0x8ad   : > { %v4943_v38 = vmul.f32 %v4868_v53, %v20789_v59  ;;  %v20823_v53 = vld [vmem:[#allocation130_spill] sm:$0xff] }
 0x8af   : > { %v16989_v4 = vadd.f32 %v4943_v38, %v4783_v30  ;;  %5617 = vrot.lane.b32.xlu1 %v5544_v6, %s14514_s30 }
 0x8b0   : > { %v16992_v35 = vpop.eup %13784  ;;  %v4876_v39 = vpop.permute.xlu1 %4875 }
 0x8b1   : > { %20820 = vst [vmem:[#allocation108_spill] sm:$0xff] %v16992_v35  ;;  %v5232_v31 = vadd.f32 %v20822_v21, %v16989_v4  ;;  %v4945_v32 = vmul.f32 %v4876_v39, %v20789_v59  ;;  %v5551_v46 = vmul.f32 %v16992_v35, %v20823_v53  ;;  %v17002_v30 = vpop.eup %13786  ;;  %v4677_v21 = vpop.permute.xlu0 %4676  ;;  %v20825_v39 = vld [vmem:[#allocation47_spill] sm:$0xff] }
 0x8b2   : > { %v13789_v38 = vpop.eup %13788  ;;  %v5545_v60 = vmul.f32 %v17002_v30, %v20826_v37 }
 0x8b3   : > { %v11469_v6 = vmul.f32 -1.442695, %v5232_v31  ;;  %v17004_v8 = vadd.f32 %v4945_v32, %v4785_v9  ;;  %5631 = vrot.lane.b32.xlu0 %v5551_v46, %s14514_s30  ;;  %5621 = vrot.lane.b32.xlu1 %v5546_v42, %s14514_s30  ;;  %v5358_v51 = vadd.f32 1.0, %v13789_v38  ;;  %v20827_v42 = vld [vmem:[#allocation123_spill] sm:$0xff] }
 0x8b5   : > { %v13791_v18 = vpop.eup %13790  ;;  %13794 = vpow2.f32 %v11469_v6  ;;  %v5234_v52 = vadd.f32 %v20825_v39, %v17004_v8  ;;  %v4667_v53 = vpop.permute.xlu1 %4666 }
 0x8b6   : > { %v17012_v3 = vpop.eup %13792  ;;  %v5357_v31 = vadd.f32 1.0, %v13791_v18  ;;  %v4752_v32 = vmul.f32 %v4667_v53, %v20788_v50  ;;  %v5478_v39 = vpop.permute.xlu0 %5477  ;;  %v20829_v18 = vld [vmem:[#allocation50_spill] sm:$0xff] }
 0x8b7   : > { %v11471_v9 = vmul.f32 -1.442695, %v5234_v52  ;;  %5619 = vrot.lane.b32.xlu1 %v5545_v60, %s14514_s30  ;;  %v5548_v46 = vmul.f32 %v17012_v3, %v20827_v42 }
 0x8b8   : > { %13796 = vrcp.f32 %v5357_v31  ;;  %v4784_v15 = vadd.f32 %v4752_v32, %v20828_v25 }
 0x8b9   : > { %13798 = vpow2.f32 %v11471_v9 }
 0x8ba   : > { %13800 = vrcp.f32 %v5358_v51  ;;  %v4872_v6 = vpop.permute.xlu1 %4871  ;;  %v4687_v9 = vpop.permute.xlu0 %4686 }
 0x8bb   : > { %v4944_v37 = vmul.f32 %v4872_v6, %v20789_v59  ;;  %5625 = vrot.lane.b32.xlu1 %v5548_v46, %s14514_s30  ;;  %v20830_v6 = vld [vmem:[#allocation126_spill] sm:$0xff] }
 0x8bd   : > { %v17021_v38 = vadd.f32 %v4944_v37, %v4784_v15 }
 0x8bf   : > { %v13795_v52 = vpop.eup %13794  ;;  %v5233_v53 = vadd.f32 %v20829_v18, %v17021_v38  ;;  %v4682_v60 = vpop.permute.xlu1 %4681  ;;  %v4754_v18 = vmul.f32 %v4677_v21, %v20788_v50 }
 0x8c0   : > { %v5360_v31 = vadd.f32 1.0, %v13795_v52  ;;  %v4755_v51 = vmul.f32 %v4682_v60, %v20788_v50  ;;  %v17036_v60 = vpop.permute.xlu0 %5479 }
 0x8c1   : > { %v11470_v45 = vmul.f32 -1.442695, %v5233_v53 }
 0x8c2   : > { %v17026_v42 = vpop.eup %13796  ;;  %13802 = vrcp.f32 %v5360_v31  ;;  %v4787_v52 = vadd.f32 %v4755_v51, %v20832_v58 }
 0x8c3   : > { %v13799_v32 = vpop.eup %13798  ;;  %13804 = vpow2.f32 %v11470_v45  ;;  %v5549_v46 = vmul.f32 %v17026_v42, %v20830_v6  ;;  %v20833_v45 = vld [vmem:[#allocation133_spill] sm:$0xff] }
 0x8c4   : > { %v17030_v15 = vpop.eup %13800  ;;  %v5362_v37 = vadd.f32 1.0, %v13799_v32  ;;  %v4884_v25 = vpop.permute.xlu1 %4883  ;;  %v4786_v32 = vadd.f32 %v4754_v18, %v20834_v5  ;;  %v20838_v18 = vld [vmem:[#allocation128_spill] sm:$0xff] }
 0x8c5   : > { %20831 = vst [vmem:[#allocation114_spill] sm:$0xff] %v17030_v15  ;;  %v4947_v53 = vmul.f32 %v4884_v25, %v20789_v59  ;;  %5627 = vrot.lane.b32.xlu1 %v5549_v46, %s14514_s30  ;;  %v5550_v6 = vmul.f32 %v17030_v15, %v20833_v45  ;;  %v20837_v45 = vld [vmem:[#allocation105_spill] sm:$0xff] }
 0x8c6   : > { %13806 = vrcp.f32 %v5362_v37 }
 0x8c7   : > { %v17038_v31 = vadd.f32 %v4947_v53, %v4787_v52  ;;  %v4697_v53 = vpop.permute.xlu0 %4696 }
 0x8c8   : > { %v4880_v61 = vpop.permute.xlu1 %4879 }
 0x8c9   : > { %v5236_v21 = vadd.f32 %v20835_v47, %v17038_v31  ;;  %v4946_v51 = vmul.f32 %v4880_v61, %v20789_v59  ;;  %5629 = vrot.lane.b32.xlu1 %v5550_v6, %s14514_s30 }
 0x8cb   : > { %v11473_v25 = vmul.f32 -1.442695, %v5236_v21  ;;  %v17047_v46 = vadd.f32 %v4946_v51, %v4786_v32  ;;  %v4756_v51 = vmul.f32 %v4687_v9, %v20788_v50 }
 0x8cc   : > { %v17049_v37 = vpop.eup %13802 }
 0x8cd   : > { %20836 = vst [vmem:[#allocation48_spill] sm:$0xff] %v17049_v37  ;;  %v13805_v52 = vpop.eup %13804  ;;  %13808 = vpow2.f32 %v11473_v25  ;;  %v5235_v58 = vadd.f32 %v20837_v45, %v17047_v46  ;;  %v4692_v2 = vpop.permute.xlu1 %4691  ;;  %v5552_v5 = vmul.f32 %v17049_v37, %v20838_v18  ;;  %v20840_v45 = vld [vmem:[#allocation85_spill] sm:$0xff] }
 0x8ce   : > { %v5361_v47 = vadd.f32 1.0, %v13805_v52  ;;  %v4757_v61 = vmul.f32 %v4692_v2, %v20788_v50  ;;  %v5482_v25 = vpop.permute.xlu0 %5481  ;;  %v20841_v52 = vld [vmem:[#allocation86_spill] sm:$0xff] }
 0x8cf   : > { %v11472_v48 = vmul.f32 -1.442695, %v5235_v58  ;;  %5633 = vrot.lane.b32.xlu1 %v5552_v5, %s14514_s30  ;;  %v4788_v40 = vadd.f32 %v4756_v51, %v20841_v52  ;;  %v20845_v51 = vld [vmem:[#allocation132_spill] sm:$0xff] }
 0x8d0   : > { %v17057_v6 = vpop.eup %13806  ;;  %13810 = vrcp.f32 %v5361_v47  ;;  %v4789_v17 = vadd.f32 %v4757_v61, %v20840_v45 }
 0x8d1   : > { %20839 = vst [vmem:[#allocation130_spill] sm:$0xff] %v17057_v6  ;;  %13812 = vpow2.f32 %v11472_v48  ;;  %v5554_v32 = vmul.f32 %v17057_v6, %v5478_v39  ;;  %v20842_v48 = vld [vmem:[#allocation109_spill] sm:$0xff] }
 0x8d2   : > { %v4892_v21 = vpop.permute.xlu1 %4891  ;;  %v4707_v9 = vpop.permute.xlu0 %4706 }
 0x8d3   : > { %v4949_v18 = vmul.f32 %v4892_v21, %v20789_v59  ;;  %5637 = vrot.lane.b32.xlu1 %v5554_v32, %s14514_s30 }
 0x8d5   : > { %v17064_v58 = vadd.f32 %v4949_v18, %v4789_v17  ;;  %v20844_v17 = vld [vmem:[#allocation110_spill] sm:$0xff] }
 0x8d6   : > { %v4888_v2 = vpop.permute.xlu1 %4887 }
 0x8d7   : > { %v13809_v5 = vpop.eup %13808  ;;  %v5238_v47 = vadd.f32 %v20842_v48, %v17064_v58  ;;  %v4948_v39 = vmul.f32 %v4888_v2, %v20789_v59 }
 0x8d8   : > { %v5364_v41 = vadd.f32 1.0, %v13809_v5 }
 0x8d9   : > { %v11475_v22 = vmul.f32 -1.442695, %v5238_v47  ;;  %v17070_v34 = vadd.f32 %v4948_v39, %v4788_v40  ;;  %v5484_v40 = vpop.permute.xlu0 %5483 }
 0x8da   : > { %v17072_v61 = vpop.eup %13810  ;;  %13814 = vrcp.f32 %v5364_v41  ;;  %v4758_v41 = vmul.f32 %v4697_v53, %v20788_v50 }
 0x8db   : > { %20843 = vst [vmem:[#allocation131_spill] sm:$0xff] %v17072_v61  ;;  %v13813_v32 = vpop.eup %13812  ;;  %13816 = vpow2.f32 %v11475_v22  ;;  %v5237_v21 = vadd.f32 %v20844_v17, %v17070_v34  ;;  %v4702_v18 = vpop.permute.xlu1 %4701  ;;  %v5553_v52 = vmul.f32 %v17072_v61, %v20845_v51  ;;  %v20846_v22 = vld [vmem:[#allocation87_spill] sm:$0xff]  ;;  %v20848_v51 = vld [vmem:[#allocation88_spill] sm:$0xff] }
 0x8dc   : > { %v5363_v48 = vadd.f32 1.0, %v13813_v32  ;;  %v4759_v2 = vmul.f32 %v4702_v18, %v20788_v50 }
 0x8dd   : > { %v11474_v45 = vmul.f32 -1.442695, %v5237_v21  ;;  %5635 = vrot.lane.b32.xlu0 %v5553_v52, %s14514_s30  ;;  %v17083_v17 = vpop.permute.xlu0 %4716  ;;  %v4790_v52 = vadd.f32 %v4758_v41, %v20848_v51  ;;  %v20851_v41 = vld [vmem:[#allocation113_spill] sm:$0xff] }
 0x8de   : > { %13818 = vrcp.f32 %v5363_v48  ;;  %v4791_v47 = vadd.f32 %v4759_v2, %v20846_v22  ;;  %v20849_v48 = vld [vmem:[#allocation112_spill] sm:$0xff] }
 0x8df   : > { %13820 = vpow2.f32 %v11474_v45 }
 0x8e0   : > { %v4900_v5 = vpop.permute.xlu1 %4899 }
 0x8e1   : > { %v4951_v39 = vmul.f32 %v4900_v5, %v20789_v59  ;;  %v17099_v6 = vpop.permute.xlu0 %5487 }
 0x8e3   : > { %v17085_v13 = vadd.f32 %v4951_v39, %v4791_v47 }
 0x8e4   : > { %v17087_v32 = vpop.eup %13814  ;;  %v4896_v21 = vpop.permute.xlu1 %4895 }
 0x8e5   : > { %20847 = vst [vmem:[#allocation47_spill] sm:$0xff] %v17087_v32  ;;  %v13817_v18 = vpop.eup %13816  ;;  %v5240_v45 = vadd.f32 %v20849_v48, %v17085_v13  ;;  %v4950_v29 = vmul.f32 %v4896_v21, %v20789_v59  ;;  %v5556_v53 = vmul.f32 %v17087_v32, %v5482_v25 }
 0x8e6   : > { %v5366_v2 = vadd.f32 1.0, %v13817_v18 }
 0x8e7   : > { %v11477_v22 = vmul.f32 -1.442695, %v5240_v45  ;;  %v17094_v5 = vadd.f32 %v4950_v29, %v4790_v52  ;;  %5641 = vrot.lane.b32.xlu1 %v5556_v53, %s14514_s30  ;;  %v20852_v53 = vld [vmem:[#allocation91_spill] sm:$0xff] }
 0x8e8   : > { %v17097_v47 = vpop.eup %13818  ;;  %13822 = vrcp.f32 %v5366_v2 }
 0x8e9   : > { %20850 = vst [vmem:[#allocation120_spill] sm:$0xff] %v17097_v47  ;;  %v13821_v39 = vpop.eup %13820  ;;  %13824 = vpow2.f32 %v11477_v22  ;;  %v5239_v48 = vadd.f32 %v20851_v41, %v17094_v5  ;;  %v4712_v51 = vpop.permute.xlu1 %4711  ;;  %v5555_v25 = vmul.f32 %v17097_v47, %v17036_v60 }
 0x8ea   : > { %v5365_v21 = vadd.f32 1.0, %v13821_v39  ;;  %v4761_v29 = vmul.f32 %v4712_v51, %v20788_v50  ;;  %v4760_v51 = vmul.f32 %v4707_v9, %v20788_v50 }
 0x8eb   : > { %v11476_v18 = vmul.f32 -1.442695, %v5239_v48  ;;  %5639 = vrot.lane.b32.xlu0 %v5555_v25, %s14514_s30  ;;  %v20854_v48 = vld [vmem:[#allocation116_spill] sm:$0xff] }
 0x8ec   : > { %13826 = vrcp.f32 %v5365_v21  ;;  %v4793_v22 = vadd.f32 %v4761_v29, %v20852_v53 }
 0x8ed   : > { %13828 = vpow2.f32 %v11476_v18  ;;  %v17107_v52 = vpop.permute.xlu0 %4726 }
 0x8ee   : > { %v4908_v45 = vpop.permute.xlu1 %4907 }
 0x8ef   : > { %v4953_v2 = vmul.f32 %v4908_v45, %v20789_v59 }
 0x8f1   : > { %v17111_v41 = vadd.f32 %v4953_v2, %v4793_v22  ;;  %v5490_v32 = vpop.permute.xlu0 %5489  ;;  %v20856_v2 = vld [vmem:[#allocation92_spill] sm:$0xff] }
 0x8f2   : > { %v17113_v61 = vpop.eup %13822  ;;  %v5486_v60 = vpop.permute.xlu1 %5485  ;;  %v4792_v53 = vadd.f32 %v4760_v51, %v20856_v2 }
 0x8f3   : > { %20853 = vst [vmem:[#allocation123_spill] sm:$0xff] %v17113_v61  ;;  %v13825_v39 = vpop.eup %13824  ;;  %v5242_v25 = vadd.f32 %v20854_v48, %v17111_v41  ;;  %v5558_v21 = vmul.f32 %v17113_v61, %v5486_v60 }
 0x8f4   : > { %v5368_v18 = vadd.f32 1.0, %v13825_v39 }
 0x8f5   : > { %v11479_v47 = vmul.f32 -1.442695, %v5242_v25  ;;  %v17119_v37 = vpop.permute.xlu0 %5491  ;;  %5645 = vrot.lane.b32.xlu1 %v5558_v21, %s14514_s30  ;;  %v20857_v25 = vld [vmem:[#allocation118_spill] sm:$0xff] }
 0x8f6   : > { %v17122_v29 = vpop.eup %13826  ;;  %13830 = vrcp.f32 %v5368_v18  ;;  %v4904_v45 = vpop.permute.xlu1 %4903 }
 0x8f7   : > { %20855 = vst [vmem:[#allocation50_spill] sm:$0xff] %v17122_v29  ;;  %v13829_v22 = vpop.eup %13828  ;;  %13832 = vpow2.f32 %v11479_v47  ;;  %v4952_v9 = vmul.f32 %v4904_v45, %v20789_v59  ;;  %v5557_v48 = vmul.f32 %v17122_v29, %v5484_v40  ;;  %v4762_v45 = vmul.f32 %v17083_v17, %v20788_v50  ;;  %v20862_v29 = vld [vmem:[#allocation135_spill] sm:$0xff] }
 0x8f8   : > { %v5367_v35 = vadd.f32 1.0, %v13829_v22  ;;  %v20859_v22 = vld [vmem:[#allocation100_spill] sm:$0xff] }
 0x8f9   : > { %v17127_v60 = vadd.f32 %v4952_v9, %v4792_v53  ;;  %v5494_v39 = vpop.permute.xlu0 %5493  ;;  %5643 = vrot.lane.b32.xlu0 %v5557_v48, %s14514_s30 }
 0x8fa   : > { %13834 = vrcp.f32 %v5367_v35 }
 0x8fb   : > { %v5241_v21 = vadd.f32 %v20857_v25, %v17127_v60  ;;  %v4722_v18 = vpop.permute.xlu1 %4721 }
 0x8fc   : > { %v4763_v15 = vmul.f32 %v4722_v18, %v20788_v50 }
 0x8fd   : > { %v11478_v61 = vmul.f32 -1.442695, %v5241_v21  ;;  %v5600_v51 = vpop.permute.xlu0 %5599 }
 0x8fe   : > { %12657 = vmatprep.mubr.msk.f32.mxu0 %vm1225_vm0, %v5600_v51  ;;  %v4795_v9 = vadd.f32 %v4763_v15, %v20859_v22  ;;  %v20861_v51 = vld [vmem:[#allocation99_spill] sm:$0xff] }
 0x8ff   : > { %13836 = vpow2.f32 %v11478_v61  ;;  %v4794_v2 = vadd.f32 %v4762_v45, %v20861_v51 }
 0x900   : > { %v17134_v47 = vpop.eup %13830  ;;  %v4916_v40 = vpop.permute.xlu1 %4915 }
 0x901   : > { %20858 = vst [vmem:[#allocation126_spill] sm:$0xff] %v17134_v47  ;;  %v13833_v53 = vpop.eup %13832  ;;  %v5560_v35 = vmul.f32 %v17134_v47, %v5490_v32  ;;  %v4955_v48 = vmul.f32 %v4916_v40, %v20789_v59  ;;  %v5496_v51 = vpop.permute.xlu0 %5495  ;;  %v20867_v47 = vld [vmem:[#allocation144_spill] sm:$0xff] }
 0x902   : > { %v5370_v25 = vadd.f32 1.0, %v13833_v53 }
 0x903   : > { %v17141_v21 = vadd.f32 %v4955_v48, %v4795_v9  ;;  %5649 = vrot.lane.b32.xlu1 %v5560_v35, %s14514_s30  ;;  %v20863_v9 = vld [vmem:[#allocation137_spill] sm:$0xff] }
 0x904   : > { %v17144_v18 = vpop.eup %13834  ;;  %13838 = vrcp.f32 %v5370_v25  ;;  %v4912_v61 = vpop.permute.xlu1 %4911 }
 0x905   : > { %20860 = vst [vmem:[#allocation133_spill] sm:$0xff] %v17144_v18  ;;  %v5244_v17 = vadd.f32 %v20862_v29, %v17141_v21  ;;  %v4954_v32 = vmul.f32 %v4912_v61, %v20789_v59  ;;  %v5559_v15 = vmul.f32 %v17144_v18, %v17099_v6 }
 0x907   : > { %v11481_v40 = vmul.f32 -1.442695, %v5244_v17  ;;  %v17152_v53 = vadd.f32 %v4954_v32, %v4794_v2  ;;  %5647 = vrot.lane.b32.xlu0 %v5559_v15, %s14514_s30  ;;  %v4764_v2 = vmul.f32 %v17107_v52, %v20788_v50  ;;  %v20865_v32 = vld [vmem:[#allocation102_spill] sm:$0xff] }
 0x909   : > { %v13837_v35 = vpop.eup %13836  ;;  %13840 = vpow2.f32 %v11481_v40  ;;  %v5243_v48 = vadd.f32 %v20863_v9, %v17152_v53  ;;  %v4732_v25 = vpop.permute.xlu1 %4731 }
 0x90a   : > { %v5369_v45 = vadd.f32 1.0, %v13837_v35  ;;  %v4765_v29 = vmul.f32 %v4732_v25, %v20788_v50  ;;  %v5608_v9 = vpop.permute.xlu0 %5607 }
 0x90b   : > { %v11480_v22 = vmul.f32 -1.442695, %v5243_v48 }
 0x90c   : > { %13842 = vrcp.f32 %v5369_v45  ;;  %v4797_v15 = vadd.f32 %v4765_v29, %v20865_v32 }
 0x90d   : > { %13844 = vpow2.f32 %v11480_v22  ;;  %v20866_v22 = vld [vmem:[#allocation101_spill] sm:$0xff] }
 0x90e   : > { %v17158_v61 = vpop.eup %13838  ;;  %v4924_v6 = vpop.permute.xlu1 %4923  ;;  %v4796_v45 = vadd.f32 %v4764_v2, %v20866_v22 }
 0x90f   : > { %20864 = vst [vmem:[#allocation49_spill] sm:$0xff] %v17158_v61  ;;  %v5562_v17 = vmul.f32 %v17158_v61, %v5494_v39  ;;  %v4957_v40 = vmul.f32 %v4924_v6, %v20789_v59  ;;  %v5498_v6 = vpop.permute.xlu0 %5497 }
 0x911   : > { %v17165_v35 = vadd.f32 %v4957_v40, %v4797_v15  ;;  %5653 = vrot.lane.b32.xlu1 %v5562_v17, %s14514_s30  ;;  %v20868_v17 = vld [vmem:[#allocation145_spill] sm:$0xff] }
 0x912   : > { %v4920_v48 = vpop.permute.xlu1 %4919 }
 0x913   : > { %v13841_v25 = vpop.eup %13840  ;;  %v5246_v18 = vadd.f32 %v20867_v47, %v17165_v35  ;;  %v4956_v52 = vmul.f32 %v4920_v48, %v20789_v59  ;;  %v20869_v48 = vld [vmem:[#allocation17_spill] sm:$0xff] }
 0x914   : > { %v5372_v50 = vadd.f32 1.0, %v13841_v25  ;;  %v20870_v25 = vld [vmem:[#allocation18_spill] sm:$0xff] }
 0x915   : > { %v11483_v39 = vmul.f32 -1.442695, %v5246_v18  ;;  %v17172_v61 = vadd.f32 %v4956_v52, %v4796_v45  ;;  %v5616_v45 = vpop.permute.xlu0 %5615  ;;  %v20871_v52 = vld [vmem:[#allocation103_spill] sm:$0xff] }
 0x916   : > { %v17174_v29 = vpop.eup %13842  ;;  %13846 = vrcp.f32 %v5372_v50  ;;  %v5602_v15 = vpop.permute.xlu1 %5601 }
 0x917   : > { %v13845_v40 = vpop.eup %13844  ;;  %13848 = vpow2.f32 %v11483_v39  ;;  %v5245_v32 = vadd.f32 %v20868_v17, %v17172_v61  ;;  %12658 = vmatmul.mubr.msk.f32.vlgmr.msra.gmra.mrb[160].mxu0 %vm1225_vm0, %v5602_v15  ;;  %v5561_v47 = vmul.f32 %v17174_v29, %v17119_v37 }
 0x918   : > { %v5371_v2 = vadd.f32 1.0, %v13845_v40  ;;  %13164 = vmatpush3.bf16.msra.mxu0 %v20869_v48 }
 0x919   : > { %v11482_v18 = vmul.f32 -1.442695, %v5245_v32  ;;  %5651 = vrot.lane.b32.xlu0 %v5561_v47, %s14514_s30  ;;  %13166 = vmatprep.subr.bf16.mxu0 %v20870_v25  ;;  %v5500_v17 = vpop.permute.xlu0 %5499 }
 0x91a   : > { %13850 = vrcp.f32 %v5371_v2  ;;  %v5606_v50 = vpop.permute.xlu1 %5605 }
 0x91b   : > { %13852 = vpow2.f32 %v11482_v18 }
 0x91c   : > { %13168 = vmatpush3.bf16.msra.mxu0 %v20870_v25 }
 0x91d   : > { %13178 = vmatprep.subr.bf16.mxu0 %v20871_v52 }
 0x91e   : > { %v5604_v39 = vpop.permute.xlu1 %5603 }
 0x91f   : > { %12660 = vmatprep.mubr.msk.f32.mxu0 %vm1225_vm0, %v5604_v39 }
 0x920   : > { %v17187_v37 = vpop.eup %13846  ;;  %12661 = vmatmul.mubr.msk.f32.gmra.mrb[162].mxu0 %vm1225_vm0, %v5606_v50 }
 0x921   : > { %v13849_v32 = vpop.eup %13848  ;;  %v5564_v15 = vmul.f32 %v17187_v37, %v5498_v6  ;;  %12663 = vmatprep.mubr.msk.f32.mxu0 %vm1225_vm0, %v5608_v9  ;;  %v5624_v6 = vpop.permute.xlu0 %5623 }
 0x922   : > { %v5374_v40 = vadd.f32 1.0, %v13849_v32  ;;  %v5610_v47 = vpop.permute.xlu1 %5609 }
 0x923   : > { %5657 = vrot.lane.b32.xlu1 %v5564_v15, %s14514_s30 }
 0x924   : > { %v17193_v2 = vpop.eup %13850  ;;  %13854 = vrcp.f32 %v5374_v40  ;;  %12664 = vmatmul.mubr.msk.f32.gmra.mrb[164].mxu0 %vm1225_vm0, %v5610_v47 }
 0x925   : > { %v13853_v18 = vpop.eup %13852  ;;  %v5563_v39 = vmul.f32 %v17193_v2, %v5496_v51  ;;  %v5502_v15 = vpop.permute.xlu0 %5501 }
 0x926   : > { %v5373_v25 = vadd.f32 1.0, %v13853_v18  ;;  %v5614_v50 = vpop.permute.xlu1 %5613 }
 0x927   : > { %5655 = vrot.lane.b32.xlu0 %v5563_v39, %s14514_s30 }
 0x928   : > { %13856 = vrcp.f32 %v5373_v25 }
 0x92a   : > { %v5612_v9 = vpop.permute.xlu1 %5611 }
 0x92b   : > { %12666 = vmatprep.mubr.msk.f32.mxu0 %vm1225_vm0, %v5612_v9 }
 0x92c   : > { %12667 = vmatmul.mubr.msk.f32.gmra.mrb[166].mxu0 %vm1225_vm0, %v5614_v50 }
 0x92d   : > { %12669 = vmatprep.mubr.msk.f32.mxu0 %vm1225_vm0, %v5616_v45 }
 0x92e   : > { %v17201_v32 = vpop.eup %13854  ;;  %v5618_v40 = vpop.permute.xlu1 %5617 }
 0x92f   : > { %v5566_v47 = vmul.f32 %v17201_v32, %v5502_v15  ;;  %v5632_v15 = vpop.permute.xlu0 %5631 }
 0x930   : > { %12670 = vmatmul.mubr.msk.f32.gmra.mrb[168].mxu0 %vm1225_vm0, %v5618_v40 }
 0x931   : > { %5661 = vrot.lane.b32.xlu1 %v5566_v47, %s14514_s30 }
 0x932   : > { %v17206_v51 = vpop.eup %13856  ;;  %v5622_v25 = vpop.permute.xlu1 %5621 }
 0x933   : > { %v5565_v18 = vmul.f32 %v17206_v51, %v5500_v17 }
 0x935   : > { %5659 = vrot.lane.b32.xlu0 %v5565_v18, %s14514_s30 }
 0x936   : > { %v5620_v39 = vpop.permute.xlu1 %5619 }
 0x937   : > { %12672 = vmatprep.mubr.msk.f32.mxu0 %vm1225_vm0, %v5620_v39 }
 0x938   : > { %12673 = vmatmul.mubr.msk.f32.gmra.mrb[170].mxu0 %vm1225_vm0, %v5622_v25 }
 0x939   : > { %12675 = vmatprep.mubr.msk.f32.mxu0 %vm1225_vm0, %v5624_v6 }
 0x93a   : > { %v5626_v45 = vpop.permute.xlu1 %5625 }
 0x93c   : > { %12676 = vmatmul.mubr.msk.f32.gmra.mrb[172].mxu0 %vm1225_vm0, %v5626_v45 }
 0x93e   : > { %v5628_v50 = vpop.permute.xlu1 %5627 }
 0x93f   : > { %12678 = vmatprep.mubr.msk.f32.mxu0 %vm1225_vm0, %v5628_v50 }
 0x942   : > { %v5630_v9 = vpop.permute.xlu1 %5629 }
 0x943   : > { %12679 = vmatmul.mubr.msk.f32.gmra.mrb[174].mxu0 %vm1225_vm0, %v5630_v9 }
 0x944   : > { %12681 = vmatprep.mubr.msk.f32.mxu0 %vm1225_vm0, %v5632_v15 }
 0x946   : > { %v5634_v17 = vpop.permute.xlu1 %5633 }
 0x947   : > { %12682 = vmatmul.mubr.msk.f32.gmra.mrb[176].mxu0 %vm1225_vm0, %v5634_v17 }
 0x94a   : > { %v5638_v47 = vpop.permute.xlu1 %5637 }
 0x94f   : > { %v5636_v40 = vpop.permute.xlu0 %5635 }
 0x950   : > { %12684 = vmatprep.mubr.msk.f32.mxu0 %vm1225_vm0, %v5636_v40 }
 0x951   : > { %12685 = vmatmul.mubr.msk.f32.gmra.mrb[178].mxu0 %vm1225_vm0, %v5638_v47 }
 0x959   : > { %v5642_v25 = vpop.permute.xlu1 %5641 }
 0x95d   : > { %v5640_v6 = vpop.permute.xlu0 %5639 }
 0x95e   : > { %12687 = vmatprep.mubr.msk.f32.mxu0 %vm1225_vm0, %v5640_v6 }
 0x95f   : > { %12688 = vmatmul.mubr.msk.f32.gmra.mrb[180].mxu0 %vm1225_vm0, %v5642_v25 }
 0x967   : > { %v5646_v39 = vpop.permute.xlu1 %5645 }
 0x96b   : > { %v5644_v18 = vpop.permute.xlu0 %5643 }
 0x96c   : > { %12690 = vmatprep.mubr.msk.f32.mxu0 %vm1225_vm0, %v5644_v18 }
 0x96d   : > { %12691 = vmatmul.mubr.msk.f32.gmra.mrb[182].mxu0 %vm1225_vm0, %v5646_v39 }
 0x975   : > { %v5650_v50 = vpop.permute.xlu1 %5649 }
 0x979   : > { %v5648_v45 = vpop.permute.xlu0 %5647 }
 0x97a   : > { %12693 = vmatprep.mubr.msk.f32.mxu0 %vm1225_vm0, %v5648_v45 }
 0x97b   : > { %12694 = vmatmul.mubr.msk.f32.gmra.mrb[184].mxu0 %vm1225_vm0, %v5650_v50 }
 0x983   : > { %v5654_v15 = vpop.permute.xlu1 %5653 }
 0x98b   : > { %v5652_v9 = vpop.permute.xlu0 %5651 }
 0x98c   : > { %12696 = vmatprep.mubr.msk.f32.mxu0 %vm1225_vm0, %v5652_v9 }
 0x98d   : > { %12697 = vmatmul.mubr.msk.f32.gmra.mrb[186].mxu0 %vm1225_vm0, %v5654_v15 }
 0x995   : > { %v5658_v40 = vpop.permute.xlu1 %5657 }
 0x999   : > { %v5656_v17 = vpop.permute.xlu0 %5655 }
 0x99a   : > { %12699 = vmatprep.mubr.msk.f32.mxu0 %vm1225_vm0, %v5656_v17 }
 0x99b   : > { %12700 = vmatmul.mubr.msk.f32.gmra.mrb[188].mxu0 %vm1225_vm0, %v5658_v40 }
 0x9a3   : > { %v5662_v6 = vpop.permute.xlu1 %5661 }
 0x9a7   : > { %v5660_v47 = vpop.permute.xlu0 %5659 }
 0x9a8   : > { %12702 = vmatprep.mubr.msk.f32.mxu0 %vm1225_vm0, %v5660_v47 }
 0x9a9   : > { %12703 = vmatmul.mubr.msk.f32.gmra.mrb[190].mxu0 %vm1225_vm0, %v5662_v6 }
 0x9ea   : > { %v12659_v25 = vpop.f32.mrb[160].mxu0 }
 0x9eb   : > { %5986 = vrot.lane.b32.xlu1 %v12659_v25, %s14515_s22  ;;  %v5793_v18 = vpop.f32.mrb[161].mxu0 }
 0x9ec   : > { %5984 = vrot.lane.b32.xlu0 %v5793_v18, %s14515_s22 }
 0x9f3   : > { %v12662_v39 = vpop.f32.mrb[162].mxu0 }
 0x9f4   : > { %5990 = vrot.lane.b32.xlu1 %v12662_v39, %s14515_s22  ;;  %v5803_v45 = vpop.f32.mrb[163].mxu0 }
 0x9f5   : > { %5988 = vrot.lane.b32.xlu0 %v5803_v45, %s14515_s22 }
 0x9f7   : > { %v12665_v50 = vpop.f32.mrb[164].mxu0 }
 0x9f8   : > { %5994 = vrot.lane.b32.xlu1 %v12665_v50, %s14515_s22  ;;  %v5813_v9 = vpop.f32.mrb[165].mxu0 }
 0x9f9   : > { %5992 = vrot.lane.b32.xlu0 %v5813_v9, %s14515_s22 }
 0x9ff   : > { %v12668_v15 = vpop.f32.mrb[166].mxu0 }
 0xa00   : > { %5998 = vrot.lane.b32.xlu1 %v12668_v15, %s14515_s22  ;;  %v5823_v17 = vpop.f32.mrb[167].mxu0 }
 0xa01   : > { %5996 = vrot.lane.b32.xlu0 %v5823_v17, %s14515_s22 }
 0xa03   : > { %v12671_v40 = vpop.f32.mrb[168].mxu0 }
 0xa04   : > { %6002 = vrot.lane.b32.xlu1 %v12671_v40, %s14515_s22  ;;  %v5833_v47 = vpop.f32.mrb[169].mxu0 }
 0xa05   : > { %6000 = vrot.lane.b32.xlu0 %v5833_v47, %s14515_s22 }
 0xa0b   : > { %v12674_v6 = vpop.f32.mrb[170].mxu0 }
 0xa0c   : > { %6006 = vrot.lane.b32.xlu1 %v12674_v6, %s14515_s22  ;;  %v5843_v25 = vpop.f32.mrb[171].mxu0 }
 0xa0d   : > { %6004 = vrot.lane.b32.xlu0 %v5843_v25, %s14515_s22 }
 0xa0f   : > { %v12677_v18 = vpop.f32.mrb[172].mxu0 }
 0xa10   : > { %6010 = vrot.lane.b32.xlu1 %v12677_v18, %s14515_s22  ;;  %v5853_v39 = vpop.f32.mrb[173].mxu0 }
 0xa11   : > { %6008 = vrot.lane.b32.xlu0 %v5853_v39, %s14515_s22 }
 0xa16   : > { %v12680_v45 = vpop.f32.mrb[174].mxu0 }
 0xa17   : > { %6014 = vrot.lane.b32.xlu1 %v12680_v45, %s14515_s22  ;;  %v5863_v50 = vpop.f32.mrb[175].mxu0 }
 0xa18   : > { %6012 = vrot.lane.b32.xlu0 %v5863_v50, %s14515_s22 }
 0xa1a   : > { %v12683_v9 = vpop.f32.mrb[176].mxu0 }
 0xa1b   : > { %6018 = vrot.lane.b32.xlu1 %v12683_v9, %s14515_s22  ;;  %v5873_v15 = vpop.f32.mrb[177].mxu0  ;;  %v20872_v9 = vld [vmem:[#allocation143_spill] sm:$0xff] }
 0xa1c   : > { %6016 = vrot.lane.b32.xlu0 %v5873_v15, %s14515_s22 }
 0xa24   : > { %v12686_v17 = vpop.f32.mrb[178].mxu0 }
 0xa25   : > { %6022 = vrot.lane.b32.xlu1 %v12686_v17, %s14515_s22  ;;  %v5883_v40 = vpop.f32.mrb[179].mxu0 }
 0xa26   : > { %6020 = vrot.lane.b32.xlu0 %v5883_v40, %s14515_s22  ;;  %v20873_v40 = vld [vmem:[#allocation139_spill] sm:$0xff] }
 0xa32   : > { %v12689_v47 = vpop.f32.mrb[180].mxu0 }
 0xa33   : > { %6026 = vrot.lane.b32.xlu1 %v12689_v47, %s14515_s22  ;;  %v5893_v6 = vpop.f32.mrb[181].mxu0 }
 0xa34   : > { %6024 = vrot.lane.b32.xlu0 %v5893_v6, %s14515_s22 }
 0xa40   : > { %v12692_v25 = vpop.f32.mrb[182].mxu0 }
 0xa41   : > { %6030 = vrot.lane.b32.xlu1 %v12692_v25, %s14515_s22  ;;  %v5903_v18 = vpop.f32.mrb[183].mxu0 }
 0xa42   : > { %6028 = vrot.lane.b32.xlu0 %v5903_v18, %s14515_s22 }
 0xa4e   : > { %v12695_v39 = vpop.f32.mrb[184].mxu0 }
 0xa4f   : > { %6034 = vrot.lane.b32.xlu1 %v12695_v39, %s14515_s22  ;;  %v5913_v45 = vpop.f32.mrb[185].mxu0 }
 0xa50   : > { %6032 = vrot.lane.b32.xlu0 %v5913_v45, %s14515_s22 }
 0xa5d   : > { %v5987_v50 = vpop.permute.xlu1 %5986 }
 0xa5e   : > { %v6081_v15 = vadd.f32 %v5987_v50, %v20872_v9  ;;  %v5985_v17 = vpop.permute.xlu0 %5984 }
 0xa5f   : > { %v6080_v47 = vadd.f32 %v5985_v17, %v20873_v40  ;;  %v20874_v40 = vld [vmem:[#allocation141_spill] sm:$0xff] }
 0xa60   : > { %13858 = vtanh.f32 %v6081_v15  ;;  %v12698_v6 = vpop.f32.mrb[186].mxu0 }
 0xa61   : > { %6038 = vrot.lane.b32.xlu1 %v12698_v6, %s14515_s22  ;;  %v5923_v25 = vpop.f32.mrb[187].mxu0  ;;  %13860 = vtanh.f32 %v6080_v47 }
 0xa65   : > { %6036 = vrot.lane.b32.xlu1 %v5923_v25, %s14515_s22 }
 0xa66   : > { %v5991_v18 = vpop.permute.xlu1 %5990 }
 0xa67   : > { %v5989_v22 = vpop.permute.xlu0 %5988  ;;  %v6083_v39 = vadd.f32 %v5991_v18, %v16793_v23 }
 0xa68   : > { %v6082_v45 = vadd.f32 %v5989_v22, %v16804_v62 }
 0xa6a   : > { %v13859_v59 = vpop.eup %13858  ;;  %13862 = vtanh.f32 %v6082_v45  ;;  %v5995_v50 = vpop.permute.xlu1 %5994 }
 0xa6b   : > { %v6085_v9 = vadd.f32 %v5995_v50, %v16819_v26  ;;  %v5993_v15 = vpop.permute.xlu0 %5992  ;;  %6242 = vrot.lane.b32.xlu0 %v13859_v59, %s14515_s22  ;;  %13864 = vtanh.f32 %v6083_v39  ;;  %v13861_v17 = vpop.eup %13860 }
 0xa6c   : > { %v6084_v47 = vadd.f32 %v5993_v15, %v20874_v40 }
 0xa6d   : > { %13866 = vtanh.f32 %v6085_v9 }
 0xa6e   : > { %v12701_v6 = vpop.f32.mrb[188].mxu0  ;;  %13868 = vtanh.f32 %v6084_v47 }
 0xa6f   : > { %6042 = vrot.lane.b32.xlu1 %v12701_v6, %s14515_s22  ;;  %v5933_v25 = vpop.f32.mrb[189].mxu0  ;;  %6240 = vrot.lane.b32.xlu0 %v13861_v17, %s14515_s22 }
 0xa72   : > { %v5999_v23 = vpop.permute.xlu1 %5998 }
 0xa73   : > { %v6087_v62 = vadd.f32 %v5999_v23, %v16840_v10  ;;  %v5997_v22 = vpop.permute.xlu0 %5996  ;;  %6040 = vrot.lane.b32.xlu1 %v5933_v25, %s14515_s22 }
 0xa74   : > { %v13863_v26 = vpop.eup %13862  ;;  %v6086_v59 = vadd.f32 %v5997_v22, %v16848_v14 }
 0xa75   : > { %6244 = vrot.lane.b32.xlu0 %v13863_v26, %s14515_s22  ;;  %v13865_v18 = vpop.eup %13864 }
 0xa76   : > { %13870 = vtanh.f32 %v6086_v59  ;;  %v6003_v39 = vpop.permute.xlu1 %6002 }
 0xa77   : > { %v13867_v45 = vpop.eup %13866  ;;  %13872 = vtanh.f32 %v6087_v62  ;;  %v6089_v50 = vadd.f32 %v6003_v39, %v16865_v16  ;;  %v6001_v9 = vpop.permute.xlu0 %6000  ;;  %6246 = vrot.lane.b32.xlu1 %v13865_v18, %s14515_s22 }
 0xa78   : > { %v6088_v10 = vadd.f32 %v6001_v9, %v16815_v33  ;;  %v13869_v15 = vpop.eup %13868 }
 0xa79   : > { %13874 = vtanh.f32 %v6089_v50  ;;  %6250 = vrot.lane.b32.xlu0 %v13867_v45, %s14515_s22 }
 0xa7a   : > { %13876 = vtanh.f32 %v6088_v10 }
 0xa7c   : > { %v12704_v17 = vpop.f32.mrb[190].mxu0 }
 0xa7d   : > { %v5943_v14 = vpop.f32.mrb[191].mxu0  ;;  %6248 = vrot.lane.b32.xlu0 %v13869_v15, %s14515_s22 }
 0xa7e   : > { %6044 = vrot.lane.b32.xlu1 %v5943_v14, %s14515_s22  ;;  %v6007_v40 = vpop.permute.xlu1 %6006 }
 0xa7f   : > { %v6091_v47 = vadd.f32 %v6007_v40, %v16883_v19  ;;  %v6005_v16 = vpop.permute.xlu0 %6004 }
 0xa80   : > { %v13871_v6 = vpop.eup %13870  ;;  %v6090_v25 = vadd.f32 %v6005_v16, %v16899_v20 }
 0xa81   : > { %v13873_v23 = vpop.eup %13872  ;;  %13878 = vtanh.f32 %v6091_v47  ;;  %6252 = vrot.lane.b32.xlu0 %v13871_v6, %s14515_s22 }
 0xa82   : > { %13880 = vtanh.f32 %v6090_v25  ;;  %6254 = vrot.lane.b32.xlu1 %v13873_v23, %s14515_s22  ;;  %v6011_v33 = vpop.permute.xlu1 %6010 }
 0xa83   : > { %v13875_v62 = vpop.eup %13874  ;;  %v6093_v22 = vadd.f32 %v6011_v33, %v16928_v56  ;;  %v6009_v26 = vpop.permute.xlu0 %6008 }
 0xa84   : > { %v6092_v59 = vadd.f32 %v6009_v26, %v16869_v54  ;;  %v13877_v19 = vpop.eup %13876 }
 0xa85   : > { %13882 = vtanh.f32 %v6093_v22  ;;  %6258 = vrot.lane.b32.xlu0 %v13875_v62, %s14515_s22 }
 0xa86   : > { %13884 = vtanh.f32 %v6092_v59  ;;  %6046 = vrot.lane.b32.xlu1 %v12704_v17, %s14515_s22 }
 0xa89   : > { %6256 = vrot.lane.b32.xlu0 %v13877_v19, %s14515_s22  ;;  %v6015_v20 = vpop.permute.xlu1 %6014 }
 0xa8a   : > { %v6095_v18 = vadd.f32 %v6015_v20, %v16943_v24  ;;  %v6013_v39 = vpop.permute.xlu0 %6012 }
 0xa8b   : > { %v13879_v45 = vpop.eup %13878  ;;  %v6094_v50 = vadd.f32 %v6013_v39, %v16965_v49 }
 0xa8c   : > { %v13881_v56 = vpop.eup %13880  ;;  %13886 = vtanh.f32 %v6095_v18  ;;  %6262 = vrot.lane.b32.xlu1 %v13879_v45, %s14515_s22 }
 0xa8d   : > { %13888 = vtanh.f32 %v6094_v50  ;;  %6260 = vrot.lane.b32.xlu0 %v13881_v56, %s14515_s22  ;;  %v6019_v54 = vpop.permute.xlu1 %6018 }
 0xa8e   : > { %v6097_v9 = vadd.f32 %v6019_v54, %v16989_v4  ;;  %v6017_v10 = vpop.permute.xlu0 %6016 }
 0xa8f   : > { %v13883_v15 = vpop.eup %13882  ;;  %v6096_v17 = vadd.f32 %v6017_v10, %v16909_v28 }
 0xa90   : > { %v13885_v14 = vpop.eup %13884  ;;  %13890 = vtanh.f32 %v6097_v9  ;;  %6266 = vrot.lane.b32.xlu1 %v13883_v15, %s14515_s22 }
 0xa91   : > { %13892 = vtanh.f32 %v6096_v17  ;;  %6264 = vrot.lane.b32.xlu0 %v13885_v14, %s14515_s22  ;;  %v6144_v17 = vsub.f32 1.0, %v16828_v1 }
 0xa96   : > { %v13887_v24 = vpop.eup %13886 }
 0xa97   : > { %v13889_v49 = vpop.eup %13888  ;;  %6270 = vrot.lane.b32.xlu1 %v13887_v24, %s14515_s22  ;;  %v6023_v40 = vpop.permute.xlu1 %6022 }
 0xa98   : > { %v6099_v47 = vadd.f32 %v6023_v40, %v17004_v8  ;;  %v6021_v16 = vpop.permute.xlu0 %6020  ;;  %6268 = vrot.lane.b32.xlu0 %v13889_v49, %s14515_s22 }
 0xa99   : > { %v6098_v4 = vadd.f32 %v6021_v16, %v17021_v38 }
 0xa9a   : > { %v13891_v28 = vpop.eup %13890  ;;  %13894 = vtanh.f32 %v6099_v47  ;;  %v20875_v47 = vld [vmem:[#allocation20_spill] sm:$0xff] }
 0xa9b   : > { %v13893_v6 = vpop.eup %13892  ;;  %13896 = vtanh.f32 %v6098_v4  ;;  %6274 = vrot.lane.b32.xlu1 %v13891_v28, %s14515_s22  ;;  %v6176_v16 = vmul.f32 %v6144_v17, %v20875_v47 }
 0xa9c   : > { %6272 = vrot.lane.b32.xlu0 %v13893_v6, %s14515_s22 }
 0xaa4   : > { %v13895_v25 = vpop.eup %13894 }
 0xaa5   : > { %v13897_v23 = vpop.eup %13896  ;;  %6278 = vrot.lane.b32.xlu1 %v13895_v25, %s14515_s22  ;;  %v6027_v33 = vpop.permute.xlu1 %6026 }
 0xaa6   : > { %v6101_v8 = vadd.f32 %v6027_v33, %v17038_v31  ;;  %v6025_v62 = vpop.permute.xlu0 %6024  ;;  %6276 = vrot.lane.b32.xlu0 %v13897_v23, %s14515_s22  ;;  %v6146_v23 = vsub.f32 1.0, %v16939_v36 }
 0xaa7   : > { %v6100_v38 = vadd.f32 %v6025_v62, %v17047_v46  ;;  %v20879_v62 = vld [vmem:[#allocation68_spill] sm:$0xff] }
 0xaa8   : > { %13898 = vtanh.f32 %v6101_v8 }
 0xaa9   : > { %13900 = vtanh.f32 %v6100_v38  ;;  %v6178_v38 = vmul.f32 %v6146_v23, %v20879_v62 }
 0xab2   : > { %v13899_v22 = vpop.eup %13898 }
 0xab3   : > { %v13901_v26 = vpop.eup %13900  ;;  %6282 = vrot.lane.b32.xlu1 %v13899_v22, %s14515_s22  ;;  %v6031_v59 = vpop.permute.xlu1 %6030  ;;  %v20880_v22 = vld [vmem:[#allocation51_spill] sm:$0xff] }
 0xab4   : > { %v6103_v19 = vadd.f32 %v6031_v59, %v17064_v58  ;;  %v6029_v20 = vpop.permute.xlu0 %6028  ;;  %6280 = vrot.lane.b32.xlu0 %v13901_v26, %s14515_s22  ;;  %v20881_v59 = vld [vmem:[#allocation53_spill] sm:$0xff] }
 0xab5   : > { %v6102_v18 = vadd.f32 %v6029_v20, %v17070_v34 }
 0xab6   : > { %13902 = vtanh.f32 %v6103_v19  ;;  %v20882_v19 = vld [vmem:[#allocation104_spill] sm:$0xff] }
 0xab7   : > { %13904 = vtanh.f32 %v6102_v18  ;;  %v20884_v18 = vld [vmem:[#allocation22_spill] sm:$0xff] }
 0xac0   : > { %v13903_v31 = vpop.eup %13902 }
 0xac1   : > { %v13905_v39 = vpop.eup %13904  ;;  %6286 = vrot.lane.b32.xlu1 %v13903_v31, %s14515_s22  ;;  %v6035_v46 = vpop.permute.xlu1 %6034 }
 0xac2   : > { %v6105_v45 = vadd.f32 %v6035_v46, %v17085_v13  ;;  %v6033_v50 = vpop.permute.xlu0 %6032  ;;  %6284 = vrot.lane.b32.xlu0 %v13905_v39, %s14515_s22 }
 0xac3   : > { %v6104_v56 = vadd.f32 %v6033_v50, %v17094_v5  ;;  %v6145_v5 = vsub.f32 1.0, %v16907_v63 }
 0xac4   : > { %13906 = vtanh.f32 %v6105_v45 }
 0xac5   : > { %13908 = vtanh.f32 %v6104_v56 }
 0xace   : > { %v13907_v58 = vpop.eup %13906 }
 0xacf   : > { %v13909_v54 = vpop.eup %13908  ;;  %6290 = vrot.lane.b32.xlu1 %v13907_v58, %s14515_s22  ;;  %v20886_v58 = vld [vmem:[#allocation67_spill] sm:$0xff] }
 0xad0   : > { %6288 = vrot.lane.b32.xlu0 %v13909_v54, %s14515_s22 }
 0xad3   : > { %v6039_v34 = vpop.permute.xlu1 %6038 }
 0xad4   : > { %v6107_v9 = vadd.f32 %v6039_v34, %v17111_v41 }
 0xad6   : > { %13910 = vtanh.f32 %v6107_v9 }
 0xad7   : > { %v6037_v10 = vpop.permute.xlu1 %6036 }
 0xad8   : > { %v6106_v13 = vadd.f32 %v6037_v10, %v17127_v60  ;;  %v20876_v60 = vld [vmem:[#allocation19_spill] sm:$0xff]  ;;  %v6150_v10 = vsub.f32 1.0, %v16969_v0 }
 0xad9   : > { %v6177_v28 = vmul.f32 %v6145_v5, %v20876_v60 }
 0xada   : > { %13912 = vtanh.f32 %v6106_v13  ;;  %v20887_v13 = vld [vmem:[#allocation21_spill] sm:$0xff] }
 0xadd   : > { %v6243_v15 = vpop.permute.xlu0 %6242 }
 0xade   : > { %v6337_v24 = vmul.f32 %v16907_v63, %v6243_v15 }
 0xae0   : > { %v13911_v14 = vpop.eup %13910  ;;  %v17329_v33 = vadd.f32 %v6337_v24, %v6177_v28 }
 0xae1   : > { %v6241_v49 = vpop.permute.xlu0 %6240  ;;  %6294 = vrot.lane.b32.xlu1 %v13911_v14, %s14515_s22  ;;  %v6043_v40 = vpop.permute.xlu1 %6042 }
 0xae2   : > { %v6336_v41 = vmul.f32 %v16828_v1, %v6241_v49  ;;  %v6109_v4 = vadd.f32 %v6043_v40, %v17141_v21  ;;  %20878 = vst [vmem:[#allocation128_spill] sm:$0xff] %v17329_v33  ;;  %v6147_v1 = vsub.f32 1.0, %v16924_v27 }
 0xae4   : > { %v13913_v6 = vpop.eup %13912  ;;  %v17326_v25 = vadd.f32 %v6336_v41, %v6176_v16  ;;  %13914 = vtanh.f32 %v6109_v4  ;;  %v6179_v31 = vmul.f32 %v6147_v1, %v20884_v18  ;;  %v20891_v41 = vld [vmem:[#allocation71_spill] sm:$0xff] }
 0xae5   : > { %6292 = vrot.lane.b32.xlu0 %v13913_v6, %s14515_s22  ;;  %v6041_v63 = vpop.permute.xlu1 %6040 }
 0xae6   : > { %20877 = vst [vmem:[#allocation105_spill] sm:$0xff] %v17326_v25  ;;  %v6108_v8 = vadd.f32 %v6041_v63, %v17152_v53  ;;  %12713 = vmatprep.mubr.msk.f32.mxu1 %vm1225_vm0, %v17326_v25  ;;  %12769 = vmatprep.mubr.msk.f32.mxu0 %vm1225_vm0, %v17326_v25 }
 0xae7   : > { %12714 = vmatmul.mubr.msk.f32.vlgmr.msra.gmra.mrb[160].mxu1 %vm1225_vm0, %v17329_v33  ;;  %12770 = vmatmul.mubr.msk.f32.vlgmr.msra.gmra.mrb[192].mxu0 %vm1225_vm0, %v17329_v33  ;;  %v6245_v21 = vpop.permute.xlu0 %6244 }
 0xae8   : > { %13916 = vtanh.f32 %v6108_v8  ;;  %v6338_v53 = vmul.f32 %v16939_v36, %v6245_v21  ;;  %13172 = vmatpush3.bf16.msra.mxu1 %v20880_v22  ;;  %13180 = vmatpush3.bf16.msra.mxu0 %v20871_v52  ;;  %v6148_v36 = vsub.f32 1.0, %v16857_v44  ;;  %v6149_v52 = vsub.f32 1.0, %v16947_v12 }
 0xae9   : > { %v6247_v26 = vpop.permute.xlu1 %6246  ;;  %13174 = vmatprep.subr.bf16.mxu1 %v20881_v59  ;;  %13182 = vmatprep.subr.bf16.mxu0 %v20882_v19  ;;  %v6153_v8 = vsub.f32 1.0, %v16979_v7 }
 0xaea   : > { %v17348_v20 = vadd.f32 %v6338_v53, %v6178_v38  ;;  %v6339_v39 = vmul.f32 %v16924_v27, %v6247_v26  ;;  %v6180_v54 = vmul.f32 %v6148_v36, %v20886_v58  ;;  %v6181_v15 = vmul.f32 %v6149_v52, %v20887_v13  ;;  %v20894_v53 = vld [vmem:[#allocation24_spill] sm:$0xff] }
 0xaeb   : > { %v6251_v46 = vpop.permute.xlu0 %6250  ;;  %v20961_v58 = vmov 0  }
 0xaec   : > { %20883 = vst [vmem:[#allocation109_spill] sm:$0xff] %v17348_v20  ;;  %v17352_v45 = vadd.f32 %v6339_v39, %v6179_v31  ;;  %12716 = vmatprep.mubr.msk.f32.mxu1 %vm1225_vm0, %v17348_v20  ;;  %12772 = vmatprep.mubr.msk.f32.mxu0 %vm1225_vm0, %v17348_v20  ;;  %v6341_v27 = vmul.f32 %v16947_v12, %v6251_v46  ;;  %v6151_v12 = vsub.f32 1.0, %v16957_v55  ;;  %v6154_v31 = vsub.f32 1.0, %v17002_v30  ;;  %v20895_v46 = vld [vmem:[#allocation23_spill] sm:$0xff] }
 0xaed   : > { %13176 = vmatpush3.bf16.msra.mxu1 %v20881_v59  ;;  %13184 = vmatpush3.bf16.msra.mxu0 %v20882_v19  ;;  %v6185_v36 = vmul.f32 %v6153_v8, %v20895_v46  ;;  %v21002_v59 = vld [vmem:[#allocation122_spill] sm:$0xff] }
 0xaee   : > { %20885 = vst [vmem:[#allocation110_spill] sm:$0xff] %v17352_v45  ;;  %v13915_v50 = vpop.eup %13914  ;;  %12717 = vmatmul.mubr.msk.f32.gmra.mrb[162].mxu1 %vm1225_vm0, %v17352_v45  ;;  %12773 = vmatmul.mubr.msk.f32.gmra.mrb[194].mxu0 %vm1225_vm0, %v17352_v45  ;;  %v17378_v24 = vadd.f32 %v6341_v27, %v6181_v15  ;;  %v6183_v4 = vmul.f32 %v6151_v12, %v20891_v41 }
 0xaef   : > { %v6249_v56 = vpop.permute.xlu0 %6248  ;;  %6298 = vrot.lane.b32.xlu1 %v13915_v50, %s14515_s22  ;;  %13186 = vmatprep.subr.bf16.mxu1 %v20869_v48 }
 0xaf0   : > { %v6340_v34 = vmul.f32 %v16857_v44, %v6249_v56  ;;  %v6045_v9 = vpop.permute.xlu1 %6044  ;;  %13194 = vmatprep.subr.bf16.mxu0 %v20880_v22  ;;  %20889 = vst [vmem:[#allocation112_spill] sm:$0xff] %v17378_v24  ;;  %v20890_v44 = vld [vmem:[#allocation72_spill] sm:$0xff] }
 0xaf1   : > { %v6110_v17 = vadd.f32 %v6045_v9, %v17172_v61  ;;  %v6182_v40 = vmul.f32 %v6150_v10, %v20890_v44  ;;  %v6156_v9 = vsub.f32 1.0, %v16951_v11  ;;  %v20899_v10 = vld [vmem:[#allocation26_spill] sm:$0xff] }
 0xaf2   : > { %v13917_v5 = vpop.eup %13916  ;;  %v17376_v14 = vadd.f32 %v6340_v34, %v6180_v54  ;;  %v20898_v54 = vld [vmem:[#allocation78_spill] sm:$0xff] }
 0xaf3   : > { %13918 = vtanh.f32 %v6110_v17  ;;  %v6253_v49 = vpop.permute.xlu0 %6252  ;;  %6296 = vrot.lane.b32.xlu0 %v13917_v5, %s14515_s22  ;;  %v6186_v34 = vmul.f32 %v6154_v31, %v20898_v54 }
 0xaf4   : > { %20888 = vst [vmem:[#allocation132_spill] sm:$0xff] %v17376_v14  ;;  %v6342_v16 = vmul.f32 %v16969_v0, %v6253_v49  ;;  %12719 = vmatprep.mubr.msk.f32.mxu1 %vm1225_vm0, %v17376_v14  ;;  %12775 = vmatprep.mubr.msk.f32.mxu0 %vm1225_vm0, %v17376_v14  ;;  %v6255_v61 = vpop.permute.xlu1 %6254 }
 0xaf5   : > { %v6343_v28 = vmul.f32 %v16957_v55, %v6255_v61  ;;  %12720 = vmatmul.mubr.msk.f32.gmra.mrb[164].mxu1 %vm1225_vm0, %v17378_v24  ;;  %12776 = vmatmul.mubr.msk.f32.gmra.mrb[196].mxu0 %vm1225_vm0, %v17378_v24  ;;  %v6152_v55 = vsub.f32 1.0, %v16912_v57 }
 0xaf6   : > { %v17393_v6 = vadd.f32 %v6342_v16, %v6182_v40  ;;  %v20902_v40 = vld [vmem:[#allocation76_spill] sm:$0xff] }
 0xaf7   : > { %v17395_v0 = vadd.f32 %v6343_v28, %v6183_v4  ;;  %v6259_v23 = vpop.permute.xlu0 %6258  ;;  %v6184_v26 = vmul.f32 %v6152_v55, %v20894_v53  ;;  %v6188_v16 = vmul.f32 %v6156_v9, %v20902_v40  ;;  %v20903_v28 = vld [vmem:[#allocation84_spill] sm:$0xff]  ;;  %v20906_v55 = vld [vmem:[#allocation114_spill] sm:$0xff] }
 0xaf8   : > { %20892 = vst [vmem:[#allocation113_spill] sm:$0xff] %v17393_v6  ;;  %12722 = vmatprep.mubr.msk.f32.mxu1 %vm1225_vm0, %v17393_v6  ;;  %12778 = vmatprep.mubr.msk.f32.mxu0 %vm1225_vm0, %v17393_v6  ;;  %v6047_v63 = vpop.permute.xlu1 %6046  ;;  %v6345_v21 = vmul.f32 %v16979_v7, %v6259_v23  ;;  %v6159_v8 = vsub.f32 1.0, %v20906_v55  ;;  %v20938_v40 = vld [vmem:[#allocation96_spill] sm:$0xff] }
 0xaf9   : > { %20893 = vst [vmem:[#allocation116_spill] sm:$0xff] %v17395_v0  ;;  %v6111_v1 = vadd.f32 %v6047_v63, %v17165_v35  ;;  %12723 = vmatmul.mubr.msk.f32.gmra.mrb[166].mxu1 %vm1225_vm0, %v17395_v0  ;;  %12779 = vmatmul.mubr.msk.f32.gmra.mrb[198].mxu0 %vm1225_vm0, %v17395_v0  ;;  %v6155_v35 = vsub.f32 1.0, %v16987_v43  ;;  %v6158_v63 = vsub.f32 1.0, %v17026_v42 }
 0xafa   : > { %v17417_v27 = vadd.f32 %v6345_v21, %v6185_v36 }
 0xafb   : > { %13920 = vtanh.f32 %v6111_v1  ;;  %v6257_v38 = vpop.permute.xlu0 %6256  ;;  %v6187_v15 = vmul.f32 %v6155_v35, %v20899_v10  ;;  %v20909_v35 = vld [vmem:[#allocation25_spill] sm:$0xff] }
 0xafc   : > { %v6344_v19 = vmul.f32 %v16912_v57, %v6257_v38  ;;  %20897 = vst [vmem:[#allocation135_spill] sm:$0xff] %v17417_v27 }
 0xafd   : > { %v13919_v39 = vpop.eup %13918 }
 0xafe   : > { %v17414_v52 = vadd.f32 %v6344_v19, %v6184_v26  ;;  %6300 = vrot.lane.b32.xlu0 %v13919_v39, %s14515_s22  ;;  %v6263_v50 = vpop.permute.xlu1 %6262  ;;  %v20907_v26 = vld [vmem:[#allocation82_spill] sm:$0xff]  ;;  %v20908_v39 = vld [vmem:[#allocation108_spill] sm:$0xff] }
 0xaff   : > { %v6347_v7 = vmul.f32 %v16987_v43, %v6263_v50  ;;  %v6261_v56 = vpop.permute.xlu0 %6260  ;;  %v6157_v43 = vsub.f32 1.0, %v17012_v3  ;;  %v6190_v19 = vmul.f32 %v6158_v63, %v20907_v26  ;;  %v6160_v36 = vsub.f32 1.0, %v20908_v39 }
 0xb00   : > { %20896 = vst [vmem:[#allocation118_spill] sm:$0xff] %v17414_v52  ;;  %v6346_v57 = vmul.f32 %v17002_v30, %v6261_v56  ;;  %12725 = vmatprep.mubr.msk.f32.mxu1 %vm1225_vm0, %v17414_v52  ;;  %12781 = vmatprep.mubr.msk.f32.mxu0 %vm1225_vm0, %v17414_v52  ;;  %v6191_v50 = vmul.f32 %v6159_v8, %v20909_v35 }
 0xb01   : > { %12726 = vmatmul.mubr.msk.f32.gmra.mrb[168].mxu1 %vm1225_vm0, %v17417_v27  ;;  %12782 = vmatmul.mubr.msk.f32.gmra.mrb[200].mxu0 %vm1225_vm0, %v17417_v27  ;;  %v17437_v12 = vadd.f32 %v6347_v7, %v6187_v15  ;;  %v6189_v23 = vmul.f32 %v6157_v43, %v20903_v28  ;;  %v20910_v7 = vld [vmem:[#allocation48_spill] sm:$0xff] }
 0xb02   : > { %v17433_v17 = vadd.f32 %v6346_v57, %v6186_v34  ;;  %7652 = vrot.lane.b32.xlu0 %v17329_v33, %s14513_s28  ;;  %v6267_v30 = vpop.permute.xlu1 %6266  ;;  %v6161_v56 = vsub.f32 1.0, %v20910_v7 }
 0xb03   : > { %20901 = vst [vmem:[#allocation144_spill] sm:$0xff] %v17437_v12  ;;  %v6349_v5 = vmul.f32 %v17012_v3, %v6267_v30  ;;  %v6265_v49 = vpop.permute.xlu0 %6264 }
 0xb04   : > { %20900 = vst [vmem:[#allocation137_spill] sm:$0xff] %v17433_v17  ;;  %v6348_v61 = vmul.f32 %v16951_v11, %v6265_v49  ;;  %12728 = vmatprep.mubr.msk.f32.mxu1 %vm1225_vm0, %v17433_v17  ;;  %12784 = vmatprep.mubr.msk.f32.mxu0 %vm1225_vm0, %v17433_v17  ;;  %v20914_v49 = vld [vmem:[#allocation90_spill] sm:$0xff] }
 0xb05   : > { %v13921_v4 = vpop.eup %13920  ;;  %12729 = vmatmul.mubr.msk.f32.gmra.mrb[170].mxu1 %vm1225_vm0, %v17437_v12  ;;  %12785 = vmatmul.mubr.msk.f32.gmra.mrb[202].mxu0 %vm1225_vm0, %v17437_v12  ;;  %v17456_v11 = vadd.f32 %v6349_v5, %v6189_v23  ;;  %v20917_v23 = vld [vmem:[#allocation131_spill] sm:$0xff] }
 0xb06   : > { %v17451_v3 = vadd.f32 %v6348_v61, %v6188_v16  ;;  %7654 = vrot.lane.b32.xlu0 %v17348_v20, %s14513_s28  ;;  %6302 = vrot.lane.b32.xlu1 %v13921_v4, %s14515_s22  ;;  %v6193_v16 = vmul.f32 %v6161_v56, %v20914_v49  ;;  %v6162_v63 = vsub.f32 1.0, %v20917_v23 }
 0xb07   : > { %20905 = vst [vmem:[#allocation103_spill] sm:$0xff] %v17456_v11 }
 0xb08   : > { %20904 = vst [vmem:[#allocation145_spill] sm:$0xff] %v17451_v3  ;;  %12731 = vmatprep.mubr.msk.f32.mxu1 %vm1225_vm0, %v17451_v3  ;;  %12787 = vmatprep.mubr.msk.f32.mxu0 %vm1225_vm0, %v17451_v3 }
 0xb09   : > { %12732 = vmatmul.mubr.msk.f32.gmra.mrb[172].mxu1 %vm1225_vm0, %v17456_v11  ;;  %12788 = vmatmul.mubr.msk.f32.gmra.mrb[204].mxu0 %vm1225_vm0, %v17456_v11  ;;  %v6271_v1 = vpop.permute.xlu1 %6270 }
 0xb0a   : > { %v6351_v21 = vmul.f32 %v20906_v55, %v6271_v1  ;;  %v6269_v38 = vpop.permute.xlu0 %6268  ;;  %7660 = vrot.lane.b32.xlu0 %v17378_v24, %s14513_s28  ;;  %7650 = vrot.lane.b32.xlu1 %v17326_v25, %s14513_s28  ;;  %v20918_v55 = vld [vmem:[#allocation130_spill] sm:$0xff] }
 0xb0b   : > { %v6350_v31 = vmul.f32 %v17026_v42, %v6269_v38  ;;  %v20913_v42 = vld [vmem:[#allocation28_spill] sm:$0xff]  ;;  %v6163_v8 = vsub.f32 1.0, %v20918_v55 }
 0xb0c   : > { %v17480_v9 = vadd.f32 %v6351_v21, %v6191_v50  ;;  %v6192_v30 = vmul.f32 %v6160_v36, %v20913_v42  ;;  %v20920_v36 = vld [vmem:[#allocation89_spill] sm:$0xff] }
 0xb0d   : > { %v17478_v34 = vadd.f32 %v6350_v31, %v6190_v19  ;;  %v6275_v57 = vpop.permute.xlu1 %6274  ;;  %v20919_v19 = vld [vmem:[#allocation27_spill] sm:$0xff]  ;;  %v6195_v50 = vmul.f32 %v6163_v8, %v20920_v36 }
 0xb0e   : > { %20912 = vst [vmem:[#allocation139_spill] sm:$0xff] %v17480_v9  ;;  %v6353_v15 = vmul.f32 %v20910_v7, %v6275_v57  ;;  %v6273_v43 = vpop.permute.xlu0 %6272  ;;  %7658 = vrot.lane.b32.xlu0 %v17376_v14, %s14513_s28  ;;  %7656 = vrot.lane.b32.xlu1 %v17352_v45, %s14513_s28  ;;  %v6194_v31 = vmul.f32 %v6162_v63, %v20919_v19  ;;  %v20923_v57 = vld [vmem:[#allocation120_spill] sm:$0xff]  ;;  %v20925_v63 = vld [vmem:[#allocation30_spill] sm:$0xff] }
 0xb0f   : > { %20911 = vst [vmem:[#allocation143_spill] sm:$0xff] %v17478_v34  ;;  %v6352_v5 = vmul.f32 %v20908_v39, %v6273_v43  ;;  %12734 = vmatprep.mubr.msk.f32.mxu1 %vm1225_vm0, %v17478_v34  ;;  %12790 = vmatprep.mubr.msk.f32.mxu0 %vm1225_vm0, %v17478_v34  ;;  %v20924_v43 = vld [vmem:[#allocation47_spill] sm:$0xff] }
 0xb10   : > { %12735 = vmatmul.mubr.msk.f32.gmra.mrb[174].mxu1 %vm1225_vm0, %v17480_v9  ;;  %12791 = vmatmul.mubr.msk.f32.gmra.mrb[206].mxu0 %vm1225_vm0, %v17480_v9  ;;  %v17500_v4 = vadd.f32 %v6353_v15, %v6193_v16  ;;  %v6164_v15 = vsub.f32 1.0, %v20923_v57 }
 0xb11   : > { %v17498_v61 = vadd.f32 %v6352_v5, %v6192_v30  ;;  %v6165_v30 = vsub.f32 1.0, %v20924_v43 }
 0xb12   : > { %20916 = vst [vmem:[#allocation104_spill] sm:$0xff] %v17500_v4  ;;  %7662 = vrot.lane.b32.xlu0 %v17393_v6, %s14513_s28  ;;  %7664 = vrot.lane.b32.xlu1 %v17395_v0, %s14513_s28 }
 0xb13   : > { %20915 = vst [vmem:[#allocation141_spill] sm:$0xff] %v17498_v61  ;;  %12737 = vmatprep.mubr.msk.f32.mxu1 %vm1225_vm0, %v17498_v61  ;;  %12793 = vmatprep.mubr.msk.f32.mxu0 %vm1225_vm0, %v17498_v61 }
 0xb14   : > { %12738 = vmatmul.mubr.msk.f32.gmra.mrb[176].mxu1 %vm1225_vm0, %v17500_v4  ;;  %12794 = vmatmul.mubr.msk.f32.gmra.mrb[208].mxu0 %vm1225_vm0, %v17500_v4 }
 0xb16   : > { %7668 = vrot.lane.b32.xlu0 %v17417_v27, %s14513_s28  ;;  %7672 = vrot.lane.b32.xlu1 %v17437_v12, %s14513_s28 }
 0xb17   : > { %v6279_v1 = vpop.permute.xlu1 %6278 }
 0xb18   : > { %v6355_v21 = vmul.f32 %v20918_v55, %v6279_v1  ;;  %v6277_v38 = vpop.permute.xlu0 %6276  ;;  %v6196_v55 = vmul.f32 %v6164_v15, %v20925_v63  ;;  %v20926_v1 = vld [vmem:[#allocation94_spill] sm:$0xff]  ;;  %v20962_v63 = vld [vmem:[#allocation37_spill] sm:$0xff] }
 0xb19   : > { %v6354_v39 = vmul.f32 %v20917_v23, %v6277_v38 }
 0xb1a   : > { %7666 = vrot.lane.b32.xlu0 %v17414_v52, %s14513_s28  ;;  %7680 = vrot.lane.b32.xlu1 %v17480_v9, %s14513_s28  ;;  %v17530_v56 = vadd.f32 %v6355_v21, %v6195_v50  ;;  %v6197_v21 = vmul.f32 %v6165_v30, %v20926_v1 }
 0xb1b   : > { %v17528_v7 = vadd.f32 %v6354_v39, %v6194_v31  ;;  %v20929_v39 = vld [vmem:[#allocation50_spill] sm:$0xff] }
 0xb1c   : > { %20922 = vst [vmem:[#allocation108_spill] sm:$0xff] %v17530_v56  ;;  %v6166_v50 = vsub.f32 1.0, %v20929_v39 }
 0xb1d   : > { %20921 = vst [vmem:[#allocation114_spill] sm:$0xff] %v17528_v7  ;;  %12740 = vmatprep.mubr.msk.f32.mxu1 %vm1225_vm0, %v17528_v7  ;;  %12796 = vmatprep.mubr.msk.f32.mxu0 %vm1225_vm0, %v17528_v7 }
 0xb1e   : > { %7670 = vrot.lane.b32.xlu0 %v17433_v17, %s14513_s28  ;;  %12741 = vmatmul.mubr.msk.f32.gmra.mrb[178].mxu1 %vm1225_vm0, %v17530_v56 }
 0xb1f   : > { %12797 = vmatmul.mubr.msk.f32.gmra.mrb[210].mxu0 %vm1225_vm0, %v17530_v56 }
 0xb22   : > { %7676 = vrot.lane.b32.xlu0 %v17456_v11, %s14513_s28 }
 0xb25   : > { %v6283_v5 = vpop.permute.xlu1 %6282 }
 0xb26   : > { %v6357_v16 = vmul.f32 %v20924_v43, %v6283_v5  ;;  %v6281_v23 = vpop.permute.xlu0 %6280  ;;  %7674 = vrot.lane.b32.xlu0 %v17451_v3, %s14513_s28  ;;  %v20980_v3 = vld [vmem:[#allocation43_spill] sm:$0xff] }
 0xb27   : > { %v6356_v8 = vmul.f32 %v20923_v57, %v6281_v23  ;;  %v20930_v57 = vld [vmem:[#allocation123_spill] sm:$0xff] }
 0xb28   : > { %v17554_v31 = vadd.f32 %v6357_v16, %v6197_v21  ;;  %v6167_v15 = vsub.f32 1.0, %v20930_v57  ;;  %v20931_v16 = vld [vmem:[#allocation29_spill] sm:$0xff] }
 0xb29   : > { %v17552_v38 = vadd.f32 %v6356_v8, %v6196_v55  ;;  %v6198_v23 = vmul.f32 %v6166_v50, %v20931_v16  ;;  %v20932_v8 = vld [vmem:[#allocation93_spill] sm:$0xff]  ;;  %v20958_v16 = vmov 1  }
 0xb2a   : > { %20928 = vst [vmem:[#allocation131_spill] sm:$0xff] %v17554_v31  ;;  %7678 = vrot.lane.b32.xlu0 %v17478_v34, %s14513_s28  ;;  %v6199_v21 = vmul.f32 %v6167_v15, %v20932_v8 }
 0xb2b   : > { %20927 = vst [vmem:[#allocation48_spill] sm:$0xff] %v17552_v38  ;;  %12743 = vmatprep.mubr.msk.f32.mxu1 %vm1225_vm0, %v17552_v38  ;;  %12799 = vmatprep.mubr.msk.f32.mxu0 %vm1225_vm0, %v17552_v38 }
 0xb2c   : > { %12744 = vmatmul.mubr.msk.f32.gmra.mrb[180].mxu1 %vm1225_vm0, %v17554_v31  ;;  %12800 = vmatmul.mubr.msk.f32.gmra.mrb[212].mxu0 %vm1225_vm0, %v17554_v31 }
 0xb2e   : > { %7684 = vrot.lane.b32.xlu0 %v17500_v4, %s14513_s28 }
 0xb32   : > { %7682 = vrot.lane.b32.xlu0 %v17498_v61, %s14513_s28  ;;  %v20974_v61 = vld [vmem:[#allocation46_spill] sm:$0xff] }
 0xb33   : > { %v6287_v43 = vpop.permute.xlu1 %6286 }
 0xb34   : > { %v6359_v30 = vmul.f32 %v20930_v57, %v6287_v43  ;;  %v6285_v5 = vpop.permute.xlu0 %6284  ;;  %v20936_v57 = vld [vmem:[#allocation126_spill] sm:$0xff] }
 0xb35   : > { %v6358_v55 = vmul.f32 %v20929_v39, %v6285_v5  ;;  %v20935_v39 = vld [vmem:[#allocation133_spill] sm:$0xff]  ;;  %v6169_v15 = vsub.f32 1.0, %v20936_v57 }
 0xb36   : > { %7686 = vrot.lane.b32.xlu0 %v17528_v7, %s14513_s28  ;;  %v17580_v35 = vadd.f32 %v6359_v30, %v6199_v21  ;;  %v6168_v50 = vsub.f32 1.0, %v20935_v39 }
 0xb37   : > { %v17578_v26 = vadd.f32 %v6358_v55, %v6198_v23  ;;  %v20937_v23 = vld [vmem:[#allocation32_spill] sm:$0xff]  ;;  %v6201_v28 = vmul.f32 %v6169_v15, %v20938_v40 }
 0xb38   : > { %20934 = vst [vmem:[#allocation120_spill] sm:$0xff] %v17580_v35  ;;  %v6200_v55 = vmul.f32 %v6168_v50, %v20937_v23 }
 0xb39   : > { %20933 = vst [vmem:[#allocation130_spill] sm:$0xff] %v17578_v26  ;;  %12746 = vmatprep.mubr.msk.f32.mxu1 %vm1225_vm0, %v17578_v26  ;;  %12802 = vmatprep.mubr.msk.f32.mxu0 %vm1225_vm0, %v17578_v26 }
 0xb3a   : > { %12747 = vmatmul.mubr.msk.f32.gmra.mrb[182].mxu1 %vm1225_vm0, %v17580_v35  ;;  %12803 = vmatmul.mubr.msk.f32.gmra.mrb[214].mxu0 %vm1225_vm0, %v17580_v35 }
 0xb41   : > { %v6291_v43 = vpop.permute.xlu1 %6290 }
 0xb42   : > { %v6361_v30 = vmul.f32 %v20936_v57, %v6291_v43  ;;  %v6289_v5 = vpop.permute.xlu0 %6288  ;;  %v20941_v57 = vld [vmem:[#allocation49_spill] sm:$0xff] }
 0xb43   : > { %v6360_v21 = vmul.f32 %v20935_v39, %v6289_v5  ;;  %v6170_v39 = vsub.f32 1.0, %v17174_v29  ;;  %v6171_v15 = vsub.f32 1.0, %v20941_v57 }
 0xb44   : > { %v17598_v10 = vadd.f32 %v6361_v30, %v6201_v28  ;;  %v20942_v30 = vld [vmem:[#allocation31_spill] sm:$0xff] }
 0xb45   : > { %v17596_v54 = vadd.f32 %v6360_v21, %v6200_v55  ;;  %v6202_v5 = vmul.f32 %v6170_v39, %v20942_v30  ;;  %v20943_v21 = vld [vmem:[#allocation95_spill] sm:$0xff]  ;;  %v6173_v39 = vsub.f32 1.0, %v17187_v37 }
 0xb46   : > { %20940 = vst [vmem:[#allocation50_spill] sm:$0xff] %v17598_v10  ;;  %v6203_v53 = vmul.f32 %v6171_v15, %v20943_v21  ;;  %v20946_v15 = vld [vmem:[#allocation34_spill] sm:$0xff] }
 0xb47   : > { %20939 = vst [vmem:[#allocation47_spill] sm:$0xff] %v17596_v54  ;;  %12749 = vmatprep.mubr.msk.f32.mxu1 %vm1225_vm0, %v17596_v54  ;;  %12805 = vmatprep.mubr.msk.f32.mxu0 %vm1225_vm0, %v17596_v54 }
 0xb48   : > { %12750 = vmatmul.mubr.msk.f32.gmra.mrb[184].mxu1 %vm1225_vm0, %v17598_v10  ;;  %12806 = vmatmul.mubr.msk.f32.gmra.mrb[216].mxu0 %vm1225_vm0, %v17598_v10 }
 0xb53   : > { %v6295_v50 = vpop.permute.xlu1 %6294 }
 0xb54   : > { %v6363_v28 = vmul.f32 %v20941_v57, %v6295_v50 }
 0xb56   : > { %v17616_v23 = vadd.f32 %v6363_v28, %v6203_v53 }
 0xb57   : > { %v6293_v43 = vpop.permute.xlu0 %6292 }
 0xb58   : > { %v6362_v55 = vmul.f32 %v17174_v29, %v6293_v43  ;;  %20945 = vst [vmem:[#allocation133_spill] sm:$0xff] %v17616_v23  ;;  %v6172_v29 = vsub.f32 1.0, %v17193_v2 }
 0xb5a   : > { %v17614_v46 = vadd.f32 %v6362_v55, %v6202_v5  ;;  %v6204_v28 = vmul.f32 %v6172_v29, %v20946_v15  ;;  %v20947_v5 = vld [vmem:[#allocation97_spill] sm:$0xff] }
 0xb5b   : > { %v6205_v55 = vmul.f32 %v6173_v39, %v20947_v5 }
 0xb5c   : > { %20944 = vst [vmem:[#allocation123_spill] sm:$0xff] %v17614_v46  ;;  %12752 = vmatprep.mubr.msk.f32.mxu1 %vm1225_vm0, %v17614_v46  ;;  %12808 = vmatprep.mubr.msk.f32.mxu0 %vm1225_vm0, %v17614_v46 }
 0xb5d   : > { %12753 = vmatmul.mubr.msk.f32.gmra.mrb[186].mxu1 %vm1225_vm0, %v17616_v23  ;;  %12809 = vmatmul.mubr.msk.f32.gmra.mrb[218].mxu0 %vm1225_vm0, %v17616_v23 }
 0xb61   : > { %v6299_v50 = vpop.permute.xlu1 %6298 }
 0xb62   : > { %v6365_v53 = vmul.f32 %v17187_v37, %v6299_v50  ;;  %v6174_v37 = vsub.f32 1.0, %v17206_v51  ;;  %v20950_v50 = vld [vmem:[#allocation33_spill] sm:$0xff] }
 0xb64   : > { %v17634_v21 = vadd.f32 %v6365_v53, %v6205_v55  ;;  %v6206_v29 = vmul.f32 %v6174_v37, %v20950_v50 }
 0xb65   : > { %v6297_v57 = vpop.permute.xlu0 %6296 }
 0xb66   : > { %v6364_v43 = vmul.f32 %v17193_v2, %v6297_v57  ;;  %20949 = vst [vmem:[#allocation49_spill] sm:$0xff] %v17634_v21  ;;  %v6175_v57 = vsub.f32 1.0, %v17201_v32 }
 0xb68   : > { %v17632_v30 = vadd.f32 %v6364_v43, %v6204_v28  ;;  %v20952_v43 = vld [vmem:[#allocation36_spill] sm:$0xff] }
 0xb69   : > { %v6207_v55 = vmul.f32 %v6175_v57, %v20952_v43  ;;  %v20954_v57 = vld [vmem:[#allocation98_spill] sm:$0xff] }
 0xb6a   : > { %20948 = vst [vmem:[#allocation126_spill] sm:$0xff] %v17632_v30  ;;  %12755 = vmatprep.mubr.msk.f32.mxu1 %vm1225_vm0, %v17632_v30  ;;  %12811 = vmatprep.mubr.msk.f32.mxu0 %vm1225_vm0, %v17632_v30 }
 0xb6b   : > { %12756 = vmatmul.mubr.msk.f32.gmra.mrb[188].mxu1 %vm1225_vm0, %v17634_v21  ;;  %12812 = vmatmul.mubr.msk.f32.gmra.mrb[220].mxu0 %vm1225_vm0, %v17634_v21 }
 0xb70   : > { %v6301_v2 = vpop.permute.xlu0 %6300 }
 0xb71   : > { %v6366_v39 = vmul.f32 %v17206_v51, %v6301_v2  ;;  %v17667_v2 = vld [vmem:[%s20735_s19] ss:$0 sm:$0xff] }
 0xb73   : > { %v17647_v53 = vadd.f32 %v6366_v39, %v6206_v29 }
 0xb74   : > { %v17787_v11 = vpop.permute.xlu0 %7652 }
 0xb75   : > { %20951 = vst [vmem:[#allocation149_spill] sm:$0xff] %v17647_v53  ;;  %12758 = vmatprep.mubr.msk.f32.mxu1 %vm1225_vm0, %v17647_v53  ;;  %12814 = vmatprep.mubr.msk.f32.mxu0 %vm1225_vm0, %v17647_v53 }
 0xb78   : > { %v6303_v28 = vpop.permute.xlu1 %6302 }
 0xb79   : > { %v6367_v15 = vmul.f32 %v17201_v32, %v6303_v28 }
 0xb7b   : > { %v17656_v5 = vadd.f32 %v6367_v15, %v6207_v55  ;;  %v20956_v55 = vld [vmem:[#allocation35_spill] sm:$0xff] }
 0xb7d   : > { %20953 = vst [vmem:[#allocation150_spill] sm:$0xff] %v17656_v5  ;;  %12759 = vmatmul.mubr.msk.f32.gmra.mrb[190].mxu1 %vm1225_vm0, %v17656_v5  ;;  %12815 = vmatmul.mubr.msk.f32.gmra.mrb[222].mxu0 %vm1225_vm0, %v17656_v5 }
 0xbba   : > { %v12715_v51 = vpop.f32.mrb[160].mxu1  ;;  %v17662_v37 = vpop.f32.mrb[192].mxu0 }
 0xbbb   : > { %v6568_v29 = vadd.f32 %v17667_v2, %v12715_v51  ;;  %v6562_v39 = vpop.f32.mrb[161].mxu1  ;;  %v17670_v32 = vpop.f32.mrb[193].mxu0 }
 0xbbc   : > { %v6563_v15 = vadd.f32 %v17667_v2, %v6562_v39 }
 0xbbd   : > { %v17674_v28 = vadd.f32 %v6568_v29, %v20954_v57  ;;  %v20959_v29 = vld [vmem:[#allocation38_spill] sm:$0xff] }
 0xbbe   : > { %v17677_v50 = vadd.f32 %v6563_v15, %v20956_v55 }
 0xbbf   : > { %20955 = vst [vmem:[#allocation98_spill] sm:$0xff] %v17674_v28  ;;  %6792 = vperm.xlu1 %13390, %v17674_v28  }
 0xbc0   : > { %20957 = vst [vmem:[#allocation35_spill] sm:$0xff] %v17677_v50  ;;  %6787 = vperm.xlu0 %13375, %v17677_v50  }
 0xbc1   : > { %v12718_v43 = vpop.f32.mrb[162].mxu1  ;;  %v17681_v40 = vpop.f32.mrb[194].mxu0 }
 0xbc2   : > { %v6578_v51 = vadd.f32 %v17667_v2, %v12718_v43  ;;  %v6572_v44 = vpop.f32.mrb[163].mxu1  ;;  %v17684_v41 = vpop.f32.mrb[195].mxu0 }
 0xbc3   : > { %13391 = vset.pattern.permute.xlu1 %v20958_v16  ;;  %v6573_v15 = vadd.f32 %v17667_v2, %v6572_v44 }
 0xbc4   : > { %7014 = vperm.xlu1 %13391, %v17674_v28   ;;  %13392 = vset.pattern.permute.xlu0 %v20958_v16  ;;  %v17691_v39 = vadd.f32 %v6578_v51, %v20959_v29  ;;  %v20964_v51 = vld [vmem:[#allocation40_spill] sm:$0xff] }
 0xbc5   : > { %7010 = vperm.xlu0 %13392, %v17677_v50   ;;  %v17703_v1 = vadd.f32 %v6573_v15, %v20962_v63 }
 0xbc6   : > { %20960 = vst [vmem:[#allocation38_spill] sm:$0xff] %v17691_v39 }
 0xbc7   : > { %20963 = vst [vmem:[#allocation37_spill] sm:$0xff] %v17703_v1 }
 0xbc8   : > { %v12721_v57 = vpop.f32.mrb[164].mxu1  ;;  %v17694_v55 = vpop.f32.mrb[196].mxu0  ;;  %7022 = vperm.xlu1 %13391, %v17691_v39  }
 0xbc9   : > { %v6582_v43 = vpop.f32.mrb[165].mxu1  ;;  %v17697_v8 = vpop.f32.mrb[197].mxu0  ;;  %13393 = vset.pattern.permute.xlu0 %v20961_v58 }
 0xbca   : > { %v6583_v13 = vadd.f32 %v17667_v2, %v6582_v43  ;;  %6802 = vperm.xlu0 %13393, %v17691_v39   ;;  %v6588_v43 = vadd.f32 %v17667_v2, %v12721_v57  ;;  %v20968_v57 = vld [vmem:[#allocation42_spill] sm:$0xff] }
 0xbcc   : > { %v17706_v29 = vadd.f32 %v6583_v13, %v20964_v51  ;;  %v12724_v44 = vpop.f32.mrb[166].mxu1  ;;  %v17708_v62 = vpop.f32.mrb[198].mxu0  ;;  %13394 = vset.pattern.permute.xlu1 %v20961_v58  ;;  %v20966_v51 = vld [vmem:[#allocation39_spill] sm:$0xff] }
 0xbcd   : > { %v6592_v18 = vpop.f32.mrb[167].mxu1  ;;  %v17711_v19 = vpop.f32.mrb[199].mxu0  ;;  %6797 = vperm.xlu1 %13394, %v17703_v1   ;;  %v6598_v63 = vadd.f32 %v17667_v2, %v12724_v44  ;;  %v17724_v36 = vadd.f32 %v6588_v43, %v20966_v51 }
 0xbce   : > { %20965 = vst [vmem:[#allocation40_spill] sm:$0xff] %v17706_v29  ;;  %6807 = vperm.xlu0 %13393, %v17706_v29   ;;  %v6593_v28 = vadd.f32 %v17667_v2, %v6592_v18 }
 0xbcf   : > { %20967 = vst [vmem:[#allocation39_spill] sm:$0xff] %v17724_v36  ;;  %v17729_v42 = vadd.f32 %v6598_v63, %v20968_v57 }
 0xbd1   : > { %13395 = vset.pattern.permute.xlu1 %v20958_v16  ;;  %20969 = vst [vmem:[#allocation42_spill] sm:$0xff] %v17729_v42 }
 0xbd2   : > { %7018 = vperm.xlu1 %13395, %v17703_v1   ;;  %13398 = vset.pattern.permute.xlu0 %v20958_v16  ;;  %v20970_v1 = vld [vmem:[#allocation44_spill] sm:$0xff] }
 0xbd3   : > { %7026 = vperm.xlu0 %13398, %v17706_v29  }
 0xbd4   : > { %v12727_v13 = vpop.f32.mrb[168].mxu1  ;;  %v17721_v15 = vpop.f32.mrb[200].mxu0 }
 0xbd5   : > { %v6602_v47 = vpop.f32.mrb[169].mxu1  ;;  %v17726_v60 = vpop.f32.mrb[201].mxu0 }
 0xbd6   : > { %v6603_v44 = vadd.f32 %v17667_v2, %v6602_v47  ;;  %13396 = vset.pattern.permute.xlu1 %v20961_v58 }
 0xbd7   : > { %6812 = vperm.xlu1 %13396, %v17724_v36   ;;  %13399 = vset.pattern.permute.xlu0 %v20961_v58 }
 0xbd8   : > { %v12730_v49 = vpop.f32.mrb[170].mxu1  ;;  %v17735_v29 = vpop.f32.mrb[202].mxu0  ;;  %6822 = vperm.xlu0 %13399, %v17729_v42   ;;  %v17741_v39 = vadd.f32 %v6603_v44, %v20970_v1  ;;  %v20972_v1 = vld [vmem:[#allocation41_spill] sm:$0xff] }
 0xbd9   : > { %v6612_v43 = vpop.f32.mrb[171].mxu1  ;;  %v17738_v51 = vpop.f32.mrb[203].mxu0  ;;  %v6618_v7 = vadd.f32 %v17667_v2, %v12730_v49  ;;  %v17758_v44 = vadd.f32 %v6593_v28, %v20972_v1 }
 0xbda   : > { %20971 = vst [vmem:[#allocation44_spill] sm:$0xff] %v17741_v39 }
 0xbdb   : > { %13397 = vset.pattern.permute.xlu1 %v20958_v16  ;;  %20973 = vst [vmem:[#allocation41_spill] sm:$0xff] %v17758_v44  ;;  %v17763_v9 = vadd.f32 %v6618_v7, %v20974_v61  ;;  %v20978_v61 = vld [vmem:[#allocation45_spill] sm:$0xff] }
 0xbdc   : > { %v17744_v47 = vpop.f32.mrb[172].mxu1  ;;  %v17746_v63 = vpop.f32.mrb[204].mxu0  ;;  %7030 = vperm.xlu1 %13397, %v17724_v36   ;;  %6827 = vperm.xlu0 %13399, %v17741_v39  }
 0xbdd   : > { %v6622_v57 = vpop.f32.mrb[173].mxu1  ;;  %v17750_v50 = vpop.f32.mrb[205].mxu0  ;;  %20975 = vst [vmem:[#allocation46_spill] sm:$0xff] %v17763_v9 }
 0xbde   : > { %v6623_v34 = vadd.f32 %v17667_v2, %v6622_v57 }
 0xbe0   : > { %7038 = vperm.xlu1 %13397, %v17729_v42   ;;  %13404 = vset.pattern.permute.xlu0 %v20958_v16  ;;  %v17779_v7 = vadd.f32 %v6623_v34, %v20978_v61  ;;  %v6608_v42 = vadd.f32 %v17667_v2, %v12727_v13  ;;  %v17797_v34 = vpop.permute.xlu0 %7654  ;;  %v20982_v61 = vld [vmem:[#allocation107_spill] sm:$0xff] }
 0xbe1   : > { %7042 = vperm.xlu0 %13404, %v17741_v39  }
 0xbe2   : > { %20979 = vst [vmem:[#allocation45_spill] sm:$0xff] %v17779_v7  ;;  %v17790_v12 = vadd.f32 %v6608_v42, %v20980_v3 }
 0xbe3   : > { %v12736_v4 = vpop.f32.mrb[174].mxu1  ;;  %v17760_v36 = vpop.f32.mrb[206].mxu0 }
 0xbe4   : > { %13400 = vset.pattern.permute.xlu1 %v20961_v58  ;;  %v17767_v18 = vpop.f32.mrb[175].mxu1  ;;  %v17769_v49 = vpop.f32.mrb[207].mxu0  ;;  %20981 = vst [vmem:[#allocation43_spill] sm:$0xff] %v17790_v12  ;;  %v6638_v17 = vadd.f32 %v17667_v2, %v12736_v4 }
 0xbe5   : > { %20976 = vst [vmem:[#allocation151_spill] sm:$0xff] %v17769_v49  ;;  %6817 = vperm.xlu1 %13400, %v17758_v44   ;;  %13405 = vset.pattern.permute.xlu0 %v20961_v58 }
 0xbe6   : > { %6842 = vperm.xlu0 %13405, %v17763_v9  }
 0xbe7   : > { %v17774_v28 = vpop.f32.mrb[176].mxu1  ;;  %v17776_v1 = vpop.f32.mrb[208].mxu0 }
 0xbe8   : > { %20977 = vst [vmem:[#allocation152_spill] sm:$0xff] %v17776_v1  ;;  %v6642_v57 = vpop.f32.mrb[177].mxu1  ;;  %v17781_v39 = vpop.f32.mrb[209].mxu0 }
 0xbe9   : > { %13401 = vset.pattern.permute.xlu1 %v20958_v16  ;;  %v6643_v27 = vadd.f32 %v17667_v2, %v6642_v57  ;;  %v17817_v57 = vpop.permute.xlu0 %7660 }
 0xbea   : > { %7034 = vperm.xlu1 %13401, %v17758_v44   ;;  %6847 = vperm.xlu0 %13405, %v17779_v7   ;;  %v17800_v44 = vadd.f32 %v6638_v17, %v20982_v61  ;;  %v6613_v17 = vadd.f32 %v17667_v2, %v6612_v43  ;;  %v20988_v61 = vld [vmem:[#allocation106_spill] sm:$0xff] }
 0xbec   : > { %20983 = vst [vmem:[#allocation107_spill] sm:$0xff] %v17800_v44  ;;  %v17822_v0 = vadd.f32 %v6613_v17, %v20988_v61 }
 0xbee   : > { %13402 = vset.pattern.permute.xlu1 %v20961_v58  ;;  %13410 = vset.pattern.permute.xlu0 %v20958_v16  ;;  %20989 = vst [vmem:[#allocation106_spill] sm:$0xff] %v17822_v0 }
 0xbef   : > { %6832 = vperm.xlu1 %13402, %v17790_v12   ;;  %7058 = vperm.xlu0 %13410, %v17779_v7   ;;  %v20986_v7 = vld [vmem:[#allocation111_spill] sm:$0xff] }
 0xbf0   : > { %v17814_v52 = vadd.f32 %v6643_v27, %v20986_v7  ;;  %v17829_v27 = vpop.permute.xlu0 %7658 }
 0xbf1   : > { %v12742_v13 = vpop.f32.mrb[178].mxu1 }
 0xbf2   : > { %v17803_v3 = vpop.f32.mrb[210].mxu0  ;;  %v17805_v42 = vpop.f32.mrb[179].mxu1  ;;  %20987 = vst [vmem:[#allocation111_spill] sm:$0xff] %v17814_v52  ;;  %v6658_v6 = vadd.f32 %v17667_v2, %v12742_v13  ;;  %v6628_v13 = vadd.f32 %v17667_v2, %v17744_v47 }
 0xbf3   : > { %20984 = vst [vmem:[#allocation153_spill] sm:$0xff] %v17803_v3  ;;  %v17807_v4 = vpop.f32.mrb[211].mxu0  ;;  %13403 = vset.pattern.permute.xlu1 %v20958_v16  ;;  %13411 = vset.pattern.permute.xlu0 %v20961_v58 }
 0xbf4   : > { %20985 = vst [vmem:[#allocation154_spill] sm:$0xff] %v17807_v4  ;;  %7046 = vperm.xlu1 %13403, %v17790_v12   ;;  %6862 = vperm.xlu0 %13411, %v17800_v44   ;;  %v20991_v12 = vld [vmem:[#allocation117_spill] sm:$0xff] }
 0xbf8   : > { %7054 = vperm.xlu1 %13403, %v17763_v9   ;;  %6867 = vperm.xlu0 %13411, %v17814_v52   ;;  %v17836_v9 = vadd.f32 %v6658_v6, %v20991_v12  ;;  %v17850_v6 = vpop.permute.xlu0 %7662  ;;  %v20997_v12 = vld [vmem:[#allocation115_spill] sm:$0xff] }
 0xbf9   : > { %20996 = vst [vmem:[#allocation157_spill] sm:$0xff] %v17850_v6  ;;  %v17853_v45 = vadd.f32 %v6628_v13, %v20997_v12  ;;  %v6633_v12 = vadd.f32 %v17667_v2, %v17767_v18  ;;  %v6648_v18 = vadd.f32 %v17667_v2, %v17774_v28  ;;  %v21012_v28 = vld [vmem:[#allocation125_spill] sm:$0xff]  ;;  %v21042_v6 = vld [vmem:[#allocation146_spill] sm:$0xff] }
 0xbfa   : > { %20992 = vst [vmem:[#allocation117_spill] sm:$0xff] %v17836_v9 }
 0xbfb   : > { %20998 = vst [vmem:[#allocation115_spill] sm:$0xff] %v17853_v45 }
 0xbfc   : > { %13406 = vset.pattern.permute.xlu1 %v20961_v58  ;;  %13416 = vset.pattern.permute.xlu0 %v20958_v16  ;;  %v17860_v47 = vpop.permute.xlu0 %7668 }
 0xbfd   : > { %6837 = vperm.xlu1 %13406, %v17822_v0   ;;  %7074 = vperm.xlu0 %13416, %v17814_v52   ;;  %v20994_v52 = vld [vmem:[#allocation119_spill] sm:$0xff]  ;;  %20999 = vst [vmem:[#allocation158_spill] sm:$0xff] %v17860_v47  ;;  %v21035_v47 = vld [vmem:[#allocation54_spill] sm:$0xff] }
 0xbff   : > { %v17831_v43 = vpop.f32.mrb[180].mxu1  ;;  %v17833_v7 = vpop.f32.mrb[212].mxu0 }
 0xc00   : > { %20990 = vst [vmem:[#allocation155_spill] sm:$0xff] %v17833_v7  ;;  %v6662_v17 = vpop.f32.mrb[181].mxu1  ;;  %v17838_v61 = vpop.f32.mrb[213].mxu0 }
 0xc01   : > { %20993 = vst [vmem:[#allocation156_spill] sm:$0xff] %v17838_v61  ;;  %v6663_v24 = vadd.f32 %v17667_v2, %v6662_v17  ;;  %13407 = vset.pattern.permute.xlu1 %v20958_v16  ;;  %13417 = vset.pattern.permute.xlu0 %v20961_v58 }
 0xc02   : > { %7050 = vperm.xlu1 %13407, %v17822_v0   ;;  %6882 = vperm.xlu0 %13417, %v17836_v9  }
 0xc03   : > { %v17848_v14 = vadd.f32 %v6663_v24, %v20994_v52 }
 0xc05   : > { %20995 = vst [vmem:[#allocation119_spill] sm:$0xff] %v17848_v14 }
 0xc06   : > { %13408 = vset.pattern.permute.xlu1 %v20961_v58  ;;  %6887 = vperm.xlu0 %13417, %v17848_v14  }
 0xc07   : > { %6852 = vperm.xlu1 %13408, %v17853_v45  }
 0xc0a   : > { %7688 = vrot.lane.b32.xlu0 %v17530_v56, %s14513_s28  ;;  %v17874_v56 = vpop.permute.xlu0 %7666 }
 0xc0b   : > { %13409 = vset.pattern.permute.xlu1 %v20958_v16 }
 0xc0c   : > { %7062 = vperm.xlu1 %13409, %v17853_v45   ;;  %v21004_v45 = vld [vmem:[#allocation121_spill] sm:$0xff] }
 0xc0d   : > { %v17864_v24 = vpop.f32.mrb[182].mxu1  ;;  %v17866_v52 = vpop.f32.mrb[214].mxu0  ;;  %v17880_v20 = vadd.f32 %v6633_v12, %v21004_v45 }
 0xc0e   : > { %21000 = vst [vmem:[#allocation159_spill] sm:$0xff] %v17866_v52  ;;  %v6672_v17 = vpop.f32.mrb[183].mxu1  ;;  %v17868_v13 = vpop.f32.mrb[215].mxu0  ;;  %v21020_v52 = vld [vmem:[#allocation127_spill] sm:$0xff] }
 0xc0f   : > { %21001 = vst [vmem:[#allocation160_spill] sm:$0xff] %v17868_v13  ;;  %v6673_v0 = vadd.f32 %v17667_v2, %v6672_v17  ;;  %21005 = vst [vmem:[#allocation121_spill] sm:$0xff] %v17880_v20  ;;  %v17885_v33 = vpop.permute.xlu0 %7670 }
 0xc10   : > { %7070 = vperm.xlu1 %13409, %v17800_v44   ;;  %21006 = vst [vmem:[#allocation161_spill] sm:$0xff] %v17885_v33  ;;  %v21010_v44 = vld [vmem:[#allocation124_spill] sm:$0xff] }
 0xc11   : > { %v17877_v22 = vadd.f32 %v6673_v0, %v21002_v59  ;;  %v17902_v25 = vadd.f32 %v6648_v18, %v21010_v44  ;;  %v6653_v44 = vadd.f32 %v17667_v2, %v17805_v42  ;;  %v21032_v33 = vld [vmem:[#allocation136_spill] sm:$0xff] }
 0xc13   : > { %21003 = vst [vmem:[#allocation122_spill] sm:$0xff] %v17877_v22  ;;  %6897 = vperm.xlu0 %13417, %v17877_v22   ;;  %v17899_v12 = vpop.permute.xlu0 %7676  ;;  %21011 = vst [vmem:[#allocation124_spill] sm:$0xff] %v17902_v25 }
 0xc14   : > { %13412 = vset.pattern.permute.xlu1 %v20961_v58  ;;  %21009 = vst [vmem:[#allocation164_spill] sm:$0xff] %v17899_v12  ;;  %v21030_v12 = vld [vmem:[#allocation138_spill] sm:$0xff] }
 0xc15   : > { %6857 = vperm.xlu1 %13412, %v17880_v20  }
 0xc17   : > { %7690 = vrot.lane.b32.xlu0 %v17552_v38, %s14513_s28 }
 0xc19   : > { %13413 = vset.pattern.permute.xlu1 %v20958_v16 }
 0xc1a   : > { %7066 = vperm.xlu1 %13413, %v17880_v20   ;;  %v17911_v20 = vpop.permute.xlu1 %7650 }
 0xc1b   : > { %v17893_v59 = vpop.f32.mrb[184].mxu1  ;;  %v17895_v45 = vpop.f32.mrb[216].mxu0 }
 0xc1c   : > { %21007 = vst [vmem:[#allocation162_spill] sm:$0xff] %v17895_v45  ;;  %v6682_v0 = vpop.f32.mrb[185].mxu1  ;;  %v17897_v17 = vpop.f32.mrb[217].mxu0 }
 0xc1d   : > { %21008 = vst [vmem:[#allocation163_spill] sm:$0xff] %v17897_v17  ;;  %v6683_v38 = vadd.f32 %v17667_v2, %v6682_v0  ;;  %v17913_v45 = vpop.permute.xlu0 %7674  ;;  %v21015_v0 = vld [vmem:[#allocation129_spill] sm:$0xff] }
 0xc1e   : > { %13414 = vset.pattern.permute.xlu1 %v20961_v58 }
 0xc1f   : > { %v17907_v48 = vadd.f32 %v6683_v38, %v21012_v28  ;;  %6872 = vperm.xlu1 %13414, %v17902_v25   ;;  %v17922_v38 = vpop.permute.xlu1 %7656  ;;  %v17927_v28 = vadd.f32 %v6653_v44, %v21015_v0 }
 0xc21   : > { %21013 = vst [vmem:[#allocation125_spill] sm:$0xff] %v17907_v48  ;;  %6907 = vperm.xlu0 %13417, %v17907_v48   ;;  %v17924_v18 = vpop.permute.xlu0 %7678  ;;  %21016 = vst [vmem:[#allocation129_spill] sm:$0xff] %v17927_v28 }
 0xc22   : > { %21014 = vst [vmem:[#allocation165_spill] sm:$0xff] %v17924_v18 }
 0xc23   : > { %13415 = vset.pattern.permute.xlu1 %v20958_v16 }
 0xc24   : > { %7078 = vperm.xlu1 %13415, %v17902_v25   ;;  %v17931_v25 = vpop.permute.xlu1 %7664 }
 0xc25   : > { %7692 = vrot.lane.b32.xlu0 %v17554_v31, %s14513_s28  ;;  %v17933_v17 = vpop.permute.xlu0 %7684 }
 0xc26   : > { %21017 = vst [vmem:[#allocation166_spill] sm:$0xff] %v17933_v17 }
 0xc28   : > { %7086 = vperm.xlu1 %13415, %v17836_v9   ;;  %v6668_v9 = vadd.f32 %v17667_v2, %v17831_v43  ;;  %v17949_v17 = vpop.permute.xlu1 %7672 }
 0xc29   : > { %21022 = vst [vmem:[#allocation169_spill] sm:$0xff] %v17949_v17  ;;  %v17951_v7 = vpop.permute.xlu0 %7682 }
 0xc2c   : > { %13418 = vset.pattern.permute.xlu1 %v20961_v58  ;;  %v17961_v43 = vpop.permute.xlu1 %7680 }
 0xc2d   : > { %6877 = vperm.xlu1 %13418, %v17927_v28   ;;  %21025 = vst [vmem:[#allocation170_spill] sm:$0xff] %v17961_v43 }
 0xc30   : > { %v17935_v31 = vpop.f32.mrb[186].mxu1  ;;  %v17937_v42 = vpop.f32.mrb[218].mxu0 }
 0xc31   : > { %21018 = vst [vmem:[#allocation167_spill] sm:$0xff] %v17937_v42  ;;  %13419 = vset.pattern.permute.xlu1 %v20958_v16  ;;  %v6692_v13 = vpop.f32.mrb[187].mxu1  ;;  %v17942_v44 = vpop.f32.mrb[219].mxu0  ;;  %v21023_v42 = vld [vmem:[#allocation134_spill] sm:$0xff] }
 0xc32   : > { %21019 = vst [vmem:[#allocation168_spill] sm:$0xff] %v17942_v44  ;;  %v6693_v0 = vadd.f32 %v17667_v2, %v6692_v13  ;;  %7082 = vperm.xlu1 %13419, %v17927_v28   ;;  %v17954_v18 = vadd.f32 %v6668_v9, %v21023_v42  ;;  %v6678_v42 = vadd.f32 %v17667_v2, %v17864_v24  ;;  %v21034_v24 = vld [vmem:[#allocation56_spill] sm:$0xff] }
 0xc34   : > { %v17947_v61 = vadd.f32 %v6693_v0, %v21020_v52  ;;  %21024 = vst [vmem:[#allocation134_spill] sm:$0xff] %v17954_v18  ;;  %v17963_v52 = vpop.permute.xlu0 %7686 }
 0xc35   : > { %21026 = vst [vmem:[#allocation171_spill] sm:$0xff] %v17963_v52 }
 0xc36   : > { %21021 = vst [vmem:[#allocation127_spill] sm:$0xff] %v17947_v61  ;;  %13420 = vset.pattern.permute.xlu1 %v20961_v58  ;;  %6917 = vperm.xlu0 %13417, %v17947_v61  }
 0xc37   : > { %6892 = vperm.xlu1 %13420, %v17954_v18  }
 0xc3a   : > { %7694 = vrot.lane.b32.xlu0 %v17578_v26, %s14513_s28  ;;  %v21029_v26 = vld [vmem:[#allocation52_spill] sm:$0xff] }
 0xc3b   : > { %13421 = vset.pattern.permute.xlu1 %v20958_v16 }
 0xc3c   : > { %7094 = vperm.xlu1 %13421, %v17954_v18   ;;  %v17979_v18 = vadd.f32 %v6678_v42, %v21030_v12 }
 0xc3e   : > { %v17967_v13 = vpop.f32.mrb[188].mxu1  ;;  %v17969_v9 = vpop.f32.mrb[220].mxu0  ;;  %21031 = vst [vmem:[#allocation138_spill] sm:$0xff] %v17979_v18 }
 0xc3f   : > { %21027 = vst [vmem:[#allocation172_spill] sm:$0xff] %v17969_v9  ;;  %v6793_v0 = vpop.permute.xlu1 %6792  ;;  %v6788_v28 = vpop.permute.xlu0 %6787 }
 0xc40   : > { %v6702_v44 = vpop.f32.mrb[189].mxu1  ;;  %v17973_v4 = vpop.f32.mrb[221].mxu0  ;;  %7090 = vperm.xlu1 %13421, %v17848_v14   ;;  %v6945_v52 = vmul.f32 %v6788_v28, %v21029_v26 }
 0xc41   : > { %21028 = vst [vmem:[#allocation173_spill] sm:$0xff] %v17973_v4  ;;  %v6703_v43 = vadd.f32 %v17667_v2, %v6702_v44 }
 0xc42   : > { %v6977_v1 = vadd.f32 %v6945_v52, %v21034_v24  ;;  %v6688_v52 = vadd.f32 %v17667_v2, %v17893_v59  ;;  %v21038_v24 = vld [vmem:[#allocation140_spill] sm:$0xff] }
 0xc43   : > { %v17982_v3 = vadd.f32 %v6703_v43, %v21032_v33  ;;  %v7015_v9 = vpop.permute.xlu1 %7014 }
 0xc44   : > { %v7011_v17 = vpop.permute.xlu0 %7010  ;;  %13422 = vset.pattern.permute.xlu1 %v20961_v58  ;;  %v18006_v14 = vadd.f32 %v6688_v52, %v21038_v24 }
 0xc45   : > { %21033 = vst [vmem:[#allocation136_spill] sm:$0xff] %v17982_v3  ;;  %v7137_v4 = vmul.f32 %v7011_v17, %v21035_v47  ;;  %6927 = vperm.xlu0 %13417, %v17982_v3   ;;  %6902 = vperm.xlu1 %13422, %v17979_v18  }
 0xc46   : > { %21039 = vst [vmem:[#allocation140_spill] sm:$0xff] %v18006_v14 }
 0xc47   : > { %v17989_v28 = vadd.f32 %v7137_v4, %v6977_v1  ;;  %v7023_v44 = vpop.permute.xlu1 %7022 }
 0xc49   : > { %21036 = vst [vmem:[#allocation54_spill] sm:$0xff] %v17989_v28  ;;  %v7426_v12 = vadd.f32 %v17670_v32, %v17989_v28  ;;  %7698 = vrot.lane.b32.xlu0 %v17596_v54, %s14513_s28  ;;  %v6803_v33 = vpop.permute.xlu0 %6802  ;;  %13423 = vset.pattern.permute.xlu1 %v20958_v16 }
 0xc4a   : > { %7102 = vperm.xlu1 %13423, %v17979_v18  }
 0xc4b   : > { %v11580_v43 = vmul.f32 -1.442695, %v7426_v12 }
 0xc4c   : > { %v6798_v17 = vpop.permute.xlu1 %6797 }
 0xc4d   : > { %13922 = vpow2.f32 %v11580_v43  ;;  %v6808_v1 = vpop.permute.xlu0 %6807  ;;  %v21041_v43 = vld [vmem:[#allocation60_spill] sm:$0xff] }
 0xc4e   : > { %7098 = vperm.xlu1 %13423, %v17877_v22   ;;  %v6949_v4 = vmul.f32 %v6808_v1, %v21029_v26 }
 0xc50   : > { %v18001_v32 = vpop.f32.mrb[190].mxu1  ;;  %v18003_v42 = vpop.f32.mrb[222].mxu0  ;;  %v6981_v22 = vadd.f32 %v6949_v4, %v21041_v43 }
 0xc51   : > { %21037 = vst [vmem:[#allocation174_spill] sm:$0xff] %v18003_v42  ;;  %v6712_v54 = vpop.f32.mrb[191].mxu1  ;;  %v18008_v18 = vpop.f32.mrb[223].mxu0 }
 0xc52   : > { %21040 = vst [vmem:[#allocation175_spill] sm:$0xff] %v18008_v18  ;;  %v6713_v12 = vadd.f32 %v17667_v2, %v6712_v54  ;;  %v7019_v28 = vpop.permute.xlu1 %7018  ;;  %v7027_v59 = vpop.permute.xlu0 %7026  ;;  %13424 = vset.pattern.permute.xlu1 %v20961_v58 }
 0xc53   : > { %v7141_v1 = vmul.f32 %v7027_v59, %v21035_v47  ;;  %6912 = vperm.xlu1 %13424, %v18006_v14  }
 0xc54   : > { %v18016_v42 = vadd.f32 %v6713_v12, %v21042_v6 }
 0xc55   : > { %v18018_v24 = vadd.f32 %v7141_v1, %v6981_v22  ;;  %v6698_v22 = vadd.f32 %v17667_v2, %v17935_v31  ;;  %v6946_v1 = vmul.f32 %v6793_v0, %v21029_v26  ;;  %v21048_v0 = vld [vmem:[#allocation64_spill] sm:$0xff] }
 0xc56   : > { %21043 = vst [vmem:[#allocation146_spill] sm:$0xff] %v18016_v42  ;;  %6937 = vperm.xlu0 %13417, %v18016_v42   ;;  %v6813_v52 = vpop.permute.xlu1 %6812 }
 0xc57   : > { %21044 = vst [vmem:[#allocation176_spill] sm:$0xff] %v18018_v24  ;;  %v13923_v18 = vpop.eup %13922  ;;  %v7430_v54 = vadd.f32 %v17697_v8, %v18018_v24  ;;  %v6823_v49 = vpop.permute.xlu0 %6822  ;;  %13425 = vset.pattern.permute.xlu1 %v20958_v16 }
 0xc58   : > { %v7554_v4 = vadd.f32 1.0, %v13923_v18  ;;  %7110 = vperm.xlu1 %13425, %v18006_v14   ;;  %v7138_v18 = vmul.f32 %v7015_v9, %v21035_v47  ;;  %v21047_v14 = vld [vmem:[#allocation55_spill] sm:$0xff] }
 0xc59   : > { %v11584_v59 = vmul.f32 -1.442695, %v7430_v54  ;;  %v6948_v54 = vmul.f32 %v6803_v33, %v21029_v26  ;;  %v21049_v33 = vld [vmem:[#allocation57_spill] sm:$0xff] }
 0xc5a   : > { %13924 = vrcp.f32 %v7554_v4  ;;  %7700 = vrot.lane.b32.xlu0 %v17598_v10, %s14513_s28  ;;  %v21045_v4 = vld [vmem:[#allocation142_spill] sm:$0xff]  ;;  %v6978_v10 = vadd.f32 %v6946_v1, %v21047_v14  ;;  %v7140_v14 = vmul.f32 %v7023_v44, %v21035_v47 }
 0xc5b   : > { %v6828_v6 = vpop.permute.xlu0 %6827  ;;  %v7031_v12 = vpop.permute.xlu1 %7030  ;;  %13926 = vpow2.f32 %v11584_v59  ;;  %v18037_v43 = vadd.f32 %v6698_v22, %v21045_v4  ;;  %v6947_v22 = vmul.f32 %v6798_v17, %v21029_v26  ;;  %v21051_v44 = vld [vmem:[#allocation58_spill] sm:$0xff] }
 0xc5c   : > { %7106 = vperm.xlu1 %13425, %v17907_v48   ;;  %v6953_v8 = vmul.f32 %v6828_v6, %v21029_v26  ;;  %v18044_v9 = vadd.f32 %v7138_v18, %v6978_v10  ;;  %v6980_v48 = vadd.f32 %v6948_v54, %v21049_v33 }
 0xc5d   : > { %21046 = vst [vmem:[#allocation142_spill] sm:$0xff] %v18037_v43 }
 0xc5e   : > { %7702 = vrot.lane.b32.xlu0 %v17614_v46, %s14513_s28  ;;  %v6985_v59 = vadd.f32 %v6953_v8, %v21048_v0 }
 0xc5f   : > { %v7039_v31 = vpop.permute.xlu1 %7038 }
 0xc60   : > { %v7043_v24 = vpop.permute.xlu0 %7042  ;;  %13426 = vset.pattern.permute.xlu1 %v20961_v58 }
 0xc61   : > { %v7145_v6 = vmul.f32 %v7043_v24, %v21035_v47  ;;  %6922 = vperm.xlu1 %13426, %v18037_v43   ;;  %v7139_v24 = vmul.f32 %v7019_v28, %v21035_v47  ;;  %v6979_v28 = vadd.f32 %v6947_v22, %v21051_v44 }
 0xc62   : > { %7704 = vrot.lane.b32.xlu0 %v17616_v23, %s14513_s28 }
 0xc63   : > { %v18050_v4 = vadd.f32 %v7145_v6, %v6985_v59  ;;  %v7427_v59 = vadd.f32 %v17662_v37, %v18044_v9  ;;  %v18065_v6 = vadd.f32 %v7140_v14, %v6980_v48  ;;  %v18071_v23 = vadd.f32 %v7139_v24, %v6979_v28  ;;  %v21052_v14 = vld [vmem:[#allocation59_spill] sm:$0xff]  ;;  %v21054_v28 = vld [vmem:[#allocation61_spill] sm:$0xff] }
 0xc64   : > { %v18052_v1 = vpop.eup %13924  ;;  %v6818_v8 = vpop.permute.xlu1 %6817 }
 0xc65   : > { %21050 = vst [vmem:[#allocation177_spill] sm:$0xff] %v18052_v1  ;;  %v7434_v10 = vadd.f32 %v17726_v60, %v18050_v4  ;;  %v18058_v18 = vpop.permute.xlu0 %6842  ;;  %13427 = vset.pattern.permute.xlu1 %v20958_v16  ;;  %v7746_v54 = vmul.f32 %v18052_v1, %v17911_v20  ;;  %v13927_v17 = vpop.eup %13926  ;;  %v6950_v60 = vmul.f32 %v6813_v52, %v21029_v26  ;;  %v11581_v37 = vmul.f32 -1.442695, %v7427_v59 }
 0xc66   : > { %7118 = vperm.xlu1 %13427, %v18037_v43   ;;  %v7558_v33 = vadd.f32 1.0, %v13927_v17  ;;  %v7142_v20 = vmul.f32 %v7031_v12, %v21035_v47  ;;  %v7429_v48 = vadd.f32 %v17681_v40, %v18065_v6  ;;  %v6708_v12 = vadd.f32 %v17667_v2, %v17967_v13  ;;  %v21053_v17 = vld [vmem:[#allocation70_spill] sm:$0xff]  ;;  %v21083_v43 = vld [vmem:[#allocation81_spill] sm:$0xff] }
 0xc67   : > { %v11588_v0 = vmul.f32 -1.442695, %v7434_v10  ;;  %7810 = vrot.lane.b32.xlu0 %v7746_v54, %s14514_s30  ;;  %v6982_v22 = vadd.f32 %v6950_v60, %v21052_v14  ;;  %v7428_v24 = vadd.f32 %v17684_v41, %v18071_v23  ;;  %v7144_v54 = vmul.f32 %v7039_v31, %v21035_v47  ;;  %v21055_v14 = vld [vmem:[#allocation147_spill] sm:$0xff] }
 0xc68   : > { %13928 = vrcp.f32 %v7558_v33  ;;  %v6952_v33 = vmul.f32 %v6823_v49, %v21029_v26  ;;  %v11583_v10 = vmul.f32 -1.442695, %v7429_v48  ;;  %v6951_v13 = vmul.f32 %v6818_v8, %v21029_v26 }
 0xc69   : > { %v6848_v46 = vpop.permute.xlu0 %6847  ;;  %v7035_v1 = vpop.permute.xlu1 %7034  ;;  %13930 = vpow2.f32 %v11588_v0  ;;  %v18087_v40 = vadd.f32 %v7142_v20, %v6982_v22  ;;  %v18096_v41 = vadd.f32 %v6708_v12, %v21055_v14  ;;  %v11582_v20 = vmul.f32 -1.442695, %v7428_v24  ;;  %v21057_v12 = vld [vmem:[#allocation62_spill] sm:$0xff] }
 0xc6a   : > { %7696 = vrot.lane.b32.xlu1 %v17580_v35, %s14513_s28  ;;  %v6957_v52 = vmul.f32 %v6848_v46, %v21029_v26  ;;  %13932 = vpow2.f32 %v11581_v37  ;;  %v6984_v60 = vadd.f32 %v6952_v33, %v21054_v28  ;;  %v7143_v22 = vmul.f32 %v7035_v1, %v21035_v47 }
 0xc6b   : > { %7706 = vrot.lane.b32.xlu0 %v17632_v30, %s14513_s28  ;;  %21056 = vst [vmem:[#allocation147_spill] sm:$0xff] %v18096_v41  ;;  %v7431_v37 = vadd.f32 %v17694_v55, %v18087_v40  ;;  %13934 = vpow2.f32 %v11583_v10  ;;  %v6983_v24 = vadd.f32 %v6951_v13, %v21057_v12 }
 0xc6c   : > { %v6989_v59 = vadd.f32 %v6957_v52, %v21053_v17  ;;  %v18102_v48 = vadd.f32 %v7144_v54, %v6984_v60  ;;  %13936 = vpow2.f32 %v11582_v20  ;;  %v21058_v60 = vld [vmem:[#allocation63_spill] sm:$0xff] }
 0xc6e   : > { %v7059_v0 = vpop.permute.xlu0 %7058  ;;  %7114 = vperm.xlu1 %13427, %v17947_v61   ;;  %v6833_v46 = vpop.permute.xlu1 %6832  ;;  %v21086_v61 = vld [vmem:[#allocation155_spill] sm:$0xff] }
 0xc6f   : > { %v7149_v49 = vmul.f32 %v7059_v0, %v21035_v47  ;;  %v6954_v52 = vmul.f32 %v6833_v46, %v21029_v26  ;;  %v11585_v0 = vmul.f32 -1.442695, %v7431_v37 }
 0xc71   : > { %v18100_v31 = vadd.f32 %v7149_v49, %v6989_v59  ;;  %v7433_v59 = vadd.f32 %v17708_v62, %v18102_v48  ;;  %v18120_v49 = vadd.f32 %v7143_v22, %v6983_v24  ;;  %v6986_v28 = vadd.f32 %v6954_v52, %v21058_v60  ;;  %v21059_v24 = vld [vmem:[#allocation65_spill] sm:$0xff] }
 0xc72   : > { %13428 = vset.pattern.permute.xlu1 %v20961_v58  ;;  %v18107_v33 = vpop.eup %13928 }
 0xc73   : > { %v7438_v8 = vadd.f32 %v17750_v50, %v18100_v31  ;;  %v18111_v14 = vpop.permute.xlu0 %6862  ;;  %6932 = vperm.xlu1 %13428, %v18096_v41   ;;  %v7047_v55 = vpop.permute.xlu1 %7046  ;;  %v7750_v1 = vmul.f32 %v18107_v33, %v17829_v27  ;;  %v6956_v27 = vmul.f32 %v18058_v18, %v21029_v26  ;;  %v11587_v37 = vmul.f32 -1.442695, %v7433_v59 }
 0xc74   : > { %v7146_v10 = vmul.f32 %v7047_v55, %v21035_v47  ;;  %v13931_v54 = vpop.eup %13930  ;;  %v7432_v22 = vadd.f32 %v17711_v19, %v18120_v49  ;;  %v6718_v18 = vadd.f32 %v17667_v2, %v18001_v32  ;;  %v21060_v19 = vld [vmem:[#allocation77_spill] sm:$0xff] }
 0xc75   : > { %v11592_v46 = vmul.f32 -1.442695, %v7438_v8  ;;  %v7562_v50 = vadd.f32 1.0, %v13931_v54  ;;  %7818 = vrot.lane.b32.xlu0 %v7750_v1, %s14514_s30  ;;  %v13933_v12 = vpop.eup %13932 }
 0xc76   : > { %v18127_v20 = vadd.f32 %v7146_v10, %v6986_v28  ;;  %v7555_v8 = vadd.f32 1.0, %v13933_v12  ;;  %v13935_v28 = vpop.eup %13934  ;;  %v6988_v10 = vadd.f32 %v6956_v27, %v21059_v24 }
 0xc77   : > { %v6868_v13 = vpop.permute.xlu0 %6867  ;;  %13429 = vset.pattern.permute.xlu1 %v20958_v16  ;;  %v7055_v55 = vpop.permute.xlu1 %7054  ;;  %13938 = vrcp.f32 %v7562_v50  ;;  %v11586_v50 = vmul.f32 -1.442695, %v7432_v22 }
 0xc78   : > { %7126 = vperm.xlu1 %13429, %v18096_v41   ;;  %13940 = vpow2.f32 %v11592_v46  ;;  %v6961_v62 = vmul.f32 %v6868_v13, %v21029_v26  ;;  %v7148_v52 = vmul.f32 %v7055_v55, %v21035_v47  ;;  %v7435_v1 = vadd.f32 %v17721_v15, %v18127_v20  ;;  %v13937_v32 = vpop.eup %13936  ;;  %v21061_v55 = vld [vmem:[#allocation148_spill] sm:$0xff] }
 0xc79   : > { %13942 = vpow2.f32 %v11585_v0  ;;  %7708 = vrot.lane.b32.xlu0 %v17634_v21, %s14513_s28  ;;  %v7557_v13 = vadd.f32 1.0, %v13935_v28  ;;  %v18148_v27 = vadd.f32 %v6718_v18, %v21061_v55 }
 0xc7a   : > { %v6993_v46 = vadd.f32 %v6961_v62, %v21060_v19  ;;  %13944 = vpow2.f32 %v11587_v37  ;;  %v18144_v12 = vadd.f32 %v7148_v52, %v6988_v10  ;;  %v11589_v24 = vmul.f32 -1.442695, %v7435_v1 }
 0xc7b   : > { %13946 = vrcp.f32 %v7555_v8  ;;  %21062 = vst [vmem:[#allocation148_spill] sm:$0xff] %v18148_v27  ;;  %v21063_v8 = vld [vmem:[#allocation66_spill] sm:$0xff]  ;;  %v7556_v1 = vadd.f32 1.0, %v13937_v32 }
 0xc7c   : > { %v7075_v54 = vpop.permute.xlu0 %7074  ;;  %7122 = vperm.xlu1 %13429, %v17982_v3   ;;  %v6838_v0 = vpop.permute.xlu1 %6837  ;;  %13948 = vpow2.f32 %v11586_v50  ;;  %v7437_v52 = vadd.f32 %v17735_v29, %v18144_v12  ;;  %v21085_v3 = vld [vmem:[#allocation83_spill] sm:$0xff] }
 0xc7d   : > { %v7153_v59 = vmul.f32 %v7075_v54, %v21035_v47  ;;  %v6955_v2 = vmul.f32 %v6838_v0, %v21029_v26  ;;  %13950 = vrcp.f32 %v7557_v13 }
 0xc7e   : > { %13952 = vpow2.f32 %v11589_v24  ;;  %v11591_v29 = vmul.f32 -1.442695, %v7437_v52  ;;  %v21064_v52 = vld [vmem:[#allocation69_spill] sm:$0xff] }
 0xc7f   : > { %v18150_v15 = vadd.f32 %v7153_v59, %v6993_v46  ;;  %v6987_v18 = vadd.f32 %v6955_v2, %v21063_v8 }
 0xc80   : > { %13430 = vset.pattern.permute.xlu1 %v20961_v58 }
 0xc81   : > { %v7442_v62 = vadd.f32 %v17781_v39, %v18150_v15  ;;  %6942 = vperm.xlu1 %13430, %v18148_v27   ;;  %v7051_v37 = vpop.permute.xlu1 %7050  ;;  %v18156_v22 = vpop.eup %13938 }
 0xc82   : > { %v7147_v28 = vmul.f32 %v7051_v37, %v21035_v47  ;;  %v13941_v10 = vpop.eup %13940  ;;  %v7754_v39 = vmul.f32 %v18156_v22, %v17874_v56 }
 0xc83   : > { %v11596_v54 = vmul.f32 -1.442695, %v7442_v62  ;;  %v13943_v0 = vpop.eup %13942  ;;  %v7566_v46 = vadd.f32 1.0, %v13941_v10 }
 0xc84   : > { %v18164_v59 = vadd.f32 %v7147_v28, %v6987_v18  ;;  %7826 = vrot.lane.b32.xlu0 %v7754_v39, %s14514_s30  ;;  %v7559_v56 = vadd.f32 1.0, %v13943_v0  ;;  %v13945_v32 = vpop.eup %13944  ;;  %v6960_v39 = vmul.f32 %v18111_v14, %v21029_v26 }
 0xc85   : > { %13954 = vpow2.f32 %v11596_v54  ;;  %13431 = vset.pattern.permute.xlu1 %v20958_v16  ;;  %v18172_v13 = vpop.eup %13946  ;;  %v7561_v62 = vadd.f32 1.0, %v13945_v32  ;;  %v21091_v16 = vld [vmem:[#allocation85_spill] sm:$0xff] }
 0xc86   : > { %13956 = vrcp.f32 %v7566_v46  ;;  %v7436_v50 = vadd.f32 %v17738_v51, %v18164_v59  ;;  %7134 = vperm.xlu1 %13431, %v18148_v27   ;;  %v6853_v2 = vpop.permute.xlu1 %6852  ;;  %v13949_v37 = vpop.eup %13948  ;;  %v7747_v10 = vmul.f32 %v18172_v13, %v17787_v11 }
 0xc87   : > { %13958 = vrcp.f32 %v7556_v1  ;;  %v6958_v24 = vmul.f32 %v6853_v2, %v21029_v26  ;;  %v18181_v1 = vpop.eup %13950 }
 0xc88   : > { %7710 = vrot.lane.b32.xlu0 %v17647_v53, %s14513_s28  ;;  %13960 = vpow2.f32 %v11591_v29  ;;  %v11590_v55 = vmul.f32 -1.442695, %v7436_v50  ;;  %v13953_v54 = vpop.eup %13952  ;;  %v7560_v29 = vadd.f32 1.0, %v13949_v37  ;;  %v7749_v14 = vmul.f32 %v18181_v1, %v17922_v38  ;;  %v21093_v53 = vld [vmem:[#allocation159_spill] sm:$0xff] }
 0xc89   : > { %13962 = vrcp.f32 %v7559_v56  ;;  %v6990_v18 = vadd.f32 %v6958_v24, %v21064_v52 }
 0xc8a   : > { %7130 = vperm.xlu1 %13431, %v18016_v42   ;;  %13964 = vpow2.f32 %v11590_v55 }
 0xc8b   : > { %v7063_v51 = vpop.permute.xlu1 %7062  ;;  %13966 = vrcp.f32 %v7561_v62  ;;  %v21065_v62 = vld [vmem:[#allocation73_spill] sm:$0xff] }
 0xc8c   : > { %v7150_v28 = vmul.f32 %v7063_v51, %v21035_v47  ;;  %v6992_v51 = vadd.f32 %v6960_v39, %v21065_v62 }
 0xc8e   : > { %v18185_v0 = vadd.f32 %v7150_v28, %v6990_v18  ;;  %7812 = vrot.lane.b32.xlu1 %v7747_v10, %s14514_s30  ;;  %v7563_v18 = vadd.f32 1.0, %v13953_v54 }
 0xc8f   : > { %v13955_v46 = vpop.eup %13954  ;;  %v7071_v50 = vpop.permute.xlu1 %7070  ;;  %13432 = vset.pattern.permute.xlu1 %v20961_v58 }
 0xc90   : > { %v18189_v2 = vpop.eup %13956  ;;  %v7570_v11 = vadd.f32 1.0, %v13955_v46  ;;  %v7439_v56 = vadd.f32 %v17746_v63, %v18185_v0  ;;  %v7152_v32 = vmul.f32 %v7071_v50, %v21035_v47 }
 0xc91   : > { %v18196_v24 = vpop.eup %13958  ;;  %v7758_v55 = vmul.f32 %v18189_v2, %v17913_v45 }
 0xc92   : > { %13968 = vrcp.f32 %v7570_v11  ;;  %v11593_v37 = vmul.f32 -1.442695, %v7439_v56  ;;  %7816 = vrot.lane.b32.xlu1 %v7749_v14, %s14514_s30  ;;  %v13961_v63 = vpop.eup %13960  ;;  %v18203_v28 = vadd.f32 %v7152_v32, %v6992_v51  ;;  %v7748_v10 = vmul.f32 %v18196_v24, %v17797_v34  ;;  %v21066_v56 = vld [vmem:[#allocation74_spill] sm:$0xff] }
 0xc93   : > { %13970 = vrcp.f32 %v7560_v29  ;;  %7834 = vrot.lane.b32.xlu0 %v7758_v55, %s14514_s30  ;;  %v18207_v46 = vpop.eup %13962  ;;  %v7565_v39 = vadd.f32 1.0, %v13961_v63  ;;  %v6883_v63 = vpop.permute.xlu0 %6882 }
 0xc94   : > { %13972 = vpow2.f32 %v11593_v37  ;;  %v6858_v38 = vpop.permute.xlu1 %6857  ;;  %v13965_v54 = vpop.eup %13964  ;;  %v7441_v29 = vadd.f32 %v17760_v36, %v18203_v28  ;;  %v7751_v50 = vmul.f32 %v18207_v46, %v17817_v57 }
 0xc95   : > { %v6959_v45 = vmul.f32 %v6858_v38, %v21029_v26  ;;  %13974 = vrcp.f32 %v7563_v18  ;;  %v18217_v11 = vpop.eup %13966  ;;  %v7564_v55 = vadd.f32 1.0, %v13965_v54 }
 0xc96   : > { %7814 = vrot.lane.b32.xlu1 %v7748_v10, %s14514_s30  ;;  %13976 = vrcp.f32 %v7565_v39  ;;  %v11595_v37 = vmul.f32 -1.442695, %v7441_v29  ;;  %v7753_v36 = vmul.f32 %v18217_v11, %v17931_v25 }
 0xc97   : > { %7712 = vrot.lane.b32.xlu0 %v17656_v5, %s14513_s28  ;;  %v6991_v32 = vadd.f32 %v6959_v45, %v21066_v56  ;;  %v21068_v45 = vld [vmem:[#allocation151_spill] sm:$0xff]  ;;  %13978 = vrcp.f32 %v7564_v55  ;;  %v6964_v55 = vmul.f32 %v6883_v63, %v21029_v26  ;;  %v21092_v5 = vld [vmem:[#allocation86_spill] sm:$0xff] }
 0xc98   : > { %13980 = vpow2.f32 %v11595_v37 }
 0xc99   : > { %v7067_v34 = vpop.permute.xlu1 %7066 }
 0xc9a   : > { %v7151_v14 = vmul.f32 %v7067_v34, %v21035_v47  ;;  %7820 = vrot.lane.b32.xlu1 %v7751_v50, %s14514_s30  ;;  %v21069_v34 = vld [vmem:[#allocation157_spill] sm:$0xff] }
 0xc9c   : > { %v18222_v51 = vpop.eup %13968  ;;  %v18224_v18 = vadd.f32 %v7151_v14, %v6991_v32 }
 0xc9d   : > { %21067 = vst [vmem:[#allocation178_spill] sm:$0xff] %v18222_v51  ;;  %v18228_v57 = vpop.eup %13970  ;;  %v7762_v38 = vmul.f32 %v18222_v51, %v17951_v7  ;;  %v6888_v7 = vpop.permute.xlu0 %6887 }
 0xc9e   : > { %v13973_v10 = vpop.eup %13972  ;;  %v7440_v50 = vadd.f32 %v21068_v45, %v18224_v18  ;;  %7824 = vrot.lane.b32.xlu1 %v7753_v36, %s14514_s30  ;;  %v6873_v39 = vpop.permute.xlu1 %6872  ;;  %v7752_v32 = vmul.f32 %v18228_v57, %v21069_v34 }
 0xc9f   : > { %v7567_v54 = vadd.f32 1.0, %v13973_v10  ;;  %7842 = vrot.lane.b32.xlu0 %v7762_v38, %s14514_s30  ;;  %v6962_v25 = vmul.f32 %v6873_v39, %v21029_v26  ;;  %v18239_v14 = vpop.eup %13974  ;;  %v21070_v10 = vld [vmem:[#allocation75_spill] sm:$0xff]  ;;  %v21071_v38 = vld [vmem:[#allocation158_spill] sm:$0xff] }
 0xca0   : > { %v11594_v29 = vmul.f32 -1.442695, %v7440_v50  ;;  %v7755_v50 = vmul.f32 %v18239_v14, %v21071_v38  ;;  %v18247_v39 = vpop.eup %13976 }
 0xca1   : > { %v6994_v45 = vadd.f32 %v6962_v25, %v21070_v10  ;;  %v21074_v25 = vld [vmem:[#allocation169_spill] sm:$0xff]  ;;  %v18258_v10 = vpop.eup %13978  ;;  %v18260_v38 = vpop.permute.xlu0 %7688 }
 0xca2   : > { %13982 = vpow2.f32 %v11594_v29  ;;  %7822 = vrot.lane.b32.xlu1 %v7752_v32, %s14514_s30  ;;  %v21072_v32 = vld [vmem:[#allocation79_spill] sm:$0xff]  ;;  %v13981_v52 = vpop.eup %13980 }
 0xca3   : > { %13984 = vrcp.f32 %v7567_v54  ;;  %v7079_v36 = vpop.permute.xlu1 %7078  ;;  %v6996_v56 = vadd.f32 %v6964_v55, %v21072_v32  ;;  %v21073_v54 = vld [vmem:[#allocation152_spill] sm:$0xff]  ;;  %v21075_v55 = vld [vmem:[#allocation153_spill] sm:$0xff]  ;;  %v7569_v27 = vadd.f32 1.0, %v13981_v52 }
 0xca4   : > { %v7154_v37 = vmul.f32 %v7079_v36, %v21035_v47  ;;  %v7757_v36 = vmul.f32 %v18247_v39, %v21074_v25 }
 0xca5   : > { %v6898_v19 = vpop.permute.xlu0 %6897 }
 0xca6   : > { %v18249_v34 = vadd.f32 %v7154_v37, %v6994_v45  ;;  %7828 = vrot.lane.b32.xlu1 %v7755_v50, %s14514_s30 }
 0xca7   : > { %v7087_v29 = vpop.permute.xlu1 %7086 }
 0xca8   : > { %v7443_v62 = vadd.f32 %v21073_v54, %v18249_v34  ;;  %v7156_v63 = vmul.f32 %v7087_v29, %v21035_v47  ;;  %v21076_v29 = vld [vmem:[#allocation161_spill] sm:$0xff] }
 0xca9   : > { %v7756_v8 = vmul.f32 %v18258_v10, %v21076_v29  ;;  %v18278_v52 = vpop.permute.xlu0 %7690 }
 0xcaa   : > { %v11597_v45 = vmul.f32 -1.442695, %v7443_v62  ;;  %v18262_v37 = vadd.f32 %v7156_v63, %v6996_v56  ;;  %7832 = vrot.lane.b32.xlu1 %v7757_v36, %s14514_s30  ;;  %v21077_v56 = vld [vmem:[#allocation164_spill] sm:$0xff] }
 0xcac   : > { %v13983_v50 = vpop.eup %13982  ;;  %13986 = vpow2.f32 %v11597_v45  ;;  %v7445_v54 = vadd.f32 %v21075_v55, %v18262_v37  ;;  %v6878_v32 = vpop.permute.xlu1 %6877  ;;  %v21078_v45 = vld [vmem:[#allocation80_spill] sm:$0xff] }
 0xcad   : > { %v18269_v25 = vpop.eup %13984  ;;  %v7568_v60 = vadd.f32 1.0, %v13983_v50  ;;  %v6963_v62 = vmul.f32 %v6878_v32, %v21029_v26 }
 0xcae   : > { %v11599_v41 = vmul.f32 -1.442695, %v7445_v54  ;;  %7830 = vrot.lane.b32.xlu1 %v7756_v8, %s14514_s30  ;;  %v7759_v63 = vmul.f32 %v18269_v25, %v21077_v56  ;;  %v21079_v8 = vld [vmem:[#allocation154_spill] sm:$0xff]  ;;  %v18284_v54 = vpop.permute.xlu0 %6907 }
 0xcaf   : > { %13988 = vrcp.f32 %v7568_v60  ;;  %v6995_v55 = vadd.f32 %v6963_v62, %v21078_v45 }
 0xcb0   : > { %13990 = vpow2.f32 %v11599_v41 }
 0xcb1   : > { %13992 = vrcp.f32 %v7569_v27  ;;  %v7083_v36 = vpop.permute.xlu1 %7082 }
 0xcb2   : > { %v7155_v29 = vmul.f32 %v7083_v36, %v21035_v47  ;;  %7836 = vrot.lane.b32.xlu1 %v7759_v63, %s14514_s30  ;;  %v21081_v63 = vld [vmem:[#allocation165_spill] sm:$0xff] }
 0xcb4   : > { %v18280_v50 = vadd.f32 %v7155_v29, %v6995_v55 }
 0xcb6   : > { %v13987_v32 = vpop.eup %13986  ;;  %v7444_v60 = vadd.f32 %v21079_v8, %v18280_v50  ;;  %v6893_v41 = vpop.permute.xlu1 %6892  ;;  %v6965_v8 = vmul.f32 %v6888_v7, %v21029_v26 }
 0xcb7   : > { %v7571_v56 = vadd.f32 1.0, %v13987_v32  ;;  %v6966_v17 = vmul.f32 %v6893_v41, %v21029_v26 }
 0xcb8   : > { %v11598_v27 = vmul.f32 -1.442695, %v7444_v60  ;;  %v18297_v60 = vpop.permute.xlu0 %7692 }
 0xcb9   : > { %v18287_v62 = vpop.eup %13988  ;;  %13994 = vrcp.f32 %v7571_v56  ;;  %v6998_v42 = vadd.f32 %v6966_v17, %v21083_v43  ;;  %v21084_v56 = vld [vmem:[#allocation170_spill] sm:$0xff] }
 0xcba   : > { %21080 = vst [vmem:[#allocation151_spill] sm:$0xff] %v18287_v62  ;;  %v13991_v36 = vpop.eup %13990  ;;  %13996 = vpow2.f32 %v11598_v27  ;;  %v7760_v55 = vmul.f32 %v18287_v62, %v21081_v63 }
 0xcbb   : > { %v18291_v29 = vpop.eup %13992  ;;  %v7573_v45 = vadd.f32 1.0, %v13991_v36  ;;  %v7095_v44 = vpop.permute.xlu1 %7094  ;;  %v6997_v36 = vadd.f32 %v6965_v8, %v21085_v3  ;;  %v21089_v3 = vld [vmem:[#allocation166_spill] sm:$0xff] }
 0xcbc   : > { %21082 = vst [vmem:[#allocation157_spill] sm:$0xff] %v18291_v29  ;;  %v7158_v32 = vmul.f32 %v7095_v44, %v21035_v47  ;;  %7838 = vrot.lane.b32.xlu1 %v7760_v55, %s14514_s30  ;;  %v7761_v27 = vmul.f32 %v18291_v29, %v21084_v56  ;;  %v18308_v44 = vpop.permute.xlu0 %6917 }
 0xcbd   : > { %13998 = vrcp.f32 %v7573_v45 }
 0xcbe   : > { %v18299_v41 = vadd.f32 %v7158_v32, %v6998_v42  ;;  %v21088_v32 = vld [vmem:[#allocation156_spill] sm:$0xff] }
 0xcbf   : > { %v7091_v63 = vpop.permute.xlu1 %7090 }
 0xcc0   : > { %v7447_v7 = vadd.f32 %v21086_v61, %v18299_v41  ;;  %v7157_v17 = vmul.f32 %v7091_v63, %v21035_v47  ;;  %7840 = vrot.lane.b32.xlu1 %v7761_v27, %s14514_s30 }
 0xcc2   : > { %v11601_v55 = vmul.f32 -1.442695, %v7447_v7  ;;  %v18310_v43 = vadd.f32 %v7157_v17, %v6997_v36  ;;  %v18322_v36 = vpop.permute.xlu0 %7694 }
 0xcc3   : > { %v18312_v42 = vpop.eup %13994 }
 0xcc4   : > { %21087 = vst [vmem:[#allocation158_spill] sm:$0xff] %v18312_v42  ;;  %v13997_v45 = vpop.eup %13996  ;;  %14000 = vpow2.f32 %v11601_v55  ;;  %v7446_v56 = vadd.f32 %v21088_v32, %v18310_v43  ;;  %v6903_v8 = vpop.permute.xlu1 %6902  ;;  %v7763_v61 = vmul.f32 %v18312_v42, %v21089_v3  ;;  %v6967_v32 = vmul.f32 %v6898_v19, %v21029_v26 }
 0xcc5   : > { %v7572_v58 = vadd.f32 1.0, %v13997_v45  ;;  %v6968_v27 = vmul.f32 %v6903_v8, %v21029_v26 }
 0xcc6   : > { %v11600_v63 = vmul.f32 -1.442695, %v7446_v56  ;;  %7844 = vrot.lane.b32.xlu1 %v7763_v61, %s14514_s30  ;;  %v18330_v56 = vpop.permute.xlu0 %6927 }
 0xcc7   : > { %v18320_v7 = vpop.eup %13998  ;;  %14002 = vrcp.f32 %v7572_v58  ;;  %v7000_v3 = vadd.f32 %v6968_v27, %v21091_v16 }
 0xcc8   : > { %21090 = vst [vmem:[#allocation152_spill] sm:$0xff] %v18320_v7  ;;  %14004 = vpow2.f32 %v11600_v63  ;;  %v7765_v17 = vmul.f32 %v18320_v7, %v18260_v38  ;;  %v6999_v63 = vadd.f32 %v6967_v32, %v21092_v5  ;;  %v21096_v5 = vld [vmem:[#allocation171_spill] sm:$0xff] }
 0xcc9   : > { %v7103_v55 = vpop.permute.xlu1 %7102 }
 0xcca   : > { %v7160_v45 = vmul.f32 %v7103_v55, %v21035_v47  ;;  %7848 = vrot.lane.b32.xlu1 %v7765_v17, %s14514_s30  ;;  %v18342_v17 = vpop.permute.xlu0 %7698 }
 0xccc   : > { %v18332_v8 = vadd.f32 %v7160_v45, %v7000_v3  ;;  %v21095_v45 = vld [vmem:[#allocation160_spill] sm:$0xff] }
 0xccd   : > { %v7099_v58 = vpop.permute.xlu1 %7098 }
 0xcce   : > { %v14001_v61 = vpop.eup %14000  ;;  %v7449_v38 = vadd.f32 %v21093_v53, %v18332_v8  ;;  %v7159_v21 = vmul.f32 %v7099_v58, %v21035_v47 }
 0xccf   : > { %v7575_v19 = vadd.f32 1.0, %v14001_v61 }
 0xcd0   : > { %v11603_v30 = vmul.f32 -1.442695, %v7449_v38  ;;  %v18338_v27 = vadd.f32 %v7159_v21, %v6999_v63  ;;  %v21097_v38 = vld [vmem:[#allocation87_spill] sm:$0xff] }
 0xcd1   : > { %v18340_v55 = vpop.eup %14002  ;;  %14006 = vrcp.f32 %v7575_v19 }
 0xcd2   : > { %21094 = vst [vmem:[#allocation169_spill] sm:$0xff] %v18340_v55  ;;  %v14005_v3 = vpop.eup %14004  ;;  %14008 = vpow2.f32 %v11603_v30  ;;  %v7448_v16 = vadd.f32 %v21095_v45, %v18338_v27  ;;  %v6913_v32 = vpop.permute.xlu1 %6912  ;;  %v7764_v53 = vmul.f32 %v18340_v55, %v21096_v5  ;;  %v6969_v30 = vmul.f32 %v18284_v54, %v21029_v26 }
 0xcd3   : > { %v7574_v35 = vadd.f32 1.0, %v14005_v3  ;;  %v6970_v61 = vmul.f32 %v6913_v32, %v21029_v26 }
 0xcd4   : > { %v11602_v58 = vmul.f32 -1.442695, %v7448_v16  ;;  %7846 = vrot.lane.b32.xlu0 %v7764_v53, %s14514_s30 }
 0xcd5   : > { %14010 = vrcp.f32 %v7574_v35  ;;  %v18350_v21 = vpop.permute.xlu0 %6937  ;;  %v7002_v19 = vadd.f32 %v6970_v61, %v21097_v38  ;;  %v21099_v35 = vld [vmem:[#allocation88_spill] sm:$0xff] }
 0xcd6   : > { %14012 = vpow2.f32 %v11602_v58  ;;  %v7001_v53 = vadd.f32 %v6969_v30, %v21099_v35  ;;  %v21100_v58 = vld [vmem:[#allocation162_spill] sm:$0xff] }
 0xcd7   : > { %v7111_v63 = vpop.permute.xlu1 %7110 }
 0xcd8   : > { %v7162_v45 = vmul.f32 %v7111_v63, %v21035_v47 }
 0xcd9   : > { %v18356_v7 = vpop.permute.xlu0 %7700 }
 0xcda   : > { %v18358_v5 = vadd.f32 %v7162_v45, %v7002_v19 }
 0xcdb   : > { %v18360_v16 = vpop.eup %14006  ;;  %v7107_v3 = vpop.permute.xlu1 %7106 }
 0xcdc   : > { %21098 = vst [vmem:[#allocation153_spill] sm:$0xff] %v18360_v16  ;;  %v14009_v32 = vpop.eup %14008  ;;  %v7451_v55 = vadd.f32 %v21100_v58, %v18358_v5  ;;  %v7161_v42 = vmul.f32 %v7107_v3, %v21035_v47  ;;  %v7767_v54 = vmul.f32 %v18360_v16, %v18297_v60  ;;  %v21102_v58 = vld [vmem:[#allocation163_spill] sm:$0xff] }
 0xcdd   : > { %v7577_v61 = vadd.f32 1.0, %v14009_v32  ;;  %v18368_v63 = vpop.permute.xlu0 %7702 }
 0xcde   : > { %v11605_v38 = vmul.f32 -1.442695, %v7451_v55  ;;  %v18370_v19 = vadd.f32 %v7161_v42, %v7001_v53  ;;  %7852 = vrot.lane.b32.xlu1 %v7767_v54, %s14514_s30 }
 0xcdf   : > { %v18373_v45 = vpop.eup %14010  ;;  %14014 = vrcp.f32 %v7577_v61 }
 0xce0   : > { %21101 = vst [vmem:[#allocation161_spill] sm:$0xff] %v18373_v45  ;;  %v14013_v30 = vpop.eup %14012  ;;  %14016 = vpow2.f32 %v11605_v38  ;;  %v7450_v35 = vadd.f32 %v21102_v58, %v18370_v19  ;;  %v6923_v3 = vpop.permute.xlu1 %6922  ;;  %v7766_v60 = vmul.f32 %v18373_v45, %v18278_v52  ;;  %v21103_v38 = vld [vmem:[#allocation91_spill] sm:$0xff] }
 0xce1   : > { %v7576_v32 = vadd.f32 1.0, %v14013_v30  ;;  %v18379_v16 = vpop.permute.xlu0 %7704  ;;  %v6972_v42 = vmul.f32 %v6923_v3, %v21029_v26  ;;  %v6971_v3 = vmul.f32 %v18308_v44, %v21029_v26 }
 0xce2   : > { %v11604_v55 = vmul.f32 -1.442695, %v7450_v35  ;;  %7850 = vrot.lane.b32.xlu0 %v7766_v60, %s14514_s30  ;;  %v21105_v60 = vld [vmem:[#allocation167_spill] sm:$0xff] }
 0xce3   : > { %14018 = vrcp.f32 %v7576_v32  ;;  %v7004_v61 = vadd.f32 %v6972_v42, %v21103_v38 }
 0xce4   : > { %14020 = vpow2.f32 %v11604_v55 }
 0xce5   : > { %v7811_v53 = vpop.permute.xlu0 %7810  ;;  %v7119_v54 = vpop.permute.xlu1 %7118 }
 0xce6   : > { %v7164_v58 = vmul.f32 %v7119_v54, %v21035_v47  ;;  %12825 = vmatprep.mubr.msk.f32.mxu1 %vm1225_vm0, %v7811_v53 }
 0xce8   : > { %v18386_v51 = vadd.f32 %v7164_v58, %v7004_v61  ;;  %v21106_v58 = vld [vmem:[#allocation92_spill] sm:$0xff] }
 0xce9   : > { %v18388_v52 = vpop.eup %14014  ;;  %v7697_v30 = vpop.permute.xlu1 %7696  ;;  %v7003_v38 = vadd.f32 %v6971_v3, %v21106_v58 }
 0xcea   : > { %21104 = vst [vmem:[#allocation164_spill] sm:$0xff] %v18388_v52  ;;  %v14017_v35 = vpop.eup %14016  ;;  %v7453_v32 = vadd.f32 %v21105_v60, %v18386_v51  ;;  %v7769_v55 = vmul.f32 %v18388_v52, %v7697_v30  ;;  %v21107_v30 = vld [vmem:[#allocation168_spill] sm:$0xff] }
 0xceb   : > { %v7579_v45 = vadd.f32 1.0, %v14017_v35 }
 0xcec   : > { %v11607_v42 = vmul.f32 -1.442695, %v7453_v32  ;;  %7856 = vrot.lane.b32.xlu1 %v7769_v55, %s14514_s30 }
 0xced   : > { %v18396_v54 = vpop.eup %14018  ;;  %14022 = vrcp.f32 %v7579_v45  ;;  %v7115_v53 = vpop.permute.xlu1 %7114 }
 0xcee   : > { %v14021_v61 = vpop.eup %14020  ;;  %14024 = vpow2.f32 %v11607_v42  ;;  %v7163_v29 = vmul.f32 %v7115_v53, %v21035_v47  ;;  %v7768_v44 = vmul.f32 %v18396_v54, %v18322_v36  ;;  %v6973_v36 = vmul.f32 %v18330_v56, %v21029_v26  ;;  %v21112_v56 = vld [vmem:[#allocation172_spill] sm:$0xff] }
 0xcef   : > { %v7578_v60 = vadd.f32 1.0, %v14021_v61 }
 0xcf0   : > { %v18402_v62 = vadd.f32 %v7163_v29, %v7003_v38  ;;  %7854 = vrot.lane.b32.xlu0 %v7768_v44, %s14514_s30  ;;  %v21109_v38 = vld [vmem:[#allocation100_spill] sm:$0xff] }
 0xcf1   : > { %14026 = vrcp.f32 %v7578_v60 }
 0xcf2   : > { %v7452_v35 = vadd.f32 %v21107_v30, %v18402_v62  ;;  %v6933_v45 = vpop.permute.xlu1 %6932 }
 0xcf3   : > { %v6974_v55 = vmul.f32 %v6933_v45, %v21029_v26 }
 0xcf4   : > { %v11606_v32 = vmul.f32 -1.442695, %v7452_v35 }
 0xcf5   : > { %v7006_v61 = vadd.f32 %v6974_v55, %v21109_v38  ;;  %v7707_v38 = vpop.permute.xlu0 %7706 }
 0xcf6   : > { %14028 = vpow2.f32 %v11606_v32  ;;  %v21111_v32 = vld [vmem:[#allocation99_spill] sm:$0xff] }
 0xcf7   : > { %v18408_v3 = vpop.eup %14022  ;;  %v7127_v42 = vpop.permute.xlu1 %7126  ;;  %v7005_v58 = vadd.f32 %v6973_v36, %v21111_v32 }
 0xcf8   : > { %21108 = vst [vmem:[#allocation154_spill] sm:$0xff] %v18408_v3  ;;  %v14025_v53 = vpop.eup %14024  ;;  %v7771_v29 = vmul.f32 %v18408_v3, %v18356_v7  ;;  %v7166_v44 = vmul.f32 %v7127_v42, %v21035_v47  ;;  %v21116_v3 = vld [vmem:[#allocation174_spill] sm:$0xff] }
 0xcf9   : > { %v7581_v60 = vadd.f32 1.0, %v14025_v53 }
 0xcfa   : > { %v18416_v30 = vadd.f32 %v7166_v44, %v7006_v61  ;;  %7860 = vrot.lane.b32.xlu1 %v7771_v29, %s14514_s30  ;;  %v21113_v61 = vld [vmem:[#allocation173_spill] sm:$0xff] }
 0xcfb   : > { %v18419_v35 = vpop.eup %14026  ;;  %14030 = vrcp.f32 %v7581_v60  ;;  %v7123_v45 = vpop.permute.xlu1 %7122 }
 0xcfc   : > { %21110 = vst [vmem:[#allocation165_spill] sm:$0xff] %v18419_v35  ;;  %v7455_v52 = vadd.f32 %v21112_v56, %v18416_v30  ;;  %v7165_v7 = vmul.f32 %v7123_v45, %v21035_v47  ;;  %v7770_v55 = vmul.f32 %v18419_v35, %v18342_v17 }
 0xcfe   : > { %v11609_v42 = vmul.f32 -1.442695, %v7455_v52  ;;  %v18427_v53 = vadd.f32 %v7165_v7, %v7005_v58  ;;  %7858 = vrot.lane.b32.xlu0 %v7770_v55, %s14514_s30  ;;  %v6975_v52 = vmul.f32 %v18350_v21, %v21029_v26  ;;  %v21114_v58 = vld [vmem:[#allocation102_spill] sm:$0xff] }
 0xd00   : > { %v14029_v29 = vpop.eup %14028  ;;  %14032 = vpow2.f32 %v11609_v42  ;;  %v7454_v44 = vadd.f32 %v21113_v61, %v18427_v53  ;;  %v6943_v60 = vpop.permute.xlu1 %6942 }
 0xd01   : > { %v7580_v36 = vadd.f32 1.0, %v14029_v29  ;;  %v6976_v56 = vmul.f32 %v6943_v60, %v21029_v26  ;;  %v7819_v61 = vpop.permute.xlu0 %7818  ;;  %v21115_v60 = vld [vmem:[#allocation101_spill] sm:$0xff] }
 0xd02   : > { %v11608_v32 = vmul.f32 -1.442695, %v7454_v44 }
 0xd03   : > { %14034 = vrcp.f32 %v7580_v36  ;;  %v7008_v7 = vadd.f32 %v6976_v56, %v21114_v58  ;;  %v7007_v36 = vadd.f32 %v6975_v52, %v21115_v60 }
 0xd04   : > { %14036 = vpow2.f32 %v11608_v32 }
 0xd05   : > { %v18433_v45 = vpop.eup %14030  ;;  %v7135_v17 = vpop.permute.xlu1 %7134 }
 0xd06   : > { %v7168_v55 = vmul.f32 %v7135_v17, %v21035_v47  ;;  %v7773_v42 = vmul.f32 %v18433_v45, %v18379_v16  ;;  %v7709_v52 = vpop.permute.xlu0 %7708 }
 0xd08   : > { %v18441_v29 = vadd.f32 %v7168_v55, %v7008_v7  ;;  %7864 = vrot.lane.b32.xlu1 %v7773_v42, %s14514_s30  ;;  %v21117_v55 = vld [vmem:[#allocation175_spill] sm:$0xff] }
 0xd09   : > { %v7131_v44 = vpop.permute.xlu1 %7130 }
 0xd0a   : > { %v14033_v32 = vpop.eup %14032  ;;  %v7457_v35 = vadd.f32 %v21116_v3, %v18441_v29  ;;  %v7167_v21 = vmul.f32 %v7131_v44, %v21035_v47 }
 0xd0b   : > { %v7583_v56 = vadd.f32 1.0, %v14033_v32  ;;  %v21118_v32 = vld [vmem:[#allocation17_spill] sm:$0xff] }
 0xd0c   : > { %v11611_v58 = vmul.f32 -1.442695, %v7457_v35  ;;  %v18448_v17 = vadd.f32 %v7167_v21, %v7007_v36  ;;  %v21119_v36 = vld [vmem:[#allocation18_spill] sm:$0xff] }
 0xd0d   : > { %v18450_v26 = vpop.eup %14034  ;;  %14038 = vrcp.f32 %v7583_v56  ;;  %v7813_v16 = vpop.permute.xlu1 %7812 }
 0xd0e   : > { %v14037_v7 = vpop.eup %14036  ;;  %14040 = vpow2.f32 %v11611_v58  ;;  %v7456_v42 = vadd.f32 %v21117_v55, %v18448_v17  ;;  %12826 = vmatmul.mubr.msk.f32.vlgmr.msra.gmra.mrb[192].mxu1 %vm1225_vm0, %v7813_v16  ;;  %v7772_v3 = vmul.f32 %v18450_v26, %v18368_v63  ;;  %v7827_v58 = vpop.permute.xlu0 %7826 }
 0xd0f   : > { %v7582_v44 = vadd.f32 1.0, %v14037_v7  ;;  %13188 = vmatpush3.bf16.msra.mxu1 %v21118_v32 }
 0xd10   : > { %v11610_v35 = vmul.f32 -1.442695, %v7456_v42  ;;  %7862 = vrot.lane.b32.xlu0 %v7772_v3, %s14514_s30  ;;  %13190 = vmatprep.subr.bf16.mxu1 %v21119_v36 }
 0xd11   : > { %14042 = vrcp.f32 %v7582_v44  ;;  %v7817_v21 = vpop.permute.xlu1 %7816 }
 0xd12   : > { %14044 = vpow2.f32 %v11610_v35  ;;  %v7711_v44 = vpop.permute.xlu0 %7710 }
 0xd13   : > { %13192 = vmatpush3.bf16.msra.mxu1 %v21119_v36 }
 0xd15   : > { %v7815_v56 = vpop.permute.xlu1 %7814 }
 0xd16   : > { %12828 = vmatprep.mubr.msk.f32.mxu1 %vm1225_vm0, %v7815_v56 }
 0xd17   : > { %v18462_v16 = vpop.eup %14038  ;;  %12829 = vmatmul.mubr.msk.f32.gmra.mrb[194].mxu1 %vm1225_vm0, %v7817_v21 }
 0xd18   : > { %v14041_v63 = vpop.eup %14040  ;;  %12831 = vmatprep.mubr.msk.f32.mxu1 %vm1225_vm0, %v7819_v61  ;;  %v7775_v7 = vmul.f32 %v18462_v16, %v7709_v52  ;;  %v7835_v61 = vpop.permute.xlu0 %7834 }
 0xd19   : > { %v7585_v55 = vadd.f32 1.0, %v14041_v63  ;;  %v7821_v42 = vpop.permute.xlu1 %7820 }
 0xd1a   : > { %7868 = vrot.lane.b32.xlu1 %v7775_v7, %s14514_s30 }
 0xd1b   : > { %v18468_v3 = vpop.eup %14042  ;;  %14046 = vrcp.f32 %v7585_v55  ;;  %12832 = vmatmul.mubr.msk.f32.gmra.mrb[196].mxu1 %vm1225_vm0, %v7821_v42 }
 0xd1c   : > { %v14045_v32 = vpop.eup %14044  ;;  %v7774_v35 = vmul.f32 %v18468_v3, %v7707_v38  ;;  %v7713_v63 = vpop.permute.xlu0 %7712 }
 0xd1d   : > { %v7584_v36 = vadd.f32 1.0, %v14045_v32  ;;  %v7825_v21 = vpop.permute.xlu1 %7824 }
 0xd1e   : > { %7866 = vrot.lane.b32.xlu0 %v7774_v35, %s14514_s30 }
 0xd1f   : > { %14048 = vrcp.f32 %v7584_v36 }
 0xd21   : > { %v7823_v52 = vpop.permute.xlu1 %7822 }
 0xd22   : > { %12834 = vmatprep.mubr.msk.f32.mxu1 %vm1225_vm0, %v7823_v52  ;;  %v7843_v52 = vpop.permute.xlu0 %7842 }
 0xd23   : > { %12835 = vmatmul.mubr.msk.f32.gmra.mrb[198].mxu1 %vm1225_vm0, %v7825_v21 }
 0xd24   : > { %12837 = vmatprep.mubr.msk.f32.mxu1 %vm1225_vm0, %v7827_v58 }
 0xd25   : > { %v18476_v56 = vpop.eup %14046  ;;  %v7829_v7 = vpop.permute.xlu1 %7828 }
 0xd26   : > { %v7777_v55 = vmul.f32 %v18476_v56, %v7713_v63 }
 0xd27   : > { %12838 = vmatmul.mubr.msk.f32.gmra.mrb[200].mxu1 %vm1225_vm0, %v7829_v7 }
 0xd28   : > { %7872 = vrot.lane.b32.xlu1 %v7777_v55, %s14514_s30 }
 0xd29   : > { %v18481_v38 = vpop.eup %14048  ;;  %v7833_v42 = vpop.permute.xlu1 %7832 }
 0xd2a   : > { %v7776_v32 = vmul.f32 %v18481_v38, %v7711_v44 }
 0xd2c   : > { %7870 = vrot.lane.b32.xlu0 %v7776_v32, %s14514_s30 }
 0xd2d   : > { %v7831_v35 = vpop.permute.xlu1 %7830 }
 0xd2e   : > { %12840 = vmatprep.mubr.msk.f32.mxu1 %vm1225_vm0, %v7831_v35 }
 0xd2f   : > { %12841 = vmatmul.mubr.msk.f32.gmra.mrb[202].mxu1 %vm1225_vm0, %v7833_v42 }
 0xd30   : > { %12843 = vmatprep.mubr.msk.f32.mxu1 %vm1225_vm0, %v7835_v61 }
 0xd31   : > { %v7837_v58 = vpop.permute.xlu1 %7836 }
 0xd33   : > { %12844 = vmatmul.mubr.msk.f32.gmra.mrb[204].mxu1 %vm1225_vm0, %v7837_v58 }
 0xd35   : > { %v7839_v36 = vpop.permute.xlu1 %7838 }
 0xd36   : > { %12846 = vmatprep.mubr.msk.f32.mxu1 %vm1225_vm0, %v7839_v36 }
 0xd39   : > { %v7841_v21 = vpop.permute.xlu1 %7840 }
 0xd3a   : > { %12847 = vmatmul.mubr.msk.f32.gmra.mrb[206].mxu1 %vm1225_vm0, %v7841_v21 }
 0xd3b   : > { %12849 = vmatprep.mubr.msk.f32.mxu1 %vm1225_vm0, %v7843_v52 }
 0xd3d   : > { %v7845_v44 = vpop.permute.xlu1 %7844 }
 0xd3e   : > { %12850 = vmatmul.mubr.msk.f32.gmra.mrb[208].mxu1 %vm1225_vm0, %v7845_v44 }
 0xd41   : > { %v7849_v7 = vpop.permute.xlu1 %7848 }
 0xd46   : > { %v7847_v63 = vpop.permute.xlu0 %7846 }
 0xd47   : > { %12852 = vmatprep.mubr.msk.f32.mxu1 %vm1225_vm0, %v7847_v63 }
 0xd48   : > { %12853 = vmatmul.mubr.msk.f32.gmra.mrb[210].mxu1 %vm1225_vm0, %v7849_v7 }
 0xd50   : > { %v7853_v55 = vpop.permute.xlu1 %7852 }
 0xd54   : > { %v7851_v61 = vpop.permute.xlu0 %7850 }
 0xd55   : > { %12855 = vmatprep.mubr.msk.f32.mxu1 %vm1225_vm0, %v7851_v61 }
 0xd56   : > { %12856 = vmatmul.mubr.msk.f32.gmra.mrb[212].mxu1 %vm1225_vm0, %v7853_v55 }
 0xd5e   : > { %v7857_v32 = vpop.permute.xlu1 %7856 }
 0xd62   : > { %v7855_v42 = vpop.permute.xlu0 %7854 }
 0xd63   : > { %12858 = vmatprep.mubr.msk.f32.mxu1 %vm1225_vm0, %v7855_v42 }
 0xd64   : > { %12859 = vmatmul.mubr.msk.f32.gmra.mrb[214].mxu1 %vm1225_vm0, %v7857_v32 }
 0xd6c   : > { %v7861_v58 = vpop.permute.xlu1 %7860 }
 0xd70   : > { %v7859_v35 = vpop.permute.xlu0 %7858 }
 0xd71   : > { %12861 = vmatprep.mubr.msk.f32.mxu1 %vm1225_vm0, %v7859_v35 }
 0xd72   : > { %12862 = vmatmul.mubr.msk.f32.gmra.mrb[216].mxu1 %vm1225_vm0, %v7861_v58 }
 0xd7a   : > { %v7865_v21 = vpop.permute.xlu1 %7864 }
 0xd82   : > { %v7863_v36 = vpop.permute.xlu0 %7862 }
 0xd83   : > { %12864 = vmatprep.mubr.msk.f32.mxu1 %vm1225_vm0, %v7863_v36 }
 0xd84   : > { %12865 = vmatmul.mubr.msk.f32.gmra.mrb[218].mxu1 %vm1225_vm0, %v7865_v21 }
 0xd8c   : > { %v7869_v44 = vpop.permute.xlu1 %7868 }
 0xd90   : > { %v7867_v52 = vpop.permute.xlu0 %7866 }
 0xd91   : > { %12867 = vmatprep.mubr.msk.f32.mxu1 %vm1225_vm0, %v7867_v52 }
 0xd92   : > { %12868 = vmatmul.mubr.msk.f32.gmra.mrb[220].mxu1 %vm1225_vm0, %v7869_v44 }
 0xd9a   : > { %v7873_v7 = vpop.permute.xlu1 %7872 }
 0xd9e   : > { %v7871_v63 = vpop.permute.xlu0 %7870 }
 0xd9f   : > { %12870 = vmatprep.mubr.msk.f32.mxu1 %vm1225_vm0, %v7871_v63 }
 0xda0   : > { %12871 = vmatmul.mubr.msk.f32.gmra.mrb[222].mxu1 %vm1225_vm0, %v7873_v7 }
 0xde1   : > { %v12827_v61 = vpop.f32.mrb[192].mxu1 }
 0xde2   : > { %8197 = vrot.lane.b32.xlu1 %v12827_v61, %s14515_s22  ;;  %v8004_v55 = vpop.f32.mrb[193].mxu1 }
 0xde3   : > { %8195 = vrot.lane.b32.xlu0 %v8004_v55, %s14515_s22 }
 0xdea   : > { %v12830_v42 = vpop.f32.mrb[194].mxu1 }
 0xdeb   : > { %8201 = vrot.lane.b32.xlu1 %v12830_v42, %s14515_s22  ;;  %v8014_v32 = vpop.f32.mrb[195].mxu1 }
 0xdec   : > { %8199 = vrot.lane.b32.xlu0 %v8014_v32, %s14515_s22 }
 0xdee   : > { %v12833_v35 = vpop.f32.mrb[196].mxu1 }
 0xdef   : > { %8205 = vrot.lane.b32.xlu1 %v12833_v35, %s14515_s22  ;;  %v8024_v58 = vpop.f32.mrb[197].mxu1 }
 0xdf0   : > { %8203 = vrot.lane.b32.xlu0 %v8024_v58, %s14515_s22 }
 0xdf6   : > { %v12836_v36 = vpop.f32.mrb[198].mxu1 }
 0xdf7   : > { %8209 = vrot.lane.b32.xlu1 %v12836_v36, %s14515_s22  ;;  %v8034_v21 = vpop.f32.mrb[199].mxu1 }
 0xdf8   : > { %8207 = vrot.lane.b32.xlu0 %v8034_v21, %s14515_s22 }
 0xdfa   : > { %v12839_v52 = vpop.f32.mrb[200].mxu1 }
 0xdfb   : > { %8213 = vrot.lane.b32.xlu1 %v12839_v52, %s14515_s22  ;;  %v8044_v44 = vpop.f32.mrb[201].mxu1 }
 0xdfc   : > { %8211 = vrot.lane.b32.xlu0 %v8044_v44, %s14515_s22 }
 0xe02   : > { %v12842_v63 = vpop.f32.mrb[202].mxu1 }
 0xe03   : > { %8217 = vrot.lane.b32.xlu1 %v12842_v63, %s14515_s22  ;;  %v8054_v7 = vpop.f32.mrb[203].mxu1 }
 0xe04   : > { %8215 = vrot.lane.b32.xlu0 %v8054_v7, %s14515_s22 }
 0xe06   : > { %v12845_v61 = vpop.f32.mrb[204].mxu1 }
 0xe07   : > { %8221 = vrot.lane.b32.xlu1 %v12845_v61, %s14515_s22  ;;  %v8064_v55 = vpop.f32.mrb[205].mxu1 }
 0xe08   : > { %8219 = vrot.lane.b32.xlu0 %v8064_v55, %s14515_s22 }
 0xe0d   : > { %v12848_v42 = vpop.f32.mrb[206].mxu1 }
 0xe0e   : > { %8225 = vrot.lane.b32.xlu1 %v12848_v42, %s14515_s22  ;;  %v8074_v32 = vpop.f32.mrb[207].mxu1 }
 0xe0f   : > { %8223 = vrot.lane.b32.xlu0 %v8074_v32, %s14515_s22 }
 0xe11   : > { %v12851_v35 = vpop.f32.mrb[208].mxu1 }
 0xe12   : > { %8229 = vrot.lane.b32.xlu1 %v12851_v35, %s14515_s22  ;;  %v8084_v58 = vpop.f32.mrb[209].mxu1 }
 0xe13   : > { %8227 = vrot.lane.b32.xlu0 %v8084_v58, %s14515_s22  ;;  %v21120_v58 = vld [vmem:[#allocation54_spill] sm:$0xff] }
 0xe1b   : > { %v12854_v36 = vpop.f32.mrb[210].mxu1 }
 0xe1c   : > { %8233 = vrot.lane.b32.xlu1 %v12854_v36, %s14515_s22  ;;  %v8094_v21 = vpop.f32.mrb[211].mxu1 }
 0xe1d   : > { %8231 = vrot.lane.b32.xlu0 %v8094_v21, %s14515_s22 }
 0xe29   : > { %v12857_v52 = vpop.f32.mrb[212].mxu1 }
 0xe2a   : > { %8237 = vrot.lane.b32.xlu1 %v12857_v52, %s14515_s22  ;;  %v8104_v44 = vpop.f32.mrb[213].mxu1 }
 0xe2b   : > { %8235 = vrot.lane.b32.xlu0 %v8104_v44, %s14515_s22 }
 0xe37   : > { %v12860_v63 = vpop.f32.mrb[214].mxu1 }
 0xe38   : > { %8241 = vrot.lane.b32.xlu1 %v12860_v63, %s14515_s22  ;;  %v8114_v7 = vpop.f32.mrb[215].mxu1 }
 0xe39   : > { %8239 = vrot.lane.b32.xlu0 %v8114_v7, %s14515_s22 }
 0xe45   : > { %v12863_v61 = vpop.f32.mrb[216].mxu1 }
 0xe46   : > { %8245 = vrot.lane.b32.xlu1 %v12863_v61, %s14515_s22  ;;  %v8124_v55 = vpop.f32.mrb[217].mxu1 }
 0xe47   : > { %8243 = vrot.lane.b32.xlu0 %v8124_v55, %s14515_s22 }
 0xe54   : > { %v8198_v42 = vpop.permute.xlu1 %8197 }
 0xe55   : > { %v8292_v32 = vadd.f32 %v8198_v42, %v18044_v9  ;;  %v8196_v35 = vpop.permute.xlu0 %8195 }
 0xe56   : > { %v8291_v36 = vadd.f32 %v8196_v35, %v21120_v58  ;;  %v21121_v58 = vld [vmem:[#allocation176_spill] sm:$0xff] }
 0xe57   : > { %14050 = vtanh.f32 %v8292_v32  ;;  %v12866_v21 = vpop.f32.mrb[218].mxu1 }
 0xe58   : > { %8249 = vrot.lane.b32.xlu1 %v12866_v21, %s14515_s22  ;;  %v8134_v52 = vpop.f32.mrb[219].mxu1  ;;  %14052 = vtanh.f32 %v8291_v36 }
 0xe5c   : > { %8247 = vrot.lane.b32.xlu1 %v8134_v52, %s14515_s22 }
 0xe5d   : > { %v8202_v44 = vpop.permute.xlu1 %8201 }
 0xe5e   : > { %v8200_v63 = vpop.permute.xlu0 %8199  ;;  %v8294_v7 = vadd.f32 %v8202_v44, %v18065_v6 }
 0xe5f   : > { %v8293_v61 = vadd.f32 %v8200_v63, %v18071_v23 }
 0xe61   : > { %v14051_v55 = vpop.eup %14050  ;;  %14054 = vtanh.f32 %v8293_v61  ;;  %v8206_v9 = vpop.permute.xlu1 %8205 }
 0xe62   : > { %v8296_v42 = vadd.f32 %v8206_v9, %v18087_v40  ;;  %v8204_v32 = vpop.permute.xlu0 %8203  ;;  %8453 = vrot.lane.b32.xlu0 %v14051_v55, %s14515_s22  ;;  %14056 = vtanh.f32 %v8294_v7  ;;  %v14053_v35 = vpop.eup %14052 }
 0xe63   : > { %v8295_v36 = vadd.f32 %v8204_v32, %v21121_v58 }
 0xe64   : > { %14058 = vtanh.f32 %v8296_v42 }
 0xe65   : > { %v12869_v21 = vpop.f32.mrb[220].mxu1  ;;  %14060 = vtanh.f32 %v8295_v36 }
 0xe66   : > { %8253 = vrot.lane.b32.xlu1 %v12869_v21, %s14515_s22  ;;  %v8144_v52 = vpop.f32.mrb[221].mxu1  ;;  %8451 = vrot.lane.b32.xlu0 %v14053_v35, %s14515_s22 }
 0xe69   : > { %v8210_v23 = vpop.permute.xlu1 %8209 }
 0xe6a   : > { %v8298_v6 = vadd.f32 %v8210_v23, %v18102_v48  ;;  %v8208_v44 = vpop.permute.xlu0 %8207  ;;  %8251 = vrot.lane.b32.xlu1 %v8144_v52, %s14515_s22 }
 0xe6b   : > { %v14055_v40 = vpop.eup %14054  ;;  %v8297_v63 = vadd.f32 %v8208_v44, %v18120_v49 }
 0xe6c   : > { %8455 = vrot.lane.b32.xlu0 %v14055_v40, %s14515_s22  ;;  %v14057_v7 = vpop.eup %14056 }
 0xe6d   : > { %14062 = vtanh.f32 %v8297_v63  ;;  %v8214_v61 = vpop.permute.xlu1 %8213 }
 0xe6e   : > { %v14059_v55 = vpop.eup %14058  ;;  %14064 = vtanh.f32 %v8298_v6  ;;  %v8300_v9 = vadd.f32 %v8214_v61, %v18127_v20  ;;  %v8212_v42 = vpop.permute.xlu0 %8211  ;;  %8457 = vrot.lane.b32.xlu1 %v14057_v7, %s14515_s22 }
 0xe6f   : > { %v8299_v48 = vadd.f32 %v8212_v42, %v18050_v4  ;;  %v14061_v32 = vpop.eup %14060 }
 0xe70   : > { %14066 = vtanh.f32 %v8300_v9  ;;  %8461 = vrot.lane.b32.xlu0 %v14059_v55, %s14515_s22 }
 0xe71   : > { %14068 = vtanh.f32 %v8299_v48 }
 0xe73   : > { %v12872_v35 = vpop.f32.mrb[222].mxu1 }
 0xe74   : > { %v8154_v49 = vpop.f32.mrb[223].mxu1  ;;  %8459 = vrot.lane.b32.xlu0 %v14061_v32, %s14515_s22 }
 0xe75   : > { %8255 = vrot.lane.b32.xlu1 %v8154_v49, %s14515_s22  ;;  %v8218_v58 = vpop.permute.xlu1 %8217 }
 0xe76   : > { %v8302_v36 = vadd.f32 %v8218_v58, %v18144_v12  ;;  %v8216_v20 = vpop.permute.xlu0 %8215 }
 0xe77   : > { %v14063_v21 = vpop.eup %14062  ;;  %v8301_v52 = vadd.f32 %v8216_v20, %v18164_v59 }
 0xe78   : > { %v14065_v23 = vpop.eup %14064  ;;  %14070 = vtanh.f32 %v8302_v36  ;;  %8463 = vrot.lane.b32.xlu0 %v14063_v21, %s14515_s22 }
 0xe79   : > { %14072 = vtanh.f32 %v8301_v52  ;;  %8465 = vrot.lane.b32.xlu1 %v14065_v23, %s14515_s22  ;;  %v8222_v4 = vpop.permute.xlu1 %8221 }
 0xe7a   : > { %v14067_v6 = vpop.eup %14066  ;;  %v8304_v44 = vadd.f32 %v8222_v4, %v18185_v0  ;;  %v8220_v40 = vpop.permute.xlu0 %8219 }
 0xe7b   : > { %v8303_v63 = vadd.f32 %v8220_v40, %v18100_v31  ;;  %v14069_v12 = vpop.eup %14068 }
 0xe7c   : > { %14074 = vtanh.f32 %v8304_v44  ;;  %8469 = vrot.lane.b32.xlu0 %v14067_v6, %s14515_s22 }
 0xe7d   : > { %14076 = vtanh.f32 %v8303_v63  ;;  %8257 = vrot.lane.b32.xlu1 %v12872_v35, %s14515_s22 }
 0xe80   : > { %8467 = vrot.lane.b32.xlu0 %v14069_v12, %s14515_s22  ;;  %v8226_v59 = vpop.permute.xlu1 %8225 }
 0xe81   : > { %v8306_v7 = vadd.f32 %v8226_v59, %v18203_v28  ;;  %v8224_v61 = vpop.permute.xlu0 %8223 }
 0xe82   : > { %v14071_v55 = vpop.eup %14070  ;;  %v8305_v9 = vadd.f32 %v8224_v61, %v18224_v18 }
 0xe83   : > { %v14073_v0 = vpop.eup %14072  ;;  %14078 = vtanh.f32 %v8306_v7  ;;  %8473 = vrot.lane.b32.xlu1 %v14071_v55, %s14515_s22 }
 0xe84   : > { %14080 = vtanh.f32 %v8305_v9  ;;  %8471 = vrot.lane.b32.xlu0 %v14073_v0, %s14515_s22  ;;  %v8230_v31 = vpop.permute.xlu1 %8229 }
 0xe85   : > { %v8308_v42 = vadd.f32 %v8230_v31, %v18249_v34  ;;  %v8228_v48 = vpop.permute.xlu0 %8227 }
 0xe86   : > { %v14075_v32 = vpop.eup %14074  ;;  %v8307_v35 = vadd.f32 %v8228_v48, %v18150_v15 }
 0xe87   : > { %v14077_v49 = vpop.eup %14076  ;;  %14082 = vtanh.f32 %v8308_v42  ;;  %8477 = vrot.lane.b32.xlu1 %v14075_v32, %s14515_s22 }
 0xe88   : > { %14084 = vtanh.f32 %v8307_v35  ;;  %8475 = vrot.lane.b32.xlu0 %v14077_v49, %s14515_s22  ;;  %v21122_v35 = vld [vmem:[#allocation177_spill] sm:$0xff] }
 0xe89   : > { %v8355_v49 = vsub.f32 1.0, %v21122_v35 }
 0xe8d   : > { %v14079_v28 = vpop.eup %14078 }
 0xe8e   : > { %v14081_v18 = vpop.eup %14080  ;;  %8481 = vrot.lane.b32.xlu1 %v14079_v28, %s14515_s22  ;;  %v8234_v58 = vpop.permute.xlu1 %8233 }
 0xe8f   : > { %v8310_v36 = vadd.f32 %v8234_v58, %v18262_v37  ;;  %v8232_v20 = vpop.permute.xlu0 %8231  ;;  %8479 = vrot.lane.b32.xlu0 %v14081_v18, %s14515_s22 }
 0xe90   : > { %v8309_v34 = vadd.f32 %v8232_v20, %v18280_v50  ;;  %v21123_v20 = vld [vmem:[#allocation105_spill] sm:$0xff] }
 0xe91   : > { %v14083_v15 = vpop.eup %14082  ;;  %14086 = vtanh.f32 %v8310_v36 }
 0xe92   : > { %v14085_v21 = vpop.eup %14084  ;;  %14088 = vtanh.f32 %v8309_v34  ;;  %8485 = vrot.lane.b32.xlu1 %v14083_v15, %s14515_s22  ;;  %v8387_v34 = vmul.f32 %v8355_v49, %v21123_v20 }
 0xe93   : > { %8483 = vrot.lane.b32.xlu0 %v14085_v21, %s14515_s22 }
 0xe9b   : > { %v14087_v52 = vpop.eup %14086 }
 0xe9c   : > { %v14089_v23 = vpop.eup %14088  ;;  %8489 = vrot.lane.b32.xlu1 %v14087_v52, %s14515_s22  ;;  %v8238_v4 = vpop.permute.xlu1 %8237 }
 0xe9d   : > { %v8312_v37 = vadd.f32 %v8238_v4, %v18299_v41  ;;  %v8236_v6 = vpop.permute.xlu0 %8235  ;;  %8487 = vrot.lane.b32.xlu0 %v14089_v23, %s14515_s22  ;;  %v8357_v4 = vsub.f32 1.0, %v18196_v24 }
 0xe9e   : > { %v8311_v50 = vadd.f32 %v8236_v6, %v18310_v43 }
 0xe9f   : > { %14090 = vtanh.f32 %v8312_v37 }
 0xea0   : > { %14092 = vtanh.f32 %v8311_v50 }
 0xea9   : > { %v14091_v44 = vpop.eup %14090 }
 0xeaa   : > { %v14093_v40 = vpop.eup %14092  ;;  %8493 = vrot.lane.b32.xlu1 %v14091_v44, %s14515_s22  ;;  %v8242_v63 = vpop.permute.xlu1 %8241  ;;  %v21127_v44 = vld [vmem:[#allocation109_spill] sm:$0xff] }
 0xeab   : > { %v8314_v12 = vadd.f32 %v8242_v63, %v18332_v8  ;;  %v8240_v59 = vpop.permute.xlu0 %8239  ;;  %8491 = vrot.lane.b32.xlu0 %v14093_v40, %s14515_s22  ;;  %v8389_v40 = vmul.f32 %v8357_v4, %v21127_v44  ;;  %v21128_v63 = vld [vmem:[#allocation51_spill] sm:$0xff] }
 0xeac   : > { %v8313_v7 = vadd.f32 %v8240_v59, %v18338_v27  ;;  %v21129_v59 = vld [vmem:[#allocation53_spill] sm:$0xff]  ;;  %v21215_v44 = vld [vmem:[#allocation43_spill] sm:$0xff] }
 0xead   : > { %14094 = vtanh.f32 %v8314_v12 }
 0xeae   : > { %14096 = vtanh.f32 %v8313_v7 }
 0xeb7   : > { %v14095_v41 = vpop.eup %14094 }
 0xeb8   : > { %v14097_v61 = vpop.eup %14096  ;;  %8497 = vrot.lane.b32.xlu1 %v14095_v41, %s14515_s22  ;;  %v8246_v43 = vpop.permute.xlu1 %8245  ;;  %v21131_v41 = vld [vmem:[#allocation110_spill] sm:$0xff] }
 0xeb9   : > { %v8316_v55 = vadd.f32 %v8246_v43, %v18358_v5  ;;  %v8244_v9 = vpop.permute.xlu0 %8243  ;;  %8495 = vrot.lane.b32.xlu0 %v14097_v61, %s14515_s22 }
 0xeba   : > { %v8315_v0 = vadd.f32 %v8244_v9, %v18370_v19  ;;  %v8356_v19 = vsub.f32 1.0, %v18172_v13 }
 0xebb   : > { %14098 = vtanh.f32 %v8316_v55 }
 0xebc   : > { %14100 = vtanh.f32 %v8315_v0  ;;  %v8360_v0 = vsub.f32 1.0, %v18207_v46 }
 0xec5   : > { %v14099_v8 = vpop.eup %14098 }
 0xec6   : > { %v14101_v31 = vpop.eup %14100  ;;  %8501 = vrot.lane.b32.xlu1 %v14099_v8, %s14515_s22 }
 0xec7   : > { %8499 = vrot.lane.b32.xlu0 %v14101_v31, %s14515_s22 }
 0xeca   : > { %v8250_v27 = vpop.permute.xlu1 %8249 }
 0xecb   : > { %v8318_v42 = vadd.f32 %v8250_v27, %v18386_v51  ;;  %v21133_v27 = vld [vmem:[#allocation132_spill] sm:$0xff] }
 0xecd   : > { %14102 = vtanh.f32 %v8318_v42 }
 0xece   : > { %v8248_v48 = vpop.permute.xlu1 %8247 }
 0xecf   : > { %v8317_v5 = vadd.f32 %v8248_v48, %v18402_v62  ;;  %v21124_v62 = vld [vmem:[#allocation128_spill] sm:$0xff] }
 0xed0   : > { %v8388_v21 = vmul.f32 %v8356_v19, %v21124_v62 }
 0xed1   : > { %14104 = vtanh.f32 %v8317_v5 }
 0xed4   : > { %v8454_v32 = vpop.permute.xlu0 %8453 }
 0xed5   : > { %v8548_v18 = vmul.f32 %v18172_v13, %v8454_v32  ;;  %v8361_v32 = vsub.f32 1.0, %v18228_v57 }
 0xed7   : > { %v14103_v28 = vpop.eup %14102  ;;  %v18604_v37 = vadd.f32 %v8548_v18, %v8388_v21 }
 0xed8   : > { %v8452_v58 = vpop.permute.xlu0 %8451  ;;  %8505 = vrot.lane.b32.xlu1 %v14103_v28, %s14515_s22  ;;  %v8254_v36 = vpop.permute.xlu1 %8253  ;;  %v8362_v28 = vsub.f32 1.0, %v18217_v11 }
 0xed9   : > { %v8547_v51 = vmul.f32 %v21122_v35, %v8452_v58  ;;  %v8320_v15 = vadd.f32 %v8254_v36, %v18416_v30  ;;  %21126 = vst [vmem:[#allocation155_spill] sm:$0xff] %v18604_v37  ;;  %v8358_v30 = vsub.f32 1.0, %v18181_v1  ;;  %v21134_v35 = vld [vmem:[#allocation112_spill] sm:$0xff] }
 0xeda   : > { %v8392_v49 = vmul.f32 %v8360_v0, %v21134_v35 }
 0xedb   : > { %v14105_v52 = vpop.eup %14104  ;;  %v18601_v23 = vadd.f32 %v8547_v51, %v8387_v34  ;;  %14106 = vtanh.f32 %v8320_v15  ;;  %v8390_v61 = vmul.f32 %v8358_v30, %v21131_v41  ;;  %v21137_v34 = vld [vmem:[#allocation113_spill] sm:$0xff]  ;;  %v21138_v15 = vld [vmem:[#allocation116_spill] sm:$0xff]  ;;  %v8364_v30 = vsub.f32 1.0, %v18239_v14 }
 0xedc   : > { %8503 = vrot.lane.b32.xlu0 %v14105_v52, %s14515_s22  ;;  %v8252_v13 = vpop.permute.xlu1 %8251  ;;  %v8394_v21 = vmul.f32 %v8362_v28, %v21138_v15 }
 0xedd   : > { %21125 = vst [vmem:[#allocation170_spill] sm:$0xff] %v18601_v23  ;;  %v8319_v6 = vadd.f32 %v8252_v13, %v18427_v53  ;;  %12881 = vmatprep.mubr.msk.f32.mxu0 %vm1225_vm0, %v18601_v23  ;;  %12937 = vmatprep.mubr.msk.f32.mxu1 %vm1225_vm0, %v18601_v23 }
 0xede   : > { %12882 = vmatmul.mubr.msk.f32.vlgmr.msra.gmra.mrb[224].mxu0 %vm1225_vm0, %v18604_v37  ;;  %12938 = vmatmul.mubr.msk.f32.vlgmr.msra.gmra.mrb[224].mxu1 %vm1225_vm0, %v18604_v37  ;;  %v8456_v50 = vpop.permute.xlu0 %8455 }
 0xedf   : > { %14108 = vtanh.f32 %v8319_v6  ;;  %v8549_v53 = vmul.f32 %v18196_v24, %v8456_v50  ;;  %13196 = vmatpush3.bf16.msra.mxu0 %v21128_v63  ;;  %v8359_v24 = vsub.f32 1.0, %v18107_v33  ;;  %v21141_v63 = vld [vmem:[#allocation118_spill] sm:$0xff] }
 0xee0   : > { %v8458_v12 = vpop.permute.xlu1 %8457  ;;  %13198 = vmatprep.subr.bf16.mxu0 %v21129_v59 }
 0xee1   : > { %v18621_v7 = vadd.f32 %v8549_v53, %v8389_v40  ;;  %v8550_v43 = vmul.f32 %v18181_v1, %v8458_v12  ;;  %v8391_v42 = vmul.f32 %v8359_v24, %v21133_v27 }
 0xee2   : > { %v8462_v55 = vpop.permute.xlu0 %8461 }
 0xee3   : > { %21130 = vst [vmem:[#allocation156_spill] sm:$0xff] %v18621_v7  ;;  %v18625_v9 = vadd.f32 %v8550_v43, %v8390_v61  ;;  %12884 = vmatprep.mubr.msk.f32.mxu0 %vm1225_vm0, %v18621_v7  ;;  %12940 = vmatprep.mubr.msk.f32.mxu1 %vm1225_vm0, %v18621_v7  ;;  %v8552_v1 = vmul.f32 %v18207_v46, %v8462_v55  ;;  %v8365_v61 = vsub.f32 1.0, %v18258_v10  ;;  %v21142_v55 = vld [vmem:[#allocation135_spill] sm:$0xff] }
 0xee4   : > { %13200 = vmatpush3.bf16.msra.mxu0 %v21129_v59  ;;  %v8396_v24 = vmul.f32 %v8364_v30, %v21142_v55  ;;  %v21154_v30 = vld [vmem:[#allocation157_spill] sm:$0xff] }
 0xee5   : > { %21132 = vst [vmem:[#allocation166_spill] sm:$0xff] %v18625_v9  ;;  %v14107_v8 = vpop.eup %14106  ;;  %12885 = vmatmul.mubr.msk.f32.gmra.mrb[226].mxu0 %vm1225_vm0, %v18625_v9  ;;  %12941 = vmatmul.mubr.msk.f32.gmra.mrb[226].mxu1 %vm1225_vm0, %v18625_v9  ;;  %v18648_v46 = vadd.f32 %v8552_v1, %v8392_v49 }
 0xee6   : > { %v8460_v31 = vpop.permute.xlu0 %8459  ;;  %8509 = vrot.lane.b32.xlu1 %v14107_v8, %s14515_s22 }
 0xee7   : > { %v8551_v48 = vmul.f32 %v18107_v33, %v8460_v31  ;;  %v8256_v5 = vpop.permute.xlu1 %8255  ;;  %21136 = vst [vmem:[#allocation160_spill] sm:$0xff] %v18648_v46  ;;  %v8393_v33 = vmul.f32 %v8361_v32, %v21137_v34  ;;  %v21146_v32 = vld [vmem:[#allocation144_spill] sm:$0xff] }
 0xee8   : > { %v8321_v19 = vadd.f32 %v8256_v5, %v18448_v17  ;;  %v8367_v5 = vsub.f32 1.0, %v18189_v2 }
 0xee9   : > { %v14109_v18 = vpop.eup %14108  ;;  %v18646_v58 = vadd.f32 %v8551_v48, %v8391_v42  ;;  %v21145_v42 = vld [vmem:[#allocation137_spill] sm:$0xff] }
 0xeea   : > { %14110 = vtanh.f32 %v8321_v19  ;;  %v8464_v36 = vpop.permute.xlu0 %8463  ;;  %8507 = vrot.lane.b32.xlu0 %v14109_v18, %s14515_s22  ;;  %v8397_v48 = vmul.f32 %v8365_v61, %v21145_v42 }
 0xeeb   : > { %21135 = vst [vmem:[#allocation159_spill] sm:$0xff] %v18646_v58  ;;  %v8553_v51 = vmul.f32 %v18228_v57, %v8464_v36  ;;  %12887 = vmatprep.mubr.msk.f32.mxu0 %vm1225_vm0, %v18646_v58  ;;  %12943 = vmatprep.mubr.msk.f32.mxu1 %vm1225_vm0, %v18646_v58  ;;  %v8466_v17 = vpop.permute.xlu1 %8465 }
 0xeec   : > { %v8554_v52 = vmul.f32 %v18217_v11, %v8466_v17  ;;  %12888 = vmatmul.mubr.msk.f32.gmra.mrb[228].mxu0 %vm1225_vm0, %v18648_v46  ;;  %12944 = vmatmul.mubr.msk.f32.gmra.mrb[228].mxu1 %vm1225_vm0, %v18648_v46  ;;  %v8363_v11 = vsub.f32 1.0, %v18156_v22 }
 0xeed   : > { %v18663_v4 = vadd.f32 %v8553_v51, %v8393_v33  ;;  %v21149_v33 = vld [vmem:[#allocation145_spill] sm:$0xff] }
 0xeee   : > { %v18665_v57 = vadd.f32 %v8554_v52, %v8394_v21  ;;  %v8470_v13 = vpop.permute.xlu0 %8469  ;;  %v8395_v12 = vmul.f32 %v8363_v11, %v21141_v63  ;;  %v8399_v51 = vmul.f32 %v8367_v5, %v21149_v33  ;;  %v21150_v52 = vld [vmem:[#allocation103_spill] sm:$0xff] }
 0xeef   : > { %21139 = vst [vmem:[#allocation171_spill] sm:$0xff] %v18663_v4  ;;  %12890 = vmatprep.mubr.msk.f32.mxu0 %vm1225_vm0, %v18663_v4  ;;  %12946 = vmatprep.mubr.msk.f32.mxu1 %vm1225_vm0, %v18663_v4  ;;  %v8258_v6 = vpop.permute.xlu1 %8257  ;;  %v8556_v40 = vmul.f32 %v18239_v14, %v8470_v13 }
 0xef0   : > { %21140 = vst [vmem:[#allocation162_spill] sm:$0xff] %v18665_v57  ;;  %v8322_v50 = vadd.f32 %v8258_v6, %v18441_v29  ;;  %12891 = vmatmul.mubr.msk.f32.gmra.mrb[230].mxu0 %vm1225_vm0, %v18665_v57  ;;  %12947 = vmatmul.mubr.msk.f32.gmra.mrb[230].mxu1 %vm1225_vm0, %v18665_v57  ;;  %v8366_v29 = vsub.f32 1.0, %v18247_v39  ;;  %v21153_v6 = vld [vmem:[#allocation151_spill] sm:$0xff] }
 0xef1   : > { %v18687_v1 = vadd.f32 %v8556_v40, %v8396_v24  ;;  %v8369_v11 = vsub.f32 1.0, %v21153_v6  ;;  %v21156_v24 = vld [vmem:[#allocation178_spill] sm:$0xff] }
 0xef2   : > { %14112 = vtanh.f32 %v8322_v50  ;;  %v8468_v53 = vpop.permute.xlu0 %8467  ;;  %v8398_v49 = vmul.f32 %v8366_v29, %v21146_v32  ;;  %v8370_v50 = vsub.f32 1.0, %v21154_v30  ;;  %v8371_v29 = vsub.f32 1.0, %v21156_v24 }
 0xef3   : > { %v8555_v59 = vmul.f32 %v18156_v22, %v8468_v53  ;;  %21144 = vst [vmem:[#allocation167_spill] sm:$0xff] %v18687_v1 }
 0xef4   : > { %v14111_v43 = vpop.eup %14110 }
 0xef5   : > { %v18684_v0 = vadd.f32 %v8555_v59, %v8395_v12  ;;  %8511 = vrot.lane.b32.xlu0 %v14111_v43, %s14515_s22  ;;  %v8474_v8 = vpop.permute.xlu1 %8473  ;;  %v21155_v59 = vld [vmem:[#allocation143_spill] sm:$0xff] }
 0xef6   : > { %v8558_v14 = vmul.f32 %v18247_v39, %v8474_v8  ;;  %v8472_v31 = vpop.permute.xlu0 %8471  ;;  %v8368_v39 = vsub.f32 1.0, %v18269_v25  ;;  %v8401_v61 = vmul.f32 %v8369_v11, %v21155_v59  ;;  %v21157_v8 = vld [vmem:[#allocation139_spill] sm:$0xff]  ;;  %v21165_v11 = vld [vmem:[#allocation169_spill] sm:$0xff] }
 0xef7   : > { %21143 = vst [vmem:[#allocation163_spill] sm:$0xff] %v18684_v0  ;;  %v8557_v22 = vmul.f32 %v18258_v10, %v8472_v31  ;;  %12893 = vmatprep.mubr.msk.f32.mxu0 %vm1225_vm0, %v18684_v0  ;;  %12949 = vmatprep.mubr.msk.f32.mxu1 %vm1225_vm0, %v18684_v0  ;;  %v21158_v31 = vld [vmem:[#allocation158_spill] sm:$0xff] }
 0xef8   : > { %12894 = vmatmul.mubr.msk.f32.gmra.mrb[232].mxu0 %vm1225_vm0, %v18687_v1  ;;  %12950 = vmatmul.mubr.msk.f32.gmra.mrb[232].mxu1 %vm1225_vm0, %v18687_v1  ;;  %v18707_v28 = vadd.f32 %v8558_v14, %v8398_v49  ;;  %v8400_v13 = vmul.f32 %v8368_v39, %v21150_v52  ;;  %v8402_v14 = vmul.f32 %v8370_v50, %v21157_v8  ;;  %v21166_v50 = vld [vmem:[#allocation152_spill] sm:$0xff] }
 0xef9   : > { %v18703_v19 = vadd.f32 %v8557_v22, %v8397_v48  ;;  %9863 = vrot.lane.b32.xlu0 %v18604_v37, %s14513_s28  ;;  %v8478_v10 = vpop.permute.xlu1 %8477  ;;  %v8372_v48 = vsub.f32 1.0, %v21158_v31 }
 0xefa   : > { %21148 = vst [vmem:[#allocation172_spill] sm:$0xff] %v18707_v28  ;;  %v8560_v18 = vmul.f32 %v18269_v25, %v8478_v10  ;;  %v8476_v36 = vpop.permute.xlu0 %8475 }
 0xefb   : > { %21147 = vst [vmem:[#allocation168_spill] sm:$0xff] %v18703_v19  ;;  %v8559_v17 = vmul.f32 %v18189_v2, %v8476_v36  ;;  %12896 = vmatprep.mubr.msk.f32.mxu0 %vm1225_vm0, %v18703_v19  ;;  %12952 = vmatprep.mubr.msk.f32.mxu1 %vm1225_vm0, %v18703_v19 }
 0xefc   : > { %v14113_v21 = vpop.eup %14112  ;;  %12897 = vmatmul.mubr.msk.f32.gmra.mrb[234].mxu0 %vm1225_vm0, %v18707_v28  ;;  %12953 = vmatmul.mubr.msk.f32.gmra.mrb[234].mxu1 %vm1225_vm0, %v18707_v28  ;;  %v18726_v2 = vadd.f32 %v8560_v18, %v8400_v13  ;;  %v21161_v18 = vld [vmem:[#allocation141_spill] sm:$0xff] }
 0xefd   : > { %v18721_v25 = vadd.f32 %v8559_v17, %v8399_v51  ;;  %9865 = vrot.lane.b32.xlu0 %v18621_v7, %s14513_s28  ;;  %8513 = vrot.lane.b32.xlu1 %v14113_v21, %s14515_s22  ;;  %v8403_v36 = vmul.f32 %v8371_v29, %v21161_v18  ;;  %v21162_v17 = vld [vmem:[#allocation104_spill] sm:$0xff] }
 0xefe   : > { %21152 = vst [vmem:[#allocation174_spill] sm:$0xff] %v18726_v2  ;;  %v8404_v21 = vmul.f32 %v8372_v48, %v21162_v17 }
 0xeff   : > { %21151 = vst [vmem:[#allocation173_spill] sm:$0xff] %v18721_v25  ;;  %12899 = vmatprep.mubr.msk.f32.mxu0 %vm1225_vm0, %v18721_v25  ;;  %12955 = vmatprep.mubr.msk.f32.mxu1 %vm1225_vm0, %v18721_v25 }
 0xf00   : > { %12900 = vmatmul.mubr.msk.f32.gmra.mrb[236].mxu0 %vm1225_vm0, %v18726_v2  ;;  %12956 = vmatmul.mubr.msk.f32.gmra.mrb[236].mxu1 %vm1225_vm0, %v18726_v2  ;;  %v8482_v40 = vpop.permute.xlu1 %8481 }
 0xf01   : > { %v8562_v53 = vmul.f32 %v21154_v30, %v8482_v40  ;;  %v8480_v12 = vpop.permute.xlu0 %8479  ;;  %9871 = vrot.lane.b32.xlu0 %v18648_v46, %s14513_s28  ;;  %9861 = vrot.lane.b32.xlu1 %v18601_v23, %s14513_s28  ;;  %v8373_v30 = vsub.f32 1.0, %v21165_v11  ;;  %v8374_v40 = vsub.f32 1.0, %v21166_v50 }
 0xf02   : > { %v8561_v43 = vmul.f32 %v21153_v6, %v8480_v12 }
 0xf03   : > { %v18750_v49 = vadd.f32 %v8562_v53, %v8402_v14  ;;  %v21168_v14 = vld [vmem:[#allocation108_spill] sm:$0xff] }
 0xf04   : > { %v18748_v22 = vadd.f32 %v8561_v43, %v8401_v61  ;;  %v8486_v5 = vpop.permute.xlu1 %8485  ;;  %v21167_v43 = vld [vmem:[#allocation114_spill] sm:$0xff] }
 0xf05   : > { %21160 = vst [vmem:[#allocation17_spill] sm:$0xff] %v18750_v49  ;;  %v8564_v39 = vmul.f32 %v21158_v31, %v8486_v5  ;;  %v8484_v10 = vpop.permute.xlu0 %8483  ;;  %9869 = vrot.lane.b32.xlu0 %v18646_v58, %s14513_s28  ;;  %9867 = vrot.lane.b32.xlu1 %v18625_v9, %s14513_s28  ;;  %v8406_v31 = vmul.f32 %v8374_v40, %v21168_v14 }
 0xf06   : > { %21159 = vst [vmem:[#allocation175_spill] sm:$0xff] %v18748_v22  ;;  %v8563_v51 = vmul.f32 %v21156_v24, %v8484_v10  ;;  %12902 = vmatprep.mubr.msk.f32.mxu0 %vm1225_vm0, %v18748_v22  ;;  %12958 = vmatprep.mubr.msk.f32.mxu1 %vm1225_vm0, %v18748_v22  ;;  %v8405_v24 = vmul.f32 %v8373_v30, %v21167_v43 }
 0xf07   : > { %12903 = vmatmul.mubr.msk.f32.gmra.mrb[238].mxu0 %vm1225_vm0, %v18750_v49  ;;  %12959 = vmatmul.mubr.msk.f32.gmra.mrb[238].mxu1 %vm1225_vm0, %v18750_v49  ;;  %v18770_v6 = vadd.f32 %v8564_v39, %v8404_v21  ;;  %v21171_v39 = vld [vmem:[#allocation161_spill] sm:$0xff] }
 0xf08   : > { %v18768_v13 = vadd.f32 %v8563_v51, %v8403_v36  ;;  %v8375_v10 = vsub.f32 1.0, %v21171_v39  ;;  %v21172_v36 = vld [vmem:[#allocation153_spill] sm:$0xff] }
 0xf09   : > { %21164 = vst [vmem:[#allocation54_spill] sm:$0xff] %v18770_v6  ;;  %9873 = vrot.lane.b32.xlu0 %v18663_v4, %s14513_s28  ;;  %9875 = vrot.lane.b32.xlu1 %v18665_v57, %s14513_s28  ;;  %v8376_v51 = vsub.f32 1.0, %v21172_v36  ;;  %v21208_v57 = vld [vmem:[#allocation42_spill] sm:$0xff] }
 0xf0a   : > { %21163 = vst [vmem:[#allocation18_spill] sm:$0xff] %v18768_v13  ;;  %12905 = vmatprep.mubr.msk.f32.mxu0 %vm1225_vm0, %v18768_v13  ;;  %12961 = vmatprep.mubr.msk.f32.mxu1 %vm1225_vm0, %v18768_v13 }
 0xf0b   : > { %12906 = vmatmul.mubr.msk.f32.gmra.mrb[240].mxu0 %vm1225_vm0, %v18770_v6  ;;  %12962 = vmatmul.mubr.msk.f32.gmra.mrb[240].mxu1 %vm1225_vm0, %v18770_v6 }
 0xf0d   : > { %9879 = vrot.lane.b32.xlu0 %v18687_v1, %s14513_s28  ;;  %9883 = vrot.lane.b32.xlu1 %v18707_v28, %s14513_s28 }
 0xf0e   : > { %v8490_v53 = vpop.permute.xlu1 %8489 }
 0xf0f   : > { %v8566_v12 = vmul.f32 %v21166_v50, %v8490_v53  ;;  %v8488_v61 = vpop.permute.xlu0 %8487  ;;  %v21173_v50 = vld [vmem:[#allocation48_spill] sm:$0xff] }
 0xf10   : > { %v8565_v29 = vmul.f32 %v21165_v11, %v8488_v61  ;;  %v8407_v40 = vmul.f32 %v8375_v10, %v21173_v50  ;;  %v21211_v50 = vld [vmem:[#allocation46_spill] sm:$0xff] }
 0xf11   : > { %9877 = vrot.lane.b32.xlu0 %v18684_v0, %s14513_s28  ;;  %9891 = vrot.lane.b32.xlu1 %v18750_v49, %s14513_s28  ;;  %v18800_v5 = vadd.f32 %v8566_v12, %v8406_v31  ;;  %v21174_v12 = vld [vmem:[#allocation131_spill] sm:$0xff]  ;;  %v8377_v31 = vsub.f32 1.0, %v18396_v54  ;;  %v21185_v49 = vld [vmem:[#allocation50_spill] sm:$0xff] }
 0xf12   : > { %v18798_v48 = vadd.f32 %v8565_v29, %v8405_v24  ;;  %v8408_v61 = vmul.f32 %v8376_v51, %v21174_v12 }
 0xf13   : > { %21170 = vst [vmem:[#allocation177_spill] sm:$0xff] %v18800_v5 }
 0xf14   : > { %21169 = vst [vmem:[#allocation176_spill] sm:$0xff] %v18798_v48  ;;  %12908 = vmatprep.mubr.msk.f32.mxu0 %vm1225_vm0, %v18798_v48  ;;  %12964 = vmatprep.mubr.msk.f32.mxu1 %vm1225_vm0, %v18798_v48 }
 0xf15   : > { %9881 = vrot.lane.b32.xlu0 %v18703_v19, %s14513_s28  ;;  %12909 = vmatmul.mubr.msk.f32.gmra.mrb[242].mxu0 %vm1225_vm0, %v18800_v5 }
 0xf16   : > { %12965 = vmatmul.mubr.msk.f32.gmra.mrb[242].mxu1 %vm1225_vm0, %v18800_v5 }
 0xf19   : > { %9887 = vrot.lane.b32.xlu0 %v18726_v2, %s14513_s28 }
 0xf1c   : > { %v8494_v21 = vpop.permute.xlu1 %8493 }
 0xf1d   : > { %v8568_v11 = vmul.f32 %v21172_v36, %v8494_v21  ;;  %v8492_v30 = vpop.permute.xlu0 %8491  ;;  %9885 = vrot.lane.b32.xlu0 %v18721_v25, %s14513_s28 }
 0xf1e   : > { %v8567_v53 = vmul.f32 %v21171_v39, %v8492_v30  ;;  %v21177_v39 = vld [vmem:[#allocation164_spill] sm:$0xff] }
 0xf1f   : > { %v18824_v29 = vadd.f32 %v8568_v11, %v8408_v61  ;;  %v8378_v10 = vsub.f32 1.0, %v21177_v39  ;;  %v21178_v11 = vld [vmem:[#allocation130_spill] sm:$0xff] }
 0xf20   : > { %v18822_v24 = vadd.f32 %v8567_v53, %v8407_v40  ;;  %v8409_v30 = vmul.f32 %v8377_v31, %v21178_v11  ;;  %v21179_v53 = vld [vmem:[#allocation120_spill] sm:$0xff] }
 0xf21   : > { %21176 = vst [vmem:[#allocation53_spill] sm:$0xff] %v18824_v29  ;;  %9889 = vrot.lane.b32.xlu0 %v18748_v22, %s14513_s28  ;;  %v8410_v61 = vmul.f32 %v8378_v10, %v21179_v53 }
 0xf22   : > { %21175 = vst [vmem:[#allocation51_spill] sm:$0xff] %v18822_v24  ;;  %12911 = vmatprep.mubr.msk.f32.mxu0 %vm1225_vm0, %v18822_v24  ;;  %12967 = vmatprep.mubr.msk.f32.mxu1 %vm1225_vm0, %v18822_v24 }
 0xf23   : > { %12912 = vmatmul.mubr.msk.f32.gmra.mrb[244].mxu0 %vm1225_vm0, %v18824_v29  ;;  %12968 = vmatmul.mubr.msk.f32.gmra.mrb[244].mxu1 %vm1225_vm0, %v18824_v29 }
 0xf25   : > { %9895 = vrot.lane.b32.xlu0 %v18770_v6, %s14513_s28  ;;  %v21231_v6 = vld [vmem:[#allocation121_spill] sm:$0xff] }
 0xf29   : > { %9893 = vrot.lane.b32.xlu0 %v18768_v13, %s14513_s28 }
 0xf2a   : > { %v8498_v36 = vpop.permute.xlu1 %8497 }
 0xf2b   : > { %v8570_v51 = vmul.f32 %v21177_v39, %v8498_v36  ;;  %v8496_v21 = vpop.permute.xlu0 %8495  ;;  %v21183_v39 = vld [vmem:[#allocation154_spill] sm:$0xff] }
 0xf2c   : > { %v8569_v40 = vmul.f32 %v18396_v54, %v8496_v21  ;;  %v21182_v54 = vld [vmem:[#allocation165_spill] sm:$0xff]  ;;  %v8380_v10 = vsub.f32 1.0, %v21183_v39 }
 0xf2d   : > { %9897 = vrot.lane.b32.xlu0 %v18798_v48, %s14513_s28  ;;  %v18850_v59 = vadd.f32 %v8570_v51, %v8410_v61  ;;  %v8379_v31 = vsub.f32 1.0, %v21182_v54 }
 0xf2e   : > { %v18848_v22 = vadd.f32 %v8569_v40, %v8409_v30  ;;  %v21184_v30 = vld [vmem:[#allocation47_spill] sm:$0xff]  ;;  %v8412_v8 = vmul.f32 %v8380_v10, %v21185_v49 }
 0xf2f   : > { %21181 = vst [vmem:[#allocation157_spill] sm:$0xff] %v18850_v59  ;;  %v8411_v40 = vmul.f32 %v8379_v31, %v21184_v30  ;;  %v21206_v30 = vld [vmem:[#allocation40_spill] sm:$0xff] }
 0xf30   : > { %21180 = vst [vmem:[#allocation151_spill] sm:$0xff] %v18848_v22  ;;  %12914 = vmatprep.mubr.msk.f32.mxu0 %vm1225_vm0, %v18848_v22  ;;  %12970 = vmatprep.mubr.msk.f32.mxu1 %vm1225_vm0, %v18848_v22 }
 0xf31   : > { %12915 = vmatmul.mubr.msk.f32.gmra.mrb[246].mxu0 %vm1225_vm0, %v18850_v59  ;;  %12971 = vmatmul.mubr.msk.f32.gmra.mrb[246].mxu1 %vm1225_vm0, %v18850_v59 }
 0xf38   : > { %v8502_v36 = vpop.permute.xlu1 %8501 }
 0xf39   : > { %v8572_v51 = vmul.f32 %v21183_v39, %v8502_v36  ;;  %v8500_v21 = vpop.permute.xlu0 %8499  ;;  %v8382_v39 = vsub.f32 1.0, %v18433_v45  ;;  %v21188_v36 = vld [vmem:[#allocation123_spill] sm:$0xff] }
 0xf3a   : > { %v8571_v61 = vmul.f32 %v21182_v54, %v8500_v21  ;;  %v8381_v54 = vsub.f32 1.0, %v18450_v26 }
 0xf3b   : > { %v18868_v33 = vadd.f32 %v8572_v51, %v8412_v8 }
 0xf3c   : > { %v18866_v25 = vadd.f32 %v8571_v61, %v8411_v40  ;;  %v8413_v51 = vmul.f32 %v8381_v54, %v21188_v36  ;;  %v21189_v40 = vld [vmem:[#allocation133_spill] sm:$0xff] }
 0xf3d   : > { %21187 = vst [vmem:[#allocation158_spill] sm:$0xff] %v18868_v33  ;;  %v8414_v61 = vmul.f32 %v8382_v39, %v21189_v40 }
 0xf3e   : > { %21186 = vst [vmem:[#allocation178_spill] sm:$0xff] %v18866_v25  ;;  %12917 = vmatprep.mubr.msk.f32.mxu0 %vm1225_vm0, %v18866_v25  ;;  %12973 = vmatprep.mubr.msk.f32.mxu1 %vm1225_vm0, %v18866_v25 }
 0xf3f   : > { %12918 = vmatmul.mubr.msk.f32.gmra.mrb[248].mxu0 %vm1225_vm0, %v18868_v33  ;;  %12974 = vmatmul.mubr.msk.f32.gmra.mrb[248].mxu1 %vm1225_vm0, %v18868_v33 }
 0xf4a   : > { %v8506_v31 = vpop.permute.xlu1 %8505 }
 0xf4b   : > { %v8574_v8 = vmul.f32 %v18433_v45, %v8506_v31  ;;  %v8384_v31 = vsub.f32 1.0, %v18462_v16 }
 0xf4d   : > { %v18886_v52 = vadd.f32 %v8574_v8, %v8414_v61  ;;  %v21192_v8 = vld [vmem:[#allocation126_spill] sm:$0xff] }
 0xf4e   : > { %v8504_v10 = vpop.permute.xlu0 %8503 }
 0xf4f   : > { %v8573_v21 = vmul.f32 %v18450_v26, %v8504_v10  ;;  %21191 = vst [vmem:[#allocation152_spill] sm:$0xff] %v18886_v52  ;;  %v8383_v26 = vsub.f32 1.0, %v18468_v3 }
 0xf51   : > { %v18884_v2 = vadd.f32 %v8573_v21, %v8413_v51  ;;  %v8415_v10 = vmul.f32 %v8383_v26, %v21192_v8  ;;  %v21193_v21 = vld [vmem:[#allocation49_spill] sm:$0xff] }
 0xf52   : > { %v8416_v61 = vmul.f32 %v8384_v31, %v21193_v21 }
 0xf53   : > { %21190 = vst [vmem:[#allocation169_spill] sm:$0xff] %v18884_v2  ;;  %12920 = vmatprep.mubr.msk.f32.mxu0 %vm1225_vm0, %v18884_v2  ;;  %12976 = vmatprep.mubr.msk.f32.mxu1 %vm1225_vm0, %v18884_v2 }
 0xf54   : > { %12921 = vmatmul.mubr.msk.f32.gmra.mrb[250].mxu0 %vm1225_vm0, %v18886_v52  ;;  %12977 = vmatmul.mubr.msk.f32.gmra.mrb[250].mxu1 %vm1225_vm0, %v18886_v52 }
 0xf58   : > { %v8510_v45 = vpop.permute.xlu1 %8509 }
 0xf59   : > { %v8576_v54 = vmul.f32 %v18462_v16, %v8510_v45  ;;  %v8385_v16 = vsub.f32 1.0, %v18481_v38  ;;  %v21196_v45 = vld [vmem:[#allocation149_spill] sm:$0xff] }
 0xf5b   : > { %v18904_v42 = vadd.f32 %v8576_v54, %v8416_v61  ;;  %v8417_v26 = vmul.f32 %v8385_v16, %v21196_v45 }
 0xf5c   : > { %v8508_v39 = vpop.permute.xlu0 %8507 }
 0xf5d   : > { %v8575_v51 = vmul.f32 %v18468_v3, %v8508_v39  ;;  %21195 = vst [vmem:[#allocation153_spill] sm:$0xff] %v18904_v42  ;;  %v8386_v39 = vsub.f32 1.0, %v18476_v56 }
 0xf5f   : > { %v18902_v19 = vadd.f32 %v8575_v51, %v8415_v10  ;;  %v21198_v51 = vld [vmem:[#allocation150_spill] sm:$0xff] }
 0xf60   : > { %v8418_v61 = vmul.f32 %v8386_v39, %v21198_v51  ;;  %v21200_v39 = vld [vmem:[#allocation98_spill] sm:$0xff] }
 0xf61   : > { %21194 = vst [vmem:[#allocation161_spill] sm:$0xff] %v18902_v19  ;;  %12923 = vmatprep.mubr.msk.f32.mxu0 %vm1225_vm0, %v18902_v19  ;;  %12979 = vmatprep.mubr.msk.f32.mxu1 %vm1225_vm0, %v18902_v19 }
 0xf62   : > { %12924 = vmatmul.mubr.msk.f32.gmra.mrb[252].mxu0 %vm1225_vm0, %v18904_v42  ;;  %12980 = vmatmul.mubr.msk.f32.gmra.mrb[252].mxu1 %vm1225_vm0, %v18904_v42 }
 0xf67   : > { %v8512_v3 = vpop.permute.xlu0 %8511 }
 0xf68   : > { %v8577_v31 = vmul.f32 %v18481_v38, %v8512_v3  ;;  %v18937_v3 = vld [vmem:[%s20735_s19] ss:$0 sm:$0xff] }
 0xf6a   : > { %v18917_v54 = vadd.f32 %v8577_v31, %v8417_v26 }
 0xf6c   : > { %21197 = vst [vmem:[#allocation164_spill] sm:$0xff] %v18917_v54  ;;  %12926 = vmatprep.mubr.msk.f32.mxu0 %vm1225_vm0, %v18917_v54  ;;  %12982 = vmatprep.mubr.msk.f32.mxu1 %vm1225_vm0, %v18917_v54 }
 0xf6f   : > { %v8514_v10 = vpop.permute.xlu1 %8513 }
 0xf70   : > { %v8578_v8 = vmul.f32 %v18476_v56, %v8514_v10 }
 0xf72   : > { %v18926_v21 = vadd.f32 %v8578_v8, %v8418_v61  ;;  %v21201_v61 = vld [vmem:[#allocation35_spill] sm:$0xff] }
 0xf74   : > { %21199 = vst [vmem:[#allocation165_spill] sm:$0xff] %v18926_v21  ;;  %12927 = vmatmul.mubr.msk.f32.gmra.mrb[254].mxu0 %vm1225_vm0, %v18926_v21  ;;  %12983 = vmatmul.mubr.msk.f32.gmra.mrb[254].mxu1 %vm1225_vm0, %v18926_v21 }
 0xfb1   : > { %v12883_v38 = vpop.f32.mrb[224].mxu0  ;;  %v18932_v16 = vpop.f32.mrb[224].mxu1 }
 0xfb2   : > { %v8779_v26 = vadd.f32 %v18937_v3, %v12883_v38  ;;  %v8773_v31 = vpop.f32.mrb[225].mxu0  ;;  %v18940_v56 = vpop.f32.mrb[225].mxu1  ;;  %v21202_v38 = vmov 1  }
 0xfb3   : > { %v8774_v8 = vadd.f32 %v18937_v3, %v8773_v31  ;;  %v21203_v31 = vld [vmem:[#allocation38_spill] sm:$0xff] }
 0xfb4   : > { %v8933_v10 = vadd.f32 %v8779_v26, %v21200_v39 }
 0xfb5   : > { %v8932_v45 = vadd.f32 %v8774_v8, %v21201_v61 }
 0xfb6   : > { %9003 = vperm.xlu1 %13432, %v8933_v10  }
 0xfb7   : > { %8998 = vperm.xlu0 %13417, %v8932_v45  }
 0xfb8   : > { %v12886_v51 = vpop.f32.mrb[226].mxu0  ;;  %v18945_v28 = vpop.f32.mrb[226].mxu1 }
 0xfb9   : > { %v8789_v32 = vadd.f32 %v18937_v3, %v12886_v51  ;;  %v8783_v36 = vpop.f32.mrb[227].mxu0  ;;  %v18948_v40 = vpop.f32.mrb[227].mxu1  ;;  %v21204_v51 = vmov 0  }
 0xfba   : > { %13433 = vset.pattern.permute.xlu1 %v21202_v38  ;;  %v8784_v8 = vadd.f32 %v18937_v3, %v8783_v36 }
 0xfbb   : > { %9225 = vperm.xlu1 %13433, %v8933_v10   ;;  %13434 = vset.pattern.permute.xlu0 %v21202_v38  ;;  %v8935_v26 = vadd.f32 %v8789_v32, %v21203_v31  ;;  %v21205_v10 = vld [vmem:[#allocation37_spill] sm:$0xff] }
 0xfbc   : > { %9221 = vperm.xlu0 %13434, %v8932_v45   ;;  %v8934_v55 = vadd.f32 %v8784_v8, %v21205_v10 }
 0xfbf   : > { %v12889_v39 = vpop.f32.mrb[228].mxu0  ;;  %v18954_v61 = vpop.f32.mrb[228].mxu1  ;;  %9233 = vperm.xlu1 %13433, %v8935_v26  }
 0xfc0   : > { %v8793_v0 = vpop.f32.mrb[229].mxu0  ;;  %v18956_v63 = vpop.f32.mrb[229].mxu1  ;;  %13435 = vset.pattern.permute.xlu0 %v21204_v51  ;;  %v8799_v4 = vadd.f32 %v18937_v3, %v12889_v39 }
 0xfc1   : > { %v8794_v1 = vadd.f32 %v18937_v3, %v8793_v0  ;;  %9013 = vperm.xlu0 %13435, %v8935_v26   ;;  %v21207_v26 = vld [vmem:[#allocation39_spill] sm:$0xff] }
 0xfc2   : > { %v8937_v8 = vadd.f32 %v8799_v4, %v21207_v26  ;;  %v21209_v4 = vld [vmem:[#allocation44_spill] sm:$0xff] }
 0xfc3   : > { %v8936_v45 = vadd.f32 %v8794_v1, %v21206_v30  ;;  %v12892_v49 = vpop.f32.mrb[230].mxu0  ;;  %v18962_v32 = vpop.f32.mrb[230].mxu1  ;;  %13436 = vset.pattern.permute.xlu1 %v21204_v51 }
 0xfc4   : > { %v8803_v36 = vpop.f32.mrb[231].mxu0  ;;  %v18965_v31 = vpop.f32.mrb[231].mxu1  ;;  %9008 = vperm.xlu1 %13436, %v8934_v55   ;;  %v8809_v0 = vadd.f32 %v18937_v3, %v12892_v49 }
 0xfc5   : > { %9018 = vperm.xlu0 %13435, %v8936_v45   ;;  %v8804_v58 = vadd.f32 %v18937_v3, %v8803_v36 }
 0xfc6   : > { %v8939_v15 = vadd.f32 %v8809_v0, %v21208_v57 }
 0xfc8   : > { %13437 = vset.pattern.permute.xlu1 %v21202_v38 }
 0xfc9   : > { %9229 = vperm.xlu1 %13437, %v8934_v55   ;;  %13440 = vset.pattern.permute.xlu0 %v21202_v38 }
 0xfca   : > { %9237 = vperm.xlu0 %13440, %v8936_v45  }
 0xfcb   : > { %v12895_v1 = vpop.f32.mrb[232].mxu0  ;;  %v18971_v30 = vpop.f32.mrb[232].mxu1 }
 0xfcc   : > { %v8813_v10 = vpop.f32.mrb[233].mxu0  ;;  %v18974_v34 = vpop.f32.mrb[233].mxu1 }
 0xfcd   : > { %v8814_v39 = vadd.f32 %v18937_v3, %v8813_v10  ;;  %13438 = vset.pattern.permute.xlu1 %v21204_v51 }
 0xfce   : > { %9023 = vperm.xlu1 %13438, %v8937_v8   ;;  %13441 = vset.pattern.permute.xlu0 %v21204_v51 }
 0xfcf   : > { %v12898_v55 = vpop.f32.mrb[234].mxu0  ;;  %v18980_v49 = vpop.f32.mrb[234].mxu1  ;;  %9033 = vperm.xlu0 %13441, %v8939_v15   ;;  %v8940_v26 = vadd.f32 %v8814_v39, %v21209_v4  ;;  %v21210_v39 = vld [vmem:[#allocation41_spill] sm:$0xff] }
 0xfd0   : > { %v8823_v45 = vpop.f32.mrb[235].mxu0  ;;  %v18982_v11 = vpop.f32.mrb[235].mxu1  ;;  %v8829_v27 = vadd.f32 %v18937_v3, %v12898_v55  ;;  %v8938_v4 = vadd.f32 %v8804_v58, %v21210_v39  ;;  %v21214_v55 = vld [vmem:[#allocation45_spill] sm:$0xff] }
 0xfd2   : > { %13439 = vset.pattern.permute.xlu1 %v21202_v38  ;;  %v8943_v12 = vadd.f32 %v8829_v27, %v21211_v50  ;;  %v8819_v50 = vadd.f32 %v18937_v3, %v12895_v1  ;;  %v21216_v1 = vld [vmem:[#allocation107_spill] sm:$0xff] }
 0xfd3   : > { %v18986_v53 = vpop.f32.mrb[236].mxu0  ;;  %v18988_v57 = vpop.f32.mrb[236].mxu1  ;;  %9241 = vperm.xlu1 %13439, %v8937_v8   ;;  %9038 = vperm.xlu0 %13441, %v8940_v26  }
 0xfd4   : > { %v8833_v0 = vpop.f32.mrb[237].mxu0  ;;  %v18990_v10 = vpop.f32.mrb[237].mxu1  ;;  %v8941_v9 = vadd.f32 %v8819_v50, %v21215_v44  ;;  %v8824_v50 = vadd.f32 %v18937_v3, %v8823_v45  ;;  %v21222_v45 = vld [vmem:[#allocation117_spill] sm:$0xff] }
 0xfd5   : > { %v8834_v8 = vadd.f32 %v18937_v3, %v8833_v0  ;;  %v19015_v0 = vpop.permute.xlu0 %9863 }
 0xfd7   : > { %9249 = vperm.xlu1 %13439, %v8939_v15   ;;  %13446 = vset.pattern.permute.xlu0 %v21202_v38 }
 0xfd8   : > { %9253 = vperm.xlu0 %13446, %v8940_v26   ;;  %v8944_v26 = vadd.f32 %v8834_v8, %v21214_v55 }
 0xfd9   : > { %v19021_v8 = vpop.permute.xlu0 %9865 }
 0xfda   : > { %v12904_v46 = vpop.f32.mrb[238].mxu0  ;;  %v18996_v35 = vpop.f32.mrb[238].mxu1 }
 0xfdb   : > { %13442 = vset.pattern.permute.xlu1 %v21204_v51  ;;  %v19001_v7 = vpop.f32.mrb[239].mxu0  ;;  %v19003_v36 = vpop.f32.mrb[239].mxu1  ;;  %v8849_v41 = vadd.f32 %v18937_v3, %v12904_v46  ;;  %v21219_v46 = vld [vmem:[#allocation111_spill] sm:$0xff] }
 0xfdc   : > { %21212 = vst [vmem:[#allocation154_spill] sm:$0xff] %v19003_v36  ;;  %9028 = vperm.xlu1 %13442, %v8938_v4   ;;  %13447 = vset.pattern.permute.xlu0 %v21204_v51 }
 0xfdd   : > { %9053 = vperm.xlu0 %13447, %v8943_v12   ;;  %v8947_v48 = vadd.f32 %v8849_v41, %v21216_v1  ;;  %v19035_v23 = vpop.permute.xlu0 %9871  ;;  %v21220_v41 = vld [vmem:[#allocation106_spill] sm:$0xff] }
 0xfde   : > { %v19006_v15 = vpop.f32.mrb[240].mxu0  ;;  %v19008_v58 = vpop.f32.mrb[240].mxu1 }
 0xfdf   : > { %21213 = vst [vmem:[#allocation98_spill] sm:$0xff] %v19008_v58  ;;  %v8853_v39 = vpop.f32.mrb[241].mxu0  ;;  %v19011_v27 = vpop.f32.mrb[241].mxu1 }
 0xfe0   : > { %13443 = vset.pattern.permute.xlu1 %v21202_v38 }
 0xfe1   : > { %9245 = vperm.xlu1 %13443, %v8938_v4   ;;  %9058 = vperm.xlu0 %13447, %v8944_v26   ;;  %v8854_v4 = vadd.f32 %v18937_v3, %v8853_v39  ;;  %v8942_v39 = vadd.f32 %v8824_v50, %v21220_v41 }
 0xfe5   : > { %13444 = vset.pattern.permute.xlu1 %v21204_v51  ;;  %13452 = vset.pattern.permute.xlu0 %v21202_v38 }
 0xfe6   : > { %9043 = vperm.xlu1 %13444, %v8941_v9   ;;  %9269 = vperm.xlu0 %13452, %v8944_v26   ;;  %v8948_v26 = vadd.f32 %v8854_v4, %v21219_v46 }
 0xfe8   : > { %v12910_v55 = vpop.f32.mrb[242].mxu0 }
 0xfe9   : > { %v19025_v43 = vpop.f32.mrb[242].mxu1  ;;  %v19027_v14 = vpop.f32.mrb[243].mxu0  ;;  %v8869_v1 = vadd.f32 %v18937_v3, %v12910_v55  ;;  %v8839_v55 = vadd.f32 %v18937_v3, %v18986_v53 }
 0xfea   : > { %21217 = vst [vmem:[#allocation35_spill] sm:$0xff] %v19025_v43  ;;  %v19029_v44 = vpop.f32.mrb[243].mxu1  ;;  %13445 = vset.pattern.permute.xlu1 %v21202_v38  ;;  %13453 = vset.pattern.permute.xlu0 %v21204_v51  ;;  %v21253_v43 = vld [vmem:[#allocation136_spill] sm:$0xff] }
 0xfeb   : > { %21218 = vst [vmem:[#allocation38_spill] sm:$0xff] %v19029_v44  ;;  %9257 = vperm.xlu1 %13445, %v8941_v9   ;;  %9073 = vperm.xlu0 %13453, %v8947_v48   ;;  %v19041_v9 = vpop.permute.xlu0 %9869  ;;  %v8951_v46 = vadd.f32 %v8869_v1, %v21222_v45  ;;  %v21226_v1 = vld [vmem:[#allocation115_spill] sm:$0xff]  ;;  %v21246_v44 = vld [vmem:[#allocation134_spill] sm:$0xff] }
 0xfec   : > { %v8945_v45 = vadd.f32 %v8839_v55, %v21226_v1  ;;  %v8844_v55 = vadd.f32 %v18937_v3, %v19001_v7  ;;  %v8859_v7 = vadd.f32 %v18937_v3, %v19006_v15 }
 0xfef   : > { %9265 = vperm.xlu1 %13445, %v8943_v12   ;;  %9078 = vperm.xlu0 %13453, %v8948_v26   ;;  %v19058_v62 = vpop.permute.xlu0 %9873 }
 0xff0   : > { %21225 = vst [vmem:[#allocation39_spill] sm:$0xff] %v19058_v62 }
 0xff3   : > { %13448 = vset.pattern.permute.xlu1 %v21204_v51  ;;  %13458 = vset.pattern.permute.xlu0 %v21202_v38  ;;  %v19065_v53 = vpop.permute.xlu0 %9879 }
 0xff4   : > { %9048 = vperm.xlu1 %13448, %v8942_v39   ;;  %9285 = vperm.xlu0 %13458, %v8948_v26   ;;  %v21224_v26 = vld [vmem:[#allocation119_spill] sm:$0xff]  ;;  %21227 = vst [vmem:[#allocation42_spill] sm:$0xff] %v19065_v53 }
 0xff6   : > { %v19043_v20 = vpop.f32.mrb[244].mxu0  ;;  %v19045_v4 = vpop.f32.mrb[244].mxu1 }
 0xff7   : > { %21221 = vst [vmem:[#allocation37_spill] sm:$0xff] %v19045_v4  ;;  %v8873_v12 = vpop.f32.mrb[245].mxu0  ;;  %v19048_v37 = vpop.f32.mrb[245].mxu1 }
 0xff8   : > { %21223 = vst [vmem:[#allocation40_spill] sm:$0xff] %v19048_v37  ;;  %v8874_v50 = vadd.f32 %v18937_v3, %v8873_v12  ;;  %13449 = vset.pattern.permute.xlu1 %v21202_v38  ;;  %13459 = vset.pattern.permute.xlu0 %v21204_v51  ;;  %v19077_v13 = vpop.permute.xlu0 %9877 }
 0xff9   : > { %9261 = vperm.xlu1 %13449, %v8942_v39   ;;  %9093 = vperm.xlu0 %13459, %v8951_v46  }
 0xffa   : > { %v19056_v41 = vadd.f32 %v8874_v50, %v21224_v26 }
 0xffc   : > { %v19085_v17 = vpop.permute.xlu0 %9881 }
 0xffd   : > { %13450 = vset.pattern.permute.xlu1 %v21204_v51  ;;  %9098 = vperm.xlu0 %13459, %v19056_v41   ;;  %21232 = vst [vmem:[#allocation46_spill] sm:$0xff] %v19085_v17  ;;  %v21252_v17 = vld [vmem:[#allocation138_spill] sm:$0xff] }
 0xffe   : > { %9063 = vperm.xlu1 %13450, %v8945_v45  }
0x1001   : > { %9899 = vrot.lane.b32.xlu0 %v18800_v5, %s14513_s28  ;;  %v21230_v5 = vld [vmem:[#allocation122_spill] sm:$0xff] }
0x1002   : > { %13451 = vset.pattern.permute.xlu1 %v21202_v38 }
0x1003   : > { %9273 = vperm.xlu1 %13451, %v8945_v45   ;;  %v8946_v45 = vadd.f32 %v8844_v55, %v21231_v6  ;;  %v19098_v55 = vpop.permute.xlu0 %9887 }
0x1004   : > { %v19068_v39 = vpop.f32.mrb[246].mxu0  ;;  %v19070_v12 = vpop.f32.mrb[246].mxu1  ;;  %21235 = vst [vmem:[#allocation107_spill] sm:$0xff] %v19098_v55 }
0x1005   : > { %21228 = vst [vmem:[#allocation44_spill] sm:$0xff] %v19070_v12  ;;  %v8883_v50 = vpop.f32.mrb[247].mxu0  ;;  %v19072_v26 = vpop.f32.mrb[247].mxu1 }
0x1006   : > { %21229 = vst [vmem:[#allocation41_spill] sm:$0xff] %v19072_v26  ;;  %v8884_v1 = vadd.f32 %v18937_v3, %v8883_v50 }
0x1007   : > { %9281 = vperm.xlu1 %13451, %v8947_v48  }
0x1008   : > { %v19080_v18 = vadd.f32 %v8884_v1, %v21230_v5  ;;  %v21236_v1 = vld [vmem:[#allocation124_spill] sm:$0xff] }
0x1009   : > { %v8949_v60 = vadd.f32 %v8859_v7, %v21236_v1  ;;  %v8864_v7 = vadd.f32 %v18937_v3, %v19027_v14  ;;  %v8879_v14 = vadd.f32 %v18937_v3, %v19043_v20 }
0x100a   : > { %9108 = vperm.xlu0 %13459, %v19080_v18  }
0x100b   : > { %13454 = vset.pattern.permute.xlu1 %v21204_v51 }
0x100c   : > { %9068 = vperm.xlu1 %13454, %v8946_v45  }
0x100e   : > { %9901 = vrot.lane.b32.xlu0 %v18822_v24, %s14513_s28  ;;  %v21237_v24 = vld [vmem:[#allocation125_spill] sm:$0xff] }
0x1010   : > { %13455 = vset.pattern.permute.xlu1 %v21202_v38 }
0x1011   : > { %9277 = vperm.xlu1 %13455, %v8946_v45   ;;  %v19107_v45 = vpop.permute.xlu1 %9861 }
0x1012   : > { %v19092_v48 = vpop.f32.mrb[248].mxu0  ;;  %v19094_v5 = vpop.f32.mrb[248].mxu1 }
0x1013   : > { %21233 = vst [vmem:[#allocation45_spill] sm:$0xff] %v19094_v5  ;;  %v8893_v6 = vpop.f32.mrb[249].mxu0  ;;  %v19096_v50 = vpop.f32.mrb[249].mxu1 }
0x1014   : > { %21234 = vst [vmem:[#allocation43_spill] sm:$0xff] %v19096_v50  ;;  %v8894_v26 = vadd.f32 %v18937_v3, %v8893_v6  ;;  %v19109_v5 = vpop.permute.xlu0 %9885 }
0x1015   : > { %13456 = vset.pattern.permute.xlu1 %v21204_v51  ;;  %v19116_v6 = vpop.permute.xlu1 %9867 }
0x1016   : > { %v19104_v15 = vadd.f32 %v8894_v26, %v21237_v24  ;;  %9083 = vperm.xlu1 %13456, %v8949_v60   ;;  %v21239_v26 = vld [vmem:[#allocation129_spill] sm:$0xff] }
0x1017   : > { %v8950_v1 = vadd.f32 %v8864_v7, %v21239_v26  ;;  %v21243_v26 = vld [vmem:[#allocation127_spill] sm:$0xff] }
0x1018   : > { %9118 = vperm.xlu0 %13459, %v19104_v15   ;;  %v19118_v24 = vpop.permute.xlu0 %9889 }
0x1019   : > { %21238 = vst [vmem:[#allocation111_spill] sm:$0xff] %v19118_v24  ;;  %v19122_v50 = vpop.permute.xlu1 %9875 }
0x101a   : > { %13457 = vset.pattern.permute.xlu1 %v21202_v38 }
0x101b   : > { %9289 = vperm.xlu1 %13457, %v8949_v60  }
0x101c   : > { %9903 = vrot.lane.b32.xlu0 %v18824_v29, %s14513_s28  ;;  %v19124_v12 = vpop.permute.xlu0 %9895 }
0x101d   : > { %21240 = vst [vmem:[#allocation106_spill] sm:$0xff] %v19124_v12  ;;  %v19139_v24 = vpop.permute.xlu1 %9883 }
0x101e   : > { %21244 = vst [vmem:[#allocation115_spill] sm:$0xff] %v19139_v24 }
0x101f   : > { %9297 = vperm.xlu1 %13457, %v8951_v46  }
0x1020   : > { %v19141_v12 = vpop.permute.xlu0 %9893 }
0x1021   : > { %21245 = vst [vmem:[#allocation122_spill] sm:$0xff] %v19141_v12  ;;  %v19148_v20 = vpop.permute.xlu1 %9891 }
0x1022   : > { %21247 = vst [vmem:[#allocation121_spill] sm:$0xff] %v19148_v20 }
0x1023   : > { %13460 = vset.pattern.permute.xlu1 %v21204_v51 }
0x1024   : > { %9088 = vperm.xlu1 %13460, %v8950_v1  }
0x1027   : > { %v19126_v60 = vpop.f32.mrb[250].mxu0  ;;  %v19128_v29 = vpop.f32.mrb[250].mxu1 }
0x1028   : > { %21241 = vst [vmem:[#allocation117_spill] sm:$0xff] %v19128_v29  ;;  %13461 = vset.pattern.permute.xlu1 %v21202_v38  ;;  %v8903_v46 = vpop.f32.mrb[251].mxu0  ;;  %v19133_v37 = vpop.f32.mrb[251].mxu1  ;;  %v8953_v29 = vadd.f32 %v8879_v14, %v21246_v44  ;;  %v8889_v44 = vadd.f32 %v18937_v3, %v19068_v39  ;;  %v21254_v39 = vld [vmem:[#allocation56_spill] sm:$0xff] }
0x1029   : > { %21242 = vst [vmem:[#allocation119_spill] sm:$0xff] %v19133_v37  ;;  %v8904_v7 = vadd.f32 %v18937_v3, %v8903_v46  ;;  %9293 = vperm.xlu1 %13461, %v8950_v1   ;;  %v19150_v1 = vpop.permute.xlu0 %9897 }
0x102a   : > { %21248 = vst [vmem:[#allocation124_spill] sm:$0xff] %v19150_v1 }
0x102b   : > { %v19137_v4 = vadd.f32 %v8904_v7, %v21243_v26 }
0x102d   : > { %13462 = vset.pattern.permute.xlu1 %v21204_v51  ;;  %9128 = vperm.xlu0 %13459, %v19137_v4  }
0x102e   : > { %9103 = vperm.xlu1 %13462, %v8953_v29  }
0x1031   : > { %9905 = vrot.lane.b32.xlu0 %v18848_v22, %s14513_s28  ;;  %v21251_v22 = vld [vmem:[#allocation52_spill] sm:$0xff] }
0x1032   : > { %13463 = vset.pattern.permute.xlu1 %v21202_v38 }
0x1033   : > { %9305 = vperm.xlu1 %13463, %v8953_v29   ;;  %v8955_v29 = vadd.f32 %v8889_v44, %v21252_v17  ;;  %v21257_v44 = vld [vmem:[#allocation140_spill] sm:$0xff] }
0x1035   : > { %v19153_v46 = vpop.f32.mrb[252].mxu0  ;;  %v19155_v7 = vpop.f32.mrb[252].mxu1 }
0x1036   : > { %21249 = vst [vmem:[#allocation125_spill] sm:$0xff] %v19155_v7  ;;  %v9004_v14 = vpop.permute.xlu1 %9003  ;;  %v8999_v26 = vpop.permute.xlu0 %8998 }
0x1037   : > { %v8913_v37 = vpop.f32.mrb[253].mxu0  ;;  %v19159_v55 = vpop.f32.mrb[253].mxu1  ;;  %9301 = vperm.xlu1 %13463, %v19056_v41   ;;  %v9156_v20 = vmul.f32 %v8999_v26, %v21251_v22 }
0x1038   : > { %21250 = vst [vmem:[#allocation129_spill] sm:$0xff] %v19159_v55  ;;  %v8914_v1 = vadd.f32 %v18937_v3, %v8913_v37 }
0x1039   : > { %v9188_v53 = vadd.f32 %v9156_v20, %v21254_v39 }
0x103a   : > { %v19166_v24 = vadd.f32 %v8914_v1, %v21253_v43  ;;  %v9226_v7 = vpop.permute.xlu1 %9225 }
0x103b   : > { %v9222_v58 = vpop.permute.xlu0 %9221  ;;  %13464 = vset.pattern.permute.xlu1 %v21204_v51 }
0x103c   : > { %v9348_v62 = vmul.f32 %v9222_v58, %v21035_v47  ;;  %9138 = vperm.xlu0 %13459, %v19166_v24   ;;  %9113 = vperm.xlu1 %13464, %v8955_v29   ;;  %v8899_v58 = vadd.f32 %v18937_v3, %v19092_v48  ;;  %v21259_v48 = vld [vmem:[#allocation60_spill] sm:$0xff] }
0x103e   : > { %v19172_v41 = vadd.f32 %v9348_v62, %v9188_v53  ;;  %v9234_v26 = vpop.permute.xlu1 %9233  ;;  %v8957_v39 = vadd.f32 %v8899_v58, %v21257_v44 }
0x1040   : > { %21255 = vst [vmem:[#allocation127_spill] sm:$0xff] %v19172_v41  ;;  %v9637_v37 = vadd.f32 %v18940_v56, %v19172_v41  ;;  %9909 = vrot.lane.b32.xlu0 %v18866_v25, %s14513_s28  ;;  %v9014_v17 = vpop.permute.xlu0 %9013  ;;  %13465 = vset.pattern.permute.xlu1 %v21202_v38 }
0x1041   : > { %9313 = vperm.xlu1 %13465, %v8955_v29  }
0x1042   : > { %v11708_v43 = vmul.f32 -1.442695, %v9637_v37 }
0x1043   : > { %v9009_v20 = vpop.permute.xlu1 %9008 }
0x1044   : > { %14114 = vpow2.f32 %v11708_v43  ;;  %v9019_v1 = vpop.permute.xlu0 %9018 }
0x1045   : > { %9309 = vperm.xlu1 %13465, %v19080_v18   ;;  %v9160_v62 = vmul.f32 %v9019_v1, %v21251_v22  ;;  %v21260_v1 = vld [vmem:[#allocation146_spill] sm:$0xff] }
0x1047   : > { %v19183_v53 = vpop.f32.mrb[254].mxu0  ;;  %v19185_v56 = vpop.f32.mrb[254].mxu1  ;;  %v9192_v43 = vadd.f32 %v9160_v62, %v21259_v48 }
0x1048   : > { %21256 = vst [vmem:[#allocation134_spill] sm:$0xff] %v19185_v56  ;;  %v8923_v25 = vpop.f32.mrb[255].mxu0  ;;  %v19188_v41 = vpop.f32.mrb[255].mxu1 }
0x1049   : > { %21258 = vst [vmem:[#allocation52_spill] sm:$0xff] %v19188_v41  ;;  %v8924_v29 = vadd.f32 %v18937_v3, %v8923_v25  ;;  %v9230_v37 = vpop.permute.xlu1 %9229  ;;  %v9238_v55 = vpop.permute.xlu0 %9237  ;;  %13466 = vset.pattern.permute.xlu1 %v21204_v51 }
0x104a   : > { %v9352_v18 = vmul.f32 %v9238_v55, %v21035_v47  ;;  %9123 = vperm.xlu1 %13466, %v8957_v39   ;;  %v8909_v55 = vadd.f32 %v18937_v3, %v19126_v60  ;;  %v21262_v60 = vld [vmem:[#allocation55_spill] sm:$0xff] }
0x104b   : > { %v19195_v36 = vadd.f32 %v8924_v29, %v21260_v1 }
0x104c   : > { %v19197_v56 = vadd.f32 %v9352_v18, %v9192_v43  ;;  %v9157_v43 = vmul.f32 %v9004_v14, %v21251_v22  ;;  %v9349_v18 = vmul.f32 %v9226_v7, %v21035_v47  ;;  %v21263_v14 = vld [vmem:[#allocation64_spill] sm:$0xff]  ;;  %v21264_v7 = vld [vmem:[#allocation57_spill] sm:$0xff] }
0x104d   : > { %9148 = vperm.xlu0 %13459, %v19195_v36   ;;  %v9024_v58 = vpop.permute.xlu1 %9023 }
0x104e   : > { %v14115_v44 = vpop.eup %14114  ;;  %v9641_v25 = vadd.f32 %v18956_v63, %v19197_v56  ;;  %v9034_v41 = vpop.permute.xlu0 %9033  ;;  %13467 = vset.pattern.permute.xlu1 %v21202_v38 }
0x104f   : > { %v9765_v12 = vadd.f32 1.0, %v14115_v44  ;;  %9321 = vperm.xlu1 %13467, %v8957_v39   ;;  %v9159_v39 = vmul.f32 %v9014_v17, %v21251_v22 }
0x1050   : > { %v11712_v62 = vmul.f32 -1.442695, %v9641_v25  ;;  %v9189_v25 = vadd.f32 %v9157_v43, %v21262_v60  ;;  %v9351_v60 = vmul.f32 %v9234_v26, %v21035_v47  ;;  %v21267_v26 = vld [vmem:[#allocation58_spill] sm:$0xff] }
0x1051   : > { %14116 = vrcp.f32 %v9765_v12  ;;  %9911 = vrot.lane.b32.xlu0 %v18868_v33, %s14513_s28  ;;  %v21261_v12 = vld [vmem:[#allocation142_spill] sm:$0xff]  ;;  %v9191_v17 = vadd.f32 %v9159_v39, %v21264_v7 }
0x1052   : > { %v9039_v29 = vpop.permute.xlu0 %9038  ;;  %v9242_v48 = vpop.permute.xlu1 %9241  ;;  %14118 = vpow2.f32 %v11712_v62  ;;  %v8959_v1 = vadd.f32 %v8909_v55, %v21261_v12  ;;  %v9158_v55 = vmul.f32 %v9009_v20, %v21251_v22 }
0x1053   : > { %9317 = vperm.xlu1 %13467, %v19104_v15   ;;  %v9164_v63 = vmul.f32 %v9039_v29, %v21251_v22  ;;  %v19219_v29 = vadd.f32 %v9349_v18, %v9189_v25 }
0x1055   : > { %9913 = vrot.lane.b32.xlu0 %v18884_v2, %s14513_s28  ;;  %v9196_v62 = vadd.f32 %v9164_v63, %v21263_v14  ;;  %v9350_v63 = vmul.f32 %v9230_v37, %v21035_v47  ;;  %v9638_v25 = vadd.f32 %v18932_v16, %v19219_v29  ;;  %v19240_v14 = vadd.f32 %v9351_v60, %v9191_v17 }
0x1056   : > { %v9250_v44 = vpop.permute.xlu1 %9249 }
0x1057   : > { %v9254_v33 = vpop.permute.xlu0 %9253  ;;  %13468 = vset.pattern.permute.xlu1 %v21204_v51  ;;  %v9640_v16 = vadd.f32 %v18945_v28, %v19240_v14 }
0x1058   : > { %v9356_v15 = vmul.f32 %v9254_v33, %v21035_v47  ;;  %9133 = vperm.xlu1 %13468, %v8959_v1  }
0x1059   : > { %9915 = vrot.lane.b32.xlu0 %v18886_v52, %s14513_s28 }
0x105a   : > { %v19225_v12 = vadd.f32 %v9356_v15, %v9196_v62  ;;  %v9190_v62 = vadd.f32 %v9158_v55, %v21267_v26  ;;  %v9161_v15 = vmul.f32 %v9024_v58, %v21251_v22  ;;  %v9163_v55 = vmul.f32 %v9034_v41, %v21251_v22  ;;  %v21270_v26 = vld [vmem:[#allocation61_spill] sm:$0xff] }
0x105b   : > { %v19227_v43 = vpop.eup %14116  ;;  %v9029_v2 = vpop.permute.xlu1 %9028 }
0x105c   : > { %21265 = vst [vmem:[#allocation138_spill] sm:$0xff] %v19225_v12  ;;  %21266 = vst [vmem:[#allocation136_spill] sm:$0xff] %v19227_v43  ;;  %v9645_v33 = vadd.f32 %v18974_v34, %v19225_v12  ;;  %v19233_v18 = vpop.permute.xlu0 %9053  ;;  %13469 = vset.pattern.permute.xlu1 %v21202_v38  ;;  %v9957_v39 = vmul.f32 %v19227_v43, %v19107_v45  ;;  %v14119_v20 = vpop.eup %14118  ;;  %v19245_v7 = vadd.f32 %v9350_v63, %v9190_v62 }
0x105d   : > { %9329 = vperm.xlu1 %13469, %v8959_v1   ;;  %v9769_v37 = vadd.f32 1.0, %v14119_v20  ;;  %v9353_v45 = vmul.f32 %v9242_v48, %v21035_v47  ;;  %v11709_v12 = vmul.f32 -1.442695, %v9638_v25  ;;  %v21268_v1 = vld [vmem:[#allocation59_spill] sm:$0xff]  ;;  %v8919_v48 = vadd.f32 %v18937_v3, %v19153_v46  ;;  %v21269_v20 = vld [vmem:[#allocation70_spill] sm:$0xff] }
0x105e   : > { %v11716_v34 = vmul.f32 -1.442695, %v9645_v33  ;;  %10021 = vrot.lane.b32.xlu0 %v9957_v39, %s14514_s30  ;;  %v9193_v17 = vadd.f32 %v9161_v15, %v21268_v1  ;;  %v9639_v60 = vadd.f32 %v18948_v40, %v19245_v7  ;;  %v11711_v63 = vmul.f32 -1.442695, %v9640_v16 }
0x105f   : > { %14120 = vrcp.f32 %v9769_v37  ;;  %v9355_v33 = vmul.f32 %v9250_v44, %v21035_v47  ;;  %v9195_v62 = vadd.f32 %v9163_v55, %v21270_v26  ;;  %v9162_v46 = vmul.f32 %v9029_v2, %v21251_v22  ;;  %v21271_v37 = vld [vmem:[#allocation147_spill] sm:$0xff] }
0x1060   : > { %v9059_v52 = vpop.permute.xlu0 %9058  ;;  %v9246_v43 = vpop.permute.xlu1 %9245  ;;  %14122 = vpow2.f32 %v11716_v34  ;;  %v19261_v28 = vadd.f32 %v9353_v45, %v9193_v17  ;;  %v8961_v40 = vadd.f32 %v8919_v48, %v21271_v37  ;;  %v11710_v15 = vmul.f32 -1.442695, %v9639_v60  ;;  %v21272_v17 = vld [vmem:[#allocation62_spill] sm:$0xff] }
0x1061   : > { %9907 = vrot.lane.b32.xlu1 %v18850_v59, %s14513_s28  ;;  %v9168_v58 = vmul.f32 %v9059_v52, %v21251_v22  ;;  %14124 = vpow2.f32 %v11709_v12  ;;  %v19274_v44 = vadd.f32 %v9355_v33, %v9195_v62 }
0x1062   : > { %9917 = vrot.lane.b32.xlu0 %v18902_v19, %s14513_s28  ;;  %v9642_v12 = vadd.f32 %v18954_v61, %v19261_v28  ;;  %14126 = vpow2.f32 %v11711_v63 }
0x1063   : > { %v9200_v25 = vadd.f32 %v9168_v58, %v21269_v20  ;;  %v9194_v58 = vadd.f32 %v9162_v46, %v21272_v17  ;;  %14128 = vpow2.f32 %v11710_v15  ;;  %v9644_v33 = vadd.f32 %v18962_v32, %v19274_v44 }
0x1064   : > { %v11713_v60 = vmul.f32 -1.442695, %v9642_v12 }
0x1065   : > { %v9270_v39 = vpop.permute.xlu0 %9269  ;;  %9325 = vperm.xlu1 %13469, %v19137_v4   ;;  %v9044_v52 = vpop.permute.xlu1 %9043  ;;  %v9354_v4 = vmul.f32 %v9246_v43, %v21035_v47  ;;  %v11715_v46 = vmul.f32 -1.442695, %v9644_v33 }
0x1066   : > { %v9360_v41 = vmul.f32 %v9270_v39, %v21035_v47  ;;  %v9165_v45 = vmul.f32 %v9044_v52, %v21251_v22  ;;  %v21273_v52 = vld [vmem:[#allocation63_spill] sm:$0xff] }
0x1068   : > { %v19272_v34 = vadd.f32 %v9360_v41, %v9200_v25  ;;  %v9197_v20 = vadd.f32 %v9165_v45, %v21273_v52  ;;  %v21274_v45 = vld [vmem:[#allocation65_spill] sm:$0xff] }
0x1069   : > { %13470 = vset.pattern.permute.xlu1 %v21204_v51  ;;  %v19279_v16 = vpop.eup %14120 }
0x106a   : > { %v9649_v2 = vadd.f32 %v18990_v10, %v19272_v34  ;;  %v19283_v1 = vpop.permute.xlu0 %9073  ;;  %9143 = vperm.xlu1 %13470, %v8961_v40   ;;  %v9258_v61 = vpop.permute.xlu1 %9257  ;;  %v9961_v43 = vmul.f32 %v19279_v16, %v19041_v9  ;;  %v19291_v10 = vadd.f32 %v9354_v4, %v9194_v58  ;;  %v9167_v9 = vmul.f32 %v19233_v18, %v21251_v22 }
0x106b   : > { %v9357_v55 = vmul.f32 %v9258_v61, %v21035_v47  ;;  %v14123_v48 = vpop.eup %14122  ;;  %v8929_v18 = vadd.f32 %v18937_v3, %v19183_v53 }
0x106c   : > { %v11720_v63 = vmul.f32 -1.442695, %v9649_v2  ;;  %v9773_v39 = vadd.f32 1.0, %v14123_v48  ;;  %10029 = vrot.lane.b32.xlu0 %v9961_v43, %s14514_s30  ;;  %v14125_v26 = vpop.eup %14124  ;;  %v9643_v37 = vadd.f32 %v18965_v31, %v19291_v10  ;;  %v21275_v31 = vld [vmem:[#allocation77_spill] sm:$0xff] }
0x106d   : > { %v19298_v62 = vadd.f32 %v9357_v55, %v9197_v20  ;;  %v9766_v12 = vadd.f32 1.0, %v14125_v26  ;;  %v14127_v4 = vpop.eup %14126 }
0x106e   : > { %v9079_v25 = vpop.permute.xlu0 %9078  ;;  %13471 = vset.pattern.permute.xlu1 %v21202_v38  ;;  %v9266_v41 = vpop.permute.xlu1 %9265  ;;  %14130 = vrcp.f32 %v9773_v39  ;;  %v11714_v43 = vmul.f32 -1.442695, %v9643_v37 }
0x106f   : > { %9337 = vperm.xlu1 %13471, %v8961_v40   ;;  %14132 = vpow2.f32 %v11720_v63  ;;  %v9172_v32 = vmul.f32 %v9079_v25, %v21251_v22  ;;  %v9359_v15 = vmul.f32 %v9266_v41, %v21035_v47  ;;  %v9199_v40 = vadd.f32 %v9167_v9, %v21274_v45  ;;  %v14129_v53 = vpop.eup %14128  ;;  %v21276_v63 = vld [vmem:[#allocation148_spill] sm:$0xff]  ;;  %v21278_v41 = vld [vmem:[#allocation66_spill] sm:$0xff] }
0x1070   : > { %14134 = vpow2.f32 %v11713_v60  ;;  %9919 = vrot.lane.b32.xlu0 %v18904_v42, %s14513_s28  ;;  %v9646_v2 = vadd.f32 %v18971_v30, %v19298_v62  ;;  %v9768_v60 = vadd.f32 1.0, %v14127_v4  ;;  %v8963_v33 = vadd.f32 %v8929_v18, %v21276_v63 }
0x1071   : > { %v9204_v58 = vadd.f32 %v9172_v32, %v21275_v31  ;;  %14136 = vpow2.f32 %v11715_v46  ;;  %v19314_v48 = vadd.f32 %v9359_v15, %v9199_v40  ;;  %v9767_v46 = vadd.f32 1.0, %v14129_v53  ;;  %v21279_v31 = vld [vmem:[#allocation69_spill] sm:$0xff] }
0x1072   : > { %14138 = vrcp.f32 %v9766_v12  ;;  %v11717_v39 = vmul.f32 -1.442695, %v9646_v2 }
0x1073   : > { %v9286_v61 = vpop.permute.xlu0 %9285  ;;  %9333 = vperm.xlu1 %13471, %v19166_v24   ;;  %v9049_v17 = vpop.permute.xlu1 %9048  ;;  %14140 = vpow2.f32 %v11714_v43  ;;  %v9648_v25 = vadd.f32 %v18980_v49, %v19314_v48 }
0x1074   : > { %v9364_v55 = vmul.f32 %v9286_v61, %v21035_v47  ;;  %v9166_v3 = vmul.f32 %v9049_v17, %v21251_v22  ;;  %14142 = vrcp.f32 %v9768_v60  ;;  %v9171_v60 = vmul.f32 %v19283_v1, %v21251_v22 }
0x1075   : > { %14144 = vpow2.f32 %v11717_v39  ;;  %v11719_v49 = vmul.f32 -1.442695, %v9648_v25 }
0x1076   : > { %v19318_v30 = vadd.f32 %v9364_v55, %v9204_v58  ;;  %v9198_v26 = vadd.f32 %v9166_v3, %v21278_v41 }
0x1077   : > { %13472 = vset.pattern.permute.xlu1 %v21204_v51 }
0x1078   : > { %v9653_v24 = vadd.f32 %v19011_v27, %v19318_v30  ;;  %9153 = vperm.xlu1 %13472, %v8963_v33   ;;  %v9262_v52 = vpop.permute.xlu1 %9261  ;;  %v19323_v20 = vpop.eup %14130 }
0x1079   : > { %21277 = vst [vmem:[#allocation56_spill] sm:$0xff] %v19323_v20  ;;  %v9358_v9 = vmul.f32 %v9262_v52, %v21035_v47  ;;  %v14133_v32 = vpop.eup %14132  ;;  %v9965_v51 = vmul.f32 %v19323_v20, %v19077_v13 }
0x107a   : > { %v11724_v37 = vmul.f32 -1.442695, %v9653_v24  ;;  %v14135_v27 = vpop.eup %14134  ;;  %v9777_v15 = vadd.f32 1.0, %v14133_v32 }
0x107b   : > { %v19331_v12 = vadd.f32 %v9358_v9, %v9198_v26  ;;  %10037 = vrot.lane.b32.xlu0 %v9965_v51, %s14514_s30  ;;  %v9770_v45 = vadd.f32 1.0, %v14135_v27  ;;  %v14137_v13 = vpop.eup %14136  ;;  %v21281_v9 = vld [vmem:[#allocation73_spill] sm:$0xff] }
0x107c   : > { %14146 = vpow2.f32 %v11724_v37  ;;  %13473 = vset.pattern.permute.xlu1 %v21202_v38  ;;  %v19338_v2 = vpop.eup %14138  ;;  %v9772_v38 = vadd.f32 1.0, %v14137_v13  ;;  %v9203_v32 = vadd.f32 %v9171_v60, %v21281_v9 }
0x107d   : > { %14148 = vrcp.f32 %v9777_v15  ;;  %v9647_v18 = vadd.f32 %v18982_v11, %v19331_v12  ;;  %9345 = vperm.xlu1 %13473, %v8963_v33   ;;  %v9064_v4 = vpop.permute.xlu1 %9063  ;;  %v14141_v11 = vpop.eup %14140  ;;  %v9958_v43 = vmul.f32 %v19338_v2, %v19015_v0 }
0x107e   : > { %14150 = vrcp.f32 %v9767_v46  ;;  %v9169_v40 = vmul.f32 %v9064_v4, %v21251_v22  ;;  %v19347_v3 = vpop.eup %14142  ;;  %v9771_v33 = vadd.f32 1.0, %v14141_v11 }
0x107f   : > { %9921 = vrot.lane.b32.xlu0 %v18917_v54, %s14513_s28  ;;  %14152 = vpow2.f32 %v11719_v49  ;;  %v11718_v61 = vmul.f32 -1.442695, %v9647_v18  ;;  %v14145_v53 = vpop.eup %14144  ;;  %v9960_v1 = vmul.f32 %v19347_v3, %v19116_v6  ;;  %v21313_v54 = vld [vmem:[#allocation44_spill] sm:$0xff] }
0x1080   : > { %14154 = vrcp.f32 %v9770_v45  ;;  %v9201_v58 = vadd.f32 %v9169_v40, %v21279_v31  ;;  %v9774_v37 = vadd.f32 1.0, %v14145_v53  ;;  %v21283_v40 = vld [vmem:[#allocation74_spill] sm:$0xff] }
0x1081   : > { %9341 = vperm.xlu1 %13473, %v19195_v36   ;;  %14156 = vpow2.f32 %v11718_v61 }
0x1082   : > { %v9274_v17 = vpop.permute.xlu1 %9273  ;;  %14158 = vrcp.f32 %v9772_v38 }
0x1083   : > { %v9361_v55 = vmul.f32 %v9274_v17, %v21035_v47 }
0x1085   : > { %v19351_v63 = vadd.f32 %v9361_v55, %v9201_v58  ;;  %10023 = vrot.lane.b32.xlu1 %v9958_v43, %s14514_s30  ;;  %v9094_v55 = vpop.permute.xlu0 %9093  ;;  %v21285_v43 = vld [vmem:[#allocation122_spill] sm:$0xff] }
0x1086   : > { %v14147_v36 = vpop.eup %14146  ;;  %v9282_v39 = vpop.permute.xlu1 %9281 }
0x1087   : > { %v19354_v24 = vpop.eup %14148  ;;  %v9781_v52 = vadd.f32 1.0, %v14147_v36  ;;  %v9650_v0 = vadd.f32 %v18988_v57, %v19351_v63  ;;  %v9363_v25 = vmul.f32 %v9282_v39, %v21035_v47  ;;  %v21286_v36 = vld [vmem:[#allocation154_spill] sm:$0xff] }
0x1088   : > { %21280 = vst [vmem:[#allocation140_spill] sm:$0xff] %v19354_v24  ;;  %v19361_v41 = vpop.eup %14150  ;;  %v9969_v26 = vmul.f32 %v19354_v24, %v19109_v5 }
0x1089   : > { %14160 = vrcp.f32 %v9781_v52  ;;  %v11721_v46 = vmul.f32 -1.442695, %v9650_v0  ;;  %10027 = vrot.lane.b32.xlu1 %v9960_v1, %s14514_s30  ;;  %v14153_v57 = vpop.eup %14152  ;;  %v19368_v51 = vadd.f32 %v9363_v25, %v9203_v32  ;;  %v9959_v27 = vmul.f32 %v19361_v41, %v19021_v8  ;;  %v21287_v25 = vld [vmem:[#allocation39_spill] sm:$0xff]  ;;  %v9099_v9 = vpop.permute.xlu0 %9098 }
0x108a   : > { %14162 = vrcp.f32 %v9771_v33  ;;  %10045 = vrot.lane.b32.xlu0 %v9969_v26, %s14514_s30  ;;  %v19372_v15 = vpop.eup %14154  ;;  %v9776_v49 = vadd.f32 1.0, %v14153_v57 }
0x108b   : > { %14164 = vpow2.f32 %v11721_v46  ;;  %v9069_v6 = vpop.permute.xlu1 %9068  ;;  %v14157_v18 = vpop.eup %14156  ;;  %v9652_v4 = vadd.f32 %v18996_v35, %v19368_v51  ;;  %v9962_v45 = vmul.f32 %v19372_v15, %v19035_v23  ;;  %v9175_v46 = vmul.f32 %v9094_v55, %v21251_v22 }
0x108c   : > { %v9170_v5 = vmul.f32 %v9069_v6, %v21251_v22  ;;  %14166 = vrcp.f32 %v9774_v37  ;;  %v19382_v13 = vpop.eup %14158  ;;  %v9775_v17 = vadd.f32 1.0, %v14157_v18  ;;  %v21289_v37 = vld [vmem:[#allocation75_spill] sm:$0xff] }
0x108d   : > { %10025 = vrot.lane.b32.xlu1 %v9959_v27, %s14514_s30  ;;  %21282 = vst [vmem:[#allocation60_spill] sm:$0xff] %v19382_v13  ;;  %14168 = vrcp.f32 %v9776_v49  ;;  %v11723_v31 = vmul.f32 -1.442695, %v9652_v4  ;;  %v9964_v35 = vmul.f32 %v19382_v13, %v19122_v50  ;;  %v21290_v27 = vld [vmem:[#allocation42_spill] sm:$0xff]  ;;  %v19425_v55 = vpop.permute.xlu0 %9899 }
0x108e   : > { %9923 = vrot.lane.b32.xlu0 %v18926_v21, %s14513_s28  ;;  %v9202_v61 = vadd.f32 %v9170_v5, %v21283_v40  ;;  %14170 = vrcp.f32 %v9775_v17  ;;  %v21293_v40 = vld [vmem:[#allocation98_spill] sm:$0xff]  ;;  %v21294_v17 = vld [vmem:[#allocation115_spill] sm:$0xff] }
0x108f   : > { %14172 = vpow2.f32 %v11723_v31 }
0x1090   : > { %v9278_v8 = vpop.permute.xlu1 %9277 }
0x1091   : > { %v9362_v38 = vmul.f32 %v9278_v8, %v21035_v47  ;;  %10031 = vrot.lane.b32.xlu1 %v9962_v45, %s14514_s30  ;;  %v21292_v45 = vld [vmem:[#allocation79_spill] sm:$0xff] }
0x1092   : > { %v9207_v8 = vadd.f32 %v9175_v46, %v21292_v45 }
0x1093   : > { %v19387_v11 = vpop.eup %14160  ;;  %v19389_v58 = vadd.f32 %v9362_v38, %v9202_v61 }
0x1094   : > { %v19393_v23 = vpop.eup %14162  ;;  %v9973_v53 = vmul.f32 %v19387_v11, %v21285_v43 }
0x1095   : > { %21284 = vst [vmem:[#allocation146_spill] sm:$0xff] %v19393_v23  ;;  %v14165_v60 = vpop.eup %14164  ;;  %v9651_v33 = vadd.f32 %v21286_v36, %v19389_v58  ;;  %10035 = vrot.lane.b32.xlu1 %v9964_v35, %s14514_s30  ;;  %v9084_v39 = vpop.permute.xlu1 %9083  ;;  %v9963_v1 = vmul.f32 %v19393_v23, %v21287_v25 }
0x1096   : > { %v9778_v52 = vadd.f32 1.0, %v14165_v60  ;;  %10053 = vrot.lane.b32.xlu0 %v9973_v53, %s14514_s30  ;;  %v9173_v50 = vmul.f32 %v9084_v39, %v21251_v22  ;;  %v19404_v26 = vpop.eup %14166 }
0x1097   : > { %v11722_v0 = vmul.f32 -1.442695, %v9651_v33  ;;  %21288 = vst [vmem:[#allocation142_spill] sm:$0xff] %v19404_v26  ;;  %v9966_v5 = vmul.f32 %v19404_v26, %v21290_v27  ;;  %v19412_v49 = vpop.eup %14168  ;;  %v21296_v33 = vld [vmem:[#allocation35_spill] sm:$0xff] }
0x1098   : > { %v9205_v57 = vadd.f32 %v9173_v50, %v21289_v37  ;;  %21291 = vst [vmem:[#allocation55_spill] sm:$0xff] %v19412_v49  ;;  %v9968_v31 = vmul.f32 %v19412_v49, %v21294_v17  ;;  %v19423_v35 = vpop.eup %14170  ;;  %v21301_v17 = vld [vmem:[#allocation38_spill] sm:$0xff] }
0x1099   : > { %14174 = vpow2.f32 %v11722_v0  ;;  %10033 = vrot.lane.b32.xlu1 %v9963_v1, %s14514_s30  ;;  %21295 = vst [vmem:[#allocation64_spill] sm:$0xff] %v19423_v35  ;;  %v14173_v43 = vpop.eup %14172  ;;  %v21297_v0 = vld [vmem:[#allocation46_spill] sm:$0xff] }
0x109a   : > { %14176 = vrcp.f32 %v9778_v52  ;;  %v9290_v32 = vpop.permute.xlu1 %9289  ;;  %v9967_v50 = vmul.f32 %v19423_v35, %v21297_v0  ;;  %v9780_v1 = vadd.f32 1.0, %v14173_v43 }
0x109b   : > { %v9365_v6 = vmul.f32 %v9290_v32, %v21035_v47  ;;  %v9109_v32 = vpop.permute.xlu0 %9108 }
0x109d   : > { %v19414_v18 = vadd.f32 %v9365_v6, %v9205_v57  ;;  %10039 = vrot.lane.b32.xlu1 %v9966_v5, %s14514_s30  ;;  %v21299_v6 = vld [vmem:[#allocation107_spill] sm:$0xff] }
0x109e   : > { %v9298_v4 = vpop.permute.xlu1 %9297 }
0x109f   : > { %v9654_v61 = vadd.f32 %v21293_v40, %v19414_v18  ;;  %v9367_v38 = vmul.f32 %v9298_v4, %v21035_v47  ;;  %v21300_v4 = vld [vmem:[#allocation80_spill] sm:$0xff]  ;;  %v19443_v40 = vpop.permute.xlu0 %9901 }
0x10a1   : > { %v11725_v53 = vmul.f32 -1.442695, %v9654_v61  ;;  %v19427_v60 = vadd.f32 %v9367_v38, %v9207_v8  ;;  %10043 = vrot.lane.b32.xlu1 %v9968_v31, %s14514_s30 }
0x10a3   : > { %v14175_v36 = vpop.eup %14174  ;;  %14178 = vpow2.f32 %v11725_v53  ;;  %v9656_v39 = vadd.f32 %v21296_v33, %v19427_v60  ;;  %v9089_v52 = vpop.permute.xlu1 %9088 }
0x10a4   : > { %v19434_v25 = vpop.eup %14176  ;;  %v9779_v46 = vadd.f32 1.0, %v14175_v36  ;;  %v9174_v57 = vmul.f32 %v9089_v52, %v21251_v22  ;;  %v19449_v53 = vpop.permute.xlu0 %9118 }
0x10a5   : > { %21298 = vst [vmem:[#allocation57_spill] sm:$0xff] %v19434_v25  ;;  %v11727_v37 = vmul.f32 -1.442695, %v9656_v39  ;;  %10041 = vrot.lane.b32.xlu1 %v9967_v50, %s14514_s30  ;;  %v9970_v27 = vmul.f32 %v19434_v25, %v21299_v6  ;;  %v21303_v50 = vld [vmem:[#allocation111_spill] sm:$0xff]  ;;  %v9176_v6 = vmul.f32 %v9099_v9, %v21251_v22 }
0x10a6   : > { %14180 = vrcp.f32 %v9779_v46  ;;  %v9206_v45 = vadd.f32 %v9174_v57, %v21300_v4 }
0x10a7   : > { %14182 = vpow2.f32 %v11727_v37 }
0x10a8   : > { %14184 = vrcp.f32 %v9780_v1  ;;  %v9294_v5 = vpop.permute.xlu1 %9293 }
0x10a9   : > { %v9366_v8 = vmul.f32 %v9294_v5, %v21035_v47  ;;  %10047 = vrot.lane.b32.xlu1 %v9970_v27, %s14514_s30  ;;  %v21305_v27 = vld [vmem:[#allocation81_spill] sm:$0xff] }
0x10ab   : > { %v19445_v61 = vadd.f32 %v9366_v8, %v9206_v45  ;;  %v19462_v45 = vpop.permute.xlu0 %9903 }
0x10ad   : > { %v14179_v38 = vpop.eup %14178  ;;  %v9655_v31 = vadd.f32 %v21301_v17, %v19445_v61  ;;  %v9104_v43 = vpop.permute.xlu1 %9103 }
0x10ae   : > { %v9782_v36 = vadd.f32 1.0, %v14179_v38  ;;  %v9177_v39 = vmul.f32 %v9104_v43, %v21251_v22  ;;  %v21306_v38 = vld [vmem:[#allocation121_spill] sm:$0xff]  ;;  %v21307_v43 = vld [vmem:[#allocation83_spill] sm:$0xff] }
0x10af   : > { %v11726_v33 = vmul.f32 -1.442695, %v9655_v31 }
0x10b0   : > { %v19452_v52 = vpop.eup %14180  ;;  %14186 = vrcp.f32 %v9782_v36  ;;  %v9209_v5 = vadd.f32 %v9177_v39, %v21305_v27  ;;  %v9208_v36 = vadd.f32 %v9176_v6, %v21307_v43  ;;  %v21309_v27 = vld [vmem:[#allocation40_spill] sm:$0xff] }
0x10b1   : > { %21302 = vst [vmem:[#allocation58_spill] sm:$0xff] %v19452_v52  ;;  %v14183_v0 = vpop.eup %14182  ;;  %14188 = vpow2.f32 %v11726_v33  ;;  %v9971_v1 = vmul.f32 %v19452_v52, %v21303_v50  ;;  %v21308_v33 = vld [vmem:[#allocation37_spill] sm:$0xff]  ;;  %v21312_v52 = vld [vmem:[#allocation86_spill] sm:$0xff] }
0x10b2   : > { %v19456_v46 = vpop.eup %14184  ;;  %v9784_v37 = vadd.f32 1.0, %v14183_v0  ;;  %v9306_v57 = vpop.permute.xlu1 %9305 }
0x10b3   : > { %21304 = vst [vmem:[#allocation59_spill] sm:$0xff] %v19456_v46  ;;  %v9369_v4 = vmul.f32 %v9306_v57, %v21035_v47  ;;  %10049 = vrot.lane.b32.xlu1 %v9971_v1, %s14514_s30  ;;  %v9972_v17 = vmul.f32 %v19456_v46, %v21306_v38  ;;  %v19473_v0 = vpop.permute.xlu0 %9128 }
0x10b4   : > { %14190 = vrcp.f32 %v9784_v37 }
0x10b5   : > { %v19464_v8 = vadd.f32 %v9369_v4, %v9209_v5  ;;  %v21310_v4 = vld [vmem:[#allocation106_spill] sm:$0xff] }
0x10b6   : > { %v9302_v31 = vpop.permute.xlu1 %9301 }
0x10b7   : > { %v9658_v9 = vadd.f32 %v21308_v33, %v19464_v8  ;;  %v9368_v39 = vmul.f32 %v9302_v31, %v21035_v47  ;;  %10051 = vrot.lane.b32.xlu1 %v9972_v17, %s14514_s30 }
0x10b9   : > { %v11729_v50 = vmul.f32 -1.442695, %v9658_v9  ;;  %v19475_v1 = vadd.f32 %v9368_v39, %v9208_v36  ;;  %v19487_v36 = vpop.permute.xlu0 %9905 }
0x10ba   : > { %v19477_v37 = vpop.eup %14186 }
0x10bb   : > { %v14189_v57 = vpop.eup %14188  ;;  %14192 = vpow2.f32 %v11729_v50  ;;  %v9657_v5 = vadd.f32 %v21309_v27, %v19475_v1  ;;  %v9114_v6 = vpop.permute.xlu1 %9113  ;;  %v9974_v38 = vmul.f32 %v19477_v37, %v21310_v4  ;;  %v9178_v50 = vmul.f32 %v9109_v32, %v21251_v22  ;;  %v21311_v27 = vld [vmem:[#allocation85_spill] sm:$0xff] }
0x10bc   : > { %v9783_v43 = vadd.f32 1.0, %v14189_v57  ;;  %v9179_v17 = vmul.f32 %v9114_v6, %v21251_v22 }
0x10bd   : > { %v11728_v31 = vmul.f32 -1.442695, %v9657_v5  ;;  %10055 = vrot.lane.b32.xlu1 %v9974_v38, %s14514_s30  ;;  %v19495_v5 = vpop.permute.xlu0 %9138 }
0x10be   : > { %v19485_v33 = vpop.eup %14190  ;;  %14194 = vrcp.f32 %v9783_v43  ;;  %v9211_v4 = vadd.f32 %v9179_v17, %v21311_v27 }
0x10bf   : > { %14196 = vpow2.f32 %v11728_v31  ;;  %v9976_v9 = vmul.f32 %v19485_v33, %v19425_v55  ;;  %v9210_v31 = vadd.f32 %v9178_v50, %v21312_v52  ;;  %v21315_v50 = vld [vmem:[#allocation124_spill] sm:$0xff] }
0x10c0   : > { %v9314_v39 = vpop.permute.xlu1 %9313 }
0x10c1   : > { %v9371_v57 = vmul.f32 %v9314_v39, %v21035_v47  ;;  %10059 = vrot.lane.b32.xlu1 %v9976_v9, %s14514_s30  ;;  %v19507_v9 = vpop.permute.xlu0 %9909 }
0x10c3   : > { %v19497_v6 = vadd.f32 %v9371_v57, %v9211_v4  ;;  %v21314_v4 = vld [vmem:[#allocation41_spill] sm:$0xff] }
0x10c4   : > { %v9310_v38 = vpop.permute.xlu1 %9309 }
0x10c5   : > { %v14193_v43 = vpop.eup %14192  ;;  %v9660_v55 = vadd.f32 %v21313_v54, %v19497_v6  ;;  %v9370_v46 = vmul.f32 %v9310_v38, %v21035_v47 }
0x10c6   : > { %v9786_v32 = vadd.f32 1.0, %v14193_v43 }
0x10c7   : > { %v11731_v21 = vmul.f32 -1.442695, %v9660_v55  ;;  %v19503_v17 = vadd.f32 %v9370_v46, %v9210_v31  ;;  %v21316_v55 = vld [vmem:[#allocation87_spill] sm:$0xff] }
0x10c8   : > { %v19505_v39 = vpop.eup %14194  ;;  %14198 = vrcp.f32 %v9786_v32 }
0x10c9   : > { %v14197_v27 = vpop.eup %14196  ;;  %14200 = vpow2.f32 %v11731_v21  ;;  %v9659_v57 = vadd.f32 %v21314_v4, %v19503_v17  ;;  %v9124_v52 = vpop.permute.xlu1 %9123  ;;  %v9975_v54 = vmul.f32 %v19505_v39, %v21315_v50  ;;  %v9180_v21 = vmul.f32 %v19449_v53, %v21251_v22 }
0x10ca   : > { %v9785_v24 = vadd.f32 1.0, %v14197_v27  ;;  %v9181_v43 = vmul.f32 %v9124_v52, %v21251_v22 }
0x10cb   : > { %v11730_v38 = vmul.f32 -1.442695, %v9659_v57  ;;  %10057 = vrot.lane.b32.xlu0 %v9975_v54, %s14514_s30 }
0x10cc   : > { %14202 = vrcp.f32 %v9785_v24  ;;  %v19515_v46 = vpop.permute.xlu0 %9148  ;;  %v9213_v32 = vadd.f32 %v9181_v43, %v21316_v55  ;;  %v21317_v24 = vld [vmem:[#allocation88_spill] sm:$0xff] }
0x10cd   : > { %14204 = vpow2.f32 %v11730_v38  ;;  %v9212_v54 = vadd.f32 %v9180_v21, %v21317_v24  ;;  %v21318_v38 = vld [vmem:[#allocation45_spill] sm:$0xff]  ;;  %v21319_v24 = vld [vmem:[#allocation43_spill] sm:$0xff] }
0x10ce   : > { %v9322_v31 = vpop.permute.xlu1 %9321 }
0x10cf   : > { %v9373_v4 = vmul.f32 %v9322_v31, %v21035_v47 }
0x10d0   : > { %v19521_v19 = vpop.permute.xlu0 %9911 }
0x10d1   : > { %v19523_v27 = vadd.f32 %v9373_v4, %v9213_v32 }
0x10d2   : > { %v19525_v57 = vpop.eup %14198  ;;  %v9318_v52 = vpop.permute.xlu1 %9317 }
0x10d3   : > { %v14201_v50 = vpop.eup %14200  ;;  %v9662_v25 = vadd.f32 %v21318_v38, %v19523_v27  ;;  %v9372_v42 = vmul.f32 %v9318_v52, %v21035_v47  ;;  %v9978_v53 = vmul.f32 %v19525_v57, %v19462_v45 }
0x10d4   : > { %v9788_v43 = vadd.f32 1.0, %v14201_v50  ;;  %v19533_v31 = vpop.permute.xlu0 %9913 }
0x10d5   : > { %v11733_v55 = vmul.f32 -1.442695, %v9662_v25  ;;  %v19535_v32 = vadd.f32 %v9372_v42, %v9212_v54  ;;  %10063 = vrot.lane.b32.xlu1 %v9978_v53, %s14514_s30 }
0x10d6   : > { %v19538_v4 = vpop.eup %14202  ;;  %14206 = vrcp.f32 %v9788_v43  ;;  %v21320_v43 = vld [vmem:[#allocation91_spill] sm:$0xff] }
0x10d7   : > { %v14205_v21 = vpop.eup %14204  ;;  %14208 = vpow2.f32 %v11733_v55  ;;  %v9661_v38 = vadd.f32 %v21319_v24, %v19535_v32  ;;  %v9134_v52 = vpop.permute.xlu1 %9133  ;;  %v9977_v45 = vmul.f32 %v19538_v4, %v19443_v40 }
0x10d8   : > { %v9787_v50 = vadd.f32 1.0, %v14205_v21  ;;  %v19544_v35 = vpop.permute.xlu0 %9915  ;;  %v9183_v42 = vmul.f32 %v9134_v52, %v21251_v22  ;;  %v9182_v52 = vmul.f32 %v19473_v0, %v21251_v22 }
0x10d9   : > { %v11732_v25 = vmul.f32 -1.442695, %v9661_v38  ;;  %10061 = vrot.lane.b32.xlu0 %v9977_v45, %s14514_s30  ;;  %v21321_v45 = vld [vmem:[#allocation117_spill] sm:$0xff] }
0x10da   : > { %14210 = vrcp.f32 %v9787_v50  ;;  %v9215_v55 = vadd.f32 %v9183_v42, %v21320_v43 }
0x10db   : > { %14212 = vpow2.f32 %v11732_v25 }
0x10dc   : > { %v10022_v54 = vpop.permute.xlu0 %10021  ;;  %v9330_v53 = vpop.permute.xlu1 %9329 }
0x10dd   : > { %v9375_v24 = vmul.f32 %v9330_v53, %v21035_v47  ;;  %12993 = vmatprep.mubr.msk.f32.mxu0 %vm1225_vm0, %v10022_v54 }
0x10df   : > { %v19551_v49 = vadd.f32 %v9375_v24, %v9215_v55  ;;  %v21322_v55 = vld [vmem:[#allocation92_spill] sm:$0xff] }
0x10e0   : > { %v19553_v40 = vpop.eup %14206  ;;  %v9908_v21 = vpop.permute.xlu1 %9907  ;;  %v9214_v24 = vadd.f32 %v9182_v52, %v21322_v55 }
0x10e1   : > { %v14209_v38 = vpop.eup %14208  ;;  %v9664_v50 = vadd.f32 %v21321_v45, %v19551_v49  ;;  %v9980_v25 = vmul.f32 %v19553_v40, %v9908_v21  ;;  %v21323_v21 = vld [vmem:[#allocation119_spill] sm:$0xff] }
0x10e2   : > { %v9790_v20 = vadd.f32 1.0, %v14209_v38 }
0x10e3   : > { %v11735_v42 = vmul.f32 -1.442695, %v9664_v50  ;;  %10067 = vrot.lane.b32.xlu1 %v9980_v25, %s14514_s30 }
0x10e4   : > { %v19561_v53 = vpop.eup %14210  ;;  %14214 = vrcp.f32 %v9790_v20  ;;  %v9326_v54 = vpop.permute.xlu1 %9325 }
0x10e5   : > { %v14213_v43 = vpop.eup %14212  ;;  %14216 = vpow2.f32 %v11735_v42  ;;  %v9374_v26 = vmul.f32 %v9326_v54, %v21035_v47  ;;  %v9979_v0 = vmul.f32 %v19561_v53, %v19487_v36  ;;  %v9184_v36 = vmul.f32 %v19495_v5, %v21251_v22  ;;  %v21328_v5 = vld [vmem:[#allocation125_spill] sm:$0xff] }
0x10e6   : > { %v9789_v45 = vadd.f32 1.0, %v14213_v43  ;;  %v21325_v43 = vld [vmem:[#allocation100_spill] sm:$0xff] }
0x10e7   : > { %v19567_v23 = vadd.f32 %v9374_v26, %v9214_v24  ;;  %10065 = vrot.lane.b32.xlu0 %v9979_v0, %s14514_s30 }
0x10e8   : > { %14218 = vrcp.f32 %v9789_v45 }
0x10e9   : > { %v9663_v38 = vadd.f32 %v21323_v21, %v19567_v23  ;;  %v9144_v20 = vpop.permute.xlu1 %9143 }
0x10ea   : > { %v9185_v25 = vmul.f32 %v9144_v20, %v21251_v22  ;;  %v21327_v20 = vld [vmem:[#allocation99_spill] sm:$0xff] }
0x10eb   : > { %v11734_v50 = vmul.f32 -1.442695, %v9663_v38 }
0x10ec   : > { %v9217_v55 = vadd.f32 %v9185_v25, %v21325_v43  ;;  %v21329_v43 = vld [vmem:[#allocation129_spill] sm:$0xff] }
0x10ed   : > { %14220 = vpow2.f32 %v11734_v50  ;;  %v9216_v50 = vadd.f32 %v9184_v36, %v21327_v20 }
0x10ee   : > { %v19573_v52 = vpop.eup %14214  ;;  %v9338_v42 = vpop.permute.xlu1 %9337 }
0x10ef   : > { %21324 = vst [vmem:[#allocation70_spill] sm:$0xff] %v19573_v52  ;;  %v14217_v54 = vpop.eup %14216  ;;  %v9982_v26 = vmul.f32 %v19573_v52, %v19521_v19  ;;  %v9377_v24 = vmul.f32 %v9338_v42, %v21035_v47 }
0x10f0   : > { %v9792_v0 = vadd.f32 1.0, %v14217_v54 }
0x10f1   : > { %v19581_v45 = vadd.f32 %v9377_v24, %v9217_v55  ;;  %10071 = vrot.lane.b32.xlu1 %v9982_v26, %s14514_s30 }
0x10f2   : > { %v19584_v21 = vpop.eup %14218  ;;  %14222 = vrcp.f32 %v9792_v0  ;;  %v9334_v38 = vpop.permute.xlu1 %9333 }
0x10f3   : > { %21326 = vst [vmem:[#allocation61_spill] sm:$0xff] %v19584_v21  ;;  %v9666_v13 = vadd.f32 %v21328_v5, %v19581_v45  ;;  %v9376_v19 = vmul.f32 %v9334_v38, %v21035_v47  ;;  %v9981_v25 = vmul.f32 %v19584_v21, %v19507_v9  ;;  %v9918_v5 = vpop.permute.xlu0 %9917  ;;  %v9186_v9 = vmul.f32 %v19515_v46, %v21251_v22  ;;  %v21333_v21 = vld [vmem:[#allocation134_spill] sm:$0xff] }
0x10f5   : > { %v11737_v42 = vmul.f32 -1.442695, %v9666_v13  ;;  %v19592_v54 = vadd.f32 %v9376_v19, %v9216_v50  ;;  %10069 = vrot.lane.b32.xlu0 %v9981_v25, %s14514_s30  ;;  %v21331_v50 = vld [vmem:[#allocation102_spill] sm:$0xff] }
0x10f7   : > { %v14221_v26 = vpop.eup %14220  ;;  %14224 = vpow2.f32 %v11737_v42  ;;  %v9665_v55 = vadd.f32 %v21329_v43, %v19592_v54  ;;  %v9154_v24 = vpop.permute.xlu1 %9153 }
0x10f8   : > { %v9791_v36 = vadd.f32 1.0, %v14221_v26  ;;  %v9187_v20 = vmul.f32 %v9154_v24, %v21251_v22  ;;  %v10030_v43 = vpop.permute.xlu0 %10029 }
0x10f9   : > { %v11736_v0 = vmul.f32 -1.442695, %v9665_v55 }
0x10fa   : > { %14226 = vrcp.f32 %v9791_v36  ;;  %v9219_v19 = vadd.f32 %v9187_v20, %v21331_v50  ;;  %v21332_v36 = vld [vmem:[#allocation101_spill] sm:$0xff] }
0x10fb   : > { %14228 = vpow2.f32 %v11736_v0  ;;  %v9218_v0 = vadd.f32 %v9186_v9, %v21332_v36 }
0x10fc   : > { %v19598_v38 = vpop.eup %14222  ;;  %v9346_v13 = vpop.permute.xlu1 %9345 }
0x10fd   : > { %21330 = vst [vmem:[#allocation147_spill] sm:$0xff] %v19598_v38  ;;  %v9379_v25 = vmul.f32 %v9346_v13, %v21035_v47  ;;  %v9984_v42 = vmul.f32 %v19598_v38, %v19544_v35  ;;  %v9920_v9 = vpop.permute.xlu0 %9919 }
0x10ff   : > { %v19606_v26 = vadd.f32 %v9379_v25, %v9219_v19  ;;  %10075 = vrot.lane.b32.xlu1 %v9984_v42, %s14514_s30  ;;  %v21335_v25 = vld [vmem:[#allocation52_spill] sm:$0xff] }
0x1100   : > { %v9342_v55 = vpop.permute.xlu1 %9341 }
0x1101   : > { %v14225_v24 = vpop.eup %14224  ;;  %v9668_v52 = vadd.f32 %v21333_v21, %v19606_v26  ;;  %v9378_v22 = vmul.f32 %v9342_v55, %v21035_v47 }
0x1102   : > { %v9794_v46 = vadd.f32 1.0, %v14225_v24  ;;  %v10038_v24 = vpop.permute.xlu0 %10037 }
0x1103   : > { %v11739_v20 = vmul.f32 -1.442695, %v9668_v52  ;;  %v19613_v13 = vadd.f32 %v9378_v22, %v9218_v0 }
0x1104   : > { %v19615_v50 = vpop.eup %14226  ;;  %14230 = vrcp.f32 %v9794_v46  ;;  %v10024_v35 = vpop.permute.xlu1 %10023 }
0x1105   : > { %21334 = vst [vmem:[#allocation62_spill] sm:$0xff] %v19615_v50  ;;  %v14229_v19 = vpop.eup %14228  ;;  %14232 = vpow2.f32 %v11739_v20  ;;  %v9667_v42 = vadd.f32 %v21335_v25, %v19613_v13  ;;  %12994 = vmatmul.mubr.msk.f32.vlgmr.msra.gmra.mrb[0].mxu0 %vm1225_vm0, %v10024_v35  ;;  %v9983_v21 = vmul.f32 %v19615_v50, %v19533_v31 }
0x1106   : > { %v9793_v47 = vadd.f32 1.0, %v14229_v19  ;;  %v9922_v19 = vpop.permute.xlu0 %9921 }
0x1107   : > { %v11738_v55 = vmul.f32 -1.442695, %v9667_v42  ;;  %10073 = vrot.lane.b32.xlu0 %v9983_v21, %s14514_s30 }
0x1108   : > { %14234 = vrcp.f32 %v9793_v47  ;;  %v10028_v52 = vpop.permute.xlu1 %10027 }
0x1109   : > { %14236 = vpow2.f32 %v11738_v55 }
0x110c   : > { %v10026_v36 = vpop.permute.xlu1 %10025 }
0x110d   : > { %12996 = vmatprep.mubr.msk.f32.mxu0 %vm1225_vm0, %v10026_v36 }
0x110e   : > { %v19624_v0 = vpop.eup %14230  ;;  %12997 = vmatmul.mubr.msk.f32.gmra.mrb[2].mxu0 %vm1225_vm0, %v10028_v52 }
0x110f   : > { %21336 = vst [vmem:[#allocation63_spill] sm:$0xff] %v19624_v0  ;;  %v14233_v22 = vpop.eup %14232  ;;  %12999 = vmatprep.mubr.msk.f32.mxu0 %vm1225_vm0, %v10030_v43  ;;  %v9986_v31 = vmul.f32 %v19624_v0, %v9920_v9  ;;  %v10046_v43 = vpop.permute.xlu0 %10045 }
0x1110   : > { %v9796_v46 = vadd.f32 1.0, %v14233_v22  ;;  %v10032_v20 = vpop.permute.xlu1 %10031 }
0x1111   : > { %10079 = vrot.lane.b32.xlu1 %v9986_v31, %s14514_s30 }
0x1112   : > { %v19630_v35 = vpop.eup %14234  ;;  %14238 = vrcp.f32 %v9796_v46  ;;  %13000 = vmatmul.mubr.msk.f32.gmra.mrb[4].mxu0 %vm1225_vm0, %v10032_v20 }
0x1113   : > { %21337 = vst [vmem:[#allocation65_spill] sm:$0xff] %v19630_v35  ;;  %v14237_v25 = vpop.eup %14236  ;;  %v9985_v42 = vmul.f32 %v19630_v35, %v9918_v5  ;;  %v9924_v52 = vpop.permute.xlu0 %9923 }
0x1114   : > { %v9795_v21 = vadd.f32 1.0, %v14237_v25  ;;  %v10036_v47 = vpop.permute.xlu1 %10035 }
0x1115   : > { %10077 = vrot.lane.b32.xlu0 %v9985_v42, %s14514_s30 }
0x1116   : > { %14240 = vrcp.f32 %v9795_v21 }
0x1117   : > { %v10054_v21 = vpop.permute.xlu0 %10053 }
0x1118   : > { %v10034_v9 = vpop.permute.xlu1 %10033 }
0x1119   : > { %13002 = vmatprep.mubr.msk.f32.mxu0 %vm1225_vm0, %v10034_v9 }
0x111a   : > { %13003 = vmatmul.mubr.msk.f32.gmra.mrb[6].mxu0 %vm1225_vm0, %v10036_v47 }
0x111b   : > { %13005 = vmatprep.mubr.msk.f32.mxu0 %vm1225_vm0, %v10038_v24 }
0x111c   : > { %v19638_v55 = vpop.eup %14238  ;;  %v10040_v36 = vpop.permute.xlu1 %10039 }
0x111d   : > { %21338 = vst [vmem:[#allocation77_spill] sm:$0xff] %v19638_v55  ;;  %v9988_v22 = vmul.f32 %v19638_v55, %v9924_v52 }
0x111e   : > { %13006 = vmatmul.mubr.msk.f32.gmra.mrb[8].mxu0 %vm1225_vm0, %v10040_v36 }
0x111f   : > { %10083 = vrot.lane.b32.xlu1 %v9988_v22, %s14514_s30 }
0x1120   : > { %v19643_v5 = vpop.eup %14240  ;;  %v10044_v31 = vpop.permute.xlu1 %10043 }
0x1121   : > { %21339 = vst [vmem:[#allocation148_spill] sm:$0xff] %v19643_v5  ;;  %v9987_v46 = vmul.f32 %v19643_v5, %v9922_v19 }
0x1123   : > { %10081 = vrot.lane.b32.xlu0 %v9987_v46, %s14514_s30 }
0x1124   : > { %v10042_v20 = vpop.permute.xlu1 %10041 }
0x1125   : > { %13008 = vmatprep.mubr.msk.f32.mxu0 %vm1225_vm0, %v10042_v20 }
0x1126   : > { %13009 = vmatmul.mubr.msk.f32.gmra.mrb[10].mxu0 %vm1225_vm0, %v10044_v31 }
0x1127   : > { %13011 = vmatprep.mubr.msk.f32.mxu0 %vm1225_vm0, %v10046_v43 }
0x1128   : > { %v10048_v24 = vpop.permute.xlu1 %10047 }
0x112a   : > { %13012 = vmatmul.mubr.msk.f32.gmra.mrb[12].mxu0 %vm1225_vm0, %v10048_v24 }
0x112c   : > { %v10050_v25 = vpop.permute.xlu1 %10049 }
0x112d   : > { %13014 = vmatprep.mubr.msk.f32.mxu0 %vm1225_vm0, %v10050_v25 }
0x1130   : > { %v10052_v42 = vpop.permute.xlu1 %10051 }
0x1131   : > { %13015 = vmatmul.mubr.msk.f32.gmra.mrb[14].mxu0 %vm1225_vm0, %v10052_v42 }
0x1132   : > { %13017 = vmatprep.mubr.msk.f32.mxu0 %vm1225_vm0, %v10054_v21 }
0x1134   : > { %v10056_v19 = vpop.permute.xlu1 %10055 }
0x1135   : > { %13018 = vmatmul.mubr.msk.f32.gmra.mrb[16].mxu0 %vm1225_vm0, %v10056_v19 }
0x1138   : > { %v10060_v9 = vpop.permute.xlu1 %10059 }
0x113d   : > { %v10058_v47 = vpop.permute.xlu0 %10057 }
0x113e   : > { %13020 = vmatprep.mubr.msk.f32.mxu0 %vm1225_vm0, %v10058_v47 }
0x113f   : > { %13021 = vmatmul.mubr.msk.f32.gmra.mrb[18].mxu0 %vm1225_vm0, %v10060_v9 }
0x1147   : > { %v10064_v52 = vpop.permute.xlu1 %10063 }
0x114b   : > { %v10062_v43 = vpop.permute.xlu0 %10061 }
0x114c   : > { %13023 = vmatprep.mubr.msk.f32.mxu0 %vm1225_vm0, %v10062_v43 }
0x114d   : > { %13024 = vmatmul.mubr.msk.f32.gmra.mrb[20].mxu0 %vm1225_vm0, %v10064_v52 }
0x1155   : > { %v10068_v22 = vpop.permute.xlu1 %10067 }
0x1159   : > { %v10066_v36 = vpop.permute.xlu0 %10065 }
0x115a   : > { %13026 = vmatprep.mubr.msk.f32.mxu0 %vm1225_vm0, %v10066_v36 }
0x115b   : > { %13027 = vmatmul.mubr.msk.f32.gmra.mrb[22].mxu0 %vm1225_vm0, %v10068_v22 }
0x1163   : > { %v10072_v46 = vpop.permute.xlu1 %10071 }
0x1167   : > { %v10070_v31 = vpop.permute.xlu0 %10069 }
0x1168   : > { %13029 = vmatprep.mubr.msk.f32.mxu0 %vm1225_vm0, %v10070_v31 }
0x1169   : > { %13030 = vmatmul.mubr.msk.f32.gmra.mrb[24].mxu0 %vm1225_vm0, %v10072_v46 }
0x1171   : > { %v10076_v24 = vpop.permute.xlu1 %10075 }
0x1179   : > { %v10074_v20 = vpop.permute.xlu0 %10073 }
0x117a   : > { %13032 = vmatprep.mubr.msk.f32.mxu0 %vm1225_vm0, %v10074_v20 }
0x117b   : > { %13033 = vmatmul.mubr.msk.f32.gmra.mrb[26].mxu0 %vm1225_vm0, %v10076_v24 }
0x1183   : > { %v10080_v42 = vpop.permute.xlu1 %10079 }
0x1187   : > { %v10078_v25 = vpop.permute.xlu0 %10077 }
0x1188   : > { %13035 = vmatprep.mubr.msk.f32.mxu0 %vm1225_vm0, %v10078_v25 }
0x1189   : > { %13036 = vmatmul.mubr.msk.f32.gmra.mrb[28].mxu0 %vm1225_vm0, %v10080_v42 }
0x1191   : > { %v10084_v19 = vpop.permute.xlu1 %10083 }
0x1195   : > { %v10082_v21 = vpop.permute.xlu0 %10081 }
0x1196   : > { %13038 = vmatprep.mubr.msk.f32.mxu0 %vm1225_vm0, %v10082_v21 }
0x1197   : > { %13039 = vmatmul.mubr.msk.f32.gmra.mrb[30].mxu0 %vm1225_vm0, %v10084_v19 }
0x11d8   : > { %v12995_v47 = vpop.f32.mrb[0].mxu0 }
0x11d9   : > { %v10215_v9 = vpop.f32.mrb[1].mxu0 }
0x11e1   : > { %v12998_v43 = vpop.f32.mrb[2].mxu0 }
0x11e2   : > { %v10225_v52 = vpop.f32.mrb[3].mxu0 }
0x11e5   : > { %v13001_v36 = vpop.f32.mrb[4].mxu0 }
0x11e6   : > { %v10235_v22 = vpop.f32.mrb[5].mxu0 }
0x11ed   : > { %v13004_v31 = vpop.f32.mrb[6].mxu0 }
0x11ee   : > { %v10245_v46 = vpop.f32.mrb[7].mxu0 }
0x11f1   : > { %v13007_v20 = vpop.f32.mrb[8].mxu0 }
0x11f2   : > { %v10255_v24 = vpop.f32.mrb[9].mxu0 }
0x11f9   : > { %v13010_v5 = vpop.f32.mrb[10].mxu0 }
0x11fa   : > { %v10265_v25 = vpop.f32.mrb[11].mxu0 }
0x11fd   : > { %v13013_v55 = vpop.f32.mrb[12].mxu0 }
0x11fe   : > { %v10275_v42 = vpop.f32.mrb[13].mxu0 }
0x1204   : > { %v13016_v35 = vpop.f32.mrb[14].mxu0 }
0x1205   : > { %v10285_v0 = vpop.f32.mrb[15].mxu0 }
0x1208   : > { %v13019_v50 = vpop.f32.mrb[16].mxu0 }
0x1209   : > { %10440 = vrot.lane.b32.xlu1 %v13019_v50, %s14515_s22  ;;  %v10295_v21 = vpop.f32.mrb[17].mxu0 }
0x120a   : > { %10438 = vrot.lane.b32.xlu0 %v10295_v21, %s14515_s22 }
0x120d   : > { %10408 = vrot.lane.b32.xlu1 %v12995_v47, %s14515_s22 }
0x120e   : > { %10406 = vrot.lane.b32.xlu0 %v10215_v9, %s14515_s22 }
0x1212   : > { %v13022_v19 = vpop.f32.mrb[18].mxu0 }
0x1213   : > { %10444 = vrot.lane.b32.xlu1 %v13022_v19, %s14515_s22  ;;  %v10305_v38 = vpop.f32.mrb[19].mxu0  ;;  %v21340_v19 = vld [vmem:[#allocation127_spill] sm:$0xff] }
0x1214   : > { %10442 = vrot.lane.b32.xlu0 %v10305_v38, %s14515_s22 }
0x1217   : > { %10412 = vrot.lane.b32.xlu1 %v12998_v43, %s14515_s22 }
0x1218   : > { %10410 = vrot.lane.b32.xlu0 %v10225_v52, %s14515_s22 }
0x1220   : > { %v13025_v59 = vpop.f32.mrb[20].mxu0 }
0x1221   : > { %10448 = vrot.lane.b32.xlu1 %v13025_v59, %s14515_s22  ;;  %v10315_v50 = vpop.f32.mrb[21].mxu0 }
0x1222   : > { %10446 = vrot.lane.b32.xlu0 %v10315_v50, %s14515_s22 }
0x1225   : > { %10416 = vrot.lane.b32.xlu1 %v13001_v36, %s14515_s22 }
0x1226   : > { %10414 = vrot.lane.b32.xlu0 %v10235_v22, %s14515_s22 }
0x122e   : > { %v13028_v47 = vpop.f32.mrb[22].mxu0 }
0x122f   : > { %10452 = vrot.lane.b32.xlu1 %v13028_v47, %s14515_s22  ;;  %v10325_v9 = vpop.f32.mrb[23].mxu0 }
0x1230   : > { %10450 = vrot.lane.b32.xlu0 %v10325_v9, %s14515_s22 }
0x1233   : > { %10420 = vrot.lane.b32.xlu1 %v13004_v31, %s14515_s22 }
0x1234   : > { %10418 = vrot.lane.b32.xlu0 %v10245_v46, %s14515_s22 }
0x123c   : > { %v13031_v38 = vpop.f32.mrb[24].mxu0 }
0x123d   : > { %10456 = vrot.lane.b32.xlu1 %v13031_v38, %s14515_s22  ;;  %v10335_v59 = vpop.f32.mrb[25].mxu0 }
0x123e   : > { %10454 = vrot.lane.b32.xlu0 %v10335_v59, %s14515_s22 }
0x1241   : > { %10424 = vrot.lane.b32.xlu1 %v13007_v20, %s14515_s22 }
0x1242   : > { %10422 = vrot.lane.b32.xlu0 %v10255_v24, %s14515_s22 }
0x124e   : > { %v13034_v43 = vpop.f32.mrb[26].mxu0 }
0x124f   : > { %10460 = vrot.lane.b32.xlu1 %v13034_v43, %s14515_s22  ;;  %v10345_v52 = vpop.f32.mrb[27].mxu0 }
0x1250   : > { %10458 = vrot.lane.b32.xlu0 %v10345_v52, %s14515_s22 }
0x1253   : > { %10428 = vrot.lane.b32.xlu1 %v13010_v5, %s14515_s22 }
0x1254   : > { %10426 = vrot.lane.b32.xlu0 %v10265_v25, %s14515_s22 }
0x125c   : > { %v13037_v36 = vpop.f32.mrb[28].mxu0 }
0x125d   : > { %10464 = vrot.lane.b32.xlu1 %v13037_v36, %s14515_s22  ;;  %v10355_v22 = vpop.f32.mrb[29].mxu0 }
0x125e   : > { %10462 = vrot.lane.b32.xlu0 %v10355_v22, %s14515_s22 }
0x1261   : > { %10432 = vrot.lane.b32.xlu1 %v13013_v55, %s14515_s22 }
0x1262   : > { %10430 = vrot.lane.b32.xlu0 %v10275_v42, %s14515_s22 }
0x126a   : > { %v13040_v31 = vpop.f32.mrb[30].mxu0 }
0x126b   : > { %10468 = vrot.lane.b32.xlu1 %v13040_v31, %s14515_s22  ;;  %v10365_v46 = vpop.f32.mrb[31].mxu0 }
0x126c   : > { %10466 = vrot.lane.b32.xlu0 %v10365_v46, %s14515_s22 }
0x126f   : > { %10436 = vrot.lane.b32.xlu1 %v13016_v35, %s14515_s22 }
0x1270   : > { %10434 = vrot.lane.b32.xlu0 %v10285_v0, %s14515_s22 }
0x127b   : > { %v10441_v5 = vpop.permute.xlu1 %10440 }
0x127c   : > { %v10519_v20 = vadd.f32 %v10441_v5, %v19414_v18  ;;  %v10439_v24 = vpop.permute.xlu0 %10438 }
0x127d   : > { %v10518_v25 = vadd.f32 %v10439_v24, %v19318_v30 }
0x127e   : > { %14242 = vtanh.f32 %v10519_v20 }
0x127f   : > { %14244 = vtanh.f32 %v10518_v25  ;;  %v10409_v55 = vpop.permute.xlu1 %10408 }
0x1280   : > { %v10503_v42 = vadd.f32 %v10409_v55, %v19219_v29  ;;  %v10407_v21 = vpop.permute.xlu0 %10406 }
0x1281   : > { %v10502_v50 = vadd.f32 %v10407_v21, %v21340_v19 }
0x1282   : > { %14246 = vtanh.f32 %v10503_v42 }
0x1283   : > { %14248 = vtanh.f32 %v10502_v50 }
0x1285   : > { %v10445_v47 = vpop.permute.xlu1 %10444 }
0x1286   : > { %v10521_v35 = vadd.f32 %v10445_v47, %v19427_v60  ;;  %v10443_v0 = vpop.permute.xlu0 %10442 }
0x1287   : > { %v10520_v9 = vadd.f32 %v10443_v0, %v19445_v61 }
0x1288   : > { %v14243_v18 = vpop.eup %14242  ;;  %14250 = vtanh.f32 %v10521_v35 }
0x1289   : > { %v14245_v38 = vpop.eup %14244  ;;  %14252 = vtanh.f32 %v10520_v9  ;;  %10696 = vrot.lane.b32.xlu1 %v14243_v18, %s14515_s22  ;;  %v10413_v30 = vpop.permute.xlu1 %10412 }
0x128a   : > { %v10505_v29 = vadd.f32 %v10413_v30, %v19240_v14  ;;  %v10411_v59 = vpop.permute.xlu0 %10410  ;;  %10694 = vrot.lane.b32.xlu0 %v14245_v38, %s14515_s22 }
0x128b   : > { %v10504_v43 = vadd.f32 %v10411_v59, %v19245_v7 }
0x128c   : > { %v14247_v52 = vpop.eup %14246  ;;  %14254 = vtanh.f32 %v10505_v29 }
0x128d   : > { %v14249_v60 = vpop.eup %14248  ;;  %14256 = vtanh.f32 %v10504_v43  ;;  %10664 = vrot.lane.b32.xlu1 %v14247_v52, %s14515_s22 }
0x128e   : > { %10662 = vrot.lane.b32.xlu0 %v14249_v60, %s14515_s22  ;;  %v21341_v60 = vld [vmem:[#allocation138_spill] sm:$0xff] }
0x1292   : > { %v14251_v61 = vpop.eup %14250 }
0x1293   : > { %v14253_v36 = vpop.eup %14252  ;;  %10700 = vrot.lane.b32.xlu1 %v14251_v61, %s14515_s22  ;;  %v10449_v22 = vpop.permute.xlu1 %10448 }
0x1294   : > { %v10523_v14 = vadd.f32 %v10449_v22, %v19464_v8  ;;  %v10447_v31 = vpop.permute.xlu0 %10446  ;;  %10698 = vrot.lane.b32.xlu0 %v14253_v36, %s14515_s22 }
0x1295   : > { %v10522_v7 = vadd.f32 %v10447_v31, %v19475_v1 }
0x1296   : > { %v14255_v46 = vpop.eup %14254  ;;  %14258 = vtanh.f32 %v10523_v14 }
0x1297   : > { %v14257_v5 = vpop.eup %14256  ;;  %14260 = vtanh.f32 %v10522_v7  ;;  %10668 = vrot.lane.b32.xlu1 %v14255_v46, %s14515_s22  ;;  %v10417_v20 = vpop.permute.xlu1 %10416 }
0x1298   : > { %v10507_v24 = vadd.f32 %v10417_v20, %v19261_v28  ;;  %v10415_v25 = vpop.permute.xlu0 %10414  ;;  %10666 = vrot.lane.b32.xlu0 %v14257_v5, %s14515_s22 }
0x1299   : > { %v10506_v55 = vadd.f32 %v10415_v25, %v19197_v56 }
0x129a   : > { %14262 = vtanh.f32 %v10507_v24 }
0x129b   : > { %14264 = vtanh.f32 %v10506_v55 }
0x12a0   : > { %v14259_v8 = vpop.eup %14258 }
0x12a1   : > { %v14261_v42 = vpop.eup %14260  ;;  %10704 = vrot.lane.b32.xlu1 %v14259_v8, %s14515_s22  ;;  %v10453_v1 = vpop.permute.xlu1 %10452 }
0x12a2   : > { %v10525_v21 = vadd.f32 %v10453_v1, %v19497_v6  ;;  %v10451_v19 = vpop.permute.xlu0 %10450  ;;  %10702 = vrot.lane.b32.xlu0 %v14261_v42, %s14515_s22 }
0x12a3   : > { %v10524_v50 = vadd.f32 %v10451_v19, %v19503_v17 }
0x12a4   : > { %v14263_v28 = vpop.eup %14262  ;;  %14266 = vtanh.f32 %v10525_v21 }
0x12a5   : > { %v14265_v47 = vpop.eup %14264  ;;  %14268 = vtanh.f32 %v10524_v50  ;;  %10672 = vrot.lane.b32.xlu1 %v14263_v28, %s14515_s22  ;;  %v10421_v56 = vpop.permute.xlu1 %10420 }
0x12a6   : > { %v10509_v35 = vadd.f32 %v10421_v56, %v19274_v44  ;;  %v10419_v0 = vpop.permute.xlu0 %10418  ;;  %10670 = vrot.lane.b32.xlu0 %v14265_v47, %s14515_s22 }
0x12a7   : > { %v10508_v9 = vadd.f32 %v10419_v0, %v19291_v10 }
0x12a8   : > { %14270 = vtanh.f32 %v10509_v35 }
0x12a9   : > { %14272 = vtanh.f32 %v10508_v9 }
0x12ae   : > { %v14267_v6 = vpop.eup %14266 }
0x12af   : > { %v14269_v18 = vpop.eup %14268  ;;  %10708 = vrot.lane.b32.xlu1 %v14267_v6, %s14515_s22  ;;  %v10457_v17 = vpop.permute.xlu1 %10456 }
0x12b0   : > { %v10527_v38 = vadd.f32 %v10457_v17, %v19523_v27  ;;  %v10455_v30 = vpop.permute.xlu0 %10454  ;;  %10706 = vrot.lane.b32.xlu0 %v14269_v18, %s14515_s22 }
0x12b1   : > { %v10526_v29 = vadd.f32 %v10455_v30, %v19535_v32 }
0x12b2   : > { %v14271_v44 = vpop.eup %14270  ;;  %14274 = vtanh.f32 %v10527_v38 }
0x12b3   : > { %v14273_v59 = vpop.eup %14272  ;;  %14276 = vtanh.f32 %v10526_v29  ;;  %10676 = vrot.lane.b32.xlu1 %v14271_v44, %s14515_s22  ;;  %v10425_v10 = vpop.permute.xlu1 %10424  ;;  %v10583_v29 = vsub.f32 1.0, %v19477_v37  ;;  %v10582_v44 = vsub.f32 1.0, %v19387_v11 }
0x12b4   : > { %v10511_v43 = vadd.f32 %v10425_v10, %v19298_v62  ;;  %v10423_v52 = vpop.permute.xlu0 %10422  ;;  %10674 = vrot.lane.b32.xlu0 %v14273_v59, %s14515_s22  ;;  %v21344_v10 = vld [vmem:[#allocation90_spill] sm:$0xff] }
0x12b5   : > { %v10510_v61 = vadd.f32 %v10423_v52, %v21341_v60  ;;  %v21346_v60 = vld [vmem:[#allocation54_spill] sm:$0xff] }
0x12b6   : > { %14278 = vtanh.f32 %v10511_v43  ;;  %v21345_v43 = vld [vmem:[#allocation104_spill] sm:$0xff] }
0x12b7   : > { %14280 = vtanh.f32 %v10510_v61  ;;  %v6770_v52 = vadd.f32 %v21345_v43, %v21344_v10  ;;  %v10615_v61 = vmul.f32 %v10583_v29, %v21346_v60  ;;  %v21361_v29 = vld [vmem:[#allocation177_spill] sm:$0xff]  ;;  %v21362_v10 = vld [vmem:[#allocation27_spill] sm:$0xff]  ;;  %v21363_v43 = vld [vmem:[#allocation114_spill] sm:$0xff] }
0x12bc   : > { %v14275_v27 = vpop.eup %14274 }
0x12bd   : > { %v14277_v36 = vpop.eup %14276  ;;  %10712 = vrot.lane.b32.xlu1 %v14275_v27, %s14515_s22 }
0x12be   : > { %10710 = vrot.lane.b32.xlu0 %v14277_v36, %s14515_s22 }
0x12c0   : > { %v14279_v32 = vpop.eup %14278 }
0x12c1   : > { %v14281_v22 = vpop.eup %14280  ;;  %10680 = vrot.lane.b32.xlu1 %v14279_v32, %s14515_s22  ;;  %v10461_v14 = vpop.permute.xlu1 %10460  ;;  %v10567_v32 = vsub.f32 1.0, %v19338_v2 }
0x12c2   : > { %v10529_v62 = vadd.f32 %v10461_v14, %v19551_v49  ;;  %v10459_v31 = vpop.permute.xlu0 %10458  ;;  %10678 = vrot.lane.b32.xlu0 %v14281_v22, %s14515_s22  ;;  %v21347_v22 = vld [vmem:[#allocation28_spill] sm:$0xff]  ;;  %v21348_v14 = vld [vmem:[#allocation141_spill] sm:$0xff] }
0x12c3   : > { %v10528_v7 = vadd.f32 %v10459_v31, %v19567_v23  ;;  %v21349_v31 = vld [vmem:[#allocation18_spill] sm:$0xff] }
0x12c4   : > { %14282 = vtanh.f32 %v10529_v62  ;;  %v6769_v62 = vadd.f32 %v21348_v14, %v21347_v22  ;;  %v10568_v14 = vsub.f32 1.0, %v19361_v41 }
0x12c5   : > { %14284 = vtanh.f32 %v10528_v7  ;;  %v10429_v46 = vpop.permute.xlu1 %10428  ;;  %v10614_v7 = vmul.f32 %v10582_v44, %v21349_v31 }
0x12c6   : > { %v10513_v5 = vadd.f32 %v10429_v46, %v19314_v48  ;;  %v10427_v20 = vpop.permute.xlu0 %10426 }
0x12c7   : > { %v10512_v24 = vadd.f32 %v10427_v20, %v19331_v12 }
0x12c8   : > { %14286 = vtanh.f32 %v10513_v5  ;;  %v21350_v5 = vld [vmem:[#allocation136_spill] sm:$0xff] }
0x12c9   : > { %14288 = vtanh.f32 %v10512_v24  ;;  %v10566_v20 = vsub.f32 1.0, %v21350_v5  ;;  %v8981_v24 = vadd.f32 %v21346_v60, %v6770_v52  ;;  %v6771_v52 = vadd.f32 %v21363_v43, %v21362_v10 }
0x12ce   : > { %v14283_v25 = vpop.eup %14282 }
0x12cf   : > { %v14285_v55 = vpop.eup %14284  ;;  %10716 = vrot.lane.b32.xlu1 %v14283_v25, %s14515_s22  ;;  %v10465_v49 = vpop.permute.xlu1 %10464 }
0x12d0   : > { %v10531_v8 = vadd.f32 %v10465_v49, %v19581_v45  ;;  %v10463_v42 = vpop.permute.xlu0 %10462  ;;  %10714 = vrot.lane.b32.xlu0 %v14285_v55, %s14515_s22  ;;  %v8980_v55 = vadd.f32 %v21349_v31, %v6769_v62 }
0x12d1   : > { %v10530_v23 = vadd.f32 %v10463_v42, %v19592_v54  ;;  %v21351_v42 = vld [vmem:[#allocation19_spill] sm:$0xff] }
0x12d2   : > { %v14287_v1 = vpop.eup %14286  ;;  %14290 = vtanh.f32 %v10531_v8 }
0x12d3   : > { %v14289_v48 = vpop.eup %14288  ;;  %14292 = vtanh.f32 %v10530_v23  ;;  %10684 = vrot.lane.b32.xlu1 %v14287_v1, %s14515_s22  ;;  %v10433_v12 = vpop.permute.xlu1 %10432  ;;  %v21352_v23 = vld [vmem:[#allocation128_spill] sm:$0xff] }
0x12d4   : > { %v10515_v21 = vadd.f32 %v10433_v12, %v19351_v63  ;;  %v10431_v19 = vpop.permute.xlu0 %10430  ;;  %10682 = vrot.lane.b32.xlu0 %v14289_v48, %s14515_s22  ;;  %v6754_v1 = vadd.f32 %v21352_v23, %v21351_v42  ;;  %v21353_v48 = vld [vmem:[#allocation155_spill] sm:$0xff]  ;;  %v21368_v42 = vld [vmem:[#allocation68_spill] sm:$0xff]  ;;  %v21369_v23 = vld [vmem:[#allocation109_spill] sm:$0xff] }
0x12d5   : > { %v10514_v50 = vadd.f32 %v10431_v19, %v19272_v34  ;;  %v10599_v12 = vmul.f32 %v10567_v32, %v21353_v48 }
0x12d6   : > { %14294 = vtanh.f32 %v10515_v21 }
0x12d7   : > { %14296 = vtanh.f32 %v10514_v50 }
0x12dc   : > { %v14291_v45 = vpop.eup %14290 }
0x12dd   : > { %v14293_v28 = vpop.eup %14292  ;;  %10720 = vrot.lane.b32.xlu1 %v14291_v45, %s14515_s22  ;;  %v10469_v54 = vpop.permute.xlu1 %10468  ;;  %v21355_v45 = vld [vmem:[#allocation105_spill] sm:$0xff] }
0x12de   : > { %v10533_v47 = vadd.f32 %v10469_v54, %v19606_v26  ;;  %10718 = vrot.lane.b32.xlu0 %v14293_v28, %s14515_s22  ;;  %v10467_v56 = vpop.permute.xlu0 %10466  ;;  %v21356_v54 = vld [vmem:[#allocation170_spill] sm:$0xff] }
0x12df   : > { %v10532_v35 = vadd.f32 %v10467_v56, %v19613_v13  ;;  %v19765_v13 = vld [vmem:[%s21342_s23] sm:$0x3] }
0x12e0   : > { %v14295_v63 = vpop.eup %14294  ;;  %14298 = vtanh.f32 %v10533_v47  ;;  %12311 = vmatprep.mubr.msk.f32.mxu1 %vm1225_vm0, %v19765_v13  ;;  %v10598_v47 = vmul.f32 %v10566_v20, %v21356_v54  ;;  %v21365_v20 = vld [vmem:[#allocation22_spill] sm:$0xff] }
0x12e1   : > { %v14297_v0 = vpop.eup %14296  ;;  %14300 = vtanh.f32 %v10532_v35  ;;  %10688 = vrot.lane.b32.xlu1 %v14295_v63, %s14515_s22  ;;  %v10437_v34 = vpop.permute.xlu1 %10436  ;;  %v8965_v35 = vadd.f32 %v21353_v48, %v6754_v1  ;;  %v6755_v1 = vadd.f32 %v21369_v23, %v21368_v42  ;;  %v21370_v48 = vld [vmem:[#allocation156_spill] sm:$0xff] }
0x12e2   : > { %v10517_v9 = vadd.f32 %v10437_v34, %v19368_v51  ;;  %10686 = vrot.lane.b32.xlu0 %v14297_v0, %s14515_s22  ;;  %v10435_v6 = vpop.permute.xlu0 %10434  ;;  %v10855_v51 = vld [vmem:[%s21343_s15] sm:$0x3] }
0x12e3   : > { %v10516_v18 = vadd.f32 %v10435_v6, %v19389_v58  ;;  %v10856_v30 = vmul.f32 4.0, %v10855_v51  ;;  %v21359_v51 = vld [vmem:[#allocation89_spill] sm:$0xff] }
0x12e4   : > { %14302 = vtanh.f32 %v10517_v9 }
0x12e5   : > { %14304 = vtanh.f32 %v10516_v18  ;;  %v10584_v18 = vsub.f32 1.0, %v19505_v39 }
0x12ea   : > { %v14299_v26 = vpop.eup %14298 }
0x12eb   : > { %v14301_v17 = vpop.eup %14300  ;;  %10724 = vrot.lane.b32.xlu1 %v14299_v26, %s14515_s22 }
0x12ec   : > { %10722 = vrot.lane.b32.xlu0 %v14301_v17, %s14515_s22 }
0x12ee   : > { %v14303_v58 = vpop.eup %14302 }
0x12ef   : > { %v14305_v38 = vpop.eup %14304  ;;  %10692 = vrot.lane.b32.xlu1 %v14303_v58, %s14515_s22  ;;  %v21360_v58 = vld [vmem:[#allocation108_spill] sm:$0xff] }
0x12f0   : > { %10690 = vrot.lane.b32.xlu0 %v14305_v38, %s14515_s22  ;;  %v6772_v38 = vadd.f32 %v21360_v58, %v21359_v51  ;;  %v21374_v51 = vld [vmem:[#allocation30_spill] sm:$0xff]  ;;  %v21375_v58 = vld [vmem:[#allocation48_spill] sm:$0xff]  ;;  %s11810_s22 = sshll.u32 %s21464_s25, 2 }
0x12f1   : > { %s656_s18 = scalar_lea.vmem %s21461_s29, %s11810_s22 }
0x12f2   : > { %v8983_v62 = vadd.f32 %v21361_v29, %v6772_v38  ;;  %v6773_v38 = vadd.f32 %v21375_v58, %v21374_v51  ;;  %v21391_v51 = vld [vmem:[#allocation71_spill] sm:$0xff]  ;;  %v21392_v58 = vld [vmem:[#allocation116_spill] sm:$0xff] }
0x12f4   : > { %10859 = vperm.xlu0 %13459, %v10856_v30  }
0x12fb   : > { %v10697_v59 = vpop.permute.xlu1 %10696 }
0x12fc   : > { %v10775_v27 = vmul.f32 %v19477_v37, %v10697_v59  ;;  %v10695_v36 = vpop.permute.xlu0 %10694 }
0x12fd   : > { %v10774_v46 = vmul.f32 %v19387_v11, %v10695_v36  ;;  %v21354_v11 = vld [vmem:[#allocation20_spill] sm:$0xff] }
0x12fe   : > { %v10807_v25 = vadd.f32 %v10775_v27, %v10615_v61  ;;  %v6753_v28 = vadd.f32 %v21355_v45, %v21354_v11  ;;  %v10569_v61 = vsub.f32 1.0, %v19347_v3  ;;  %v21364_v36 = vld [vmem:[#allocation176_spill] sm:$0xff]  ;;  %v8966_v45 = vadd.f32 %v21370_v48, %v6755_v1 }
0x12ff   : > { %v10806_v49 = vadd.f32 %v10774_v46, %v10614_v7  ;;  %v10665_v8 = vpop.permute.xlu1 %10664  ;;  %v10616_v32 = vmul.f32 %v10584_v18, %v21364_v36  ;;  %v8982_v7 = vadd.f32 %v21364_v36, %v6771_v52  ;;  %v21378_v36 = vld [vmem:[#allocation112_spill] sm:$0xff]  ;;  %v10588_v1 = vsub.f32 1.0, %v19561_v53 }
0x1300   : > { %v10839_v37 = vadd.f32 %v10807_v25, %v8981_v24  ;;  %v10759_v21 = vmul.f32 %v19338_v2, %v10665_v8  ;;  %v10663_v19 = vpop.permute.xlu0 %10662  ;;  %v10585_v2 = vsub.f32 1.0, %v19485_v33  ;;  %v8964_v9 = vadd.f32 %v21356_v54, %v6753_v28  ;;  %v21366_v24 = vld [vmem:[#allocation110_spill] sm:$0xff] }
0x1301   : > { %v10838_v50 = vadd.f32 %v10806_v49, %v8980_v55  ;;  %v10758_v56 = vmul.f32 %v21350_v5, %v10663_v19  ;;  %v6756_v25 = vadd.f32 %v21366_v24, %v21365_v20  ;;  %v21367_v55 = vld [vmem:[#allocation166_spill] sm:$0xff] }
0x1302   : > { %v10791_v63 = vadd.f32 %v10759_v21, %v10599_v12  ;;  %v10617_v44 = vmul.f32 %v10585_v2, %v21361_v29  ;;  %v10601_v49 = vmul.f32 %v10569_v61, %v21367_v55  ;;  %v10600_v12 = vmul.f32 %v10568_v14, %v21370_v48  ;;  %v21372_v2 = vld [vmem:[#allocation131_spill] sm:$0xff]  ;;  %v21383_v48 = vld [vmem:[#allocation93_spill] sm:$0xff] }
0x1303   : > { %v13201_v34 = vpack.c.bf16 %v10839_v37, %v10838_v50  ;;  %v10790_v6 = vadd.f32 %v10758_v56, %v10598_v47  ;;  %v8967_v19 = vadd.f32 %v21367_v55, %v6756_v25 }
0x1304   : > { %v10823_v26 = vadd.f32 %v10791_v63, %v8965_v35  ;;  %v10586_v35 = vsub.f32 1.0, %v19538_v4  ;;  %v21371_v63 = vld [vmem:[#allocation94_spill] sm:$0xff] }
0x1305   : > { %v10822_v17 = vadd.f32 %v10790_v6, %v8964_v9  ;;  %13203 = vmatprep.subr.msk.bf16.mxu1 %vm19800_vm1, %v13201_v34  ;;  %v10701_v30 = vpop.permute.xlu1 %10700  ;;  %v6774_v34 = vadd.f32 %v21372_v2, %v21371_v63  ;;  %v21373_v9 = vld [vmem:[#allocation53_spill] sm:$0xff]  ;;  %v21390_v2 = vld [vmem:[#allocation146_spill] sm:$0xff] }
0x1306   : > { %v10777_v59 = vmul.f32 %v19485_v33, %v10701_v30  ;;  %v10699_v60 = vpop.permute.xlu0 %10698  ;;  %v21376_v30 = vld [vmem:[#allocation51_spill] sm:$0xff] }
0x1307   : > { %v13204_v27 = vpack.c.bf16 %v10823_v26, %v10822_v17  ;;  %v10776_v22 = vmul.f32 %v19505_v39, %v10699_v60  ;;  %v10571_v17 = vsub.f32 1.0, %v19372_v15  ;;  %v10618_v29 = vmul.f32 %v10586_v35, %v21376_v30  ;;  %v21389_v35 = vld [vmem:[#allocation151_spill] sm:$0xff] }
0x1308   : > { %v10809_v31 = vadd.f32 %v10777_v59, %v10617_v44  ;;  %v10570_v59 = vsub.f32 1.0, %v19279_v16  ;;  %v8985_v10 = vadd.f32 %v21373_v9, %v6774_v34  ;;  %v8984_v52 = vadd.f32 %v21376_v30, %v6773_v38  ;;  %v21393_v30 = vld [vmem:[#allocation162_spill] sm:$0xff] }
0x1309   : > { %v10808_v46 = vadd.f32 %v10776_v22, %v10616_v32  ;;  %13206 = vmatpush3.bf16.xpose.msk.msra.mxu1 %vm19800_vm1, %v13204_v27  ;;  %v10669_v33 = vpop.permute.xlu1 %10668  ;;  %v21377_v27 = vld [vmem:[#allocation21_spill] sm:$0xff]  ;;  %v21379_v22 = vld [vmem:[#allocation160_spill] sm:$0xff]  ;;  %v10572_v34 = vsub.f32 1.0, %v21390_v2  ;;  %v6760_v38 = vadd.f32 %v21392_v58, %v21391_v51 }
0x130a   : > { %v10841_v5 = vadd.f32 %v10809_v31, %v8983_v62  ;;  %v10761_v39 = vmul.f32 %v19347_v3, %v10669_v33  ;;  %v10667_v8 = vpop.permute.xlu0 %10666  ;;  %v10587_v3 = vsub.f32 1.0, %v19525_v57  ;;  %v6758_v32 = vadd.f32 %v21378_v36, %v21377_v27 }
0x130b   : > { %v10840_v37 = vadd.f32 %v10808_v46, %v8982_v7  ;;  %v10760_v21 = vmul.f32 %v19361_v41, %v10667_v8  ;;  %v10603_v14 = vmul.f32 %v10571_v17, %v21379_v22  ;;  %v21381_v46 = vld [vmem:[#allocation132_spill] sm:$0xff]  ;;  %v8971_v27 = vadd.f32 %v21393_v30, %v6760_v38 }
0x130c   : > { %v10793_v50 = vadd.f32 %v10761_v39, %v10601_v49  ;;  %v10619_v6 = vmul.f32 %v10587_v3, %v21373_v9  ;;  %v8969_v25 = vadd.f32 %v21379_v22, %v6758_v32  ;;  %v21388_v3 = vld [vmem:[#allocation130_spill] sm:$0xff] }
0x130d   : > { %v13207_v11 = vpack.c.bf16 %v10841_v5, %v10840_v37  ;;  %v10792_v28 = vadd.f32 %v10760_v21, %v10600_v12  ;;  %v21382_v5 = vld [vmem:[#allocation159_spill] sm:$0xff]  ;;  %v21384_v12 = vld [vmem:[#allocation120_spill] sm:$0xff] }
0x130e   : > { %v10825_v54 = vadd.f32 %v10793_v50, %v8967_v19  ;;  %v10602_v20 = vmul.f32 %v10570_v59, %v21382_v5  ;;  %v6776_v21 = vadd.f32 %v21384_v12, %v21383_v48  ;;  %v21385_v19 = vld [vmem:[#allocation157_spill] sm:$0xff]  ;;  %v21405_v48 = vld [vmem:[#allocation178_spill] sm:$0xff] }
0x130f   : > { %v10824_v47 = vadd.f32 %v10792_v28, %v8966_v45  ;;  %13209 = vmatprep.subr.msk.bf16.mxu1 %vm19800_vm1, %v13207_v11  ;;  %v21386_v28 = vld [vmem:[#allocation60_spill] sm:$0xff] }
0x1310   : > { %v8987_v9 = vadd.f32 %v21385_v19, %v6776_v21 }
0x1311   : > { %v13210_v56 = vpack.c.bf16 %v10825_v54, %v10824_v47  ;;  %v10573_v54 = vsub.f32 1.0, %v21386_v28  ;;  %v21387_v47 = vld [vmem:[#allocation29_spill] sm:$0xff] }
0x1313   : > { %13212 = vmatpush3.bf16.xpose.msk.msra.mxu1 %vm19800_vm1, %v13210_v56  ;;  %v10705_v41 = vpop.permute.xlu1 %10704  ;;  %v6775_v56 = vadd.f32 %v21388_v3, %v21387_v47 }
0x1314   : > { %v10779_v18 = vmul.f32 %v19525_v57, %v10705_v41  ;;  %v10703_v26 = vpop.permute.xlu0 %10702  ;;  %v10620_v41 = vmul.f32 %v10588_v1, %v21389_v35  ;;  %v21404_v1 = vld [vmem:[#allocation47_spill] sm:$0xff] }
0x1315   : > { %v10778_v44 = vmul.f32 %v19538_v4, %v10703_v26  ;;  %v21380_v4 = vld [vmem:[#allocation67_spill] sm:$0xff] }
0x1316   : > { %v10811_v43 = vadd.f32 %v10779_v18, %v10619_v6  ;;  %v6757_v33 = vadd.f32 %v21381_v46, %v21380_v4  ;;  %v8986_v18 = vadd.f32 %v21389_v35, %v6775_v56  ;;  %v21407_v56 = vld [vmem:[#allocation23_spill] sm:$0xff] }
0x1317   : > { %v10810_v60 = vadd.f32 %v10778_v44, %v10618_v29  ;;  %v10673_v61 = vpop.permute.xlu1 %10672  ;;  %v10605_v29 = vmul.f32 %v10573_v54, %v21393_v30  ;;  %v21408_v35 = vld [vmem:[#allocation135_spill] sm:$0xff] }
0x1318   : > { %v10843_v57 = vadd.f32 %v10811_v43, %v8985_v10  ;;  %v10763_v62 = vmul.f32 %v19372_v15, %v10673_v61  ;;  %v10671_v31 = vpop.permute.xlu0 %10670  ;;  %v8968_v39 = vadd.f32 %v21382_v5, %v6757_v33  ;;  %v10589_v15 = vsub.f32 1.0, %v19553_v40  ;;  %v21395_v43 = vld [vmem:[#allocation113_spill] sm:$0xff] }
0x1319   : > { %v10842_v7 = vadd.f32 %v10810_v60, %v8984_v52  ;;  %v10762_v24 = vmul.f32 %v19279_v16, %v10671_v31  ;;  %v21396_v60 = vld [vmem:[#allocation171_spill] sm:$0xff]  ;;  %v21398_v33 = vld [vmem:[#allocation61_spill] sm:$0xff] }
0x131a   : > { %v10795_v55 = vadd.f32 %v10763_v62, %v10603_v14  ;;  %v10621_v50 = vmul.f32 %v10589_v15, %v21385_v19  ;;  %v10604_v61 = vmul.f32 %v10572_v34, %v21396_v60  ;;  %v10590_v5 = vsub.f32 1.0, %v21398_v33  ;;  %v21406_v19 = vld [vmem:[#allocation56_spill] sm:$0xff] }
0x131b   : > { %v13213_v49 = vpack.c.bf16 %v10843_v57, %v10842_v7  ;;  %v10794_v8 = vadd.f32 %v10762_v24, %v10602_v20  ;;  %v21397_v7 = vld [vmem:[#allocation70_spill] sm:$0xff]  ;;  %v21399_v24 = vld [vmem:[#allocation96_spill] sm:$0xff] }
0x131c   : > { %v10827_v37 = vadd.f32 %v10795_v55, %v8969_v25  ;;  %v10591_v4 = vsub.f32 1.0, %v21397_v7  ;;  %v21400_v25 = vld [vmem:[#allocation50_spill] sm:$0xff]  ;;  %v10622_v12 = vmul.f32 %v10590_v5, %v21405_v48  ;;  %v21420_v5 = vld [vmem:[#allocation123_spill] sm:$0xff] }
0x131d   : > { %v10826_v42 = vadd.f32 %v10794_v8, %v8968_v39  ;;  %13215 = vmatprep.subr.msk.bf16.mxu1 %vm19800_vm1, %v13213_v49  ;;  %v6778_v55 = vadd.f32 %v21400_v25, %v21399_v24  ;;  %v21401_v49 = vld [vmem:[#allocation158_spill] sm:$0xff]  ;;  %v21421_v24 = vld [vmem:[#allocation169_spill] sm:$0xff] }
0x131e   : > { %v10623_v39 = vmul.f32 %v10591_v4, %v21401_v49  ;;  %v21418_v4 = vld [vmem:[#allocation55_spill] sm:$0xff] }
0x131f   : > { %v13216_v23 = vpack.c.bf16 %v10827_v37, %v10826_v42  ;;  %v21402_v42 = vld [vmem:[#allocation142_spill] sm:$0xff] }
0x1320   : > { %v10575_v15 = vsub.f32 1.0, %v21402_v42 }
0x1321   : > { %13218 = vmatpush3.bf16.xpose.msk.msra.mxu1 %vm19800_vm1, %v13216_v23  ;;  %v10709_v16 = vpop.permute.xlu1 %10708  ;;  %v21403_v23 = vld [vmem:[#allocation32_spill] sm:$0xff] }
0x1322   : > { %v10781_v11 = vmul.f32 %v19553_v40, %v10709_v16  ;;  %v10707_v45 = vpop.permute.xlu0 %10706  ;;  %v6777_v16 = vadd.f32 %v21404_v1, %v21403_v23 }
0x1323   : > { %v10780_v63 = vmul.f32 %v19561_v53, %v10707_v45  ;;  %v21394_v53 = vld [vmem:[#allocation72_spill] sm:$0xff] }
0x1324   : > { %v10813_v6 = vadd.f32 %v10781_v11, %v10621_v50  ;;  %v6759_v52 = vadd.f32 %v21395_v43, %v21394_v53  ;;  %v10574_v50 = vsub.f32 1.0, %v21406_v19  ;;  %v8989_v11 = vadd.f32 %v21401_v49, %v6778_v55  ;;  %v21422_v49 = vld [vmem:[#allocation64_spill] sm:$0xff] }
0x1325   : > { %v10812_v26 = vadd.f32 %v10780_v63, %v10620_v41  ;;  %v10677_v17 = vpop.permute.xlu1 %10676  ;;  %v6762_v41 = vadd.f32 %v21408_v35, %v21407_v56  ;;  %v21409_v63 = vld [vmem:[#allocation167_spill] sm:$0xff] }
0x1326   : > { %v10845_v40 = vadd.f32 %v10813_v6, %v8987_v9  ;;  %v10765_v44 = vmul.f32 %v21386_v28, %v10677_v17  ;;  %v10675_v59 = vpop.permute.xlu0 %10674  ;;  %v8970_v22 = vadd.f32 %v21396_v60, %v6759_v52  ;;  %v8988_v28 = vadd.f32 %v21405_v48, %v6777_v16  ;;  %v21413_v52 = vld [vmem:[#allocation147_spill] sm:$0xff]  ;;  %v21423_v16 = vld [vmem:[#allocation26_spill] sm:$0xff]  ;;  %v21424_v48 = vld [vmem:[#allocation144_spill] sm:$0xff] }
0x1327   : > { %v10844_v10 = vadd.f32 %v10812_v26, %v8986_v18  ;;  %v10764_v57 = vmul.f32 %v21390_v2, %v10675_v59  ;;  %v10607_v2 = vmul.f32 %v10575_v15, %v21409_v63  ;;  %v21410_v18 = vld [vmem:[#allocation24_spill] sm:$0xff]  ;;  %v21411_v26 = vld [vmem:[#allocation118_spill] sm:$0xff]  ;;  %v8973_v38 = vadd.f32 %v21409_v63, %v6762_v41 }
0x1328   : > { %v10797_v36 = vadd.f32 %v10765_v44, %v10605_v29  ;;  %v6761_v17 = vadd.f32 %v21411_v26, %v21410_v18  ;;  %v10593_v60 = vsub.f32 1.0, %v21413_v52  ;;  %v21429_v26 = vld [vmem:[#allocation63_spill] sm:$0xff] }
0x1329   : > { %v13219_v32 = vpack.c.bf16 %v10845_v40, %v10844_v10  ;;  %v10796_v14 = vadd.f32 %v10764_v57, %v10604_v61  ;;  %v21412_v40 = vld [vmem:[#allocation163_spill] sm:$0xff]  ;;  %v21414_v61 = vld [vmem:[#allocation62_spill] sm:$0xff] }
0x132a   : > { %v10829_v62 = vadd.f32 %v10797_v36, %v8971_v27  ;;  %v10606_v51 = vmul.f32 %v10574_v50, %v21412_v40  ;;  %v8972_v44 = vadd.f32 %v21412_v40, %v6761_v17  ;;  %v10592_v57 = vsub.f32 1.0, %v21414_v61  ;;  %v21415_v36 = vld [vmem:[#allocation95_spill] sm:$0xff] }
0x132b   : > { %v10828_v31 = vadd.f32 %v10796_v14, %v8970_v22  ;;  %13221 = vmatprep.subr.msk.bf16.mxu1 %vm19800_vm1, %v13219_v32  ;;  %v21416_v32 = vld [vmem:[#allocation133_spill] sm:$0xff]  ;;  %v21417_v14 = vld [vmem:[#allocation152_spill] sm:$0xff]  ;;  %v10595_v17 = vsub.f32 1.0, %v21429_v26 }
0x132c   : > { %v6780_v22 = vadd.f32 %v21416_v32, %v21415_v36  ;;  %v10624_v25 = vmul.f32 %v10592_v57, %v21421_v24  ;;  %v21436_v57 = vld [vmem:[#allocation126_spill] sm:$0xff]  ;;  %v21437_v36 = vld [vmem:[#allocation161_spill] sm:$0xff] }
0x132d   : > { %v13222_v46 = vpack.c.bf16 %v10829_v62, %v10828_v31  ;;  %v10625_v62 = vmul.f32 %v10593_v60, %v21417_v14 }
0x132f   : > { %13224 = vmatpush3.bf16.xpose.msk.msra.mxu1 %vm19800_vm1, %v13222_v46  ;;  %v10713_v20 = vpop.permute.xlu1 %10712  ;;  %v10577_v46 = vsub.f32 1.0, %v21418_v4 }
0x1330   : > { %v10783_v8 = vmul.f32 %v21397_v7, %v10713_v20  ;;  %v10711_v37 = vpop.permute.xlu0 %10710 }
0x1331   : > { %v10782_v21 = vmul.f32 %v21398_v33, %v10711_v37  ;;  %v21419_v33 = vld [vmem:[#allocation31_spill] sm:$0xff] }
0x1332   : > { %v10815_v45 = vadd.f32 %v10783_v8, %v10623_v39  ;;  %v6779_v20 = vadd.f32 %v21420_v5, %v21419_v33  ;;  %v10576_v39 = vsub.f32 1.0, %v21422_v49  ;;  %v8991_v8 = vadd.f32 %v21417_v14, %v6780_v22  ;;  %v21438_v14 = vld [vmem:[#allocation140_spill] sm:$0xff] }
0x1333   : > { %v10814_v54 = vadd.f32 %v10782_v21, %v10622_v12  ;;  %v10681_v47 = vpop.permute.xlu1 %10680  ;;  %v6764_v12 = vadd.f32 %v21424_v48, %v21423_v16  ;;  %v21425_v21 = vld [vmem:[#allocation172_spill] sm:$0xff] }
0x1334   : > { %v10847_v3 = vadd.f32 %v10815_v45, %v8989_v11  ;;  %v10767_v34 = vmul.f32 %v21402_v42, %v10681_v47  ;;  %v10679_v9 = vpop.permute.xlu0 %10678  ;;  %v8990_v42 = vadd.f32 %v21421_v24, %v6779_v20  ;;  %v21439_v20 = vld [vmem:[#allocation84_spill] sm:$0xff]  ;;  %v21440_v24 = vld [vmem:[#allocation103_spill] sm:$0xff] }
0x1335   : > { %v10846_v6 = vadd.f32 %v10814_v54, %v8988_v28  ;;  %v10766_v58 = vmul.f32 %v21406_v19, %v10679_v9  ;;  %v10609_v19 = vmul.f32 %v10577_v46, %v21425_v21  ;;  %v21426_v28 = vld [vmem:[#allocation78_spill] sm:$0xff]  ;;  %v21427_v54 = vld [vmem:[#allocation137_spill] sm:$0xff]  ;;  %v8975_v41 = vadd.f32 %v21425_v21, %v6764_v12 }
0x1336   : > { %v10799_v30 = vadd.f32 %v10767_v34, %v10607_v2  ;;  %v6763_v47 = vadd.f32 %v21427_v54, %v21426_v28  ;;  %v21445_v54 = vld [vmem:[#allocation77_spill] sm:$0xff] }
0x1337   : > { %v13225_v29 = vpack.c.bf16 %v10847_v3, %v10846_v6  ;;  %v10798_v59 = vadd.f32 %v10766_v58, %v10606_v51  ;;  %v21428_v3 = vld [vmem:[#allocation168_spill] sm:$0xff]  ;;  %v21430_v51 = vld [vmem:[#allocation65_spill] sm:$0xff] }
0x1338   : > { %v10831_v10 = vadd.f32 %v10799_v30, %v8973_v38  ;;  %v10608_v56 = vmul.f32 %v10576_v39, %v21428_v3  ;;  %v8974_v34 = vadd.f32 %v21428_v3, %v6763_v47  ;;  %v10594_v58 = vsub.f32 1.0, %v21430_v51  ;;  %v21431_v30 = vld [vmem:[#allocation97_spill] sm:$0xff] }
0x1339   : > { %v10830_v53 = vadd.f32 %v10798_v59, %v8972_v44  ;;  %13227 = vmatprep.subr.msk.bf16.mxu1 %vm19800_vm1, %v13225_v29  ;;  %v21432_v29 = vld [vmem:[#allocation49_spill] sm:$0xff]  ;;  %v10597_v47 = vsub.f32 1.0, %v21445_v54 }
0x133a   : > { %v6782_v44 = vadd.f32 %v21432_v29, %v21431_v30  ;;  %v21433_v59 = vld [vmem:[#allocation153_spill] sm:$0xff]  ;;  %v10626_v32 = vmul.f32 %v10594_v58, %v21437_v36  ;;  %v21453_v30 = vld [vmem:[#allocation164_spill] sm:$0xff] }
0x133b   : > { %v13228_v43 = vpack.c.bf16 %v10831_v10, %v10830_v53  ;;  %v10627_v10 = vmul.f32 %v10595_v17, %v21433_v59  ;;  %v21450_v17 = vld [vmem:[#allocation59_spill] sm:$0xff]  ;;  %v21452_v58 = vld [vmem:[#allocation149_spill] sm:$0xff] }
0x133d   : > { %13230 = vmatpush3.bf16.xpose.msk.msra.mxu1 %vm19800_vm1, %v13228_v43 }
0x1341   : > { %v10717_v27 = vpop.permute.xlu1 %10716 }
0x1342   : > { %v10785_v31 = vmul.f32 %v21413_v52, %v10717_v27  ;;  %v10715_v7 = vpop.permute.xlu0 %10714  ;;  %v21434_v52 = vld [vmem:[#allocation57_spill] sm:$0xff] }
0x1343   : > { %v10784_v55 = vmul.f32 %v21414_v61, %v10715_v7  ;;  %v10579_v60 = vsub.f32 1.0, %v21434_v52  ;;  %v21435_v61 = vld [vmem:[#allocation34_spill] sm:$0xff] }
0x1344   : > { %v10817_v37 = vadd.f32 %v10785_v31, %v10625_v62  ;;  %v6781_v27 = vadd.f32 %v21436_v57, %v21435_v61  ;;  %v10578_v62 = vsub.f32 1.0, %v21438_v14  ;;  %v8993_v31 = vadd.f32 %v21433_v59, %v6782_v44  ;;  %v21454_v59 = vld [vmem:[#allocation58_spill] sm:$0xff] }
0x1345   : > { %v10816_v15 = vadd.f32 %v10784_v55, %v10624_v25  ;;  %v10685_v23 = vpop.permute.xlu1 %10684  ;;  %v6766_v25 = vadd.f32 %v21440_v24, %v21439_v20  ;;  %v21441_v55 = vld [vmem:[#allocation174_spill] sm:$0xff] }
0x1346   : > { %v10849_v1 = vadd.f32 %v10817_v37, %v8991_v8  ;;  %v10769_v50 = vmul.f32 %v21418_v4, %v10685_v23  ;;  %v10683_v11 = vpop.permute.xlu0 %10682  ;;  %v8992_v4 = vadd.f32 %v21437_v36, %v6781_v27  ;;  %v21455_v27 = vld [vmem:[#allocation25_spill] sm:$0xff]  ;;  %v21456_v36 = vld [vmem:[#allocation139_spill] sm:$0xff] }
0x1347   : > { %v10848_v45 = vadd.f32 %v10816_v15, %v8990_v42  ;;  %v10768_v35 = vmul.f32 %v21422_v49, %v10683_v11  ;;  %v10611_v49 = vmul.f32 %v10579_v60, %v21441_v55  ;;  %v21442_v42 = vld [vmem:[#allocation76_spill] sm:$0xff]  ;;  %v21443_v15 = vld [vmem:[#allocation145_spill] sm:$0xff]  ;;  %v8977_v12 = vadd.f32 %v21441_v55, %v6766_v25 }
0x1348   : > { %v10801_v63 = vadd.f32 %v10769_v50, %v10609_v19  ;;  %v6765_v23 = vadd.f32 %v21443_v15, %v21442_v42 }
0x1349   : > { %v13231_v2 = vpack.c.bf16 %v10849_v1, %v10848_v45  ;;  %v10800_v9 = vadd.f32 %v10768_v35, %v10608_v56  ;;  %v21444_v1 = vld [vmem:[#allocation173_spill] sm:$0xff]  ;;  %v21446_v56 = vld [vmem:[#allocation148_spill] sm:$0xff] }
0x134a   : > { %v10833_v6 = vadd.f32 %v10801_v63, %v8975_v41  ;;  %v10610_v16 = vmul.f32 %v10578_v62, %v21444_v1  ;;  %v8976_v50 = vadd.f32 %v21444_v1, %v6765_v23  ;;  %v10596_v35 = vsub.f32 1.0, %v21446_v56  ;;  %v21447_v63 = vld [vmem:[#allocation36_spill] sm:$0xff] }
0x134b   : > { %v10832_v18 = vadd.f32 %v10800_v9, %v8974_v34  ;;  %13233 = vmatprep.subr.msk.bf16.mxu1 %vm19800_vm1, %v13231_v2  ;;  %v21448_v2 = vld [vmem:[#allocation150_spill] sm:$0xff]  ;;  %v21449_v9 = vld [vmem:[#allocation165_spill] sm:$0xff] }
0x134c   : > { %v6784_v34 = vadd.f32 %v21448_v2, %v21447_v63  ;;  %v10628_v29 = vmul.f32 %v10596_v35, %v21453_v30 }
0x134d   : > { %v13234_v40 = vpack.c.bf16 %v10833_v6, %v10832_v18  ;;  %v10629_v6 = vmul.f32 %v10597_v47, %v21449_v9 }
0x134f   : > { %13236 = vmatpush3.bf16.xpose.msk.msra.mxu1 %vm19800_vm1, %v13234_v40  ;;  %v10721_v38 = vpop.permute.xlu1 %10720  ;;  %v10581_v40 = vsub.f32 1.0, %v21450_v17 }
0x1350   : > { %v10787_v53 = vmul.f32 %v21429_v26, %v10721_v38  ;;  %v10719_v43 = vpop.permute.xlu0 %10718 }
0x1351   : > { %v10786_v22 = vmul.f32 %v21430_v51, %v10719_v43  ;;  %v21451_v51 = vld [vmem:[#allocation33_spill] sm:$0xff] }
0x1352   : > { %v10819_v7 = vadd.f32 %v10787_v53, %v10627_v10  ;;  %v6783_v38 = vadd.f32 %v21452_v58, %v21451_v51  ;;  %v10580_v10 = vsub.f32 1.0, %v21454_v59  ;;  %v8995_v53 = vadd.f32 %v21449_v9, %v6784_v34 }
0x1353   : > { %v10818_v46 = vadd.f32 %v10786_v22, %v10626_v32  ;;  %v10689_v33 = vpop.permute.xlu1 %10688  ;;  %v6768_v32 = vadd.f32 %v21456_v36, %v21455_v27  ;;  %v21457_v22 = vld [vmem:[#allocation17_spill] sm:$0xff] }
0x1354   : > { %v10851_v5 = vadd.f32 %v10819_v7, %v8993_v31  ;;  %v10771_v39 = vmul.f32 %v21434_v52, %v10689_v33  ;;  %v10687_v8 = vpop.permute.xlu0 %10686  ;;  %v8994_v52 = vadd.f32 %v21453_v30, %v6783_v38 }
0x1355   : > { %v10850_v37 = vadd.f32 %v10818_v46, %v8992_v4  ;;  %v10770_v48 = vmul.f32 %v21438_v14, %v10687_v8  ;;  %v10613_v14 = vmul.f32 %v10581_v40, %v21457_v22  ;;  %v21458_v4 = vld [vmem:[#allocation82_spill] sm:$0xff]  ;;  %v21459_v46 = vld [vmem:[#allocation143_spill] sm:$0xff]  ;;  %v8979_v25 = vadd.f32 %v21457_v22, %v6768_v32 }
0x1356   : > { %v10803_v21 = vadd.f32 %v10771_v39, %v10611_v49  ;;  %v6767_v33 = vadd.f32 %v21459_v46, %v21458_v4 }
0x1357   : > { %v13237_v19 = vpack.c.bf16 %v10851_v5, %v10850_v37  ;;  %v10802_v11 = vadd.f32 %v10770_v48, %v10610_v16  ;;  %v21460_v5 = vld [vmem:[#allocation175_spill] sm:$0xff] }
0x1358   : > { %v10835_v45 = vadd.f32 %v10803_v21, %v8977_v12  ;;  %v10612_v20 = vmul.f32 %v10580_v10, %v21460_v5  ;;  %v8978_v39 = vadd.f32 %v21460_v5, %v6767_v33 }
0x1359   : > { %v10834_v28 = vadd.f32 %v10802_v11, %v8976_v50  ;;  %13239 = vmatprep.subr.msk.bf16.mxu1 %vm19800_vm1, %v13237_v19 }
0x135b   : > { %v13240_v3 = vpack.c.bf16 %v10835_v45, %v10834_v28 }
0x135d   : > { %13242 = vmatpush3.bf16.xpose.msk.msra.mxu1 %vm19800_vm1, %v13240_v3  ;;  %v10725_v41 = vpop.permute.xlu1 %10724 }
0x135e   : > { %v10789_v18 = vmul.f32 %v21445_v54, %v10725_v41  ;;  %v10723_v26 = vpop.permute.xlu0 %10722 }
0x135f   : > { %v10788_v44 = vmul.f32 %v21446_v56, %v10723_v26 }
0x1360   : > { %v10821_v43 = vadd.f32 %v10789_v18, %v10629_v6 }
0x1361   : > { %v10820_v60 = vadd.f32 %v10788_v44, %v10628_v29  ;;  %v10693_v61 = vpop.permute.xlu1 %10692 }
0x1362   : > { %v10853_v57 = vadd.f32 %v10821_v43, %v8995_v53  ;;  %v10773_v62 = vmul.f32 %v21450_v17, %v10693_v61  ;;  %v10691_v31 = vpop.permute.xlu0 %10690 }
0x1363   : > { %v10852_v7 = vadd.f32 %v10820_v60, %v8994_v52  ;;  %v10772_v24 = vmul.f32 %v21454_v59, %v10691_v31 }
0x1364   : > { %v10805_v55 = vadd.f32 %v10773_v62, %v10613_v14 }
0x1365   : > { %v13243_v49 = vpack.c.bf16 %v10853_v57, %v10852_v7  ;;  %v10804_v8 = vadd.f32 %v10772_v24, %v10612_v20 }
0x1366   : > { %v10837_v37 = vadd.f32 %v10805_v55, %v8979_v25 }
0x1367   : > { %v10836_v42 = vadd.f32 %v10804_v8, %v8978_v39  ;;  %13245 = vmatprep.subr.msk.bf16.mxu1 %vm19800_vm1, %v13243_v49 }
0x1369   : > { %v13246_v15 = vpack.c.bf16 %v10837_v37, %v10836_v42 }
0x136b   : > { %13248 = vmatpush3.bf16.xpose.msk.msra.mxu1 %vm19800_vm1, %v13246_v15 }
0x1372   : > { %12312 = vmatmul.mubr.msk.f32.vlgmr.msra.gmra.mrb[0].mxu1 %vm1225_vm0, %v19765_v13 }
0x1373   : > { %v10860_v23 = vpop.permute.xlu0 %10859 }
0x1445   : > { %v11027_v1 = vpop.f32.mrb[0].mxu1 }
0x1446   : > { %v11028_v16 = vadd.f32 %v11027_v1, %v10860_v23  ;;  %v11029_v48 = vpop.f32.mrb[1].mxu1 }
0x1447   : > { %v11030_v12 = vadd.f32 %v11029_v48, %v10860_v23 }
0x1449   : > { %v11034_v21 = vcombine.low %v11028_v16, %v11030_v12 }
0x144b   : > { %11805 = vst.sshfl [vmem:[%s656_s18] sm:$0x33 pattern:$0x76325410] %v11034_v21 }
0x144c PF: > { %s21462_s1 = sld [smem:[#allocation16_spill]] }
0x1452   : > { %s31_s24 = sadd.s32 1, %s21462_s1  }
0x1453   : > { %p28_p9 = scmp.ge.s32.totalorder %s31_s24, 4  }
0x1455   :  { %30 = sbr.rel (!%p28_p9) target bundleno = 11 (0xb), region = 146 }
0x145c   :  { %11065 = vsyncpa [#allocation3], 1 }
0x145d   :  { %11067 = vsyncpa [#allocation3 + $0x1], 1 }
0x145e   :  { %11068 = vsyncpa [#allocation5], 1 }
0x145f   :  { %11069 = vsyncpa [#allocation8], 1 }
0x1460   :  { %11070 = vsyncpa [#allocation11], 1 }

</bundles_post_ra>
